<compile_context>
chip_gen: v5e
topology: v5e:2x2
jax: 0.10.0
libtpu: 0.0.40
codegen_flags: <defaults>
</compile_context>

<pallas_src>
import jax
import jax.numpy as jnp
import numpy as np
from jax.experimental import pallas as pl
from jax.experimental.pallas import tpu as pltpu

# ---- stand-in for the original `config` module -----------------------------
PAD = 0
MAX_LENGTH = 6               # decoder runs MAX_LENGTH + 1 steps
CLIP_FORWARD = 50.0
UNIFORM_INIT_RANGE = 0.1

VOCAB_SIZE = 64
HIDDEN = 32
NUM_LAYERS = 2
BATCH = 2
T_STEPS = MAX_LENGTH + 1     # range(1, MAX_LENGTH + 2) -> MAX_LENGTH + 1 steps

LANE = 128


def _round_up(x, m):
    return ((x + m - 1) // m) * m


# ---- Pallas kernel ----------------------------------------------------------
def decoder_kernel(xg0_ref,          # VMEM (T, N, 4Hp)  layer-0 input-half gates (+bias)
                   w_ih_ref,         # VMEM (L, Hp, 4Hp) padded W_ih^T (layer-0 entry unused)
                   w_hh_ref,         # VMEM (L, Hp, 4Hp) padded W_hh^T
                   b_ref,            # VMEM (L, 1, 4Hp)  padded b_ih+b_hh (layer-0 entry unused)
                   w_out_ref,        # VMEM (Hp, Vp)     padded output projection
                   h0_ref, c0_ref,   # VMEM (L, N, Hp)
                   logits_ref,       # VMEM (N, T, Vp)
                   h_out_ref, c_out_ref,   # VMEM (L, N, Hp)
                   tops_ref):        # VMEM scratch (T, N, Hp)
    T, N, G = xg0_ref.shape
    Hp = G // 4
    L = h0_ref.shape[0]

    h_init = tuple(h0_ref[l] for l in range(L))
    c_init = tuple(c0_ref[l] for l in range(L))

    def step(t, carry):
        h, c = carry
        new_h, new_c = [], []
        top = None
        for l in range(L):                                   # static layer unroll
            h_prev, c_prev = h[l], c[l]
            if l == 0:
                # Input half (and bias) precomputed for all steps outside the loop.
                gates = xg0_ref[t] + jnp.dot(
                    h_prev, w_hh_ref[0], preferred_element_type=jnp.float32)
            else:
                # Two dots instead of a lane-concatenate: zero cross-lane movement.
                gates = (jnp.dot(top, w_ih_ref[l], preferred_element_type=jnp.float32)
                         + jnp.dot(h_prev, w_hh_ref[l], preferred_element_type=jnp.float32)
                         + b_ref[l])
            # Each quarter is a whole 128-lane vreg slice (Hp = 128): no XLU extracts.
            i_g = jax.nn.sigmoid(gates[:, 0 * Hp:1 * Hp])
            f_g = jax.nn.sigmoid(gates[:, 1 * Hp:2 * Hp])
            g_g = jnp.tanh(gates[:, 2 * Hp:3 * Hp])
            o_g = jax.nn.sigmoid(gates[:, 3 * Hp:4 * Hp])
            c_new = f_g * c_prev + i_g * g_g
            h_new = o_g * jnp.tanh(c_new)
            # Carried state is clamped (clamp happens AFTER the LSTM call in
            # forward_step); the layer output (`top`) itself is NOT.
            new_h.append(jnp.clip(h_new, -CLIP_FORWARD, CLIP_FORWARD))
            new_c.append(jnp.clip(c_new, -CLIP_FORWARD, CLIP_FORWARD))
            top = h_new
        tops_ref[t] = top                                    # (N, Hp) lane-dense store
        return tuple(new_h), tuple(new_c)

    unroll = True if T <= 16 else 4
    h_fin, c_fin = jax.lax.fori_loop(0, T, step, (h_init, c_init), unroll=unroll)

    for l in range(L):
        h_out_ref[l] = h_fin[l]
        c_out_ref[l] = c_fin[l]

    # Output projection after the recurrence (off the serial chain), emitting
    # logits directly in (N, T, Vp) layout — lane-dense (T, Vp) stores.
    for n in range(N):
        logits_ref[n] = jnp.dot(tops_ref[:, n, :], w_out_ref[...],
                                preferred_element_type=jnp.float32)


# ---- host-side (jit-fused) weight re-layout helpers -------------------------
def _pad_gate_weight(w, H, Hp):
    """PyTorch (4H, H) gate weight -> (Hp, 4Hp) so that
    (x_pad @ out)[:, q*Hp : q*Hp+H] == x @ w[q*H:(q+1)*H].T  (padding lanes -> 0)."""
    wq = jnp.transpose(w.reshape(4, H, H), (0, 2, 1))            # (4, H_in, H_out)
    p = jnp.zeros((4, Hp, Hp), w.dtype).at[:, :H, :H].set(wq)    # (4, Hp_in, Hp_out)
    return jnp.transpose(p, (1, 0, 2)).reshape(Hp, 4 * Hp)


def _pad_gate_bias(b, H, Hp):
    return jnp.zeros((4, Hp), b.dtype).at[:, :H].set(b.reshape(4, H)).reshape(4 * Hp)


@jax.jit
def decoder_pallas(target, emb_table, w_ih, w_hh, b_ih, b_hh, w_out_weight,
                   h0, c0, src_len=None, encoder_outputs=None):
    """Mirrors Decoder.forward with attn_type='no' (src_len / encoder_outputs
    are accepted but unused on this path). Sizes derived from input shapes."""
    del src_len, encoder_outputs
    f32 = jnp.float32
    V, H = emb_table.shape
    L, N, _ = h0.shape
    T = T_STEPS
    Hp = _round_up(H, LANE)
    Vp = _round_up(V, LANE)

    emb_table = emb_table.astype(f32)
    w_ih = w_ih.astype(f32)
    w_hh = w_hh.astype(f32)
    b_sum = (b_ih + b_hh).astype(f32)
    w_out_weight = w_out_weight.astype(f32)

    # Teacher-forcing token ids -> embedding gather hoisted out of the kernel.
    ids = target[:, :T].astype(jnp.int32)                        # (N, T)
    x_all = jnp.take(emb_table, ids, axis=0)                     # (N, T, H)

    # Padded gate layout: quarter q lives at lanes [q*Hp, q*Hp + H).
    w_ih_p = jnp.stack([_pad_gate_weight(w_ih[l], H, Hp) for l in range(L)])  # (L, Hp, 4Hp)
    w_hh_p = jnp.stack([_pad_gate_weight(w_hh[l], H, Hp) for l in range(L)])  # (L, Hp, 4Hp)
    b_p = jnp.stack([_pad_gate_bias(b_sum[l], H, Hp) for l in range(L)])      # (L, 4Hp)

    # Input half of layer-0 gates for all steps, bias folded in: one batched matmul.
    xg0 = jnp.einsum('nth,hg->tng', x_all, w_ih_p[0, :H, :]) + b_p[0]         # (T, N, 4Hp)

    b_in = b_p.reshape(L, 1, 4 * Hp)
    w_out_p = jnp.zeros((Hp, Vp), f32).at[:H, :V].set(w_out_weight.T)
    h0_p = jnp.zeros((L, N, Hp), f32).at[:, :, :H].set(h0.astype(f32))
    c0_p = jnp.zeros((L, N, Hp), f32).at[:, :, :H].set(c0.astype(f32))

    def full(shape):
        return pl.BlockSpec(shape, lambda i: (0,) * len(shape))

    logits_p, h_t_p, c_t_p = pl.pallas_call(
        decoder_kernel,
        out_shape=(
            jax.ShapeDtypeStruct((N, T, Vp), f32),
            jax.ShapeDtypeStruct((L, N, Hp), f32),
            jax.ShapeDtypeStruct((L, N, Hp), f32),
        ),
        grid_spec=pltpu.PrefetchScalarGridSpec(
            num_scalar_prefetch=0,
            grid=(1,),                          # whole recurrence in one invocation
            in_specs=[
                full((T, N, 4 * Hp)),           # xg0
                full((L, Hp, 4 * Hp)),          # W_ih (padded)
                full((L, Hp, 4 * Hp)),          # W_hh (padded)
                full((L, 1, 4 * Hp)),           # fused bias (padded)
                full((Hp, Vp)),                 # output projection (padded)
                full((L, N, Hp)),               # h0
                full((L, N, Hp)),               # c0
            ],
            out_specs=[
                full((N, T, Vp)),               # logits (lane-dense, no wrapper transpose)
                full((L, N, Hp)),               # h_T
                full((L, N, Hp)),               # c_T
            ],
            scratch_shapes=[pltpu.VMEM((T, N, Hp), f32)],   # per-step tops
        ),
        compiler_params=pltpu.CompilerParams(
            dimension_semantics=("arbitrary",)),   # sequential time recurrence
    )(xg0, w_ih_p, w_hh_p, b_in, w_out_p, h0_p, c0_p)

    decoder_outputs = logits_p[:, :, :V]          # (N, T, V)
    h_t = h_t_p[:, :, :H]                         # (L, N, H)
    c_t = c_t_p[:, :, :H]
    return decoder_outputs, h_t, c_t


# ---- pure-JAX reference (mirrors the PyTorch forward) ------------------------
def decoder_ref(target, emb_table, w_ih, w_hh, b_ih, b_hh, w_out_weight, h0, c0):
    H = HIDDEN
    h = h0.astype(jnp.float32)
    c = c0.astype(jnp.float32)
    outs = []
    for t in range(T_STEPS):
        top = emb_table[target[:, t]]
        h_new, c_new = [], []
        for l in range(NUM_LAYERS):
            gates = top @ w_ih[l].T + h[l] @ w_hh[l].T + b_ih[l] + b_hh[l]
            i_g = jax.nn.sigmoid(gates[:, :H])
            f_g = jax.nn.sigmoid(gates[:, H:2 * H])
            g_g = jnp.tanh(gates[:, 2 * H:3 * H])
            o_g = jax.nn.sigmoid(gates[:, 3 * H:])
            c_n = f_g * c[l] + i_g * g_g
            h_n = o_g * jnp.tanh(c_n)
            h_new.append(jnp.clip(h_n, -CLIP_FORWARD, CLIP_FORWARD))
            c_new.append(jnp.clip(c_n, -CLIP_FORWARD, CLIP_FORWARD))
            top = h_n
        h = jnp.stack(h_new)
        c = jnp.stack(c_new)
        outs.append(top @ w_out_weight.T)
    return jnp.stack(outs, axis=1), h, c


# ---- driver ------------------------------------------------------------------
if __name__ == "__main__":
    key = jax.random.PRNGKey(0)
    ks = jax.random.split(key, 10)
    u = UNIFORM_INIT_RANGE

    # Deterministic parameter init (uniform in [-u, u], as in initialization()).
    emb_table = jax.random.uniform(ks[0], (VOCAB_SIZE, HIDDEN), jnp.float32, -u, u)
    emb_table = emb_table.at[PAD].set(0.0)              # padding_idx row is zero
    w_ih = jax.random.uniform(ks[1], (NUM_LAYERS, 4 * HIDDEN, HIDDEN), jnp.float32, -u, u)
    w_hh = jax.random.uniform(ks[2], (NUM_LAYERS, 4 * HIDDEN, HIDDEN), jnp.float32, -u, u)
    b_ih = jax.random.uniform(ks[3], (NUM_LAYERS, 4 * HIDDEN), jnp.float32, -u, u)
    b_hh = jax.random.uniform(ks[4], (NUM_LAYERS, 4 * HIDDEN), jnp.float32, -u, u)
    w_out_weight = jax.random.uniform(ks[5], (VOCAB_SIZE, HIDDEN), jnp.float32, -u, u)

    # Example inputs.
    target = jax.random.randint(ks[6], (BATCH, MAX_LENGTH + 2), 0, VOCAB_SIZE, jnp.int32)
    h0 = jax.random.uniform(ks[7], (NUM_LAYERS, BATCH, HIDDEN), jnp.float32, -1.0, 1.0)
    c0 = jax.random.uniform(ks[8], (NUM_LAYERS, BATCH, HIDDEN), jnp.float32, -1.0, 1.0)
    src_len = jnp.full((BATCH,), 16, jnp.int32)                      # unused (attn='no')
    encoder_outputs = jax.random.normal(ks[9], (BATCH, 16, HIDDEN))  # unused (attn='no')

    out, h_t, c_t = decoder_pallas(target, emb_table, w_ih, w_hh, b_ih, b_hh,
                                   w_out_weight, h0, c0,
                                   src_len=src_len, encoder_outputs=encoder_outputs)
    jax.block_until_ready((out, h_t, c_t))

    ref_out, ref_h, ref_c = decoder_ref(target, emb_table, w_ih, w_hh, b_ih, b_hh,
                                        w_out_weight, h0, c0)
    assert out.shape == (BATCH, T_STEPS, VOCAB_SIZE)
    assert h_t.shape == (NUM_LAYERS, BATCH, HIDDEN)
    assert c_t.shape == (NUM_LAYERS, BATCH, HIDDEN)
    assert np.allclose(np.asarray(out), np.asarray(ref_out), atol=2e-3, rtol=2e-3)
    assert np.allclose(np.asarray(h_t), np.asarray(ref_h), atol=2e-3, rtol=2e-3)
    assert np.allclose(np.asarray(c_t), np.asarray(ref_c), atol=2e-3, rtol=2e-3)

    print("KERNEL_OK")
</pallas_src>

<mosaic_0001>
module attributes {stable_mosaic.version = 11 : i64} {
  func.func @decoder_kernel(%arg0: i32, %arg1: memref<7x2x512xf32, #tpu.memory_space<vmem>>, %arg2: memref<2x128x512xf32, #tpu.memory_space<vmem>>, %arg3: memref<2x128x512xf32, #tpu.memory_space<vmem>>, %arg4: memref<2x1x512xf32, #tpu.memory_space<vmem>>, %arg5: memref<128x128xf32, #tpu.memory_space<vmem>>, %arg6: memref<2x2x128xf32, #tpu.memory_space<vmem>>, %arg7: memref<2x2x128xf32, #tpu.memory_space<vmem>>, %arg8: memref<2x7x128xf32, #tpu.memory_space<vmem>>, %arg9: memref<2x2x128xf32, #tpu.memory_space<vmem>>, %arg10: memref<2x2x128xf32, #tpu.memory_space<vmem>>, %arg11: memref<7x2x128xf32, #tpu.memory_space<vmem>>) attributes {dimension_semantics = [#tpu.dimension_semantics<arbitrary>], iteration_bounds = array<i64: 1>, scalar_prefetch = 0 : i64, scratch_operands = 1 : i64, tpu.core_type = #tpu.core_type<tc>, window_params = [{pipeline_mode = #tpu.pipeline_mode<synchronous>, transform_indices = @transform_0, window_bounds = array<i64: 7, 2, 512>}, {pipeline_mode = #tpu.pipeline_mode<synchronous>, transform_indices = @transform_1, window_bounds = array<i64: 2, 128, 512>}, {pipeline_mode = #tpu.pipeline_mode<synchronous>, transform_indices = @transform_2, window_bounds = array<i64: 2, 128, 512>}, {pipeline_mode = #tpu.pipeline_mode<synchronous>, transform_indices = @transform_3, window_bounds = array<i64: 2, 1, 512>}, {pipeline_mode = #tpu.pipeline_mode<synchronous>, transform_indices = @transform_4, window_bounds = array<i64: 128, 128>}, {pipeline_mode = #tpu.pipeline_mode<synchronous>, transform_indices = @transform_5, window_bounds = array<i64: 2, 2, 128>}, {pipeline_mode = #tpu.pipeline_mode<synchronous>, transform_indices = @transform_6, window_bounds = array<i64: 2, 2, 128>}, {pipeline_mode = #tpu.pipeline_mode<synchronous>, transform_indices = @transform_7, window_bounds = array<i64: 2, 7, 128>}, {pipeline_mode = #tpu.pipeline_mode<synchronous>, transform_indices = @transform_8, window_bounds = array<i64: 2, 2, 128>}, {pipeline_mode = #tpu.pipeline_mode<synchronous>, transform_indices = @transform_9, window_bounds = array<i64: 2, 2, 128>}]} {
    %c0 = arith.constant 0 : index
    %c0_0 = arith.constant 0 : index
    %c0_1 = arith.constant 0 : index
    %0 = vector.load %arg6[%c0, %c0_0, %c0_1] : memref<2x2x128xf32, #tpu.memory_space<vmem>>, vector<1x2x128xf32>
    %1 = vector.shape_cast %0 : vector<1x2x128xf32> to vector<2x128xf32>
    %c1 = arith.constant 1 : index
    %c0_2 = arith.constant 0 : index
    %c0_3 = arith.constant 0 : index
    %2 = vector.load %arg6[%c1, %c0_2, %c0_3] : memref<2x2x128xf32, #tpu.memory_space<vmem>>, vector<1x2x128xf32>
    %3 = vector.shape_cast %2 : vector<1x2x128xf32> to vector<2x128xf32>
    %c0_4 = arith.constant 0 : index
    %c0_5 = arith.constant 0 : index
    %c0_6 = arith.constant 0 : index
    %4 = vector.load %arg7[%c0_4, %c0_5, %c0_6] : memref<2x2x128xf32, #tpu.memory_space<vmem>>, vector<1x2x128xf32>
    %5 = vector.shape_cast %4 : vector<1x2x128xf32> to vector<2x128xf32>
    %c1_7 = arith.constant 1 : index
    %c0_8 = arith.constant 0 : index
    %c0_9 = arith.constant 0 : index
    %6 = vector.load %arg7[%c1_7, %c0_8, %c0_9] : memref<2x2x128xf32, #tpu.memory_space<vmem>>, vector<1x2x128xf32>
    %7 = vector.shape_cast %6 : vector<1x2x128xf32> to vector<2x128xf32>
    %c0_i32 = arith.constant 0 : i32
    %8 = arith.index_cast %c0_i32 : i32 to index
    %c0_10 = arith.constant 0 : index
    %c0_11 = arith.constant 0 : index
    %9 = vector.load %arg1[%8, %c0_10, %c0_11] : memref<7x2x512xf32, #tpu.memory_space<vmem>>, vector<1x2x512xf32>
    %10 = vector.shape_cast %9 : vector<1x2x512xf32> to vector<2x512xf32>
    %c0_12 = arith.constant 0 : index
    %c0_13 = arith.constant 0 : index
    %c0_14 = arith.constant 0 : index
    %11 = vector.load %arg3[%c0_12, %c0_13, %c0_14] : memref<2x128x512xf32, #tpu.memory_space<vmem>>, vector<1x128x512xf32>
    %12 = vector.shape_cast %11 : vector<1x128x512xf32> to vector<128x512xf32>
    %cst = arith.constant dense<0.000000e+00> : vector<2x512xf32>
    %13 = tpu.matmul %1, %12, %cst {dimension_numbers = #tpu.dot_dimension_numbers<[1], [0], [0], [1], [0, 0, 1, 1], [], []>} : vector<2x128xf32>, vector<128x512xf32>, vector<2x512xf32> -> vector<2x512xf32>
    %14 = arith.addf %10, %13 : vector<2x512xf32>
    %15 = vector.extract_strided_slice %14 {offsets = [0, 0], sizes = [2, 128], strides = [1, 1]} : vector<2x512xf32> to vector<2x128xf32>
    %16 = arith.negf %15 : vector<2x128xf32>
    %17 = math.exp %16 : vector<2x128xf32>
    %cst_15 = arith.constant 1.000000e+00 : f32
    %18 = vector.broadcast %cst_15 : f32 to vector<2x128xf32>
    %19 = arith.addf %18, %17 : vector<2x128xf32>
    %20 = arith.divf %18, %19 : vector<2x128xf32>
    %21 = vector.extract_strided_slice %14 {offsets = [0, 128], sizes = [2, 128], strides = [1, 1]} : vector<2x512xf32> to vector<2x128xf32>
    %22 = arith.negf %21 : vector<2x128xf32>
    %23 = math.exp %22 : vector<2x128xf32>
    %cst_16 = arith.constant 1.000000e+00 : f32
    %24 = vector.broadcast %cst_16 : f32 to vector<2x128xf32>
    %25 = arith.addf %24, %23 : vector<2x128xf32>
    %26 = arith.divf %24, %25 : vector<2x128xf32>
    %27 = vector.extract_strided_slice %14 {offsets = [0, 256], sizes = [2, 128], strides = [1, 1]} : vector<2x512xf32> to vector<2x128xf32>
    %28 = math.tanh %27 : vector<2x128xf32>
    %29 = vector.extract_strided_slice %14 {offsets = [0, 384], sizes = [2, 128], strides = [1, 1]} : vector<2x512xf32> to vector<2x128xf32>
    %30 = arith.negf %29 : vector<2x128xf32>
    %31 = math.exp %30 : vector<2x128xf32>
    %cst_17 = arith.constant 1.000000e+00 : f32
    %32 = vector.broadcast %cst_17 : f32 to vector<2x128xf32>
    %33 = arith.addf %32, %31 : vector<2x128xf32>
    %34 = arith.divf %32, %33 : vector<2x128xf32>
    %35 = arith.mulf %26, %5 : vector<2x128xf32>
    %36 = arith.mulf %20, %28 : vector<2x128xf32>
    %37 = arith.addf %35, %36 : vector<2x128xf32>
    %38 = math.tanh %37 : vector<2x128xf32>
    %39 = arith.mulf %34, %38 : vector<2x128xf32>
    %cst_18 = arith.constant -5.000000e+01 : f32
    %cst_19 = arith.constant 5.000000e+01 : f32
    %40 = vector.broadcast %cst_18 : f32 to vector<2x128xf32>
    %41 = arith.maximumf %40, %39 : vector<2x128xf32>
    %42 = vector.broadcast %cst_19 : f32 to vector<2x128xf32>
    %43 = arith.minimumf %42, %41 : vector<2x128xf32>
    %cst_20 = arith.constant -5.000000e+01 : f32
    %cst_21 = arith.constant 5.000000e+01 : f32
    %44 = vector.broadcast %cst_20 : f32 to vector<2x128xf32>
    %45 = arith.maximumf %44, %37 : vector<2x128xf32>
    %46 = vector.broadcast %cst_21 : f32 to vector<2x128xf32>
    %47 = arith.minimumf %46, %45 : vector<2x128xf32>
    %c1_22 = arith.constant 1 : index
    %c0_23 = arith.constant 0 : index
    %c0_24 = arith.constant 0 : index
    %48 = vector.load %arg2[%c1_22, %c0_23, %c0_24] : memref<2x128x512xf32, #tpu.memory_space<vmem>>, vector<1x128x512xf32>
    %49 = vector.shape_cast %48 : vector<1x128x512xf32> to vector<128x512xf32>
    %cst_25 = arith.constant dense<0.000000e+00> : vector<2x512xf32>
    %50 = tpu.matmul %39, %49, %cst_25 {dimension_numbers = #tpu.dot_dimension_numbers<[1], [0], [0], [1], [0, 0, 1, 1], [], []>} : vector<2x128xf32>, vector<128x512xf32>, vector<2x512xf32> -> vector<2x512xf32>
    %c1_26 = arith.constant 1 : index
    %c0_27 = arith.constant 0 : index
    %c0_28 = arith.constant 0 : index
    %51 = vector.load %arg3[%c1_26, %c0_27, %c0_28] : memref<2x128x512xf32, #tpu.memory_space<vmem>>, vector<1x128x512xf32>
    %52 = vector.shape_cast %51 : vector<1x128x512xf32> to vector<128x512xf32>
    %cst_29 = arith.constant dense<0.000000e+00> : vector<2x512xf32>
    %53 = tpu.matmul %3, %52, %cst_29 {dimension_numbers = #tpu.dot_dimension_numbers<[1], [0], [0], [1], [0, 0, 1, 1], [], []>} : vector<2x128xf32>, vector<128x512xf32>, vector<2x512xf32> -> vector<2x512xf32>
    %54 = arith.addf %50, %53 : vector<2x512xf32>
    %c1_30 = arith.constant 1 : index
    %c0_31 = arith.constant 0 : index
    %c0_32 = arith.constant 0 : index
    %55 = vector.load %arg4[%c1_30, %c0_31, %c0_32] : memref<2x1x512xf32, #tpu.memory_space<vmem>>, vector<1x1x512xf32>
    %56 = vector.shape_cast %55 : vector<1x1x512xf32> to vector<1x512xf32>
    %57 = vector.broadcast %56 : vector<1x512xf32> to vector<2x512xf32>
    %58 = arith.addf %54, %57 : vector<2x512xf32>
    %59 = vector.extract_strided_slice %58 {offsets = [0, 0], sizes = [2, 128], strides = [1, 1]} : vector<2x512xf32> to vector<2x128xf32>
    %60 = arith.negf %59 : vector<2x128xf32>
    %61 = math.exp %60 : vector<2x128xf32>
    %cst_33 = arith.constant 1.000000e+00 : f32
    %62 = vector.broadcast %cst_33 : f32 to vector<2x128xf32>
    %63 = arith.addf %62, %61 : vector<2x128xf32>
    %64 = arith.divf %62, %63 : vector<2x128xf32>
    %65 = vector.extract_strided_slice %58 {offsets = [0, 128], sizes = [2, 128], strides = [1, 1]} : vector<2x512xf32> to vector<2x128xf32>
    %66 = arith.negf %65 : vector<2x128xf32>
    %67 = math.exp %66 : vector<2x128xf32>
    %cst_34 = arith.constant 1.000000e+00 : f32
    %68 = vector.broadcast %cst_34 : f32 to vector<2x128xf32>
    %69 = arith.addf %68, %67 : vector<2x128xf32>
    %70 = arith.divf %68, %69 : vector<2x128xf32>
    %71 = vector.extract_strided_slice %58 {offsets = [0, 256], sizes = [2, 128], strides = [1, 1]} : vector<2x512xf32> to vector<2x128xf32>
    %72 = math.tanh %71 : vector<2x128xf32>
    %73 = vector.extract_strided_slice %58 {offsets = [0, 384], sizes = [2, 128], strides = [1, 1]} : vector<2x512xf32> to vector<2x128xf32>
    %74 = arith.negf %73 : vector<2x128xf32>
    %75 = math.exp %74 : vector<2x128xf32>
    %cst_35 = arith.constant 1.000000e+00 : f32
    %76 = vector.broadcast %cst_35 : f32 to vector<2x128xf32>
    %77 = arith.addf %76, %75 : vector<2x128xf32>
    %78 = arith.divf %76, %77 : vector<2x128xf32>
    %79 = arith.mulf %70, %7 : vector<2x128xf32>
    %80 = arith.mulf %64, %72 : vector<2x128xf32>
    %81 = arith.addf %79, %80 : vector<2x128xf32>
    %82 = math.tanh %81 : vector<2x128xf32>
    %83 = arith.mulf %78, %82 : vector<2x128xf32>
    %cst_36 = arith.constant -5.000000e+01 : f32
    %cst_37 = arith.constant 5.000000e+01 : f32
    %84 = vector.broadcast %cst_36 : f32 to vector<2x128xf32>
    %85 = arith.maximumf %84, %83 : vector<2x128xf32>
    %86 = vector.broadcast %cst_37 : f32 to vector<2x128xf32>
    %87 = arith.minimumf %86, %85 : vector<2x128xf32>
    %cst_38 = arith.constant -5.000000e+01 : f32
    %cst_39 = arith.constant 5.000000e+01 : f32
    %88 = vector.broadcast %cst_38 : f32 to vector<2x128xf32>
    %89 = arith.maximumf %88, %81 : vector<2x128xf32>
    %90 = vector.broadcast %cst_39 : f32 to vector<2x128xf32>
    %91 = arith.minimumf %90, %89 : vector<2x128xf32>
    %92 = arith.index_cast %c0_i32 : i32 to index
    %c0_40 = arith.constant 0 : index
    %c0_41 = arith.constant 0 : index
    %93 = vector.load %arg11[%92, %c0_40, %c0_41] : memref<7x2x128xf32, #tpu.memory_space<vmem>>, vector<1x2x128xf32>
    %94 = vector.shape_cast %93 : vector<1x2x128xf32> to vector<2x128xf32>
    %95 = vector.shape_cast %83 : vector<2x128xf32> to vector<1x2x128xf32>
    tpu.vector_store %arg11[%92, %c0_40, %c0_41], %95 {strides = array<i32>} : memref<7x2x128xf32, #tpu.memory_space<vmem>>, vector<1x2x128xf32>,
    %c1_i32 = arith.constant 1 : i32
    %96 = arith.index_cast %c1_i32 : i32 to index
    %c0_42 = arith.constant 0 : index
    %c0_43 = arith.constant 0 : index
    %97 = vector.load %arg1[%96, %c0_42, %c0_43] : memref<7x2x512xf32, #tpu.memory_space<vmem>>, vector<1x2x512xf32>
    %98 = vector.shape_cast %97 : vector<1x2x512xf32> to vector<2x512xf32>
    %c0_44 = arith.constant 0 : index
    %c0_45 = arith.constant 0 : index
    %c0_46 = arith.constant 0 : index
    %99 = vector.load %arg3[%c0_44, %c0_45, %c0_46] : memref<2x128x512xf32, #tpu.memory_space<vmem>>, vector<1x128x512xf32>
    %100 = vector.shape_cast %99 : vector<1x128x512xf32> to vector<128x512xf32>
    %cst_47 = arith.constant dense<0.000000e+00> : vector<2x512xf32>
    %101 = tpu.matmul %43, %100, %cst_47 {dimension_numbers = #tpu.dot_dimension_numbers<[1], [0], [0], [1], [0, 0, 1, 1], [], []>} : vector<2x128xf32>, vector<128x512xf32>, vector<2x512xf32> -> vector<2x512xf32>
    %102 = arith.addf %98, %101 : vector<2x512xf32>
    %103 = vector.extract_strided_slice %102 {offsets = [0, 0], sizes = [2, 128], strides = [1, 1]} : vector<2x512xf32> to vector<2x128xf32>
    %104 = arith.negf %103 : vector<2x128xf32>
    %105 = math.exp %104 : vector<2x128xf32>
    %cst_48 = arith.constant 1.000000e+00 : f32
    %106 = vector.broadcast %cst_48 : f32 to vector<2x128xf32>
    %107 = arith.addf %106, %105 : vector<2x128xf32>
    %108 = arith.divf %106, %107 : vector<2x128xf32>
    %109 = vector.extract_strided_slice %102 {offsets = [0, 128], sizes = [2, 128], strides = [1, 1]} : vector<2x512xf32> to vector<2x128xf32>
    %110 = arith.negf %109 : vector<2x128xf32>
    %111 = math.exp %110 : vector<2x128xf32>
    %cst_49 = arith.constant 1.000000e+00 : f32
    %112 = vector.broadcast %cst_49 : f32 to vector<2x128xf32>
    %113 = arith.addf %112, %111 : vector<2x128xf32>
    %114 = arith.divf %112, %113 : vector<2x128xf32>
    %115 = vector.extract_strided_slice %102 {offsets = [0, 256], sizes = [2, 128], strides = [1, 1]} : vector<2x512xf32> to vector<2x128xf32>
    %116 = math.tanh %115 : vector<2x128xf32>
    %117 = vector.extract_strided_slice %102 {offsets = [0, 384], sizes = [2, 128], strides = [1, 1]} : vector<2x512xf32> to vector<2x128xf32>
    %118 = arith.negf %117 : vector<2x128xf32>
    %119 = math.exp %118 : vector<2x128xf32>
    %cst_50 = arith.constant 1.000000e+00 : f32
    %120 = vector.broadcast %cst_50 : f32 to vector<2x128xf32>
    %121 = arith.addf %120, %119 : vector<2x128xf32>
    %122 = arith.divf %120, %121 : vector<2x128xf32>
    %123 = arith.mulf %114, %47 : vector<2x128xf32>
    %124 = arith.mulf %108, %116 : vector<2x128xf32>
    %125 = arith.addf %123, %124 : vector<2x128xf32>
    %126 = math.tanh %125 : vector<2x128xf32>
    %127 = arith.mulf %122, %126 : vector<2x128xf32>
    %cst_51 = arith.constant -5.000000e+01 : f32
    %cst_52 = arith.constant 5.000000e+01 : f32
    %128 = vector.broadcast %cst_51 : f32 to vector<2x128xf32>
    %129 = arith.maximumf %128, %127 : vector<2x128xf32>
    %130 = vector.broadcast %cst_52 : f32 to vector<2x128xf32>
    %131 = arith.minimumf %130, %129 : vector<2x128xf32>
    %cst_53 = arith.constant -5.000000e+01 : f32
    %cst_54 = arith.constant 5.000000e+01 : f32
    %132 = vector.broadcast %cst_53 : f32 to vector<2x128xf32>
    %133 = arith.maximumf %132, %125 : vector<2x128xf32>
    %134 = vector.broadcast %cst_54 : f32 to vector<2x128xf32>
    %135 = arith.minimumf %134, %133 : vector<2x128xf32>
    %c1_55 = arith.constant 1 : index
    %c0_56 = arith.constant 0 : index
    %c0_57 = arith.constant 0 : index
    %136 = vector.load %arg2[%c1_55, %c0_56, %c0_57] : memref<2x128x512xf32, #tpu.memory_space<vmem>>, vector<1x128x512xf32>
    %137 = vector.shape_cast %136 : vector<1x128x512xf32> to vector<128x512xf32>
    %cst_58 = arith.constant dense<0.000000e+00> : vector<2x512xf32>
    %138 = tpu.matmul %127, %137, %cst_58 {dimension_numbers = #tpu.dot_dimension_numbers<[1], [0], [0], [1], [0, 0, 1, 1], [], []>} : vector<2x128xf32>, vector<128x512xf32>, vector<2x512xf32> -> vector<2x512xf32>
    %c1_59 = arith.constant 1 : index
    %c0_60 = arith.constant 0 : index
    %c0_61 = arith.constant 0 : index
    %139 = vector.load %arg3[%c1_59, %c0_60, %c0_61] : memref<2x128x512xf32, #tpu.memory_space<vmem>>, vector<1x128x512xf32>
    %140 = vector.shape_cast %139 : vector<1x128x512xf32> to vector<128x512xf32>
    %cst_62 = arith.constant dense<0.000000e+00> : vector<2x512xf32>
    %141 = tpu.matmul %87, %140, %cst_62 {dimension_numbers = #tpu.dot_dimension_numbers<[1], [0], [0], [1], [0, 0, 1, 1], [], []>} : vector<2x128xf32>, vector<128x512xf32>, vector<2x512xf32> -> vector<2x512xf32>
    %142 = arith.addf %138, %141 : vector<2x512xf32>
    %c1_63 = arith.constant 1 : index
    %c0_64 = arith.constant 0 : index
    %c0_65 = arith.constant 0 : index
    %143 = vector.load %arg4[%c1_63, %c0_64, %c0_65] : memref<2x1x512xf32, #tpu.memory_space<vmem>>, vector<1x1x512xf32>
    %144 = vector.shape_cast %143 : vector<1x1x512xf32> to vector<1x512xf32>
    %145 = vector.broadcast %144 : vector<1x512xf32> to vector<2x512xf32>
    %146 = arith.addf %142, %145 : vector<2x512xf32>
    %147 = vector.extract_strided_slice %146 {offsets = [0, 0], sizes = [2, 128], strides = [1, 1]} : vector<2x512xf32> to vector<2x128xf32>
    %148 = arith.negf %147 : vector<2x128xf32>
    %149 = math.exp %148 : vector<2x128xf32>
    %cst_66 = arith.constant 1.000000e+00 : f32
    %150 = vector.broadcast %cst_66 : f32 to vector<2x128xf32>
    %151 = arith.addf %150, %149 : vector<2x128xf32>
    %152 = arith.divf %150, %151 : vector<2x128xf32>
    %153 = vector.extract_strided_slice %146 {offsets = [0, 128], sizes = [2, 128], strides = [1, 1]} : vector<2x512xf32> to vector<2x128xf32>
    %154 = arith.negf %153 : vector<2x128xf32>
    %155 = math.exp %154 : vector<2x128xf32>
    %cst_67 = arith.constant 1.000000e+00 : f32
    %156 = vector.broadcast %cst_67 : f32 to vector<2x128xf32>
    %157 = arith.addf %156, %155 : vector<2x128xf32>
    %158 = arith.divf %156, %157 : vector<2x128xf32>
    %159 = vector.extract_strided_slice %146 {offsets = [0, 256], sizes = [2, 128], strides = [1, 1]} : vector<2x512xf32> to vector<2x128xf32>
    %160 = math.tanh %159 : vector<2x128xf32>
    %161 = vector.extract_strided_slice %146 {offsets = [0, 384], sizes = [2, 128], strides = [1, 1]} : vector<2x512xf32> to vector<2x128xf32>
    %162 = arith.negf %161 : vector<2x128xf32>
    %163 = math.exp %162 : vector<2x128xf32>
    %cst_68 = arith.constant 1.000000e+00 : f32
    %164 = vector.broadcast %cst_68 : f32 to vector<2x128xf32>
    %165 = arith.addf %164, %163 : vector<2x128xf32>
    %166 = arith.divf %164, %165 : vector<2x128xf32>
    %167 = arith.mulf %158, %91 : vector<2x128xf32>
    %168 = arith.mulf %152, %160 : vector<2x128xf32>
    %169 = arith.addf %167, %168 : vector<2x128xf32>
    %170 = math.tanh %169 : vector<2x128xf32>
    %171 = arith.mulf %166, %170 : vector<2x128xf32>
    %cst_69 = arith.constant -5.000000e+01 : f32
    %cst_70 = arith.constant 5.000000e+01 : f32
    %172 = vector.broadcast %cst_69 : f32 to vector<2x128xf32>
    %173 = arith.maximumf %172, %171 : vector<2x128xf32>
    %174 = vector.broadcast %cst_70 : f32 to vector<2x128xf32>
    %175 = arith.minimumf %174, %173 : vector<2x128xf32>
    %cst_71 = arith.constant -5.000000e+01 : f32
    %cst_72 = arith.constant 5.000000e+01 : f32
    %176 = vector.broadcast %cst_71 : f32 to vector<2x128xf32>
    %177 = arith.maximumf %176, %169 : vector<2x128xf32>
    %178 = vector.broadcast %cst_72 : f32 to vector<2x128xf32>
    %179 = arith.minimumf %178, %177 : vector<2x128xf32>
    %180 = arith.index_cast %c1_i32 : i32 to index
    %c0_73 = arith.constant 0 : index
    %c0_74 = arith.constant 0 : index
    %181 = vector.load %arg11[%180, %c0_73, %c0_74] : memref<7x2x128xf32, #tpu.memory_space<vmem>>, vector<1x2x128xf32>
    %182 = vector.shape_cast %181 : vector<1x2x128xf32> to vector<2x128xf32>
    %183 = vector.shape_cast %171 : vector<2x128xf32> to vector<1x2x128xf32>
    tpu.vector_store %arg11[%180, %c0_73, %c0_74], %183 {strides = array<i32>} : memref<7x2x128xf32, #tpu.memory_space<vmem>>, vector<1x2x128xf32>,
    %c2_i32 = arith.constant 2 : i32
    %184 = arith.index_cast %c2_i32 : i32 to index
    %c0_75 = arith.constant 0 : index
    %c0_76 = arith.constant 0 : index
    %185 = vector.load %arg1[%184, %c0_75, %c0_76] : memref<7x2x512xf32, #tpu.memory_space<vmem>>, vector<1x2x512xf32>
    %186 = vector.shape_cast %185 : vector<1x2x512xf32> to vector<2x512xf32>
    %c0_77 = arith.constant 0 : index
    %c0_78 = arith.constant 0 : index
    %c0_79 = arith.constant 0 : index
    %187 = vector.load %arg3[%c0_77, %c0_78, %c0_79] : memref<2x128x512xf32, #tpu.memory_space<vmem>>, vector<1x128x512xf32>
    %188 = vector.shape_cast %187 : vector<1x128x512xf32> to vector<128x512xf32>
    %cst_80 = arith.constant dense<0.000000e+00> : vector<2x512xf32>
    %189 = tpu.matmul %131, %188, %cst_80 {dimension_numbers = #tpu.dot_dimension_numbers<[1], [0], [0], [1], [0, 0, 1, 1], [], []>} : vector<2x128xf32>, vector<128x512xf32>, vector<2x512xf32> -> vector<2x512xf32>
    %190 = arith.addf %186, %189 : vector<2x512xf32>
    %191 = vector.extract_strided_slice %190 {offsets = [0, 0], sizes = [2, 128], strides = [1, 1]} : vector<2x512xf32> to vector<2x128xf32>
    %192 = arith.negf %191 : vector<2x128xf32>
    %193 = math.exp %192 : vector<2x128xf32>
    %cst_81 = arith.constant 1.000000e+00 : f32
    %194 = vector.broadcast %cst_81 : f32 to vector<2x128xf32>
    %195 = arith.addf %194, %193 : vector<2x128xf32>
    %196 = arith.divf %194, %195 : vector<2x128xf32>
    %197 = vector.extract_strided_slice %190 {offsets = [0, 128], sizes = [2, 128], strides = [1, 1]} : vector<2x512xf32> to vector<2x128xf32>
    %198 = arith.negf %197 : vector<2x128xf32>
    %199 = math.exp %198 : vector<2x128xf32>
    %cst_82 = arith.constant 1.000000e+00 : f32
    %200 = vector.broadcast %cst_82 : f32 to vector<2x128xf32>
    %201 = arith.addf %200, %199 : vector<2x128xf32>
    %202 = arith.divf %200, %201 : vector<2x128xf32>
    %203 = vector.extract_strided_slice %190 {offsets = [0, 256], sizes = [2, 128], strides = [1, 1]} : vector<2x512xf32> to vector<2x128xf32>
    %204 = math.tanh %203 : vector<2x128xf32>
    %205 = vector.extract_strided_slice %190 {offsets = [0, 384], sizes = [2, 128], strides = [1, 1]} : vector<2x512xf32> to vector<2x128xf32>
    %206 = arith.negf %205 : vector<2x128xf32>
    %207 = math.exp %206 : vector<2x128xf32>
    %cst_83 = arith.constant 1.000000e+00 : f32
    %208 = vector.broadcast %cst_83 : f32 to vector<2x128xf32>
    %209 = arith.addf %208, %207 : vector<2x128xf32>
    %210 = arith.divf %208, %209 : vector<2x128xf32>
    %211 = arith.mulf %202, %135 : vector<2x128xf32>
    %212 = arith.mulf %196, %204 : vector<2x128xf32>
    %213 = arith.addf %211, %212 : vector<2x128xf32>
    %214 = math.tanh %213 : vector<2x128xf32>
    %215 = arith.mulf %210, %214 : vector<2x128xf32>
    %cst_84 = arith.constant -5.000000e+01 : f32
    %cst_85 = arith.constant 5.000000e+01 : f32
    %216 = vector.broadcast %cst_84 : f32 to vector<2x128xf32>
    %217 = arith.maximumf %216, %215 : vector<2x128xf32>
    %218 = vector.broadcast %cst_85 : f32 to vector<2x128xf32>
    %219 = arith.minimumf %218, %217 : vector<2x128xf32>
    %cst_86 = arith.constant -5.000000e+01 : f32
    %cst_87 = arith.constant 5.000000e+01 : f32
    %220 = vector.broadcast %cst_86 : f32 to vector<2x128xf32>
    %221 = arith.maximumf %220, %213 : vector<2x128xf32>
    %222 = vector.broadcast %cst_87 : f32 to vector<2x128xf32>
    %223 = arith.minimumf %222, %221 : vector<2x128xf32>
    %c1_88 = arith.constant 1 : index
    %c0_89 = arith.constant 0 : index
    %c0_90 = arith.constant 0 : index
    %224 = vector.load %arg2[%c1_88, %c0_89, %c0_90] : memref<2x128x512xf32, #tpu.memory_space<vmem>>, vector<1x128x512xf32>
    %225 = vector.shape_cast %224 : vector<1x128x512xf32> to vector<128x512xf32>
    %cst_91 = arith.constant dense<0.000000e+00> : vector<2x512xf32>
    %226 = tpu.matmul %215, %225, %cst_91 {dimension_numbers = #tpu.dot_dimension_numbers<[1], [0], [0], [1], [0, 0, 1, 1], [], []>} : vector<2x128xf32>, vector<128x512xf32>, vector<2x512xf32> -> vector<2x512xf32>
    %c1_92 = arith.constant 1 : index
    %c0_93 = arith.constant 0 : index
    %c0_94 = arith.constant 0 : index
    %227 = vector.load %arg3[%c1_92, %c0_93, %c0_94] : memref<2x128x512xf32, #tpu.memory_space<vmem>>, vector<1x128x512xf32>
    %228 = vector.shape_cast %227 : vector<1x128x512xf32> to vector<128x512xf32>
    %cst_95 = arith.constant dense<0.000000e+00> : vector<2x512xf32>
    %229 = tpu.matmul %175, %228, %cst_95 {dimension_numbers = #tpu.dot_dimension_numbers<[1], [0], [0], [1], [0, 0, 1, 1], [], []>} : vector<2x128xf32>, vector<128x512xf32>, vector<2x512xf32> -> vector<2x512xf32>
    %230 = arith.addf %226, %229 : vector<2x512xf32>
    %c1_96 = arith.constant 1 : index
    %c0_97 = arith.constant 0 : index
    %c0_98 = arith.constant 0 : index
    %231 = vector.load %arg4[%c1_96, %c0_97, %c0_98] : memref<2x1x512xf32, #tpu.memory_space<vmem>>, vector<1x1x512xf32>
    %232 = vector.shape_cast %231 : vector<1x1x512xf32> to vector<1x512xf32>
    %233 = vector.broadcast %232 : vector<1x512xf32> to vector<2x512xf32>
    %234 = arith.addf %230, %233 : vector<2x512xf32>
    %235 = vector.extract_strided_slice %234 {offsets = [0, 0], sizes = [2, 128], strides = [1, 1]} : vector<2x512xf32> to vector<2x128xf32>
    %236 = arith.negf %235 : vector<2x128xf32>
    %237 = math.exp %236 : vector<2x128xf32>
    %cst_99 = arith.constant 1.000000e+00 : f32
    %238 = vector.broadcast %cst_99 : f32 to vector<2x128xf32>
    %239 = arith.addf %238, %237 : vector<2x128xf32>
    %240 = arith.divf %238, %239 : vector<2x128xf32>
    %241 = vector.extract_strided_slice %234 {offsets = [0, 128], sizes = [2, 128], strides = [1, 1]} : vector<2x512xf32> to vector<2x128xf32>
    %242 = arith.negf %241 : vector<2x128xf32>
    %243 = math.exp %242 : vector<2x128xf32>
    %cst_100 = arith.constant 1.000000e+00 : f32
    %244 = vector.broadcast %cst_100 : f32 to vector<2x128xf32>
    %245 = arith.addf %244, %243 : vector<2x128xf32>
    %246 = arith.divf %244, %245 : vector<2x128xf32>
    %247 = vector.extract_strided_slice %234 {offsets = [0, 256], sizes = [2, 128], strides = [1, 1]} : vector<2x512xf32> to vector<2x128xf32>
    %248 = math.tanh %247 : vector<2x128xf32>
    %249 = vector.extract_strided_slice %234 {offsets = [0, 384], sizes = [2, 128], strides = [1, 1]} : vector<2x512xf32> to vector<2x128xf32>
    %250 = arith.negf %249 : vector<2x128xf32>
    %251 = math.exp %250 : vector<2x128xf32>
    %cst_101 = arith.constant 1.000000e+00 : f32
    %252 = vector.broadcast %cst_101 : f32 to vector<2x128xf32>
    %253 = arith.addf %252, %251 : vector<2x128xf32>
    %254 = arith.divf %252, %253 : vector<2x128xf32>
    %255 = arith.mulf %246, %179 : vector<2x128xf32>
    %256 = arith.mulf %240, %248 : vector<2x128xf32>
    %257 = arith.addf %255, %256 : vector<2x128xf32>
    %258 = math.tanh %257 : vector<2x128xf32>
    %259 = arith.mulf %254, %258 : vector<2x128xf32>
    %cst_102 = arith.constant -5.000000e+01 : f32
    %cst_103 = arith.constant 5.000000e+01 : f32
    %260 = vector.broadcast %cst_102 : f32 to vector<2x128xf32>
    %261 = arith.maximumf %260, %259 : vector<2x128xf32>
    %262 = vector.broadcast %cst_103 : f32 to vector<2x128xf32>
    %263 = arith.minimumf %262, %261 : vector<2x128xf32>
    %cst_104 = arith.constant -5.000000e+01 : f32
    %cst_105 = arith.constant 5.000000e+01 : f32
    %264 = vector.broadcast %cst_104 : f32 to vector<2x128xf32>
    %265 = arith.maximumf %264, %257 : vector<2x128xf32>
    %266 = vector.broadcast %cst_105 : f32 to vector<2x128xf32>
    %267 = arith.minimumf %266, %265 : vector<2x128xf32>
    %268 = arith.index_cast %c2_i32 : i32 to index
    %c0_106 = arith.constant 0 : index
    %c0_107 = arith.constant 0 : index
    %269 = vector.load %arg11[%268, %c0_106, %c0_107] : memref<7x2x128xf32, #tpu.memory_space<vmem>>, vector<1x2x128xf32>
    %270 = vector.shape_cast %269 : vector<1x2x128xf32> to vector<2x128xf32>
    %271 = vector.shape_cast %259 : vector<2x128xf32> to vector<1x2x128xf32>
    tpu.vector_store %arg11[%268, %c0_106, %c0_107], %271 {strides = array<i32>} : memref<7x2x128xf32, #tpu.memory_space<vmem>>, vector<1x2x128xf32>,
    %c3_i32 = arith.constant 3 : i32
    %272 = arith.index_cast %c3_i32 : i32 to index
    %c0_108 = arith.constant 0 : index
    %c0_109 = arith.constant 0 : index
    %273 = vector.load %arg1[%272, %c0_108, %c0_109] : memref<7x2x512xf32, #tpu.memory_space<vmem>>, vector<1x2x512xf32>
    %274 = vector.shape_cast %273 : vector<1x2x512xf32> to vector<2x512xf32>
    %c0_110 = arith.constant 0 : index
    %c0_111 = arith.constant 0 : index
    %c0_112 = arith.constant 0 : index
    %275 = vector.load %arg3[%c0_110, %c0_111, %c0_112] : memref<2x128x512xf32, #tpu.memory_space<vmem>>, vector<1x128x512xf32>
    %276 = vector.shape_cast %275 : vector<1x128x512xf32> to vector<128x512xf32>
    %cst_113 = arith.constant dense<0.000000e+00> : vector<2x512xf32>
    %277 = tpu.matmul %219, %276, %cst_113 {dimension_numbers = #tpu.dot_dimension_numbers<[1], [0], [0], [1], [0, 0, 1, 1], [], []>} : vector<2x128xf32>, vector<128x512xf32>, vector<2x512xf32> -> vector<2x512xf32>
    %278 = arith.addf %274, %277 : vector<2x512xf32>
    %279 = vector.extract_strided_slice %278 {offsets = [0, 0], sizes = [2, 128], strides = [1, 1]} : vector<2x512xf32> to vector<2x128xf32>
    %280 = arith.negf %279 : vector<2x128xf32>
    %281 = math.exp %280 : vector<2x128xf32>
    %cst_114 = arith.constant 1.000000e+00 : f32
    %282 = vector.broadcast %cst_114 : f32 to vector<2x128xf32>
    %283 = arith.addf %282, %281 : vector<2x128xf32>
    %284 = arith.divf %282, %283 : vector<2x128xf32>
    %285 = vector.extract_strided_slice %278 {offsets = [0, 128], sizes = [2, 128], strides = [1, 1]} : vector<2x512xf32> to vector<2x128xf32>
    %286 = arith.negf %285 : vector<2x128xf32>
    %287 = math.exp %286 : vector<2x128xf32>
    %cst_115 = arith.constant 1.000000e+00 : f32
    %288 = vector.broadcast %cst_115 : f32 to vector<2x128xf32>
    %289 = arith.addf %288, %287 : vector<2x128xf32>
    %290 = arith.divf %288, %289 : vector<2x128xf32>
    %291 = vector.extract_strided_slice %278 {offsets = [0, 256], sizes = [2, 128], strides = [1, 1]} : vector<2x512xf32> to vector<2x128xf32>
    %292 = math.tanh %291 : vector<2x128xf32>
    %293 = vector.extract_strided_slice %278 {offsets = [0, 384], sizes = [2, 128], strides = [1, 1]} : vector<2x512xf32> to vector<2x128xf32>
    %294 = arith.negf %293 : vector<2x128xf32>
    %295 = math.exp %294 : vector<2x128xf32>
    %cst_116 = arith.constant 1.000000e+00 : f32
    %296 = vector.broadcast %cst_116 : f32 to vector<2x128xf32>
    %297 = arith.addf %296, %295 : vector<2x128xf32>
    %298 = arith.divf %296, %297 : vector<2x128xf32>
    %299 = arith.mulf %290, %223 : vector<2x128xf32>
    %300 = arith.mulf %284, %292 : vector<2x128xf32>
    %301 = arith.addf %299, %300 : vector<2x128xf32>
    %302 = math.tanh %301 : vector<2x128xf32>
    %303 = arith.mulf %298, %302 : vector<2x128xf32>
    %cst_117 = arith.constant -5.000000e+01 : f32
    %cst_118 = arith.constant 5.000000e+01 : f32
    %304 = vector.broadcast %cst_117 : f32 to vector<2x128xf32>
    %305 = arith.maximumf %304, %303 : vector<2x128xf32>
    %306 = vector.broadcast %cst_118 : f32 to vector<2x128xf32>
    %307 = arith.minimumf %306, %305 : vector<2x128xf32>
    %cst_119 = arith.constant -5.000000e+01 : f32
    %cst_120 = arith.constant 5.000000e+01 : f32
    %308 = vector.broadcast %cst_119 : f32 to vector<2x128xf32>
    %309 = arith.maximumf %308, %301 : vector<2x128xf32>
    %310 = vector.broadcast %cst_120 : f32 to vector<2x128xf32>
    %311 = arith.minimumf %310, %309 : vector<2x128xf32>
    %c1_121 = arith.constant 1 : index
    %c0_122 = arith.constant 0 : index
    %c0_123 = arith.constant 0 : index
    %312 = vector.load %arg2[%c1_121, %c0_122, %c0_123] : memref<2x128x512xf32, #tpu.memory_space<vmem>>, vector<1x128x512xf32>
    %313 = vector.shape_cast %312 : vector<1x128x512xf32> to vector<128x512xf32>
    %cst_124 = arith.constant dense<0.000000e+00> : vector<2x512xf32>
    %314 = tpu.matmul %303, %313, %cst_124 {dimension_numbers = #tpu.dot_dimension_numbers<[1], [0], [0], [1], [0, 0, 1, 1], [], []>} : vector<2x128xf32>, vector<128x512xf32>, vector<2x512xf32> -> vector<2x512xf32>
    %c1_125 = arith.constant 1 : index
    %c0_126 = arith.constant 0 : index
    %c0_127 = arith.constant 0 : index
    %315 = vector.load %arg3[%c1_125, %c0_126, %c0_127] : memref<2x128x512xf32, #tpu.memory_space<vmem>>, vector<1x128x512xf32>
    %316 = vector.shape_cast %315 : vector<1x128x512xf32> to vector<128x512xf32>
    %cst_128 = arith.constant dense<0.000000e+00> : vector<2x512xf32>
    %317 = tpu.matmul %263, %316, %cst_128 {dimension_numbers = #tpu.dot_dimension_numbers<[1], [0], [0], [1], [0, 0, 1, 1], [], []>} : vector<2x128xf32>, vector<128x512xf32>, vector<2x512xf32> -> vector<2x512xf32>
    %318 = arith.addf %314, %317 : vector<2x512xf32>
    %c1_129 = arith.constant 1 : index
    %c0_130 = arith.constant 0 : index
    %c0_131 = arith.constant 0 : index
    %319 = vector.load %arg4[%c1_129, %c0_130, %c0_131] : memref<2x1x512xf32, #tpu.memory_space<vmem>>, vector<1x1x512xf32>
    %320 = vector.shape_cast %319 : vector<1x1x512xf32> to vector<1x512xf32>
    %321 = vector.broadcast %320 : vector<1x512xf32> to vector<2x512xf32>
    %322 = arith.addf %318, %321 : vector<2x512xf32>
    %323 = vector.extract_strided_slice %322 {offsets = [0, 0], sizes = [2, 128], strides = [1, 1]} : vector<2x512xf32> to vector<2x128xf32>
    %324 = arith.negf %323 : vector<2x128xf32>
    %325 = math.exp %324 : vector<2x128xf32>
    %cst_132 = arith.constant 1.000000e+00 : f32
    %326 = vector.broadcast %cst_132 : f32 to vector<2x128xf32>
    %327 = arith.addf %326, %325 : vector<2x128xf32>
    %328 = arith.divf %326, %327 : vector<2x128xf32>
    %329 = vector.extract_strided_slice %322 {offsets = [0, 128], sizes = [2, 128], strides = [1, 1]} : vector<2x512xf32> to vector<2x128xf32>
    %330 = arith.negf %329 : vector<2x128xf32>
    %331 = math.exp %330 : vector<2x128xf32>
    %cst_133 = arith.constant 1.000000e+00 : f32
    %332 = vector.broadcast %cst_133 : f32 to vector<2x128xf32>
    %333 = arith.addf %332, %331 : vector<2x128xf32>
    %334 = arith.divf %332, %333 : vector<2x128xf32>
    %335 = vector.extract_strided_slice %322 {offsets = [0, 256], sizes = [2, 128], strides = [1, 1]} : vector<2x512xf32> to vector<2x128xf32>
    %336 = math.tanh %335 : vector<2x128xf32>
    %337 = vector.extract_strided_slice %322 {offsets = [0, 384], sizes = [2, 128], strides = [1, 1]} : vector<2x512xf32> to vector<2x128xf32>
    %338 = arith.negf %337 : vector<2x128xf32>
    %339 = math.exp %338 : vector<2x128xf32>
    %cst_134 = arith.constant 1.000000e+00 : f32
    %340 = vector.broadcast %cst_134 : f32 to vector<2x128xf32>
    %341 = arith.addf %340, %339 : vector<2x128xf32>
    %342 = arith.divf %340, %341 : vector<2x128xf32>
    %343 = arith.mulf %334, %267 : vector<2x128xf32>
    %344 = arith.mulf %328, %336 : vector<2x128xf32>
    %345 = arith.addf %343, %344 : vector<2x128xf32>
    %346 = math.tanh %345 : vector<2x128xf32>
    %347 = arith.mulf %342, %346 : vector<2x128xf32>
    %cst_135 = arith.constant -5.000000e+01 : f32
    %cst_136 = arith.constant 5.000000e+01 : f32
    %348 = vector.broadcast %cst_135 : f32 to vector<2x128xf32>
    %349 = arith.maximumf %348, %347 : vector<2x128xf32>
    %350 = vector.broadcast %cst_136 : f32 to vector<2x128xf32>
    %351 = arith.minimumf %350, %349 : vector<2x128xf32>
    %cst_137 = arith.constant -5.000000e+01 : f32
    %cst_138 = arith.constant 5.000000e+01 : f32
    %352 = vector.broadcast %cst_137 : f32 to vector<2x128xf32>
    %353 = arith.maximumf %352, %345 : vector<2x128xf32>
    %354 = vector.broadcast %cst_138 : f32 to vector<2x128xf32>
    %355 = arith.minimumf %354, %353 : vector<2x128xf32>
    %356 = arith.index_cast %c3_i32 : i32 to index
    %c0_139 = arith.constant 0 : index
    %c0_140 = arith.constant 0 : index
    %357 = vector.load %arg11[%356, %c0_139, %c0_140] : memref<7x2x128xf32, #tpu.memory_space<vmem>>, vector<1x2x128xf32>
    %358 = vector.shape_cast %357 : vector<1x2x128xf32> to vector<2x128xf32>
    %359 = vector.shape_cast %347 : vector<2x128xf32> to vector<1x2x128xf32>
    tpu.vector_store %arg11[%356, %c0_139, %c0_140], %359 {strides = array<i32>} : memref<7x2x128xf32, #tpu.memory_space<vmem>>, vector<1x2x128xf32>,
    %c4_i32 = arith.constant 4 : i32
    %360 = arith.index_cast %c4_i32 : i32 to index
    %c0_141 = arith.constant 0 : index
    %c0_142 = arith.constant 0 : index
    %361 = vector.load %arg1[%360, %c0_141, %c0_142] : memref<7x2x512xf32, #tpu.memory_space<vmem>>, vector<1x2x512xf32>
    %362 = vector.shape_cast %361 : vector<1x2x512xf32> to vector<2x512xf32>
    %c0_143 = arith.constant 0 : index
    %c0_144 = arith.constant 0 : index
    %c0_145 = arith.constant 0 : index
    %363 = vector.load %arg3[%c0_143, %c0_144, %c0_145] : memref<2x128x512xf32, #tpu.memory_space<vmem>>, vector<1x128x512xf32>
    %364 = vector.shape_cast %363 : vector<1x128x512xf32> to vector<128x512xf32>
    %cst_146 = arith.constant dense<0.000000e+00> : vector<2x512xf32>
    %365 = tpu.matmul %307, %364, %cst_146 {dimension_numbers = #tpu.dot_dimension_numbers<[1], [0], [0], [1], [0, 0, 1, 1], [], []>} : vector<2x128xf32>, vector<128x512xf32>, vector<2x512xf32> -> vector<2x512xf32>
    %366 = arith.addf %362, %365 : vector<2x512xf32>
    %367 = vector.extract_strided_slice %366 {offsets = [0, 0], sizes = [2, 128], strides = [1, 1]} : vector<2x512xf32> to vector<2x128xf32>
    %368 = arith.negf %367 : vector<2x128xf32>
    %369 = math.exp %368 : vector<2x128xf32>
    %cst_147 = arith.constant 1.000000e+00 : f32
    %370 = vector.broadcast %cst_147 : f32 to vector<2x128xf32>
    %371 = arith.addf %370, %369 : vector<2x128xf32>
    %372 = arith.divf %370, %371 : vector<2x128xf32>
    %373 = vector.extract_strided_slice %366 {offsets = [0, 128], sizes = [2, 128], strides = [1, 1]} : vector<2x512xf32> to vector<2x128xf32>
    %374 = arith.negf %373 : vector<2x128xf32>
    %375 = math.exp %374 : vector<2x128xf32>
    %cst_148 = arith.constant 1.000000e+00 : f32
    %376 = vector.broadcast %cst_148 : f32 to vector<2x128xf32>
    %377 = arith.addf %376, %375 : vector<2x128xf32>
    %378 = arith.divf %376, %377 : vector<2x128xf32>
    %379 = vector.extract_strided_slice %366 {offsets = [0, 256], sizes = [2, 128], strides = [1, 1]} : vector<2x512xf32> to vector<2x128xf32>
    %380 = math.tanh %379 : vector<2x128xf32>
    %381 = vector.extract_strided_slice %366 {offsets = [0, 384], sizes = [2, 128], strides = [1, 1]} : vector<2x512xf32> to vector<2x128xf32>
    %382 = arith.negf %381 : vector<2x128xf32>
    %383 = math.exp %382 : vector<2x128xf32>
    %cst_149 = arith.constant 1.000000e+00 : f32
    %384 = vector.broadcast %cst_149 : f32 to vector<2x128xf32>
    %385 = arith.addf %384, %383 : vector<2x128xf32>
    %386 = arith.divf %384, %385 : vector<2x128xf32>
    %387 = arith.mulf %378, %311 : vector<2x128xf32>
    %388 = arith.mulf %372, %380 : vector<2x128xf32>
    %389 = arith.addf %387, %388 : vector<2x128xf32>
    %390 = math.tanh %389 : vector<2x128xf32>
    %391 = arith.mulf %386, %390 : vector<2x128xf32>
    %cst_150 = arith.constant -5.000000e+01 : f32
    %cst_151 = arith.constant 5.000000e+01 : f32
    %392 = vector.broadcast %cst_150 : f32 to vector<2x128xf32>
    %393 = arith.maximumf %392, %391 : vector<2x128xf32>
    %394 = vector.broadcast %cst_151 : f32 to vector<2x128xf32>
    %395 = arith.minimumf %394, %393 : vector<2x128xf32>
    %cst_152 = arith.constant -5.000000e+01 : f32
    %cst_153 = arith.constant 5.000000e+01 : f32
    %396 = vector.broadcast %cst_152 : f32 to vector<2x128xf32>
    %397 = arith.maximumf %396, %389 : vector<2x128xf32>
    %398 = vector.broadcast %cst_153 : f32 to vector<2x128xf32>
    %399 = arith.minimumf %398, %397 : vector<2x128xf32>
    %c1_154 = arith.constant 1 : index
    %c0_155 = arith.constant 0 : index
    %c0_156 = arith.constant 0 : index
    %400 = vector.load %arg2[%c1_154, %c0_155, %c0_156] : memref<2x128x512xf32, #tpu.memory_space<vmem>>, vector<1x128x512xf32>
    %401 = vector.shape_cast %400 : vector<1x128x512xf32> to vector<128x512xf32>
    %cst_157 = arith.constant dense<0.000000e+00> : vector<2x512xf32>
    %402 = tpu.matmul %391, %401, %cst_157 {dimension_numbers = #tpu.dot_dimension_numbers<[1], [0], [0], [1], [0, 0, 1, 1], [], []>} : vector<2x128xf32>, vector<128x512xf32>, vector<2x512xf32> -> vector<2x512xf32>
    %c1_158 = arith.constant 1 : index
    %c0_159 = arith.constant 0 : index
    %c0_160 = arith.constant 0 : index
    %403 = vector.load %arg3[%c1_158, %c0_159, %c0_160] : memref<2x128x512xf32, #tpu.memory_space<vmem>>, vector<1x128x512xf32>
    %404 = vector.shape_cast %403 : vector<1x128x512xf32> to vector<128x512xf32>
    %cst_161 = arith.constant dense<0.000000e+00> : vector<2x512xf32>
    %405 = tpu.matmul %351, %404, %cst_161 {dimension_numbers = #tpu.dot_dimension_numbers<[1], [0], [0], [1], [0, 0, 1, 1], [], []>} : vector<2x128xf32>, vector<128x512xf32>, vector<2x512xf32> -> vector<2x512xf32>
    %406 = arith.addf %402, %405 : vector<2x512xf32>
    %c1_162 = arith.constant 1 : index
    %c0_163 = arith.constant 0 : index
    %c0_164 = arith.constant 0 : index
    %407 = vector.load %arg4[%c1_162, %c0_163, %c0_164] : memref<2x1x512xf32, #tpu.memory_space<vmem>>, vector<1x1x512xf32>
    %408 = vector.shape_cast %407 : vector<1x1x512xf32> to vector<1x512xf32>
    %409 = vector.broadcast %408 : vector<1x512xf32> to vector<2x512xf32>
    %410 = arith.addf %406, %409 : vector<2x512xf32>
    %411 = vector.extract_strided_slice %410 {offsets = [0, 0], sizes = [2, 128], strides = [1, 1]} : vector<2x512xf32> to vector<2x128xf32>
    %412 = arith.negf %411 : vector<2x128xf32>
    %413 = math.exp %412 : vector<2x128xf32>
    %cst_165 = arith.constant 1.000000e+00 : f32
    %414 = vector.broadcast %cst_165 : f32 to vector<2x128xf32>
    %415 = arith.addf %414, %413 : vector<2x128xf32>
    %416 = arith.divf %414, %415 : vector<2x128xf32>
    %417 = vector.extract_strided_slice %410 {offsets = [0, 128], sizes = [2, 128], strides = [1, 1]} : vector<2x512xf32> to vector<2x128xf32>
    %418 = arith.negf %417 : vector<2x128xf32>
    %419 = math.exp %418 : vector<2x128xf32>
    %cst_166 = arith.constant 1.000000e+00 : f32
    %420 = vector.broadcast %cst_166 : f32 to vector<2x128xf32>
    %421 = arith.addf %420, %419 : vector<2x128xf32>
    %422 = arith.divf %420, %421 : vector<2x128xf32>
    %423 = vector.extract_strided_slice %410 {offsets = [0, 256], sizes = [2, 128], strides = [1, 1]} : vector<2x512xf32> to vector<2x128xf32>
    %424 = math.tanh %423 : vector<2x128xf32>
    %425 = vector.extract_strided_slice %410 {offsets = [0, 384], sizes = [2, 128], strides = [1, 1]} : vector<2x512xf32> to vector<2x128xf32>
    %426 = arith.negf %425 : vector<2x128xf32>
    %427 = math.exp %426 : vector<2x128xf32>
    %cst_167 = arith.constant 1.000000e+00 : f32
    %428 = vector.broadcast %cst_167 : f32 to vector<2x128xf32>
    %429 = arith.addf %428, %427 : vector<2x128xf32>
    %430 = arith.divf %428, %429 : vector<2x128xf32>
    %431 = arith.mulf %422, %355 : vector<2x128xf32>
    %432 = arith.mulf %416, %424 : vector<2x128xf32>
    %433 = arith.addf %431, %432 : vector<2x128xf32>
    %434 = math.tanh %433 : vector<2x128xf32>
    %435 = arith.mulf %430, %434 : vector<2x128xf32>
    %cst_168 = arith.constant -5.000000e+01 : f32
    %cst_169 = arith.constant 5.000000e+01 : f32
    %436 = vector.broadcast %cst_168 : f32 to vector<2x128xf32>
    %437 = arith.maximumf %436, %435 : vector<2x128xf32>
    %438 = vector.broadcast %cst_169 : f32 to vector<2x128xf32>
    %439 = arith.minimumf %438, %437 : vector<2x128xf32>
    %cst_170 = arith.constant -5.000000e+01 : f32
    %cst_171 = arith.constant 5.000000e+01 : f32
    %440 = vector.broadcast %cst_170 : f32 to vector<2x128xf32>
    %441 = arith.maximumf %440, %433 : vector<2x128xf32>
    %442 = vector.broadcast %cst_171 : f32 to vector<2x128xf32>
    %443 = arith.minimumf %442, %441 : vector<2x128xf32>
    %444 = arith.index_cast %c4_i32 : i32 to index
    %c0_172 = arith.constant 0 : index
    %c0_173 = arith.constant 0 : index
    %445 = vector.load %arg11[%444, %c0_172, %c0_173] : memref<7x2x128xf32, #tpu.memory_space<vmem>>, vector<1x2x128xf32>
    %446 = vector.shape_cast %445 : vector<1x2x128xf32> to vector<2x128xf32>
    %447 = vector.shape_cast %435 : vector<2x128xf32> to vector<1x2x128xf32>
    tpu.vector_store %arg11[%444, %c0_172, %c0_173], %447 {strides = array<i32>} : memref<7x2x128xf32, #tpu.memory_space<vmem>>, vector<1x2x128xf32>,
    %c5_i32 = arith.constant 5 : i32
    %448 = arith.index_cast %c5_i32 : i32 to index
    %c0_174 = arith.constant 0 : index
    %c0_175 = arith.constant 0 : index
    %449 = vector.load %arg1[%448, %c0_174, %c0_175] : memref<7x2x512xf32, #tpu.memory_space<vmem>>, vector<1x2x512xf32>
    %450 = vector.shape_cast %449 : vector<1x2x512xf32> to vector<2x512xf32>
    %c0_176 = arith.constant 0 : index
    %c0_177 = arith.constant 0 : index
    %c0_178 = arith.constant 0 : index
    %451 = vector.load %arg3[%c0_176, %c0_177, %c0_178] : memref<2x128x512xf32, #tpu.memory_space<vmem>>, vector<1x128x512xf32>
    %452 = vector.shape_cast %451 : vector<1x128x512xf32> to vector<128x512xf32>
    %cst_179 = arith.constant dense<0.000000e+00> : vector<2x512xf32>
    %453 = tpu.matmul %395, %452, %cst_179 {dimension_numbers = #tpu.dot_dimension_numbers<[1], [0], [0], [1], [0, 0, 1, 1], [], []>} : vector<2x128xf32>, vector<128x512xf32>, vector<2x512xf32> -> vector<2x512xf32>
    %454 = arith.addf %450, %453 : vector<2x512xf32>
    %455 = vector.extract_strided_slice %454 {offsets = [0, 0], sizes = [2, 128], strides = [1, 1]} : vector<2x512xf32> to vector<2x128xf32>
    %456 = arith.negf %455 : vector<2x128xf32>
    %457 = math.exp %456 : vector<2x128xf32>
    %cst_180 = arith.constant 1.000000e+00 : f32
    %458 = vector.broadcast %cst_180 : f32 to vector<2x128xf32>
    %459 = arith.addf %458, %457 : vector<2x128xf32>
    %460 = arith.divf %458, %459 : vector<2x128xf32>
    %461 = vector.extract_strided_slice %454 {offsets = [0, 128], sizes = [2, 128], strides = [1, 1]} : vector<2x512xf32> to vector<2x128xf32>
    %462 = arith.negf %461 : vector<2x128xf32>
    %463 = math.exp %462 : vector<2x128xf32>
    %cst_181 = arith.constant 1.000000e+00 : f32
    %464 = vector.broadcast %cst_181 : f32 to vector<2x128xf32>
    %465 = arith.addf %464, %463 : vector<2x128xf32>
    %466 = arith.divf %464, %465 : vector<2x128xf32>
    %467 = vector.extract_strided_slice %454 {offsets = [0, 256], sizes = [2, 128], strides = [1, 1]} : vector<2x512xf32> to vector<2x128xf32>
    %468 = math.tanh %467 : vector<2x128xf32>
    %469 = vector.extract_strided_slice %454 {offsets = [0, 384], sizes = [2, 128], strides = [1, 1]} : vector<2x512xf32> to vector<2x128xf32>
    %470 = arith.negf %469 : vector<2x128xf32>
    %471 = math.exp %470 : vector<2x128xf32>
    %cst_182 = arith.constant 1.000000e+00 : f32
    %472 = vector.broadcast %cst_182 : f32 to vector<2x128xf32>
    %473 = arith.addf %472, %471 : vector<2x128xf32>
    %474 = arith.divf %472, %473 : vector<2x128xf32>
    %475 = arith.mulf %466, %399 : vector<2x128xf32>
    %476 = arith.mulf %460, %468 : vector<2x128xf32>
    %477 = arith.addf %475, %476 : vector<2x128xf32>
    %478 = math.tanh %477 : vector<2x128xf32>
    %479 = arith.mulf %474, %478 : vector<2x128xf32>
    %cst_183 = arith.constant -5.000000e+01 : f32
    %cst_184 = arith.constant 5.000000e+01 : f32
    %480 = vector.broadcast %cst_183 : f32 to vector<2x128xf32>
    %481 = arith.maximumf %480, %479 : vector<2x128xf32>
    %482 = vector.broadcast %cst_184 : f32 to vector<2x128xf32>
    %483 = arith.minimumf %482, %481 : vector<2x128xf32>
    %cst_185 = arith.constant -5.000000e+01 : f32
    %cst_186 = arith.constant 5.000000e+01 : f32
    %484 = vector.broadcast %cst_185 : f32 to vector<2x128xf32>
    %485 = arith.maximumf %484, %477 : vector<2x128xf32>
    %486 = vector.broadcast %cst_186 : f32 to vector<2x128xf32>
    %487 = arith.minimumf %486, %485 : vector<2x128xf32>
    %c1_187 = arith.constant 1 : index
    %c0_188 = arith.constant 0 : index
    %c0_189 = arith.constant 0 : index
    %488 = vector.load %arg2[%c1_187, %c0_188, %c0_189] : memref<2x128x512xf32, #tpu.memory_space<vmem>>, vector<1x128x512xf32>
    %489 = vector.shape_cast %488 : vector<1x128x512xf32> to vector<128x512xf32>
    %cst_190 = arith.constant dense<0.000000e+00> : vector<2x512xf32>
    %490 = tpu.matmul %479, %489, %cst_190 {dimension_numbers = #tpu.dot_dimension_numbers<[1], [0], [0], [1], [0, 0, 1, 1], [], []>} : vector<2x128xf32>, vector<128x512xf32>, vector<2x512xf32> -> vector<2x512xf32>
    %c1_191 = arith.constant 1 : index
    %c0_192 = arith.constant 0 : index
    %c0_193 = arith.constant 0 : index
    %491 = vector.load %arg3[%c1_191, %c0_192, %c0_193] : memref<2x128x512xf32, #tpu.memory_space<vmem>>, vector<1x128x512xf32>
    %492 = vector.shape_cast %491 : vector<1x128x512xf32> to vector<128x512xf32>
    %cst_194 = arith.constant dense<0.000000e+00> : vector<2x512xf32>
    %493 = tpu.matmul %439, %492, %cst_194 {dimension_numbers = #tpu.dot_dimension_numbers<[1], [0], [0], [1], [0, 0, 1, 1], [], []>} : vector<2x128xf32>, vector<128x512xf32>, vector<2x512xf32> -> vector<2x512xf32>
    %494 = arith.addf %490, %493 : vector<2x512xf32>
    %c1_195 = arith.constant 1 : index
    %c0_196 = arith.constant 0 : index
    %c0_197 = arith.constant 0 : index
    %495 = vector.load %arg4[%c1_195, %c0_196, %c0_197] : memref<2x1x512xf32, #tpu.memory_space<vmem>>, vector<1x1x512xf32>
    %496 = vector.shape_cast %495 : vector<1x1x512xf32> to vector<1x512xf32>
    %497 = vector.broadcast %496 : vector<1x512xf32> to vector<2x512xf32>
    %498 = arith.addf %494, %497 : vector<2x512xf32>
    %499 = vector.extract_strided_slice %498 {offsets = [0, 0], sizes = [2, 128], strides = [1, 1]} : vector<2x512xf32> to vector<2x128xf32>
    %500 = arith.negf %499 : vector<2x128xf32>
    %501 = math.exp %500 : vector<2x128xf32>
    %cst_198 = arith.constant 1.000000e+00 : f32
    %502 = vector.broadcast %cst_198 : f32 to vector<2x128xf32>
    %503 = arith.addf %502, %501 : vector<2x128xf32>
    %504 = arith.divf %502, %503 : vector<2x128xf32>
    %505 = vector.extract_strided_slice %498 {offsets = [0, 128], sizes = [2, 128], strides = [1, 1]} : vector<2x512xf32> to vector<2x128xf32>
    %506 = arith.negf %505 : vector<2x128xf32>
    %507 = math.exp %506 : vector<2x128xf32>
    %cst_199 = arith.constant 1.000000e+00 : f32
    %508 = vector.broadcast %cst_199 : f32 to vector<2x128xf32>
    %509 = arith.addf %508, %507 : vector<2x128xf32>
    %510 = arith.divf %508, %509 : vector<2x128xf32>
    %511 = vector.extract_strided_slice %498 {offsets = [0, 256], sizes = [2, 128], strides = [1, 1]} : vector<2x512xf32> to vector<2x128xf32>
    %512 = math.tanh %511 : vector<2x128xf32>
    %513 = vector.extract_strided_slice %498 {offsets = [0, 384], sizes = [2, 128], strides = [1, 1]} : vector<2x512xf32> to vector<2x128xf32>
    %514 = arith.negf %513 : vector<2x128xf32>
    %515 = math.exp %514 : vector<2x128xf32>
    %cst_200 = arith.constant 1.000000e+00 : f32
    %516 = vector.broadcast %cst_200 : f32 to vector<2x128xf32>
    %517 = arith.addf %516, %515 : vector<2x128xf32>
    %518 = arith.divf %516, %517 : vector<2x128xf32>
    %519 = arith.mulf %510, %443 : vector<2x128xf32>
    %520 = arith.mulf %504, %512 : vector<2x128xf32>
    %521 = arith.addf %519, %520 : vector<2x128xf32>
    %522 = math.tanh %521 : vector<2x128xf32>
    %523 = arith.mulf %518, %522 : vector<2x128xf32>
    %cst_201 = arith.constant -5.000000e+01 : f32
    %cst_202 = arith.constant 5.000000e+01 : f32
    %524 = vector.broadcast %cst_201 : f32 to vector<2x128xf32>
    %525 = arith.maximumf %524, %523 : vector<2x128xf32>
    %526 = vector.broadcast %cst_202 : f32 to vector<2x128xf32>
    %527 = arith.minimumf %526, %525 : vector<2x128xf32>
    %cst_203 = arith.constant -5.000000e+01 : f32
    %cst_204 = arith.constant 5.000000e+01 : f32
    %528 = vector.broadcast %cst_203 : f32 to vector<2x128xf32>
    %529 = arith.maximumf %528, %521 : vector<2x128xf32>
    %530 = vector.broadcast %cst_204 : f32 to vector<2x128xf32>
    %531 = arith.minimumf %530, %529 : vector<2x128xf32>
    %532 = arith.index_cast %c5_i32 : i32 to index
    %c0_205 = arith.constant 0 : index
    %c0_206 = arith.constant 0 : index
    %533 = vector.load %arg11[%532, %c0_205, %c0_206] : memref<7x2x128xf32, #tpu.memory_space<vmem>>, vector<1x2x128xf32>
    %534 = vector.shape_cast %533 : vector<1x2x128xf32> to vector<2x128xf32>
    %535 = vector.shape_cast %523 : vector<2x128xf32> to vector<1x2x128xf32>
    tpu.vector_store %arg11[%532, %c0_205, %c0_206], %535 {strides = array<i32>} : memref<7x2x128xf32, #tpu.memory_space<vmem>>, vector<1x2x128xf32>,
    %c6_i32 = arith.constant 6 : i32
    %536 = arith.index_cast %c6_i32 : i32 to index
    %c0_207 = arith.constant 0 : index
    %c0_208 = arith.constant 0 : index
    %537 = vector.load %arg1[%536, %c0_207, %c0_208] : memref<7x2x512xf32, #tpu.memory_space<vmem>>, vector<1x2x512xf32>
    %538 = vector.shape_cast %537 : vector<1x2x512xf32> to vector<2x512xf32>
    %c0_209 = arith.constant 0 : index
    %c0_210 = arith.constant 0 : index
    %c0_211 = arith.constant 0 : index
    %539 = vector.load %arg3[%c0_209, %c0_210, %c0_211] : memref<2x128x512xf32, #tpu.memory_space<vmem>>, vector<1x128x512xf32>
    %540 = vector.shape_cast %539 : vector<1x128x512xf32> to vector<128x512xf32>
    %cst_212 = arith.constant dense<0.000000e+00> : vector<2x512xf32>
    %541 = tpu.matmul %483, %540, %cst_212 {dimension_numbers = #tpu.dot_dimension_numbers<[1], [0], [0], [1], [0, 0, 1, 1], [], []>} : vector<2x128xf32>, vector<128x512xf32>, vector<2x512xf32> -> vector<2x512xf32>
    %542 = arith.addf %538, %541 : vector<2x512xf32>
    %543 = vector.extract_strided_slice %542 {offsets = [0, 0], sizes = [2, 128], strides = [1, 1]} : vector<2x512xf32> to vector<2x128xf32>
    %544 = arith.negf %543 : vector<2x128xf32>
    %545 = math.exp %544 : vector<2x128xf32>
    %cst_213 = arith.constant 1.000000e+00 : f32
    %546 = vector.broadcast %cst_213 : f32 to vector<2x128xf32>
    %547 = arith.addf %546, %545 : vector<2x128xf32>
    %548 = arith.divf %546, %547 : vector<2x128xf32>
    %549 = vector.extract_strided_slice %542 {offsets = [0, 128], sizes = [2, 128], strides = [1, 1]} : vector<2x512xf32> to vector<2x128xf32>
    %550 = arith.negf %549 : vector<2x128xf32>
    %551 = math.exp %550 : vector<2x128xf32>
    %cst_214 = arith.constant 1.000000e+00 : f32
    %552 = vector.broadcast %cst_214 : f32 to vector<2x128xf32>
    %553 = arith.addf %552, %551 : vector<2x128xf32>
    %554 = arith.divf %552, %553 : vector<2x128xf32>
    %555 = vector.extract_strided_slice %542 {offsets = [0, 256], sizes = [2, 128], strides = [1, 1]} : vector<2x512xf32> to vector<2x128xf32>
    %556 = math.tanh %555 : vector<2x128xf32>
    %557 = vector.extract_strided_slice %542 {offsets = [0, 384], sizes = [2, 128], strides = [1, 1]} : vector<2x512xf32> to vector<2x128xf32>
    %558 = arith.negf %557 : vector<2x128xf32>
    %559 = math.exp %558 : vector<2x128xf32>
    %cst_215 = arith.constant 1.000000e+00 : f32
    %560 = vector.broadcast %cst_215 : f32 to vector<2x128xf32>
    %561 = arith.addf %560, %559 : vector<2x128xf32>
    %562 = arith.divf %560, %561 : vector<2x128xf32>
    %563 = arith.mulf %554, %487 : vector<2x128xf32>
    %564 = arith.mulf %548, %556 : vector<2x128xf32>
    %565 = arith.addf %563, %564 : vector<2x128xf32>
    %566 = math.tanh %565 : vector<2x128xf32>
    %567 = arith.mulf %562, %566 : vector<2x128xf32>
    %cst_216 = arith.constant -5.000000e+01 : f32
    %cst_217 = arith.constant 5.000000e+01 : f32
    %568 = vector.broadcast %cst_216 : f32 to vector<2x128xf32>
    %569 = arith.maximumf %568, %567 : vector<2x128xf32>
    %570 = vector.broadcast %cst_217 : f32 to vector<2x128xf32>
    %571 = arith.minimumf %570, %569 : vector<2x128xf32>
    %cst_218 = arith.constant -5.000000e+01 : f32
    %cst_219 = arith.constant 5.000000e+01 : f32
    %572 = vector.broadcast %cst_218 : f32 to vector<2x128xf32>
    %573 = arith.maximumf %572, %565 : vector<2x128xf32>
    %574 = vector.broadcast %cst_219 : f32 to vector<2x128xf32>
    %575 = arith.minimumf %574, %573 : vector<2x128xf32>
    %c1_220 = arith.constant 1 : index
    %c0_221 = arith.constant 0 : index
    %c0_222 = arith.constant 0 : index
    %576 = vector.load %arg2[%c1_220, %c0_221, %c0_222] : memref<2x128x512xf32, #tpu.memory_space<vmem>>, vector<1x128x512xf32>
    %577 = vector.shape_cast %576 : vector<1x128x512xf32> to vector<128x512xf32>
    %cst_223 = arith.constant dense<0.000000e+00> : vector<2x512xf32>
    %578 = tpu.matmul %567, %577, %cst_223 {dimension_numbers = #tpu.dot_dimension_numbers<[1], [0], [0], [1], [0, 0, 1, 1], [], []>} : vector<2x128xf32>, vector<128x512xf32>, vector<2x512xf32> -> vector<2x512xf32>
    %c1_224 = arith.constant 1 : index
    %c0_225 = arith.constant 0 : index
    %c0_226 = arith.constant 0 : index
    %579 = vector.load %arg3[%c1_224, %c0_225, %c0_226] : memref<2x128x512xf32, #tpu.memory_space<vmem>>, vector<1x128x512xf32>
    %580 = vector.shape_cast %579 : vector<1x128x512xf32> to vector<128x512xf32>
    %cst_227 = arith.constant dense<0.000000e+00> : vector<2x512xf32>
    %581 = tpu.matmul %527, %580, %cst_227 {dimension_numbers = #tpu.dot_dimension_numbers<[1], [0], [0], [1], [0, 0, 1, 1], [], []>} : vector<2x128xf32>, vector<128x512xf32>, vector<2x512xf32> -> vector<2x512xf32>
    %582 = arith.addf %578, %581 : vector<2x512xf32>
    %c1_228 = arith.constant 1 : index
    %c0_229 = arith.constant 0 : index
    %c0_230 = arith.constant 0 : index
    %583 = vector.load %arg4[%c1_228, %c0_229, %c0_230] : memref<2x1x512xf32, #tpu.memory_space<vmem>>, vector<1x1x512xf32>
    %584 = vector.shape_cast %583 : vector<1x1x512xf32> to vector<1x512xf32>
    %585 = vector.broadcast %584 : vector<1x512xf32> to vector<2x512xf32>
    %586 = arith.addf %582, %585 : vector<2x512xf32>
    %587 = vector.extract_strided_slice %586 {offsets = [0, 0], sizes = [2, 128], strides = [1, 1]} : vector<2x512xf32> to vector<2x128xf32>
    %588 = arith.negf %587 : vector<2x128xf32>
    %589 = math.exp %588 : vector<2x128xf32>
    %cst_231 = arith.constant 1.000000e+00 : f32
    %590 = vector.broadcast %cst_231 : f32 to vector<2x128xf32>
    %591 = arith.addf %590, %589 : vector<2x128xf32>
    %592 = arith.divf %590, %591 : vector<2x128xf32>
    %593 = vector.extract_strided_slice %586 {offsets = [0, 128], sizes = [2, 128], strides = [1, 1]} : vector<2x512xf32> to vector<2x128xf32>
    %594 = arith.negf %593 : vector<2x128xf32>
    %595 = math.exp %594 : vector<2x128xf32>
    %cst_232 = arith.constant 1.000000e+00 : f32
    %596 = vector.broadcast %cst_232 : f32 to vector<2x128xf32>
    %597 = arith.addf %596, %595 : vector<2x128xf32>
    %598 = arith.divf %596, %597 : vector<2x128xf32>
    %599 = vector.extract_strided_slice %586 {offsets = [0, 256], sizes = [2, 128], strides = [1, 1]} : vector<2x512xf32> to vector<2x128xf32>
    %600 = math.tanh %599 : vector<2x128xf32>
    %601 = vector.extract_strided_slice %586 {offsets = [0, 384], sizes = [2, 128], strides = [1, 1]} : vector<2x512xf32> to vector<2x128xf32>
    %602 = arith.negf %601 : vector<2x128xf32>
    %603 = math.exp %602 : vector<2x128xf32>
    %cst_233 = arith.constant 1.000000e+00 : f32
    %604 = vector.broadcast %cst_233 : f32 to vector<2x128xf32>
    %605 = arith.addf %604, %603 : vector<2x128xf32>
    %606 = arith.divf %604, %605 : vector<2x128xf32>
    %607 = arith.mulf %598, %531 : vector<2x128xf32>
    %608 = arith.mulf %592, %600 : vector<2x128xf32>
    %609 = arith.addf %607, %608 : vector<2x128xf32>
    %610 = math.tanh %609 : vector<2x128xf32>
    %611 = arith.mulf %606, %610 : vector<2x128xf32>
    %cst_234 = arith.constant -5.000000e+01 : f32
    %cst_235 = arith.constant 5.000000e+01 : f32
    %612 = vector.broadcast %cst_234 : f32 to vector<2x128xf32>
    %613 = arith.maximumf %612, %611 : vector<2x128xf32>
    %614 = vector.broadcast %cst_235 : f32 to vector<2x128xf32>
    %615 = arith.minimumf %614, %613 : vector<2x128xf32>
    %cst_236 = arith.constant -5.000000e+01 : f32
    %cst_237 = arith.constant 5.000000e+01 : f32
    %616 = vector.broadcast %cst_236 : f32 to vector<2x128xf32>
    %617 = arith.maximumf %616, %609 : vector<2x128xf32>
    %618 = vector.broadcast %cst_237 : f32 to vector<2x128xf32>
    %619 = arith.minimumf %618, %617 : vector<2x128xf32>
    %620 = arith.index_cast %c6_i32 : i32 to index
    %c0_238 = arith.constant 0 : index
    %c0_239 = arith.constant 0 : index
    %621 = vector.load %arg11[%620, %c0_238, %c0_239] : memref<7x2x128xf32, #tpu.memory_space<vmem>>, vector<1x2x128xf32>
    %622 = vector.shape_cast %621 : vector<1x2x128xf32> to vector<2x128xf32>
    %623 = vector.shape_cast %611 : vector<2x128xf32> to vector<1x2x128xf32>
    tpu.vector_store %arg11[%620, %c0_238, %c0_239], %623 {strides = array<i32>} : memref<7x2x128xf32, #tpu.memory_space<vmem>>, vector<1x2x128xf32>,
    %c7_i32 = arith.constant 7 : i32
    %c0_240 = arith.constant 0 : index
    %c0_241 = arith.constant 0 : index
    %c0_242 = arith.constant 0 : index
    %624 = vector.load %arg9[%c0_240, %c0_241, %c0_242] : memref<2x2x128xf32, #tpu.memory_space<vmem>>, vector<1x2x128xf32>
    %625 = vector.shape_cast %624 : vector<1x2x128xf32> to vector<2x128xf32>
    %626 = vector.shape_cast %571 : vector<2x128xf32> to vector<1x2x128xf32>
    tpu.vector_store %arg9[%c0_240, %c0_241, %c0_242], %626 {strides = array<i32>} : memref<2x2x128xf32, #tpu.memory_space<vmem>>, vector<1x2x128xf32>,
    %c0_243 = arith.constant 0 : index
    %c0_244 = arith.constant 0 : index
    %c0_245 = arith.constant 0 : index
    %627 = vector.load %arg10[%c0_243, %c0_244, %c0_245] : memref<2x2x128xf32, #tpu.memory_space<vmem>>, vector<1x2x128xf32>
    %628 = vector.shape_cast %627 : vector<1x2x128xf32> to vector<2x128xf32>
    %629 = vector.shape_cast %575 : vector<2x128xf32> to vector<1x2x128xf32>
    tpu.vector_store %arg10[%c0_243, %c0_244, %c0_245], %629 {strides = array<i32>} : memref<2x2x128xf32, #tpu.memory_space<vmem>>, vector<1x2x128xf32>,
    %c1_246 = arith.constant 1 : index
    %c0_247 = arith.constant 0 : index
    %c0_248 = arith.constant 0 : index
    %630 = vector.load %arg9[%c1_246, %c0_247, %c0_248] : memref<2x2x128xf32, #tpu.memory_space<vmem>>, vector<1x2x128xf32>
    %631 = vector.shape_cast %630 : vector<1x2x128xf32> to vector<2x128xf32>
    %632 = vector.shape_cast %615 : vector<2x128xf32> to vector<1x2x128xf32>
    tpu.vector_store %arg9[%c1_246, %c0_247, %c0_248], %632 {strides = array<i32>} : memref<2x2x128xf32, #tpu.memory_space<vmem>>, vector<1x2x128xf32>,
    %c1_249 = arith.constant 1 : index
    %c0_250 = arith.constant 0 : index
    %c0_251 = arith.constant 0 : index
    %633 = vector.load %arg10[%c1_249, %c0_250, %c0_251] : memref<2x2x128xf32, #tpu.memory_space<vmem>>, vector<1x2x128xf32>
    %634 = vector.shape_cast %633 : vector<1x2x128xf32> to vector<2x128xf32>
    %635 = vector.shape_cast %619 : vector<2x128xf32> to vector<1x2x128xf32>
    tpu.vector_store %arg10[%c1_249, %c0_250, %c0_251], %635 {strides = array<i32>} : memref<2x2x128xf32, #tpu.memory_space<vmem>>, vector<1x2x128xf32>,
    %c0_252 = arith.constant 0 : index
    %c0_253 = arith.constant 0 : index
    %c0_254 = arith.constant 0 : index
    %636 = vector.load %arg11[%c0_252, %c0_253, %c0_254] : memref<7x2x128xf32, #tpu.memory_space<vmem>>, vector<7x1x128xf32>
    %637 = vector.shape_cast %636 : vector<7x1x128xf32> to vector<7x128xf32>
    %c0_255 = arith.constant 0 : index
    %c0_256 = arith.constant 0 : index
    %638 = vector.load %arg5[%c0_255, %c0_256] : memref<128x128xf32, #tpu.memory_space<vmem>>, vector<128x128xf32>
    %cst_257 = arith.constant dense<0.000000e+00> : vector<7x128xf32>
    %639 = tpu.matmul %637, %638, %cst_257 {dimension_numbers = #tpu.dot_dimension_numbers<[1], [0], [0], [1], [0, 0, 1, 1], [], []>} : vector<7x128xf32>, vector<128x128xf32>, vector<7x128xf32> -> vector<7x128xf32>
    %c0_258 = arith.constant 0 : index
    %c0_259 = arith.constant 0 : index
    %c0_260 = arith.constant 0 : index
    %640 = vector.load %arg8[%c0_258, %c0_259, %c0_260] : memref<2x7x128xf32, #tpu.memory_space<vmem>>, vector<1x7x128xf32>
    %641 = vector.shape_cast %640 : vector<1x7x128xf32> to vector<7x128xf32>
    %642 = vector.shape_cast %639 : vector<7x128xf32> to vector<1x7x128xf32>
    tpu.vector_store %arg8[%c0_258, %c0_259, %c0_260], %642 {strides = array<i32>} : memref<2x7x128xf32, #tpu.memory_space<vmem>>, vector<1x7x128xf32>,
    %c0_261 = arith.constant 0 : index
    %c1_262 = arith.constant 1 : index
    %c0_263 = arith.constant 0 : index
    %643 = vector.load %arg11[%c0_261, %c1_262, %c0_263] : memref<7x2x128xf32, #tpu.memory_space<vmem>>, vector<7x1x128xf32>
    %644 = vector.shape_cast %643 : vector<7x1x128xf32> to vector<7x128xf32>
    %c0_264 = arith.constant 0 : index
    %c0_265 = arith.constant 0 : index
    %645 = vector.load %arg5[%c0_264, %c0_265] : memref<128x128xf32, #tpu.memory_space<vmem>>, vector<128x128xf32>
    %cst_266 = arith.constant dense<0.000000e+00> : vector<7x128xf32>
    %646 = tpu.matmul %644, %645, %cst_266 {dimension_numbers = #tpu.dot_dimension_numbers<[1], [0], [0], [1], [0, 0, 1, 1], [], []>} : vector<7x128xf32>, vector<128x128xf32>, vector<7x128xf32> -> vector<7x128xf32>
    %c1_267 = arith.constant 1 : index
    %c0_268 = arith.constant 0 : index
    %c0_269 = arith.constant 0 : index
    %647 = vector.load %arg8[%c1_267, %c0_268, %c0_269] : memref<2x7x128xf32, #tpu.memory_space<vmem>>, vector<1x7x128xf32>
    %648 = vector.shape_cast %647 : vector<1x7x128xf32> to vector<7x128xf32>
    %649 = vector.shape_cast %646 : vector<7x128xf32> to vector<1x7x128xf32>
    tpu.vector_store %arg8[%c1_267, %c0_268, %c0_269], %649 {strides = array<i32>} : memref<2x7x128xf32, #tpu.memory_space<vmem>>, vector<1x7x128xf32>,
    return
  }
  func.func @transform_0(%arg0: i32) -> (i32, i32, i32) {
    %c0_i32 = arith.constant 0 : i32
    %c0_i32_0 = arith.constant 0 : i32
    %c0_i32_1 = arith.constant 0 : i32
    %c0_i32_2 = arith.constant 0 : i32
    return %c0_i32, %c0_i32_0, %c0_i32_1 : i32, i32, i32
  }
  func.func @transform_1(%arg0: i32) -> (i32, i32, i32) {
    %c0_i32 = arith.constant 0 : i32
    %c0_i32_0 = arith.constant 0 : i32
    %c0_i32_1 = arith.constant 0 : i32
    %c0_i32_2 = arith.constant 0 : i32
    return %c0_i32, %c0_i32_0, %c0_i32_1 : i32, i32, i32
  }
  func.func @transform_2(%arg0: i32) -> (i32, i32, i32) {
    %c0_i32 = arith.constant 0 : i32
    %c0_i32_0 = arith.constant 0 : i32
    %c0_i32_1 = arith.constant 0 : i32
    %c0_i32_2 = arith.constant 0 : i32
    return %c0_i32, %c0_i32_0, %c0_i32_1 : i32, i32, i32
  }
  func.func @transform_3(%arg0: i32) -> (i32, i32, i32) {
    %c0_i32 = arith.constant 0 : i32
    %c0_i32_0 = arith.constant 0 : i32
    %c0_i32_1 = arith.constant 0 : i32
    %c0_i32_2 = arith.constant 0 : i32
    return %c0_i32, %c0_i32_0, %c0_i32_1 : i32, i32, i32
  }
  func.func @transform_4(%arg0: i32) -> (i32, i32) {
    %c0_i32 = arith.constant 0 : i32
    %c0_i32_0 = arith.constant 0 : i32
    %c0_i32_1 = arith.constant 0 : i32
    return %c0_i32, %c0_i32_0 : i32, i32
  }
  func.func @transform_5(%arg0: i32) -> (i32, i32, i32) {
    %c0_i32 = arith.constant 0 : i32
    %c0_i32_0 = arith.constant 0 : i32
    %c0_i32_1 = arith.constant 0 : i32
    %c0_i32_2 = arith.constant 0 : i32
    return %c0_i32, %c0_i32_0, %c0_i32_1 : i32, i32, i32
  }
  func.func @transform_6(%arg0: i32) -> (i32, i32, i32) {
    %c0_i32 = arith.constant 0 : i32
    %c0_i32_0 = arith.constant 0 : i32
    %c0_i32_1 = arith.constant 0 : i32
    %c0_i32_2 = arith.constant 0 : i32
    return %c0_i32, %c0_i32_0, %c0_i32_1 : i32, i32, i32
  }
  func.func @transform_7(%arg0: i32) -> (i32, i32, i32) {
    %c0_i32 = arith.constant 0 : i32
    %c0_i32_0 = arith.constant 0 : i32
    %c0_i32_1 = arith.constant 0 : i32
    %c0_i32_2 = arith.constant 0 : i32
    return %c0_i32, %c0_i32_0, %c0_i32_1 : i32, i32, i32
  }
  func.func @transform_8(%arg0: i32) -> (i32, i32, i32) {
    %c0_i32 = arith.constant 0 : i32
    %c0_i32_0 = arith.constant 0 : i32
    %c0_i32_1 = arith.constant 0 : i32
    %c0_i32_2 = arith.constant 0 : i32
    return %c0_i32, %c0_i32_0, %c0_i32_1 : i32, i32, i32
  }
  func.func @transform_9(%arg0: i32) -> (i32, i32, i32) {
    %c0_i32 = arith.constant 0 : i32
    %c0_i32_0 = arith.constant 0 : i32
    %c0_i32_1 = arith.constant 0 : i32
    %c0_i32_2 = arith.constant 0 : i32
    return %c0_i32, %c0_i32_0, %c0_i32_1 : i32, i32, i32
  }
}

</mosaic_0001>

<bundles_post_ra>
// kernel: squeeze.7
= control target key start
LH: loop header
LB: loop body
LE: loop exit
PB: predicated region body
PF: predicated region fallthrough
CT: control target
= control target key end

     0   :  { %s370_s10 = smov 96   ;;  %s371_s11 = smov 64   ;;  %vm3_vm0 = vcmask 261120   ;;  %s523_s0 = inlined_call_operand.vmem [shape: f32[1,128,32], index: 0, kind: input, shape index: {}]   ;;  %s524_s1 = inlined_call_operand.vmem [shape: f32[4,32,32], index: 1, kind: output, shape index: {}]  }
   0x1   :  { %v328_v0 = vld [vmem:[%s523_s0 + $0x10] sm:$0xff]   ;;  %v27_v1 = vld [vmem:[%s523_s0] sm:$0xff]   ;;  %v329_v2 = vld [vmem:[%s523_s0 + $0x18] sm:$0xff]  }
   0x2   :  { %46 = vrot.lane.b32.xlu1 %v328_v0, %s370_s10  ;;  %28 = vrot.lane.b32.xlu0 %v27_v1, %s370_s10  ;;  %v327_v3 = vld [vmem:[%s523_s0 + $0x8] sm:$0xff]   ;;  %s372_s0 = smov 32   ;;  %4 = vst.msk [vmem:[#allocation0] ss:$8 sm:$0xf] %vm3_vm0, %v27_v1  }
   0x3   :  { %63 = vrot.lane.b32.xlu2 %v27_v1, %s371_s11  ;;  %5 = vst.msk [vmem:[#allocation0] ss:$8 sm:$0xf0] %vm3_vm0, %v27_v1  }
   0x4   :  { %24 = vst.msk [vmem:[#allocation0 + $0xc0] ss:$8 sm:$0xf] %vm3_vm0, %v329_v2  }
   0x5   :  { %26 = vst.msk [vmem:[#allocation0 + $0xc0] ss:$8 sm:$0xf0] %vm3_vm0, %v329_v2  }
   0x6   :  { %17 = vst.msk [vmem:[#allocation0 + $0x80] ss:$8 sm:$0xf] %vm3_vm0, %v328_v0  }
   0x7   :  { %19 = vst.msk [vmem:[#allocation0 + $0x80] ss:$8 sm:$0xf0] %vm3_vm0, %v328_v0  }
   0x8   :  { %10 = vst.msk [vmem:[#allocation0 + $0x40] ss:$8 sm:$0xf] %vm3_vm0, %v327_v3  }
   0x9   :  { %12 = vst.msk [vmem:[#allocation0 + $0x40] ss:$8 sm:$0xf0] %vm3_vm0, %v327_v3  }
   0xa   :  { %55 = vrot.lane.b32.xlu1 %v329_v2, %s370_s10  ;;  %37 = vrot.lane.b32.xlu0 %v327_v3, %s370_s10 }
   0xb   :  { %72 = vrot.lane.b32.xlu2 %v327_v3, %s371_s11 }
  0x12   :  { %90 = vrot.lane.b32.xlu1 %v329_v2, %s371_s11  ;;  %81 = vrot.lane.b32.xlu0 %v328_v0, %s371_s11 }
  0x13   :  { %98 = vrot.lane.b32.xlu2 %v27_v1, %s372_s0 }
  0x1a   :  { %116 = vrot.lane.b32.xlu1 %v328_v0, %s372_s0  ;;  %107 = vrot.lane.b32.xlu0 %v327_v3, %s372_s0 }
  0x1b   :  { %125 = vrot.lane.b32.xlu2 %v329_v2, %s372_s0 }
  0x5d   :  { %v64_v4 = vpop.permute.xlu2 %63  }
  0x5e   :  { %67 = vst.msk [vmem:[#allocation0 + $0x2] ss:$8 sm:$0xf] %vm3_vm0, %v64_v4  }
  0x5f   :  { %69 = vst.msk [vmem:[#allocation0 + $0x2] ss:$8 sm:$0xf0] %vm3_vm0, %v64_v4  }
  0x65   :  { %v73_v5 = vpop.permute.xlu2 %72  }
  0x66   :  { %76 = vst.msk [vmem:[#allocation0 + $0x42] ss:$8 sm:$0xf] %vm3_vm0, %v73_v5  }
  0x67   :  { %78 = vst.msk [vmem:[#allocation0 + $0x42] ss:$8 sm:$0xf0] %vm3_vm0, %v73_v5  }
  0x6d   :  { %v99_v6 = vpop.permute.xlu2 %98  }
  0x6e   :  { %102 = vst.msk [vmem:[#allocation0 + $0x3] ss:$8 sm:$0xf] %vm3_vm0, %v99_v6  }
  0x6f   :  { %104 = vst.msk [vmem:[#allocation0 + $0x3] ss:$8 sm:$0xf0] %vm3_vm0, %v99_v6  }
  0x74   :  { %v47_v7 = vpop.permute.xlu1 %46   ;;  %v29_v8 = vpop.permute.xlu0 %28  }
  0x75   :  { %50 = vst.msk [vmem:[#allocation0 + $0x81] ss:$8 sm:$0xf] %vm3_vm0, %v47_v7   ;;  %v126_v9 = vpop.permute.xlu2 %125  }
  0x76   :  { %52 = vst.msk [vmem:[#allocation0 + $0x81] ss:$8 sm:$0xf0] %vm3_vm0, %v47_v7  }
  0x77   :  { %32 = vst.msk [vmem:[#allocation0 + $0x1] ss:$8 sm:$0xf] %vm3_vm0, %v29_v8  }
  0x78   :  { %34 = vst.msk [vmem:[#allocation0 + $0x1] ss:$8 sm:$0xf0] %vm3_vm0, %v29_v8  }
  0x79   :  { %129 = vst.msk [vmem:[#allocation0 + $0xc3] ss:$8 sm:$0xf] %vm3_vm0, %v126_v9  }
  0x7a   :  { %131 = vst.msk [vmem:[#allocation0 + $0xc3] ss:$8 sm:$0xf0] %vm3_vm0, %v126_v9  }
  0x7c   :  { %v56_v10 = vpop.permute.xlu1 %55   ;;  %v38_v11 = vpop.permute.xlu0 %37  }
  0x7d   :  { %59 = vst.msk [vmem:[#allocation0 + $0xc1] ss:$8 sm:$0xf] %vm3_vm0, %v56_v10  }
  0x7e   :  { %v134_v12 = vld [vmem:[#allocation0] sm:$0xf]  ;;  %v139_v13 = vld [vmem:[#allocation0 + $0x8] sm:$0xf]  ;;  %v145_v14 = vld [vmem:[#allocation0 + $0x10] sm:$0xf] }
  0x7f   :  { %137 = vst [vmem:[%s524_s1] sm:$0xf] %v134_v12  ;;  %v151_v15 = vld [vmem:[#allocation0 + $0x18] sm:$0xf]  ;;  %v157_v16 = vld [vmem:[#allocation0 + $0x20] sm:$0xf] }
  0x80   :  { %61 = vst.msk [vmem:[#allocation0 + $0xc1] ss:$8 sm:$0xf0] %vm3_vm0, %v56_v10   ;;  %v163_v17 = vld [vmem:[#allocation0 + $0x28] sm:$0xf] }
  0x81   :  { %336 = vst [vmem:[%s524_s1 + $0x4] sm:$0xf] %v139_v13  ;;  %v169_v18 = vld [vmem:[#allocation0 + $0x30] sm:$0xf]  ;;  %v175_v21 = vld [vmem:[#allocation0 + $0x38] sm:$0xf] }
  0x82   :  { %337 = vst [vmem:[%s524_s1 + $0x8] sm:$0xf] %v145_v14 }
  0x83   :  { %338 = vst [vmem:[%s524_s1 + $0xc] sm:$0xf] %v151_v15 }
  0x84   :  { %v91_v19 = vpop.permute.xlu1 %90   ;;  %v82_v20 = vpop.permute.xlu0 %81   ;;  %339 = vst [vmem:[%s524_s1 + $0x10] sm:$0xf] %v157_v16 }
  0x85   :  { %340 = vst [vmem:[%s524_s1 + $0x14] sm:$0xf] %v163_v17 }
  0x86   :  { %341 = vst [vmem:[%s524_s1 + $0x18] sm:$0xf] %v169_v18 }
  0x87   :  { %342 = vst [vmem:[%s524_s1 + $0x1c] sm:$0xf] %v175_v21 }
  0x88   :  { %41 = vst.msk [vmem:[#allocation0 + $0x41] ss:$8 sm:$0xf] %vm3_vm0, %v38_v11  }
  0x89   :  { %43 = vst.msk [vmem:[#allocation0 + $0x41] ss:$8 sm:$0xf0] %vm3_vm0, %v38_v11  }
  0x8a   :  { %94 = vst.msk [vmem:[#allocation0 + $0xc2] ss:$8 sm:$0xf] %vm3_vm0, %v91_v19  }
  0x8b   :  { %96 = vst.msk [vmem:[#allocation0 + $0xc2] ss:$8 sm:$0xf0] %vm3_vm0, %v91_v19  }
  0x8c   :  { %v117_v22 = vpop.permute.xlu1 %116   ;;  %v108_v23 = vpop.permute.xlu0 %107   ;;  %85 = vst.msk [vmem:[#allocation0 + $0x82] ss:$8 sm:$0xf] %vm3_vm0, %v82_v20  }
  0x8d   :  { %87 = vst.msk [vmem:[#allocation0 + $0x82] ss:$8 sm:$0xf0] %vm3_vm0, %v82_v20  }
  0x8e   :  { %120 = vst.msk [vmem:[#allocation0 + $0x83] ss:$8 sm:$0xf] %vm3_vm0, %v117_v22  }
  0x8f   :  { %122 = vst.msk [vmem:[#allocation0 + $0x83] ss:$8 sm:$0xf0] %vm3_vm0, %v117_v22  }
  0x90   :  { %111 = vst.msk [vmem:[#allocation0 + $0x43] ss:$8 sm:$0xf] %vm3_vm0, %v108_v23  }
  0x91   :  { %v277_v24 = vld [vmem:[#allocation0 + $0xc0] sm:$0xf]  ;;  %v283_v25 = vld [vmem:[#allocation0 + $0xc8] sm:$0xf]  ;;  %v289_v26 = vld [vmem:[#allocation0 + $0xd0] sm:$0xf] }
  0x92   :  { %v295_v27 = vld [vmem:[#allocation0 + $0xd8] sm:$0xf]  ;;  %359 = vst [vmem:[%s524_s1 + $0x60] sm:$0xf] %v277_v24  ;;  %v301_v28 = vld [vmem:[#allocation0 + $0xe0] sm:$0xf] }
  0x93   :  { %360 = vst [vmem:[%s524_s1 + $0x64] sm:$0xf] %v283_v25  ;;  %v307_v29 = vld [vmem:[#allocation0 + $0xe8] sm:$0xf]  ;;  %v313_v30 = vld [vmem:[#allocation0 + $0xf0] sm:$0xf] }
  0x94   :  { %361 = vst [vmem:[%s524_s1 + $0x68] sm:$0xf] %v289_v26  ;;  %v319_v31 = vld [vmem:[#allocation0 + $0xf8] sm:$0xf] }
  0x95   :  { %362 = vst [vmem:[%s524_s1 + $0x6c] sm:$0xf] %v295_v27  ;;  %v229_v32 = vld [vmem:[#allocation0 + $0x80] sm:$0xf]  ;;  %v235_v33 = vld [vmem:[#allocation0 + $0x88] sm:$0xf] }
  0x96   :  { %363 = vst [vmem:[%s524_s1 + $0x70] sm:$0xf] %v301_v28  ;;  %v241_v34 = vld [vmem:[#allocation0 + $0x90] sm:$0xf]  ;;  %v247_v35 = vld [vmem:[#allocation0 + $0x98] sm:$0xf] }
  0x97   :  { %364 = vst [vmem:[%s524_s1 + $0x74] sm:$0xf] %v307_v29  ;;  %v253_v36 = vld [vmem:[#allocation0 + $0xa0] sm:$0xf]  ;;  %v259_v37 = vld [vmem:[#allocation0 + $0xa8] sm:$0xf] }
  0x98   :  { %365 = vst [vmem:[%s524_s1 + $0x78] sm:$0xf] %v313_v30  ;;  %v265_v38 = vld [vmem:[#allocation0 + $0xb0] sm:$0xf]  ;;  %v271_v39 = vld [vmem:[#allocation0 + $0xb8] sm:$0xf] }
  0x99   :  { %366 = vst [vmem:[%s524_s1 + $0x7c] sm:$0xf] %v319_v31  ;;  %v181_v40 = vld [vmem:[#allocation0 + $0x40] sm:$0xf]  ;;  %v187_v41 = vld [vmem:[#allocation0 + $0x48] sm:$0xf] }
  0x9a   :  { %351 = vst [vmem:[%s524_s1 + $0x40] sm:$0xf] %v229_v32  ;;  %v193_v42 = vld [vmem:[#allocation0 + $0x50] sm:$0xf]  ;;  %v199_v43 = vld [vmem:[#allocation0 + $0x58] sm:$0xf] }
  0x9b   :  { %352 = vst [vmem:[%s524_s1 + $0x44] sm:$0xf] %v235_v33 }
  0x9c   :  { %353 = vst [vmem:[%s524_s1 + $0x48] sm:$0xf] %v241_v34 }
  0x9d   :  { %354 = vst [vmem:[%s524_s1 + $0x4c] sm:$0xf] %v247_v35 }
  0x9e   :  { %355 = vst [vmem:[%s524_s1 + $0x50] sm:$0xf] %v253_v36 }
  0x9f   :  { %356 = vst [vmem:[%s524_s1 + $0x54] sm:$0xf] %v259_v37 }
  0xa0   :  { %357 = vst [vmem:[%s524_s1 + $0x58] sm:$0xf] %v265_v38 }
  0xa1   :  { %358 = vst [vmem:[%s524_s1 + $0x5c] sm:$0xf] %v271_v39 }
  0xa2   :  { %113 = vst.msk [vmem:[#allocation0 + $0x43] ss:$8 sm:$0xf0] %vm3_vm0, %v108_v23  }
  0xa3   :  { %343 = vst [vmem:[%s524_s1 + $0x20] sm:$0xf] %v181_v40 }
  0xa4   :  { %344 = vst [vmem:[%s524_s1 + $0x24] sm:$0xf] %v187_v41 }
  0xa5   :  { %345 = vst [vmem:[%s524_s1 + $0x28] sm:$0xf] %v193_v42 }
  0xa6   :  { %346 = vst [vmem:[%s524_s1 + $0x2c] sm:$0xf] %v199_v43 }
  0xa9   :  { %v205_v44 = vld [vmem:[#allocation0 + $0x60] sm:$0xf]  ;;  %v211_v45 = vld [vmem:[#allocation0 + $0x68] sm:$0xf]  ;;  %v217_v46 = vld [vmem:[#allocation0 + $0x70] sm:$0xf] }
  0xaa   :  { %347 = vst [vmem:[%s524_s1 + $0x30] sm:$0xf] %v205_v44  ;;  %v223_v47 = vld [vmem:[#allocation0 + $0x78] sm:$0xf] }
  0xab   :  { %348 = vst [vmem:[%s524_s1 + $0x34] sm:$0xf] %v211_v45 }
  0xac   :  { %349 = vst [vmem:[%s524_s1 + $0x38] sm:$0xf] %v217_v46 }
  0xad   :  { %350 = vst [vmem:[%s524_s1 + $0x3c] sm:$0xf] %v223_v47 }

// kernel: decoder_pallas.1
= control target key start
LH: loop header
LB: loop body
LE: loop exit
PB: predicated region body
PF: predicated region fallthrough
CT: control target
= control target key end

     0   :  { %15 = vsyncpa [#allocation4], 0  ;;  %s10664_s0 = inlined_call_operand.vmem [shape: f32[7,2,512], index: 0, kind: input, shape index: {}]   ;;  %s10665_s1 = inlined_call_operand.vmem [shape: f32[2,128,512], index: 1, kind: input, shape index: {}]   ;;  %s10666_s2 = inlined_call_operand.vmem [shape: f32[2,128,512], index: 2, kind: input, shape index: {}]   ;;  %s10667_s3 = inlined_call_operand.vmem [shape: f32[2,1,512], index: 3, kind: input, shape index: {}]   ;;  %s10668_s4 = inlined_call_operand.vmem [shape: f32[128,128], index: 4, kind: input, shape index: {}]   ;;  %s10669_s5 = inlined_call_operand.vmem [shape: f32[2,2,128], index: 5, kind: input, shape index: {}]   ;;  %s10670_s6 = inlined_call_operand.vmem [shape: f32[2,2,128], index: 6, kind: input, shape index: {}]   ;;  %s10671_s7 = inlined_call_operand.vmem [shape: f32[2,7,128], index: 7, kind: output, shape index: {0}]   ;;  %s10672_s8 = inlined_call_operand.hbm [shape: f32[2,2,128], index: 8, kind: output, shape index: {1}]   ;;  %s10673_s9 = inlined_call_operand.hbm [shape: f32[2,2,128], index: 9, kind: output, shape index: {2}]  }
   0x1   :  { %v5794_v0 = vld [vmem:[%s10666_s2 + $0x1f0] sm:$0xff]  ;;  %v5799_v1 = vld [vmem:[%s10666_s2 + $0x1f8] sm:$0xff]  ;;  %v5826_v6 = vld [vmem:[%s10666_s2 + $0x1e8] sm:$0xff] }
   0x2   :  { %v5804_v2 = vld [vmem:[%s10666_s2 + $0x1d0] sm:$0xff]  ;;  %142 = vmatpush.msra.mxu2 %v5794_v0  ;;  %162 = vmatpush.msra.mxu3 %v5799_v1  ;;  %v5811_v3 = vld [vmem:[%s10666_s2 + $0x1d8] sm:$0xff]  ;;  %v5833_v7 = vld [vmem:[%s10666_s2 + $0x1e0] sm:$0xff] }
   0x3   :  { %v5816_v4 = vld [vmem:[%s10666_s2 + $0x1b0] sm:$0xff]  ;;  %v5821_v5 = vld [vmem:[%s10666_s2 + $0x1b8] sm:$0xff]  ;;  %v5838_v8 = vld [vmem:[%s10666_s2 + $0x1c8] sm:$0xff]  ;;  %122 = vmatpush.msra.mxu1 %v5826_v6  ;;  %102 = vmatpush.msra.mxu0 %v5833_v7 }
   0x4   :  { %143 = vmatpush.msra.mxu2 %v5804_v2  ;;  %163 = vmatpush.msra.mxu3 %v5811_v3  ;;  %v5844_v9 = vld [vmem:[%s10666_s2 + $0x190] sm:$0xff]  ;;  %v5849_v10 = vld [vmem:[%s10666_s2 + $0x198] sm:$0xff]  ;;  %v5855_v11 = vld [vmem:[%s10666_s2 + $0x1c0] sm:$0xff] }
   0x5   :  { %v5862_v12 = vld [vmem:[%s10666_s2 + $0x1a8] sm:$0xff]  ;;  %v5867_v13 = vld [vmem:[%s10666_s2 + $0x1a0] sm:$0xff]  ;;  %123 = vmatpush.msra.mxu1 %v5838_v8  ;;  %v5873_v14 = vld [vmem:[%s10666_s2 + $0x170] sm:$0xff]  ;;  %103 = vmatpush.msra.mxu0 %v5855_v11 }
   0x6   :  { %144 = vmatpush.msra.mxu2 %v5816_v4  ;;  %164 = vmatpush.msra.mxu3 %v5821_v5  ;;  %v5878_v15 = vld [vmem:[%s10666_s2 + $0x178] sm:$0xff]  ;;  %v5886_v16 = vld [vmem:[%s10666_s2 + $0x188] sm:$0xff]  ;;  %v5891_v17 = vld [vmem:[%s10666_s2 + $0x180] sm:$0xff] }
   0x7   :  { %124 = vmatpush.msra.mxu1 %v5862_v12  ;;  %v5897_v18 = vld [vmem:[%s10666_s2 + $0x150] sm:$0xff]  ;;  %v5902_v19 = vld [vmem:[%s10666_s2 + $0x158] sm:$0xff]  ;;  %104 = vmatpush.msra.mxu0 %v5867_v13  ;;  %v5910_v20 = vld [vmem:[%s10666_s2 + $0x168] sm:$0xff] }
   0x8   :  { %145 = vmatpush.msra.mxu2 %v5844_v9  ;;  %165 = vmatpush.msra.mxu3 %v5849_v10  ;;  %v5915_v21 = vld [vmem:[%s10666_s2 + $0x160] sm:$0xff]  ;;  %v5921_v22 = vld [vmem:[%s10666_s2 + $0x130] sm:$0xff]  ;;  %v5926_v23 = vld [vmem:[%s10666_s2 + $0x138] sm:$0xff] }
   0x9   :  { %125 = vmatpush.msra.mxu1 %v5886_v16  ;;  %105 = vmatpush.msra.mxu0 %v5891_v17  ;;  %v5934_v24 = vld [vmem:[%s10666_s2 + $0x148] sm:$0xff]  ;;  %v5939_v25 = vld [vmem:[%s10666_s2 + $0x140] sm:$0xff]  ;;  %v5945_v26 = vld [vmem:[%s10666_s2 + $0x110] sm:$0xff] }
   0xa   :  { %146 = vmatpush.msra.mxu2 %v5873_v14  ;;  %166 = vmatpush.msra.mxu3 %v5878_v15  ;;  %v5950_v27 = vld [vmem:[%s10666_s2 + $0x118] sm:$0xff]  ;;  %v5958_v28 = vld [vmem:[%s10666_s2 + $0x128] sm:$0xff]  ;;  %v5963_v29 = vld [vmem:[%s10666_s2 + $0x120] sm:$0xff] }
   0xb   :  { %126 = vmatpush.msra.mxu1 %v5910_v20  ;;  %106 = vmatpush.msra.mxu0 %v5915_v21  ;;  %v5969_v30 = vld [vmem:[%s10666_s2 + $0xf0] sm:$0xff]  ;;  %v5974_v31 = vld [vmem:[%s10666_s2 + $0xf8] sm:$0xff]  ;;  %v5982_v32 = vld [vmem:[%s10666_s2 + $0x108] sm:$0xff] }
   0xc   :  { %147 = vmatpush.msra.mxu2 %v5897_v18  ;;  %167 = vmatpush.msra.mxu3 %v5902_v19  ;;  %v5987_v33 = vld [vmem:[%s10666_s2 + $0x100] sm:$0xff]  ;;  %v5993_v34 = vld [vmem:[%s10666_s2 + $0xd0] sm:$0xff]  ;;  %v5998_v35 = vld [vmem:[%s10666_s2 + $0xd8] sm:$0xff] }
   0xd   :  { %127 = vmatpush.msra.mxu1 %v5934_v24  ;;  %107 = vmatpush.msra.mxu0 %v5939_v25  ;;  %v6006_v36 = vld [vmem:[%s10666_s2 + $0xe8] sm:$0xff]  ;;  %v6011_v37 = vld [vmem:[%s10666_s2 + $0xe0] sm:$0xff]  ;;  %v6017_v38 = vld [vmem:[%s10666_s2 + $0xb0] sm:$0xff] }
   0xe   :  { %148 = vmatpush.msra.mxu2 %v5921_v22  ;;  %168 = vmatpush.msra.mxu3 %v5926_v23  ;;  %v6022_v39 = vld [vmem:[%s10666_s2 + $0xb8] sm:$0xff]  ;;  %v6030_v40 = vld [vmem:[%s10666_s2 + $0xc8] sm:$0xff]  ;;  %v6035_v41 = vld [vmem:[%s10666_s2 + $0xc0] sm:$0xff] }
   0xf   :  { %128 = vmatpush.msra.mxu1 %v5958_v28  ;;  %108 = vmatpush.msra.mxu0 %v5963_v29  ;;  %v6041_v42 = vld [vmem:[%s10666_s2 + $0x90] sm:$0xff]  ;;  %v6046_v43 = vld [vmem:[%s10666_s2 + $0x98] sm:$0xff]  ;;  %v6054_v44 = vld [vmem:[%s10666_s2 + $0xa8] sm:$0xff] }
  0x10   :  { %149 = vmatpush.msra.mxu2 %v5945_v26  ;;  %169 = vmatpush.msra.mxu3 %v5950_v27  ;;  %v6059_v45 = vld [vmem:[%s10666_s2 + $0xa0] sm:$0xff]  ;;  %v6065_v46 = vld [vmem:[%s10666_s2 + $0x70] sm:$0xff]  ;;  %v6070_v47 = vld [vmem:[%s10666_s2 + $0x78] sm:$0xff] }
  0x11   :  { %129 = vmatpush.msra.mxu1 %v5982_v32  ;;  %109 = vmatpush.msra.mxu0 %v5987_v33  ;;  %v6078_v48 = vld [vmem:[%s10666_s2 + $0x88] sm:$0xff]  ;;  %v6083_v49 = vld [vmem:[%s10666_s2 + $0x80] sm:$0xff]  ;;  %v6089_v50 = vld [vmem:[%s10666_s2 + $0x50] sm:$0xff] }
  0x12   :  { %150 = vmatpush.msra.mxu2 %v5969_v30  ;;  %170 = vmatpush.msra.mxu3 %v5974_v31  ;;  %10724 = vst [vmem:[#allocation9_spill] sm:$0xff] %v6089_v50  ;;  %v6094_v51 = vld [vmem:[%s10666_s2 + $0x58] sm:$0xff]  ;;  %v6102_v52 = vld [vmem:[%s10666_s2 + $0x68] sm:$0xff]  ;;  %v6107_v53 = vld [vmem:[%s10666_s2 + $0x60] sm:$0xff] }
  0x13   :  { %130 = vmatpush.msra.mxu1 %v6006_v36  ;;  %110 = vmatpush.msra.mxu0 %v6011_v37  ;;  %10725 = vst [vmem:[#allocation10_spill] sm:$0xff] %v6094_v51  ;;  %v6113_v54 = vld [vmem:[%s10666_s2 + $0x30] sm:$0xff]  ;;  %v6118_v55 = vld [vmem:[%s10666_s2 + $0x38] sm:$0xff]  ;;  %v6126_v56 = vld [vmem:[%s10666_s2 + $0x48] sm:$0xff] }
  0x14   :  { %151 = vmatpush.msra.mxu2 %v5993_v34  ;;  %171 = vmatpush.msra.mxu3 %v5998_v35  ;;  %10726 = vst [vmem:[#allocation11_spill] sm:$0xff] %v6113_v54  ;;  %v6131_v57 = vld [vmem:[%s10666_s2 + $0x40] sm:$0xff]  ;;  %v6137_v58 = vld [vmem:[%s10666_s2 + $0x10] sm:$0xff]  ;;  %v6142_v59 = vld [vmem:[%s10666_s2 + $0x18] sm:$0xff] }
  0x15   :  { %131 = vmatpush.msra.mxu1 %v6030_v40  ;;  %111 = vmatpush.msra.mxu0 %v6035_v41  ;;  %10727 = vst [vmem:[#allocation12_spill] sm:$0xff] %v6118_v55  ;;  %v31_v60 = vld [vmem:[%s10669_s5] sm:$0x3]  ;;  %v6155_v61 = vld [vmem:[%s10666_s2 + $0x28] sm:$0xff]  ;;  %v6167_v63 = vld [vmem:[%s10666_s2 + $0x3f0] sm:$0xff] }
  0x16   :  { %152 = vmatpush.msra.mxu2 %v6017_v38  ;;  %172 = vmatpush.msra.mxu3 %v6022_v39  ;;  %10728 = vst [vmem:[#allocation13_spill] sm:$0xff] %v6137_v58  ;;  %v6160_v62 = vld [vmem:[%s10666_s2 + $0x20] sm:$0xff] }
  0x17   :  { %132 = vmatpush.msra.mxu1 %v6054_v44  ;;  %112 = vmatpush.msra.mxu0 %v6059_v45  ;;  %10729 = vst [vmem:[#allocation14_spill] sm:$0xff] %v6142_v59 }
  0x18   :  { %153 = vmatpush.msra.mxu2 %v6041_v42  ;;  %173 = vmatpush.msra.mxu3 %v6046_v43  ;;  %10730 = vst [vmem:[#allocation15_spill] sm:$0xff] %v6155_v61 }
  0x19   :  { %133 = vmatpush.msra.mxu1 %v6078_v48  ;;  %113 = vmatpush.msra.mxu0 %v6083_v49  ;;  %10731 = vst [vmem:[#allocation16_spill] sm:$0xff] %v6160_v62 }
  0x1a   :  { %154 = vmatpush.msra.mxu2 %v6065_v46  ;;  %174 = vmatpush.msra.mxu3 %v6070_v47  ;;  %10732 = vst [vmem:[#allocation17_spill] sm:$0xff] %v6167_v63 }
  0x1b   :  { %134 = vmatpush.msra.mxu1 %v6102_v52  ;;  %114 = vmatpush.msra.mxu0 %v6107_v53 }
  0x1c   :  { %155 = vmatpush.msra.mxu2 %v6089_v50  ;;  %175 = vmatpush.msra.mxu3 %v6094_v51  ;;  %v6194_v51 = vld [vmem:[%s10666_s2 + $0x3e8] sm:$0xff] }
  0x1d   :  { %135 = vmatpush.msra.mxu1 %v6126_v56  ;;  %115 = vmatpush.msra.mxu0 %v6131_v57  ;;  %10737 = vst [vmem:[#allocation22_spill] sm:$0xff] %v6194_v51 }
  0x1e   :  { %156 = vmatpush.msra.mxu2 %v6113_v54  ;;  %176 = vmatpush.msra.mxu3 %v6118_v55  ;;  %v6172_v55 = vld [vmem:[%s10666_s2 + $0x3f8] sm:$0xff]  ;;  %v6177_v54 = vld [vmem:[%s10666_s2 + $0x8] sm:$0xff] }
  0x1f   :  { %10733 = vst [vmem:[#allocation18_spill] sm:$0xff] %v6172_v55  ;;  %136 = vmatpush.msra.mxu1 %v6155_v61  ;;  %116 = vmatpush.msra.mxu0 %v6160_v62  ;;  %v6203_v61 = vld [vmem:[%s10666_s2 + $0x3d0] sm:$0xff]  ;;  %v6208_v62 = vld [vmem:[%s10666_s2 + $0x3d8] sm:$0xff] }
  0x20   :  { %157 = vmatpush.msra.mxu2 %v6137_v58  ;;  %177 = vmatpush.msra.mxu3 %v6142_v59  ;;  %10734 = vst [vmem:[#allocation19_spill] sm:$0xff] %v6177_v54  ;;  %v6182_v59 = vld [vmem:[%s10666_s2] sm:$0xff] }
  0x21   :  { %158 = vmatmul.f32.vlgmr.msra.gmra.mxu2 %v31_v60  ;;  %178 = vmatmul.f32.vlgmr.msra.gmra.mxu3 %v31_v60  ;;  %10735 = vst [vmem:[#allocation20_spill] sm:$0xff] %v6182_v59  ;;  %v6189_v58 = vld [vmem:[%s10666_s2 + $0x3e0] sm:$0xff] }
  0x22   :  { %10736 = vst [vmem:[#allocation21_spill] sm:$0xff] %v6189_v58  ;;  %441 = vmatpush.msrb.mxu2 %v6167_v63  ;;  %461 = vmatpush.msrb.mxu3 %v6172_v55  ;;  %v6213_v55 = vld [vmem:[%s10666_s2 + $0x3c0] sm:$0xff]  ;;  %v6218_v63 = vld [vmem:[%s10666_s2 + $0x3c8] sm:$0xff] }
  0x23   :  { %137 = vmatpush.msra.mxu1 %v6177_v54  ;;  %117 = vmatpush.msra.mxu0 %v6182_v59  ;;  %10738 = vst [vmem:[#allocation23_spill] sm:$0xff] %v6203_v61  ;;  %v6225_v54 = vld [vmem:[%s10666_s2 + $0x3b0] sm:$0xff] }
  0x24   :  { %10739 = vst [vmem:[#allocation24_spill] sm:$0xff] %v6208_v62  ;;  %138 = vmatmul.f32.vlgmr.msra.gmra.mxu1 %v31_v60  ;;  %118 = vmatmul.f32.vlgmr.msra.gmra.mxu0 %v31_v60  ;;  %v6230_v60 = vld [vmem:[%s10666_s2 + $0x3b8] sm:$0xff] }
  0x25   :  { %10740 = vst [vmem:[#allocation25_spill] sm:$0xff] %v6213_v55  ;;  %401 = vmatpush.msrb.mxu0 %v6189_v58  ;;  %421 = vmatpush.msrb.mxu1 %v6194_v51  ;;  %v6237_v58 = vld [vmem:[%s10666_s2 + $0x3a0] sm:$0xff]  ;;  %v6242_v51 = vld [vmem:[%s10666_s2 + $0x3a8] sm:$0xff] }
  0x26   :  { %10741 = vst [vmem:[#allocation26_spill] sm:$0xff] %v6218_v63  ;;  %442 = vmatpush.msrb.mxu2 %v6203_v61  ;;  %462 = vmatpush.msrb.mxu3 %v6208_v62  ;;  %v6249_v61 = vld [vmem:[%s10666_s2 + $0x390] sm:$0xff]  ;;  %v6254_v62 = vld [vmem:[%s10666_s2 + $0x398] sm:$0xff] }
  0x27   :  { %10742 = vst [vmem:[#allocation27_spill] sm:$0xff] %v6225_v54  ;;  %402 = vmatpush.msrb.mxu0 %v6213_v55  ;;  %422 = vmatpush.msrb.mxu1 %v6218_v63  ;;  %v6261_v55 = vld [vmem:[%s10666_s2 + $0x380] sm:$0xff]  ;;  %v6266_v63 = vld [vmem:[%s10666_s2 + $0x388] sm:$0xff] }
  0x28   :  { %10743 = vst [vmem:[#allocation28_spill] sm:$0xff] %v6230_v60  ;;  %443 = vmatpush.msrb.mxu2 %v6225_v54  ;;  %463 = vmatpush.msrb.mxu3 %v6230_v60  ;;  %v6273_v54 = vld [vmem:[%s10666_s2 + $0x370] sm:$0xff]  ;;  %v6278_v60 = vld [vmem:[%s10666_s2 + $0x378] sm:$0xff] }
  0x29   :  { %10744 = vst [vmem:[#allocation29_spill] sm:$0xff] %v6237_v58  ;;  %403 = vmatpush.msrb.mxu0 %v6237_v58  ;;  %423 = vmatpush.msrb.mxu1 %v6242_v51  ;;  %v6285_v58 = vld [vmem:[%s10666_s2 + $0x360] sm:$0xff] }
  0x2a   :  { %10745 = vst [vmem:[#allocation30_spill] sm:$0xff] %v6242_v51  ;;  %444 = vmatpush.msrb.mxu2 %v6249_v61  ;;  %464 = vmatpush.msrb.mxu3 %v6254_v62  ;;  %v6290_v51 = vld [vmem:[%s10666_s2 + $0x368] sm:$0xff] }
  0x2b   :  { %10746 = vst [vmem:[#allocation31_spill] sm:$0xff] %v6249_v61  ;;  %404 = vmatpush.msrb.mxu0 %v6261_v55  ;;  %424 = vmatpush.msrb.mxu1 %v6266_v63  ;;  %v6297_v61 = vld [vmem:[%s10666_s2 + $0x350] sm:$0xff] }
  0x2c   :  { %10747 = vst [vmem:[#allocation32_spill] sm:$0xff] %v6254_v62  ;;  %v6302_v62 = vld [vmem:[%s10666_s2 + $0x358] sm:$0xff]  ;;  %445 = vmatpush.msrb.mxu2 %v6273_v54  ;;  %465 = vmatpush.msrb.mxu3 %v6278_v60 }
  0x2d   :  { %10748 = vst [vmem:[#allocation33_spill] sm:$0xff] %v6261_v55  ;;  %v6309_v55 = vld [vmem:[%s10666_s2 + $0x340] sm:$0xff]  ;;  %405 = vmatpush.msrb.mxu0 %v6285_v58  ;;  %425 = vmatpush.msrb.mxu1 %v6290_v51 }
  0x2e   :  { %10749 = vst [vmem:[#allocation34_spill] sm:$0xff] %v6266_v63  ;;  %v6314_v63 = vld [vmem:[%s10666_s2 + $0x348] sm:$0xff] }
  0x2f   :  { %10750 = vst [vmem:[#allocation35_spill] sm:$0xff] %v6273_v54  ;;  %v6321_v54 = vld [vmem:[%s10666_s2 + $0x330] sm:$0xff] }
  0x30   :  { %10751 = vst [vmem:[#allocation36_spill] sm:$0xff] %v6278_v60  ;;  %v6326_v60 = vld [vmem:[%s10666_s2 + $0x338] sm:$0xff] }
  0x31   :  { %10752 = vst [vmem:[#allocation37_spill] sm:$0xff] %v6285_v58 }
  0x32   :  { %10753 = vst [vmem:[#allocation38_spill] sm:$0xff] %v6290_v51 }
  0x33   :  { %10754 = vst [vmem:[#allocation39_spill] sm:$0xff] %v6297_v61 }
  0x34   :  { %10755 = vst [vmem:[#allocation40_spill] sm:$0xff] %v6302_v62 }
  0x35   :  { %10756 = vst [vmem:[#allocation41_spill] sm:$0xff] %v6309_v55 }
  0x36   :  { %10757 = vst [vmem:[#allocation42_spill] sm:$0xff] %v6314_v63 }
  0x37   :  { %10758 = vst [vmem:[#allocation43_spill] sm:$0xff] %v6321_v54 }
  0x38   :  { %10759 = vst [vmem:[#allocation44_spill] sm:$0xff] %v6326_v60 }
  0x39   :  { %16 = vsyncpa [#allocation6], 0  ;;  %446 = vmatpush.msrb.mxu2 %v6297_v61  ;;  %466 = vmatpush.msrb.mxu3 %v6302_v62  ;;  %v6333_v58 = vld [vmem:[%s10666_s2 + $0x320] sm:$0xff]  ;;  %v6338_v51 = vld [vmem:[%s10666_s2 + $0x328] sm:$0xff]  ;;  %vm189_vm0 = vcmask 1041408   ;;  %vm191_vm1 = vcmask 1045508  }
  0x3a   :  { %10760 = vst [vmem:[#allocation45_spill] sm:$0xff] %v6333_v58  ;;  %406 = vmatpush.msrb.mxu0 %v6309_v55  ;;  %426 = vmatpush.msrb.mxu1 %v6314_v63  ;;  %v6345_v61 = vld [vmem:[%s10666_s2 + $0x310] sm:$0xff]  ;;  %v6350_v62 = vld [vmem:[%s10666_s2 + $0x318] sm:$0xff]  ;;  %v6357_v55 = vld [vmem:[%s10666_s2 + $0x300] sm:$0xff]  ;;  %vm193_vm2 = vcmask 1043456   ;;  %s4411_s12 = sshll.u32 %s10672_s8, 4  ;;  %s4412_s12 = int_to_ptr.hbm [resolvable:$true] %s4411_s12 }
  0x3b   :  { %10761 = vst [vmem:[#allocation46_spill] sm:$0xff] %v6338_v51  ;;  %447 = vmatpush.msrb.mxu2 %v6321_v54  ;;  %467 = vmatpush.msrb.mxu3 %v6326_v60  ;;  %v6362_v63 = vld [vmem:[%s10666_s2 + $0x308] sm:$0xff]  ;;  %v6369_v54 = vld [vmem:[%s10666_s2 + $0x2f0] sm:$0xff]  ;;  %v6374_v60 = vld [vmem:[%s10666_s2 + $0x2f8] sm:$0xff]  ;;  %s5738_s13 = smov 32   ;;  %s5739_s14 = smov 2  }
  0x3c   :  { %10762 = vst [vmem:[#allocation47_spill] sm:$0xff] %v6345_v61  ;;  %407 = vmatpush.msrb.mxu0 %v6333_v58  ;;  %427 = vmatpush.msrb.mxu1 %v6338_v51  ;;  %v6381_v58 = vld [vmem:[%s10666_s2 + $0x2e0] sm:$0xff]  ;;  %v6386_v51 = vld [vmem:[%s10666_s2 + $0x2e8] sm:$0xff]  ;;  %v4529_v50 = vld [vmem:[%s10666_s2 + $0x278] sm:$0xff]  ;;  %s5740_s15 = smov [#allocation5]  }
  0x3d   :  { %10763 = vst [vmem:[#allocation48_spill] sm:$0xff] %v6350_v62  ;;  %448 = vmatpush.msrb.mxu2 %v6345_v61  ;;  %468 = vmatpush.msrb.mxu3 %v6350_v62  ;;  %v6393_v61 = vld [vmem:[%s10666_s2 + $0x2d0] sm:$0xff]  ;;  %v6398_v62 = vld [vmem:[%s10666_s2 + $0x2d8] sm:$0xff]  ;;  %v4534_v59 = vld [vmem:[%s10666_s2 + $0x2a0] sm:$0xff]  ;;  %s4422_s16 = sshll.u32 %s5740_s15, 4  ;;  %s4423_s16 = int_to_ptr.vmem [resolvable:$true] %s4422_s16 }
  0x3e   :  { %10764 = vst [vmem:[#allocation49_spill] sm:$0xff] %v6357_v55  ;;  %408 = vmatpush.msrb.mxu0 %v6357_v55  ;;  %428 = vmatpush.msrb.mxu1 %v6362_v63  ;;  %v6405_v55 = vld [vmem:[%s10666_s2 + $0x2c0] sm:$0xff] }
  0x3f   :  { %10765 = vst [vmem:[#allocation50_spill] sm:$0xff] %v6362_v63  ;;  %449 = vmatpush.msrb.mxu2 %v6369_v54  ;;  %469 = vmatpush.msrb.mxu3 %v6374_v60  ;;  %v6410_v63 = vld [vmem:[%s10666_s2 + $0x2c8] sm:$0xff] }
  0x40   :  { %10766 = vst [vmem:[#allocation51_spill] sm:$0xff] %v6369_v54  ;;  %409 = vmatpush.msrb.mxu0 %v6381_v58  ;;  %429 = vmatpush.msrb.mxu1 %v6386_v51  ;;  %v4536_v54 = vld [vmem:[%s10666_s2 + $0x2b0] sm:$0xff] }
  0x41   :  { %10767 = vst [vmem:[#allocation52_spill] sm:$0xff] %v6374_v60  ;;  %v4537_v60 = vld [vmem:[%s10666_s2 + $0x2b8] sm:$0xff]  ;;  %450 = vmatpush.msrb.mxu2 %v6393_v61  ;;  %470 = vmatpush.msrb.mxu3 %v6398_v62 }
  0x42   :  { %10768 = vst [vmem:[#allocation53_spill] sm:$0xff] %v6381_v58  ;;  %410 = vmatpush.msrb.mxu0 %v6405_v55  ;;  %430 = vmatpush.msrb.mxu1 %v6410_v63  ;;  %v4532_v58 = vld [vmem:[%s10666_s2 + $0x290] sm:$0xff] }
  0x43   :  { %10769 = vst [vmem:[#allocation54_spill] sm:$0xff] %v6386_v51  ;;  %v4535_v51 = vld [vmem:[%s10666_s2 + $0x2a8] sm:$0xff]  ;;  %451 = vmatpush.msrb.mxu2 %v4536_v54  ;;  %471 = vmatpush.msrb.mxu3 %v4537_v60  ;;  %v4526_v54 = vld [vmem:[%s10666_s2 + $0x260] sm:$0xff] }
  0x44   :  { %10770 = vst [vmem:[#allocation55_spill] sm:$0xff] %v6393_v61  ;;  %v4530_v61 = vld [vmem:[%s10666_s2 + $0x280] sm:$0xff]  ;;  %411 = vmatpush.msrb.mxu0 %v4534_v59  ;;  %431 = vmatpush.msrb.mxu1 %v4535_v51  ;;  %v4527_v60 = vld [vmem:[%s10666_s2 + $0x268] sm:$0xff]  ;;  %v4524_v51 = vld [vmem:[%s10666_s2 + $0x250] sm:$0xff] }
  0x45   :  { %10771 = vst [vmem:[#allocation56_spill] sm:$0xff] %v6398_v62  ;;  %v4533_v62 = vld [vmem:[%s10666_s2 + $0x298] sm:$0xff]  ;;  %452 = vmatpush.msrb.mxu2 %v4532_v58  ;;  %v4522_v58 = vld [vmem:[%s10666_s2 + $0x240] sm:$0xff] }
  0x46   :  { %10772 = vst [vmem:[#allocation57_spill] sm:$0xff] %v6405_v55  ;;  %v4531_v55 = vld [vmem:[%s10666_s2 + $0x288] sm:$0xff]  ;;  %472 = vmatpush.msrb.mxu3 %v4533_v62  ;;  %412 = vmatpush.msrb.mxu0 %v4530_v61  ;;  %v4525_v59 = vld [vmem:[%s10666_s2 + $0x258] sm:$0xff] }
  0x47   :  { %10773 = vst [vmem:[#allocation58_spill] sm:$0xff] %v6410_v63  ;;  %v4528_v63 = vld [vmem:[%s10666_s2 + $0x270] sm:$0xff]  ;;  %432 = vmatpush.msrb.mxu1 %v4531_v55  ;;  %v4523_v62 = vld [vmem:[%s10666_s2 + $0x248] sm:$0xff]  ;;  %v4521_v61 = vld [vmem:[%s10666_s2 + $0x238] sm:$0xff] }
  0x48   :  { %453 = vmatpush.msrb.mxu2 %v4528_v63  ;;  %473 = vmatpush.msrb.mxu3 %v4529_v50  ;;  %v4520_v55 = vld [vmem:[%s10666_s2 + $0x230] sm:$0xff]  ;;  %v4518_v50 = vld [vmem:[%s10666_s2 + $0x220] sm:$0xff]  ;;  %v4519_v63 = vld [vmem:[%s10666_s2 + $0x228] sm:$0xff] }
  0x49   :  { %413 = vmatpush.msrb.mxu0 %v4526_v54  ;;  %433 = vmatpush.msrb.mxu1 %v4527_v60  ;;  %v4516_v54 = vld [vmem:[%s10666_s2 + $0x210] sm:$0xff]  ;;  %v4517_v60 = vld [vmem:[%s10666_s2 + $0x218] sm:$0xff] }
  0x4a   :  { %454 = vmatpush.msrb.mxu2 %v4524_v51  ;;  %474 = vmatpush.msrb.mxu3 %v4525_v59  ;;  %v4514_v51 = vld [vmem:[%s10666_s2 + $0x200] sm:$0xff]  ;;  %v4515_v59 = vld [vmem:[%s10666_s2 + $0x208] sm:$0xff] }
  0x4b   :  { %414 = vmatpush.msrb.mxu0 %v4522_v58  ;;  %434 = vmatpush.msrb.mxu1 %v4523_v62  ;;  %v4510_v58 = vld [vmem:[%s10665_s1 + $0x3e0] sm:$0xff]  ;;  %v4511_v62 = vld [vmem:[%s10665_s1 + $0x3e8] sm:$0xff] }
  0x4c   :  { %455 = vmatpush.msrb.mxu2 %v4520_v55  ;;  %475 = vmatpush.msrb.mxu3 %v4521_v61  ;;  %v4512_v55 = vld [vmem:[%s10665_s1 + $0x3f0] sm:$0xff]  ;;  %v4513_v61 = vld [vmem:[%s10665_s1 + $0x3f8] sm:$0xff] }
  0x4d   :  { %415 = vmatpush.msrb.mxu0 %v4518_v50  ;;  %435 = vmatpush.msrb.mxu1 %v4519_v63  ;;  %v4506_v50 = vld [vmem:[%s10665_s1 + $0x3c0] sm:$0xff]  ;;  %v4507_v63 = vld [vmem:[%s10665_s1 + $0x3c8] sm:$0xff] }
  0x4e   :  { %456 = vmatpush.msrb.mxu2 %v4516_v54  ;;  %476 = vmatpush.msrb.mxu3 %v4517_v60  ;;  %v4508_v54 = vld [vmem:[%s10665_s1 + $0x3d0] sm:$0xff]  ;;  %v4509_v60 = vld [vmem:[%s10665_s1 + $0x3d8] sm:$0xff] }
  0x4f   :  { %416 = vmatpush.msrb.mxu0 %v4514_v51  ;;  %436 = vmatpush.msrb.mxu1 %v4515_v59  ;;  %v4502_v51 = vld [vmem:[%s10665_s1 + $0x3a0] sm:$0xff]  ;;  %v4503_v59 = vld [vmem:[%s10665_s1 + $0x3a8] sm:$0xff] }
  0x50   :  { %521 = vmatpush.msra.mxu2 %v4512_v55  ;;  %541 = vmatpush.msra.mxu3 %v4513_v61  ;;  %v4498_v55 = vld [vmem:[%s10665_s1 + $0x380] sm:$0xff]  ;;  %v4499_v61 = vld [vmem:[%s10665_s1 + $0x388] sm:$0xff] }
  0x51   :  { %481 = vmatpush.msra.mxu0 %v4510_v58  ;;  %501 = vmatpush.msra.mxu1 %v4511_v62  ;;  %v4504_v58 = vld [vmem:[%s10665_s1 + $0x3b0] sm:$0xff]  ;;  %v4505_v62 = vld [vmem:[%s10665_s1 + $0x3b8] sm:$0xff] }
  0x52   :  { %522 = vmatpush.msra.mxu2 %v4508_v54  ;;  %542 = vmatpush.msra.mxu3 %v4509_v60  ;;  %v4494_v54 = vld [vmem:[%s10665_s1 + $0x360] sm:$0xff]  ;;  %v4495_v60 = vld [vmem:[%s10665_s1 + $0x368] sm:$0xff] }
  0x53   :  { %482 = vmatpush.msra.mxu0 %v4506_v50  ;;  %502 = vmatpush.msra.mxu1 %v4507_v63  ;;  %v4500_v50 = vld [vmem:[%s10665_s1 + $0x390] sm:$0xff]  ;;  %v4501_v63 = vld [vmem:[%s10665_s1 + $0x398] sm:$0xff] }
  0x54   :  { %523 = vmatpush.msra.mxu2 %v4504_v58  ;;  %543 = vmatpush.msra.mxu3 %v4505_v62  ;;  %v4490_v58 = vld [vmem:[%s10665_s1 + $0x340] sm:$0xff]  ;;  %v4491_v62 = vld [vmem:[%s10665_s1 + $0x348] sm:$0xff] }
  0x55   :  { %483 = vmatpush.msra.mxu0 %v4502_v51  ;;  %503 = vmatpush.msra.mxu1 %v4503_v59  ;;  %v4496_v51 = vld [vmem:[%s10665_s1 + $0x370] sm:$0xff]  ;;  %v4497_v59 = vld [vmem:[%s10665_s1 + $0x378] sm:$0xff] }
  0x56   :  { %524 = vmatpush.msra.mxu2 %v4500_v50  ;;  %544 = vmatpush.msra.mxu3 %v4501_v63  ;;  %v4486_v50 = vld [vmem:[%s10665_s1 + $0x320] sm:$0xff]  ;;  %v4487_v63 = vld [vmem:[%s10665_s1 + $0x328] sm:$0xff] }
  0x57   :  { %484 = vmatpush.msra.mxu0 %v4498_v55  ;;  %504 = vmatpush.msra.mxu1 %v4499_v61  ;;  %v4492_v55 = vld [vmem:[%s10665_s1 + $0x350] sm:$0xff]  ;;  %v4493_v61 = vld [vmem:[%s10665_s1 + $0x358] sm:$0xff] }
  0x58   :  { %525 = vmatpush.msra.mxu2 %v4496_v51  ;;  %545 = vmatpush.msra.mxu3 %v4497_v59  ;;  %v4482_v51 = vld [vmem:[%s10665_s1 + $0x300] sm:$0xff]  ;;  %v4483_v59 = vld [vmem:[%s10665_s1 + $0x308] sm:$0xff] }
  0x59   :  { %485 = vmatpush.msra.mxu0 %v4494_v54  ;;  %505 = vmatpush.msra.mxu1 %v4495_v60  ;;  %v4488_v54 = vld [vmem:[%s10665_s1 + $0x330] sm:$0xff]  ;;  %v4489_v60 = vld [vmem:[%s10665_s1 + $0x338] sm:$0xff] }
  0x5a   :  { %526 = vmatpush.msra.mxu2 %v4492_v55  ;;  %546 = vmatpush.msra.mxu3 %v4493_v61  ;;  %v4478_v55 = vld [vmem:[%s10665_s1 + $0x2e0] sm:$0xff]  ;;  %v4479_v61 = vld [vmem:[%s10665_s1 + $0x2e8] sm:$0xff] }
  0x5b   :  { %486 = vmatpush.msra.mxu0 %v4490_v58  ;;  %506 = vmatpush.msra.mxu1 %v4491_v62  ;;  %v4484_v58 = vld [vmem:[%s10665_s1 + $0x310] sm:$0xff]  ;;  %v4485_v62 = vld [vmem:[%s10665_s1 + $0x318] sm:$0xff] }
  0x5c   :  { %527 = vmatpush.msra.mxu2 %v4488_v54  ;;  %547 = vmatpush.msra.mxu3 %v4489_v60  ;;  %v4474_v54 = vld [vmem:[%s10665_s1 + $0x2c0] sm:$0xff]  ;;  %v4475_v60 = vld [vmem:[%s10665_s1 + $0x2c8] sm:$0xff] }
  0x5d   :  { %487 = vmatpush.msra.mxu0 %v4486_v50  ;;  %507 = vmatpush.msra.mxu1 %v4487_v63  ;;  %v4480_v50 = vld [vmem:[%s10665_s1 + $0x2f0] sm:$0xff]  ;;  %v4481_v63 = vld [vmem:[%s10665_s1 + $0x2f8] sm:$0xff] }
  0x5e   :  { %528 = vmatpush.msra.mxu2 %v4484_v58  ;;  %548 = vmatpush.msra.mxu3 %v4485_v62  ;;  %v4470_v58 = vld [vmem:[%s10665_s1 + $0x2a0] sm:$0xff]  ;;  %v4471_v62 = vld [vmem:[%s10665_s1 + $0x2a8] sm:$0xff] }
  0x5f   :  { %488 = vmatpush.msra.mxu0 %v4482_v51  ;;  %508 = vmatpush.msra.mxu1 %v4483_v59  ;;  %v4476_v51 = vld [vmem:[%s10665_s1 + $0x2d0] sm:$0xff]  ;;  %v4477_v59 = vld [vmem:[%s10665_s1 + $0x2d8] sm:$0xff] }
  0x60   :  { %529 = vmatpush.msra.mxu2 %v4480_v50  ;;  %549 = vmatpush.msra.mxu3 %v4481_v63  ;;  %v4466_v50 = vld [vmem:[%s10665_s1 + $0x280] sm:$0xff]  ;;  %v4467_v63 = vld [vmem:[%s10665_s1 + $0x288] sm:$0xff] }
  0x61   :  { %489 = vmatpush.msra.mxu0 %v4478_v55  ;;  %509 = vmatpush.msra.mxu1 %v4479_v61  ;;  %v4472_v55 = vld [vmem:[%s10665_s1 + $0x2b0] sm:$0xff]  ;;  %v4473_v61 = vld [vmem:[%s10665_s1 + $0x2b8] sm:$0xff] }
  0x62   :  { %530 = vmatpush.msra.mxu2 %v4476_v51  ;;  %550 = vmatpush.msra.mxu3 %v4477_v59  ;;  %v4462_v51 = vld [vmem:[%s10665_s1 + $0x260] sm:$0xff]  ;;  %v4463_v59 = vld [vmem:[%s10665_s1 + $0x268] sm:$0xff] }
  0x63   :  { %490 = vmatpush.msra.mxu0 %v4474_v54  ;;  %510 = vmatpush.msra.mxu1 %v4475_v60  ;;  %v4468_v54 = vld [vmem:[%s10665_s1 + $0x290] sm:$0xff]  ;;  %v4469_v60 = vld [vmem:[%s10665_s1 + $0x298] sm:$0xff] }
  0x64   :  { %531 = vmatpush.msra.mxu2 %v4472_v55  ;;  %551 = vmatpush.msra.mxu3 %v4473_v61  ;;  %v4458_v55 = vld [vmem:[%s10665_s1 + $0x240] sm:$0xff]  ;;  %v4459_v61 = vld [vmem:[%s10665_s1 + $0x248] sm:$0xff] }
  0x65   :  { %491 = vmatpush.msra.mxu0 %v4470_v58  ;;  %511 = vmatpush.msra.mxu1 %v4471_v62  ;;  %v4464_v58 = vld [vmem:[%s10665_s1 + $0x270] sm:$0xff]  ;;  %v4465_v62 = vld [vmem:[%s10665_s1 + $0x278] sm:$0xff] }
  0x66   :  { %532 = vmatpush.msra.mxu2 %v4468_v54  ;;  %552 = vmatpush.msra.mxu3 %v4469_v60  ;;  %v4454_v54 = vld [vmem:[%s10665_s1 + $0x220] sm:$0xff]  ;;  %v4455_v60 = vld [vmem:[%s10665_s1 + $0x228] sm:$0xff] }
  0x67   :  { %492 = vmatpush.msra.mxu0 %v4466_v50  ;;  %512 = vmatpush.msra.mxu1 %v4467_v63  ;;  %v4460_v50 = vld [vmem:[%s10665_s1 + $0x250] sm:$0xff]  ;;  %v4461_v63 = vld [vmem:[%s10665_s1 + $0x258] sm:$0xff] }
  0x68   :  { %533 = vmatpush.msra.mxu2 %v4464_v58  ;;  %553 = vmatpush.msra.mxu3 %v4465_v62  ;;  %v4450_v58 = vld [vmem:[%s10665_s1 + $0x200] sm:$0xff]  ;;  %v4451_v62 = vld [vmem:[%s10665_s1 + $0x208] sm:$0xff] }
  0x69   :  { %493 = vmatpush.msra.mxu0 %v4462_v51  ;;  %513 = vmatpush.msra.mxu1 %v4463_v59  ;;  %v4456_v51 = vld [vmem:[%s10665_s1 + $0x230] sm:$0xff]  ;;  %v4457_v59 = vld [vmem:[%s10665_s1 + $0x238] sm:$0xff] }
  0x6a   :  { %534 = vmatpush.msra.mxu2 %v4460_v50  ;;  %554 = vmatpush.msra.mxu3 %v4461_v63  ;;  %v4443_v50 = vld [vmem:[%s10669_s5 + $0x2] sm:$0x3]  ;;  %s4424_s5 = sshll.u32 %s10673_s9, 4  ;;  %s4425_s5 = int_to_ptr.hbm [resolvable:$true] %s4424_s5 }
  0x6b   :  { %494 = vmatpush.msra.mxu0 %v4458_v55  ;;  %514 = vmatpush.msra.mxu1 %v4459_v61  ;;  %v4452_v55 = vld [vmem:[%s10665_s1 + $0x210] sm:$0xff]  ;;  %v4453_v61 = vld [vmem:[%s10665_s1 + $0x218] sm:$0xff] }
  0x6c   :  { %535 = vmatpush.msra.mxu2 %v4456_v51  ;;  %555 = vmatpush.msra.mxu3 %v4457_v59 }
  0x6d   :  { %495 = vmatpush.msra.mxu0 %v4454_v54  ;;  %515 = vmatpush.msra.mxu1 %v4455_v60 }
  0x6e   :  { %536 = vmatpush.msra.mxu2 %v4452_v55  ;;  %556 = vmatpush.msra.mxu3 %v4453_v61  ;;  %v37_v61 = vld [vmem:[%s10664_s0] sm:$0xff] }
  0x6f   :  { %496 = vmatpush.msra.mxu0 %v4450_v58  ;;  %516 = vmatpush.msra.mxu1 %v4451_v62 }
  0x70   :  { %417 = vmatmul.f32.vlgmr.msrb.gmra.mxu0 %v4443_v50  ;;  %437 = vmatmul.f32.vlgmr.msrb.gmra.mxu1 %v4443_v50 }
  0x71   :  { %457 = vmatmul.f32.vlgmr.msrb.gmra.mxu2 %v4443_v50  ;;  %477 = vmatmul.f32.vlgmr.msrb.gmra.mxu3 %v4443_v50 }
  0x72   :  { %710 = vmatpush.msrb.mxu0 %v5833_v7  ;;  %730 = vmatpush.msrb.mxu1 %v5826_v6 }
  0x73   :  { %750 = vmatpush.msrb.mxu2 %v5794_v0  ;;  %770 = vmatpush.msrb.mxu3 %v5799_v1 }
  0x74   :  { %711 = vmatpush.msrb.mxu0 %v5855_v11  ;;  %731 = vmatpush.msrb.mxu1 %v5838_v8 }
  0x75   :  { %751 = vmatpush.msrb.mxu2 %v5804_v2  ;;  %771 = vmatpush.msrb.mxu3 %v5811_v3 }
  0x76   :  { %712 = vmatpush.msrb.mxu0 %v5867_v13  ;;  %732 = vmatpush.msrb.mxu1 %v5862_v12 }
  0x77   :  { %752 = vmatpush.msrb.mxu2 %v5816_v4  ;;  %772 = vmatpush.msrb.mxu3 %v5821_v5 }
  0x78   :  { %713 = vmatpush.msrb.mxu0 %v5891_v17  ;;  %733 = vmatpush.msrb.mxu1 %v5886_v16 }
  0x79   :  { %753 = vmatpush.msrb.mxu2 %v5844_v9  ;;  %773 = vmatpush.msrb.mxu3 %v5849_v10 }
  0x7a   :  { %714 = vmatpush.msrb.mxu0 %v5915_v21  ;;  %734 = vmatpush.msrb.mxu1 %v5910_v20  ;;  %v10775_v20 = vld [vmem:[#allocation10_spill] sm:$0xff] }
  0x7b   :  { %754 = vmatpush.msrb.mxu2 %v5873_v14  ;;  %774 = vmatpush.msrb.mxu3 %v5878_v15 }
  0x7c   :  { %715 = vmatpush.msrb.mxu0 %v5939_v25  ;;  %735 = vmatpush.msrb.mxu1 %v5934_v24  ;;  %v10777_v24 = vld [vmem:[#allocation15_spill] sm:$0xff] }
  0x7d   :  { %755 = vmatpush.msrb.mxu2 %v5897_v18  ;;  %775 = vmatpush.msrb.mxu3 %v5902_v19  ;;  %v10774_v19 = vld [vmem:[#allocation9_spill] sm:$0xff] }
  0x7e   :  { %716 = vmatpush.msrb.mxu0 %v5963_v29  ;;  %736 = vmatpush.msrb.mxu1 %v5958_v28  ;;  %v10778_v28 = vld [vmem:[#allocation11_spill] sm:$0xff]  ;;  %v10779_v29 = vld [vmem:[#allocation12_spill] sm:$0xff] }
  0x7f   :  { %756 = vmatpush.msrb.mxu2 %v5921_v22  ;;  %776 = vmatpush.msrb.mxu3 %v5926_v23  ;;  %v10776_v23 = vld [vmem:[#allocation16_spill] sm:$0xff] }
  0x80   :  { %717 = vmatpush.msrb.mxu0 %v5987_v33  ;;  %737 = vmatpush.msrb.mxu1 %v5982_v32  ;;  %v10780_v32 = vld [vmem:[#allocation20_spill] sm:$0xff]  ;;  %v10781_v33 = vld [vmem:[#allocation19_spill] sm:$0xff] }
  0x81   :  { %757 = vmatpush.msrb.mxu2 %v5945_v26  ;;  %777 = vmatpush.msrb.mxu3 %v5950_v27 }
  0x82   :  { %718 = vmatpush.msrb.mxu0 %v6011_v37  ;;  %738 = vmatpush.msrb.mxu1 %v6006_v36  ;;  %v10782_v36 = vld [vmem:[#allocation13_spill] sm:$0xff]  ;;  %v10783_v37 = vld [vmem:[#allocation14_spill] sm:$0xff] }
  0x83   :  { %758 = vmatpush.msrb.mxu2 %v5969_v30  ;;  %778 = vmatpush.msrb.mxu3 %v5974_v31 }
  0x84   :  { %719 = vmatpush.msrb.mxu0 %v6035_v41  ;;  %739 = vmatpush.msrb.mxu1 %v6030_v40 }
  0x85   :  { %759 = vmatpush.msrb.mxu2 %v5993_v34  ;;  %779 = vmatpush.msrb.mxu3 %v5998_v35 }
  0x86   :  { %720 = vmatpush.msrb.mxu0 %v6059_v45  ;;  %740 = vmatpush.msrb.mxu1 %v6054_v44  ;;  %v34_v45 = vld [vmem:[%s10670_s6] sm:$0x3] }
  0x87   :  { %760 = vmatpush.msrb.mxu2 %v6017_v38  ;;  %780 = vmatpush.msrb.mxu3 %v6022_v39 }
  0x88   :  { %721 = vmatpush.msrb.mxu0 %v6083_v49  ;;  %741 = vmatpush.msrb.mxu1 %v6078_v48 }
  0x89   :  { %761 = vmatpush.msrb.mxu2 %v6041_v42  ;;  %781 = vmatpush.msrb.mxu3 %v6046_v43 }
  0x8a   :  { %722 = vmatpush.msrb.mxu0 %v6107_v53  ;;  %742 = vmatpush.msrb.mxu1 %v6102_v52 }
  0x8b   :  { %762 = vmatpush.msrb.mxu2 %v6065_v46  ;;  %782 = vmatpush.msrb.mxu3 %v6070_v47 }
  0x8c   :  { %723 = vmatpush.msrb.mxu0 %v6131_v57  ;;  %743 = vmatpush.msrb.mxu1 %v6126_v56 }
  0x8d   :  { %763 = vmatpush.msrb.mxu2 %v10774_v19  ;;  %783 = vmatpush.msrb.mxu3 %v10775_v20  ;;  %v10804_v19 = vld [vmem:[#allocation41_spill] sm:$0xff]  ;;  %v10805_v20 = vld [vmem:[#allocation42_spill] sm:$0xff] }
  0x8e   :  { %724 = vmatpush.msrb.mxu0 %v10776_v23  ;;  %744 = vmatpush.msrb.mxu1 %v10777_v24  ;;  %v10808_v23 = vld [vmem:[#allocation45_spill] sm:$0xff]  ;;  %v10809_v24 = vld [vmem:[#allocation46_spill] sm:$0xff] }
  0x8f   :  { %764 = vmatpush.msrb.mxu2 %v10778_v28  ;;  %784 = vmatpush.msrb.mxu3 %v10779_v29  ;;  %v10813_v28 = vld [vmem:[#allocation50_spill] sm:$0xff]  ;;  %v10814_v29 = vld [vmem:[#allocation47_spill] sm:$0xff] }
  0x90   :  { %725 = vmatpush.msrb.mxu0 %v10780_v32  ;;  %745 = vmatpush.msrb.mxu1 %v10781_v33  ;;  %v10817_v32 = vld [vmem:[#allocation54_spill] sm:$0xff]  ;;  %v10818_v33 = vld [vmem:[#allocation51_spill] sm:$0xff] }
  0x91   :  { %765 = vmatpush.msrb.mxu2 %v10782_v36  ;;  %785 = vmatpush.msrb.mxu3 %v10783_v37  ;;  %v10821_v36 = vld [vmem:[#allocation58_spill] sm:$0xff]  ;;  %v10822_v37 = vld [vmem:[#allocation55_spill] sm:$0xff] }
  0xa1   :  { %v139_v63 = vpop.f32.mrf.mxu1  ;;  %v119_v54 = vpop.f32.mrf.mxu0 }
  0xa2   :  { %v186_v60 = vrot.slane %v139_v63, 6 }
  0xa4   :  { %v159_v51 = vpop.f32.mrf.mxu2  ;;  %v179_v59 = vpop.f32.mrf.mxu3  ;;  %v190_v55 = vsel %vm189_vm0, %v119_v54, %v186_v60 }
  0xa5   :  { %v187_v58 = vrot.slane %v159_v51, 4  ;;  %v188_v62 = vrot.slane %v179_v59, 2 }
  0xa7   :  { %v192_v7 = vsel %vm191_vm1, %v187_v58, %v188_v62 }
  0xa8   :  { %v194_v6 = vsel %vm193_vm2, %v190_v55, %v192_v7  ;;  %v10784_v55 = vld [vmem:[#allocation21_spill] sm:$0xff] }
  0xa9   :  { %v6701_v0 = vadd.f32 %v194_v6, %v37_v61  ;;  %v10785_v61 = vld [vmem:[#allocation22_spill] sm:$0xff]  ;;  %v10786_v7 = vld [vmem:[#allocation17_spill] sm:$0xff] }
  0xaa   :  { %v10787_v6 = vld [vmem:[#allocation18_spill] sm:$0xff] }
  0xab   :  { %v4445_v1 = vmul.f32 -1.442695, %v6701_v0  ;;  %v217_v2 = vrot.slane %v6701_v0, 2  ;;  %v241_v3 = vrot.slane %v6701_v0, 6  ;;  %v238_v18 = vrot.slane %v6701_v0, 4  ;;  %v10788_v0 = vld [vmem:[#allocation25_spill] sm:$0xff] }
  0xad   :  { %5429 = vpow2.f32 %v4445_v1  ;;  %v4446_v4 = vmul.f32 -1.442695, %v217_v2  ;;  %v4447_v5 = vmul.f32 -1.442695, %v241_v3  ;;  %v10789_v1 = vld [vmem:[#allocation26_spill] sm:$0xff]  ;;  %v10790_v2 = vld [vmem:[#allocation23_spill] sm:$0xff] }
  0xae   :  { %v10791_v3 = vld [vmem:[#allocation24_spill] sm:$0xff] }
  0xaf   :  { %5431 = vpow2.f32 %v4446_v4 }
  0xb0   :  { %5433 = vpow2.f32 %v4447_v5  ;;  %v10792_v5 = vld [vmem:[#allocation29_spill] sm:$0xff] }
  0xb3   :  { %v5430_v8 = vpop.eup %5429 }
  0xb4   :  { %v6728_v9 = vadd.f32 1.0, %v5430_v8  ;;  %v10793_v8 = vld [vmem:[#allocation30_spill] sm:$0xff] }
  0xb5   :  { %v5432_v10 = vpop.eup %5431 }
  0xb6   :  { %v5434_v11 = vpop.eup %5433  ;;  %5435 = vrcp.f32 %v6728_v9  ;;  %v6737_v12 = vadd.f32 1.0, %v5432_v10  ;;  %v212_v26 = vand.u32 2147483648, %v6728_v9  ;;  %v210_v30 = vand.u32 2147483647, %v6728_v9  ;;  %v10795_v10 = vld [vmem:[#allocation28_spill] sm:$0xff] }
  0xb7   :  { %v6739_v13 = vadd.f32 1.0, %v5434_v11  ;;  %vm206_vm4 = vweird.f32 %v6728_v9  ;;  %v10796_v11 = vld [vmem:[#allocation33_spill] sm:$0xff] }
  0xb8   :  { %5437 = vrcp.f32 %v6737_v12  ;;  %v234_v35 = vand.u32 2147483648, %v6737_v12  ;;  %v232_v39 = vand.u32 2147483647, %v6737_v12  ;;  %v213_v41 = vor.u32 1.1754944e-38, %v212_v26  ;;  %v10811_v26 = vld [vmem:[#allocation44_spill] sm:$0xff] }
  0xb9   :  { %5439 = vrcp.f32 %v6739_v13  ;;  %vm211_vm7 = vcmp.eq.f32.partialorder %v210_v30, 8.507059e+37  ;;  %vm228_vm8 = vweird.f32 %v6737_v12  ;;  %v258_v63 = vand.u32 2147483648, %v6739_v13  ;;  %v10815_v30 = vld [vmem:[#allocation48_spill] sm:$0xff] }
  0xba   :  { %5441 = vtanh.f32 %v238_v18  ;;  %v235_v46 = vor.u32 1.1754944e-38, %v234_v35  ;;  %vm233_vm10 = vcmp.eq.f32.partialorder %v232_v39, 8.507059e+37  ;;  %vm252_vm12 = vweird.f32 %v6739_v13  ;;  %v10803_v18 = vld [vmem:[#allocation36_spill] sm:$0xff]  ;;  %v10820_v35 = vld [vmem:[#allocation57_spill] sm:$0xff]  ;;  %v4674_v39 = vld [vmem:[%s10666_s2 + $0x2a0] sm:$0xff] }
  0xbb   :  { %v256_v54 = vand.u32 2147483647, %v6739_v13  ;;  %v259_v51 = vor.u32 1.1754944e-38, %v258_v63  ;;  %v4665_v63 = vld [vmem:[%s10666_s2 + $0x258] sm:$0xff] }
  0xbc   :  { %v5436_v14 = vpop.eup %5435 }
  0xbd   :  { %v202_v15 = vmul.f32 %v5436_v14, %v6728_v9  ;;  %vm207_vm3 = vweird.f32 %v5436_v14  ;;  %vm257_vm14 = vcmp.eq.f32.partialorder %v256_v54, 8.507059e+37  ;;  %v10794_v9 = vld [vmem:[#allocation27_spill] sm:$0xff] }
  0xbe   :  { %v5438_v16 = vpop.eup %5437  ;;  %vm208_vm5 = vmor %vm206_vm4, %vm207_vm3  ;;  %v4658_v54 = vld [vmem:[%s10666_s2 + $0x220] sm:$0xff] }
  0xbf   :  { %v203_v17 = vsub.f32 1.0, %v202_v15  ;;  %v5440_v21 = vpop.eup %5439  ;;  %v224_v22 = vmul.f32 %v5438_v16, %v6737_v12  ;;  %vm229_vm6 = vweird.f32 %v5438_v16  ;;  %v10797_v12 = vld [vmem:[#allocation34_spill] sm:$0xff]  ;;  %v10800_v15 = vld [vmem:[#allocation37_spill] sm:$0xff] }
  0xc0   :  { %v248_v27 = vmul.f32 %v5440_v21, %v6739_v13  ;;  %vm230_vm9 = vmor %vm228_vm8, %vm229_vm6  ;;  %v5442_v48 = vpop.eup %5441  ;;  %vm253_vm11 = vweird.f32 %v5440_v21  ;;  %v10798_v13 = vld [vmem:[#allocation31_spill] sm:$0xff] }
  0xc1   :  { %v204_v25 = vmul.f32 %v5436_v14, %v203_v17  ;;  %v225_v31 = vsub.f32 1.0, %v224_v22  ;;  %vm254_vm13 = vmor %vm252_vm12, %vm253_vm11  ;;  %v10802_v17 = vld [vmem:[#allocation35_spill] sm:$0xff]  ;;  %v10807_v22 = vld [vmem:[#allocation40_spill] sm:$0xff] }
  0xc2   :  { %v249_v42 = vsub.f32 1.0, %v248_v27  ;;  %v10812_v27 = vld [vmem:[#allocation49_spill] sm:$0xff] }
  0xc3   :  { %v205_v34 = vadd.f32 %v5436_v14, %v204_v25  ;;  %v226_v38 = vmul.f32 %v5438_v16, %v225_v31  ;;  %v10810_v25 = vld [vmem:[#allocation43_spill] sm:$0xff]  ;;  %v10816_v31 = vld [vmem:[#allocation53_spill] sm:$0xff] }
  0xc4   :  { %v250_v52 = vmul.f32 %v5440_v21, %v249_v42  ;;  %v4677_v42 = vld [vmem:[%s10666_s2 + $0x2b8] sm:$0xff] }
  0xc5   :  { %v209_v40 = vsel %vm208_vm5, %v5436_v14, %v205_v34  ;;  %v227_v43 = vadd.f32 %v5438_v16, %v226_v38  ;;  %v10799_v14 = vld [vmem:[#allocation32_spill] sm:$0xff] }
  0xc6   :  { %v214_v44 = vsel %vm211_vm7, %v213_v41, %v209_v40  ;;  %v251_v50 = vadd.f32 %v5440_v21, %v250_v52  ;;  %v10819_v34 = vld [vmem:[#allocation52_spill] sm:$0xff]  ;;  %v4669_v52 = vld [vmem:[%s10666_s2 + $0x278] sm:$0xff] }
  0xc7   :  { %v231_v47 = vsel %vm230_vm9, %v5438_v16, %v227_v43  ;;  %v263_v53 = vmul.f32 %v5442_v48, %v214_v44  ;;  %v10801_v16 = vld [vmem:[#allocation38_spill] sm:$0xff]  ;;  %v10823_v38 = vld [vmem:[#allocation56_spill] sm:$0xff] }
  0xc8   :  { %v236_v49 = vsel %vm233_vm10, %v235_v46, %v231_v47  ;;  %v255_v60 = vsel %vm254_vm13, %v5440_v21, %v251_v50  ;;  %v10806_v21 = vld [vmem:[#allocation39_spill] sm:$0xff]  ;;  %v4676_v41 = vld [vmem:[%s10666_s2 + $0x2b0] sm:$0xff]  ;;  %v4673_v46 = vld [vmem:[%s10666_s2 + $0x298] sm:$0xff] }
  0xc9   :  { %v262_v56 = vmul.f32 %v236_v49, %v34_v45  ;;  %v260_v58 = vsel %vm257_vm14, %v259_v51, %v255_v60  ;;  %v4675_v40 = vld [vmem:[%s10666_s2 + $0x2a8] sm:$0xff]  ;;  %v4670_v43 = vld [vmem:[%s10666_s2 + $0x280] sm:$0xff]  ;;  %v4672_v45 = vld [vmem:[%s10666_s2 + $0x290] sm:$0xff] }
  0xca   :  { %v4671_v44 = vld [vmem:[%s10666_s2 + $0x288] sm:$0xff]  ;;  %v4666_v47 = vld [vmem:[%s10666_s2 + $0x260] sm:$0xff]  ;;  %v4668_v49 = vld [vmem:[%s10666_s2 + $0x270] sm:$0xff] }
  0xcb   :  { %v6783_v57 = vadd.f32 %v263_v53, %v262_v56  ;;  %v4667_v48 = vld [vmem:[%s10666_s2 + $0x268] sm:$0xff]  ;;  %v4662_v53 = vld [vmem:[%s10666_s2 + $0x240] sm:$0xff]  ;;  %v4664_v50 = vld [vmem:[%s10666_s2 + $0x250] sm:$0xff] }
  0xcc   :  { %v4663_v56 = vld [vmem:[%s10666_s2 + $0x248] sm:$0xff]  ;;  %v4660_v51 = vld [vmem:[%s10666_s2 + $0x230] sm:$0xff] }
  0xcd   :  { %5443 = vtanh.f32 %v6783_v57  ;;  %v4659_v60 = vld [vmem:[%s10666_s2 + $0x228] sm:$0xff] }
  0xd3   :  { %v5444_v59 = vpop.eup %5443 }
  0xd4   :  { %v266_v62 = vmul.f32 %v5444_v59, %v260_v58  ;;  %v4661_v59 = vld [vmem:[%s10666_s2 + $0x238] sm:$0xff]  ;;  %v4654_v58 = vld [vmem:[%s10666_s2 + $0x200] sm:$0xff] }
  0xd6   :  { %497 = vmatmul.f32.vlgmr.msra.gmra.mxu0 %v266_v62  ;;  %517 = vmatmul.f32.vlgmr.msra.gmra.mxu1 %v266_v62  ;;  %v4448_v4 = vclamps-f32 %v266_v62, 50.0 }
  0xd7   :  { %537 = vmatmul.f32.vlgmr.msra.gmra.mxu2 %v266_v62  ;;  %557 = vmatmul.f32.vlgmr.msra.gmra.mxu3 %v266_v62  ;;  %v4655_v62 = vld [vmem:[%s10666_s2 + $0x208] sm:$0xff] }
  0xd8   :  { %1004 = vmatpush.msra.mxu0 %v10784_v55  ;;  %1024 = vmatpush.msra.mxu1 %v10785_v61  ;;  %v4656_v55 = vld [vmem:[%s10666_s2 + $0x210] sm:$0xff]  ;;  %v4657_v61 = vld [vmem:[%s10666_s2 + $0x218] sm:$0xff] }
  0xd9   :  { %1044 = vmatpush.msra.mxu2 %v10786_v7  ;;  %1064 = vmatpush.msra.mxu3 %v10787_v6  ;;  %v4650_v7 = vld [vmem:[%s10665_s1 + $0x3e0] sm:$0xff] }
  0xda   :  { %1005 = vmatpush.msra.mxu0 %v10788_v0  ;;  %1025 = vmatpush.msra.mxu1 %v10789_v1  ;;  %v4651_v0 = vld [vmem:[%s10665_s1 + $0x3e8] sm:$0xff]  ;;  %v4652_v1 = vld [vmem:[%s10665_s1 + $0x3f0] sm:$0xff] }
  0xdb   :  { %1045 = vmatpush.msra.mxu2 %v10790_v2  ;;  %1065 = vmatpush.msra.mxu3 %v10791_v3  ;;  %v4653_v2 = vld [vmem:[%s10665_s1 + $0x3f8] sm:$0xff]  ;;  %v4646_v3 = vld [vmem:[%s10665_s1 + $0x3c0] sm:$0xff] }
  0xdc   :  { %1006 = vmatpush.msra.mxu0 %v10792_v5  ;;  %1026 = vmatpush.msra.mxu1 %v10793_v8  ;;  %v4648_v5 = vld [vmem:[%s10665_s1 + $0x3d0] sm:$0xff] }
  0xdd   :  { %1046 = vmatpush.msra.mxu2 %v10794_v9  ;;  %1066 = vmatpush.msra.mxu3 %v10795_v10  ;;  %v4649_v9 = vld [vmem:[%s10665_s1 + $0x3d8] sm:$0xff]  ;;  %v4642_v10 = vld [vmem:[%s10665_s1 + $0x3a0] sm:$0xff] }
  0xde   :  { %726 = vmatmul.f32.vlgmr.msrb.gmra.mxu0 %v4448_v4  ;;  %746 = vmatmul.f32.vlgmr.msrb.gmra.mxu1 %v4448_v4 }
  0xdf   :  { %766 = vmatmul.f32.vlgmr.msrb.gmra.mxu2 %v4448_v4  ;;  %786 = vmatmul.f32.vlgmr.msrb.gmra.mxu3 %v4448_v4  ;;  %v4647_v4 = vld [vmem:[%s10665_s1 + $0x3c8] sm:$0xff] }
  0xe0   :  { %1007 = vmatpush.msra.mxu0 %v10796_v11  ;;  %1027 = vmatpush.msra.mxu1 %v10797_v12  ;;  %v4643_v11 = vld [vmem:[%s10665_s1 + $0x3a8] sm:$0xff]  ;;  %v4644_v12 = vld [vmem:[%s10665_s1 + $0x3b0] sm:$0xff] }
  0xe1   :  { %1047 = vmatpush.msra.mxu2 %v10798_v13  ;;  %1067 = vmatpush.msra.mxu3 %v10799_v14  ;;  %v4645_v13 = vld [vmem:[%s10665_s1 + $0x3b8] sm:$0xff]  ;;  %v4638_v14 = vld [vmem:[%s10665_s1 + $0x380] sm:$0xff] }
  0xe2   :  { %1008 = vmatpush.msra.mxu0 %v10800_v15  ;;  %1028 = vmatpush.msra.mxu1 %v10801_v16  ;;  %v4639_v15 = vld [vmem:[%s10665_s1 + $0x388] sm:$0xff]  ;;  %v4640_v16 = vld [vmem:[%s10665_s1 + $0x390] sm:$0xff] }
  0xe3   :  { %1048 = vmatpush.msra.mxu2 %v10802_v17  ;;  %1068 = vmatpush.msra.mxu3 %v10803_v18  ;;  %v6949_v17 = vld [vmem:[%s10667_s3 + $0x4] sm:$0xf]  ;;  %v4641_v18 = vld [vmem:[%s10665_s1 + $0x398] sm:$0xff] }
  0xe4   :  { %1009 = vmatpush.msra.mxu0 %v10804_v19  ;;  %1029 = vmatpush.msra.mxu1 %v10805_v20  ;;  %v4634_v19 = vld [vmem:[%s10665_s1 + $0x360] sm:$0xff]  ;;  %v4635_v20 = vld [vmem:[%s10665_s1 + $0x368] sm:$0xff] }
  0xe5   :  { %1049 = vmatpush.msra.mxu2 %v10806_v21  ;;  %1069 = vmatpush.msra.mxu3 %v10807_v22  ;;  %v4636_v21 = vld [vmem:[%s10665_s1 + $0x370] sm:$0xff]  ;;  %v4637_v22 = vld [vmem:[%s10665_s1 + $0x378] sm:$0xff] }
  0xe6   :  { %1010 = vmatpush.msra.mxu0 %v10808_v23  ;;  %1030 = vmatpush.msra.mxu1 %v10809_v24 }
  0xe7   :  { %1050 = vmatpush.msra.mxu2 %v10810_v25  ;;  %1070 = vmatpush.msra.mxu3 %v10811_v26  ;;  %v564_v25 = vperm.slane %v6949_v17, 0  ;;  %v565_v26 = vperm.slane %v6949_v17, 1 }
  0xe8   :  { %1011 = vmatpush.msra.mxu0 %v10812_v27  ;;  %1031 = vmatpush.msra.mxu1 %v10813_v28  ;;  %v4630_v27 = vld [vmem:[%s10665_s1 + $0x340] sm:$0xff]  ;;  %v4631_v28 = vld [vmem:[%s10665_s1 + $0x348] sm:$0xff] }
  0xe9   :  { %1051 = vmatpush.msra.mxu2 %v10814_v29  ;;  %1071 = vmatpush.msra.mxu3 %v10815_v30  ;;  %v4632_v29 = vld [vmem:[%s10665_s1 + $0x350] sm:$0xff] }
  0xea   :  { %1012 = vmatpush.msra.mxu0 %v10816_v31  ;;  %1032 = vmatpush.msra.mxu1 %v10817_v32  ;;  %v4633_v32 = vld [vmem:[%s10665_s1 + $0x358] sm:$0xff] }
  0xeb   :  { %1052 = vmatpush.msra.mxu2 %v10818_v33  ;;  %1072 = vmatpush.msra.mxu3 %v10819_v34 }
  0xec   :  { %1013 = vmatpush.msra.mxu0 %v10820_v35  ;;  %1033 = vmatpush.msra.mxu1 %v10821_v36  ;;  %v4626_v35 = vld [vmem:[%s10665_s1 + $0x320] sm:$0xff]  ;;  %v4627_v36 = vld [vmem:[%s10665_s1 + $0x328] sm:$0xff] }
  0xed   :  { %1053 = vmatpush.msra.mxu2 %v10822_v37  ;;  %1073 = vmatpush.msra.mxu3 %v10823_v38  ;;  %v418_v6 = vpop.f32.mrf.mxu0  ;;  %v438_v8 = vpop.f32.mrf.mxu1  ;;  %v4628_v37 = vld [vmem:[%s10665_s1 + $0x330] sm:$0xff]  ;;  %v4629_v38 = vld [vmem:[%s10665_s1 + $0x338] sm:$0xff] }
  0xee   :  { %1014 = vmatpush.msra.mxu0 %v4674_v39  ;;  %1034 = vmatpush.msra.mxu1 %v4675_v40 }
  0xef   :  { %1054 = vmatpush.msra.mxu2 %v4676_v41  ;;  %1074 = vmatpush.msra.mxu3 %v4677_v42  ;;  %v4622_v41 = vld [vmem:[%s10665_s1 + $0x300] sm:$0xff]  ;;  %v4623_v42 = vld [vmem:[%s10665_s1 + $0x308] sm:$0xff] }
  0xf0   :  { %1015 = vmatpush.msra.mxu0 %v4670_v43  ;;  %1035 = vmatpush.msra.mxu1 %v4671_v44  ;;  %v4624_v43 = vld [vmem:[%s10665_s1 + $0x310] sm:$0xff]  ;;  %v4625_v44 = vld [vmem:[%s10665_s1 + $0x318] sm:$0xff] }
  0xf1   :  { %1055 = vmatpush.msra.mxu2 %v4672_v45  ;;  %1075 = vmatpush.msra.mxu3 %v4673_v46 }
  0xf2   :  { %1016 = vmatpush.msra.mxu0 %v4666_v47  ;;  %1036 = vmatpush.msra.mxu1 %v4667_v48  ;;  %v4618_v47 = vld [vmem:[%s10665_s1 + $0x2e0] sm:$0xff]  ;;  %v4619_v48 = vld [vmem:[%s10665_s1 + $0x2e8] sm:$0xff] }
  0xf3   :  { %1056 = vmatpush.msra.mxu2 %v4668_v49  ;;  %1076 = vmatpush.msra.mxu3 %v4669_v52  ;;  %v567_v49 = vperm.slane %v6949_v17, 3  ;;  %v4620_v52 = vld [vmem:[%s10665_s1 + $0x2f0] sm:$0xff] }
  0xf4   :  { %1017 = vmatpush.msra.mxu0 %v4662_v53  ;;  %1037 = vmatpush.msra.mxu1 %v4663_v56  ;;  %v6966_v23 = vpop.f32.mrf.mxu2  ;;  %v478_v24 = vpop.f32.mrf.mxu3  ;;  %v4621_v53 = vld [vmem:[%s10665_s1 + $0x2f8] sm:$0xff] }
  0xf5   :  { %1057 = vmatpush.msra.mxu2 %v4664_v50  ;;  %1077 = vmatpush.msra.mxu3 %v4665_v63  ;;  %v4614_v63 = vld [vmem:[%s10665_s1 + $0x2c0] sm:$0xff] }
  0xf6   :  { %1018 = vmatpush.msra.mxu0 %v4658_v54  ;;  %1038 = vmatpush.msra.mxu1 %v4659_v60  ;;  %v4615_v54 = vld [vmem:[%s10665_s1 + $0x2c8] sm:$0xff]  ;;  %v4616_v60 = vld [vmem:[%s10665_s1 + $0x2d0] sm:$0xff] }
  0xf7   :  { %1058 = vmatpush.msra.mxu2 %v4660_v51  ;;  %1078 = vmatpush.msra.mxu3 %v4661_v59  ;;  %v4617_v59 = vld [vmem:[%s10665_s1 + $0x2d8] sm:$0xff] }
  0xf8   :  { %1019 = vmatpush.msra.mxu0 %v4654_v58  ;;  %1039 = vmatpush.msra.mxu1 %v4655_v62  ;;  %v4610_v58 = vld [vmem:[%s10665_s1 + $0x2a0] sm:$0xff]  ;;  %v4611_v62 = vld [vmem:[%s10665_s1 + $0x2a8] sm:$0xff] }
  0xf9   :  { %1059 = vmatpush.msra.mxu2 %v4656_v55  ;;  %1079 = vmatpush.msra.mxu3 %v4657_v61  ;;  %v4612_v55 = vld [vmem:[%s10665_s1 + $0x2b0] sm:$0xff] }
  0xfa   :  { %1084 = vmatpush.msrb.mxu0 %v4650_v7  ;;  %1104 = vmatpush.msrb.mxu1 %v4651_v0  ;;  %v4613_v7 = vld [vmem:[%s10665_s1 + $0x2b8] sm:$0xff]  ;;  %v4607_v0 = vld [vmem:[%s10665_s1 + $0x288] sm:$0xff] }
  0xfb   :  { %1124 = vmatpush.msrb.mxu2 %v4652_v1  ;;  %1144 = vmatpush.msrb.mxu3 %v4653_v2  ;;  %v4608_v1 = vld [vmem:[%s10665_s1 + $0x290] sm:$0xff] }
  0xfc   :  { %1085 = vmatpush.msrb.mxu0 %v4646_v3  ;;  %1105 = vmatpush.msrb.mxu1 %v4647_v4  ;;  %v4609_v3 = vld [vmem:[%s10665_s1 + $0x298] sm:$0xff] }
  0xfd   :  { %1125 = vmatpush.msrb.mxu2 %v4648_v5  ;;  %1145 = vmatpush.msrb.mxu3 %v4649_v9  ;;  %v4603_v9 = vld [vmem:[%s10665_s1 + $0x268] sm:$0xff] }
  0xfe   :  { %1086 = vmatpush.msrb.mxu0 %v4642_v10  ;;  %1106 = vmatpush.msrb.mxu1 %v4643_v11  ;;  %v4604_v10 = vld [vmem:[%s10665_s1 + $0x270] sm:$0xff] }
  0xff   :  { %1126 = vmatpush.msrb.mxu2 %v4644_v12  ;;  %1146 = vmatpush.msrb.mxu3 %v4645_v13  ;;  %v4605_v13 = vld [vmem:[%s10665_s1 + $0x278] sm:$0xff] }
 0x100   :  { %1087 = vmatpush.msrb.mxu0 %v4638_v14  ;;  %1107 = vmatpush.msrb.mxu1 %v4639_v15  ;;  %v4598_v14 = vld [vmem:[%s10665_s1 + $0x240] sm:$0xff]  ;;  %v4599_v15 = vld [vmem:[%s10665_s1 + $0x248] sm:$0xff] }
 0x101   :  { %1127 = vmatpush.msrb.mxu2 %v4640_v16  ;;  %1147 = vmatpush.msrb.mxu3 %v4641_v18 }
 0x102   :  { %1088 = vmatpush.msrb.mxu0 %v4634_v19  ;;  %1108 = vmatpush.msrb.mxu1 %v4635_v20  ;;  %v4600_v20 = vld [vmem:[%s10665_s1 + $0x250] sm:$0xff] }
 0x103   :  { %1128 = vmatpush.msrb.mxu2 %v4636_v21  ;;  %1148 = vmatpush.msrb.mxu3 %v4637_v22  ;;  %v4601_v21 = vld [vmem:[%s10665_s1 + $0x258] sm:$0xff] }
 0x104   :  { %1089 = vmatpush.msrb.mxu0 %v4630_v27  ;;  %1109 = vmatpush.msrb.mxu1 %v4631_v28  ;;  %v566_v27 = vperm.slane %v6949_v17, 2  ;;  %v4596_v28 = vld [vmem:[%s10665_s1 + $0x230] sm:$0xff]  ;;  %v4591_v17 = vld [vmem:[%s10665_s1 + $0x208] sm:$0xff] }
 0x105   :  { %1129 = vmatpush.msrb.mxu2 %v4632_v29  ;;  %1149 = vmatpush.msrb.mxu3 %v4633_v32  ;;  %v4597_v29 = vld [vmem:[%s10665_s1 + $0x238] sm:$0xff] }
 0x106   :  { %1090 = vmatpush.msrb.mxu0 %v4626_v35  ;;  %1110 = vmatpush.msrb.mxu1 %v4627_v36  ;;  %v4593_v35 = vld [vmem:[%s10665_s1 + $0x218] sm:$0xff] }
 0x107   :  { %1130 = vmatpush.msrb.mxu2 %v4628_v37  ;;  %1150 = vmatpush.msrb.mxu3 %v4629_v38 }
 0x108   :  { %1091 = vmatpush.msrb.mxu0 %v4622_v41  ;;  %1111 = vmatpush.msrb.mxu1 %v4623_v42 }
 0x109   :  { %1131 = vmatpush.msrb.mxu2 %v4624_v43  ;;  %1151 = vmatpush.msrb.mxu3 %v4625_v44 }
 0x10a   :  { %1092 = vmatpush.msrb.mxu0 %v4618_v47  ;;  %1112 = vmatpush.msrb.mxu1 %v4619_v48 }
 0x10b   :  { %1132 = vmatpush.msrb.mxu2 %v4620_v52  ;;  %1152 = vmatpush.msrb.mxu3 %v4621_v53 }
 0x10c   :  { %1093 = vmatpush.msrb.mxu0 %v4614_v63  ;;  %1113 = vmatpush.msrb.mxu1 %v4615_v54 }
 0x10d   :  { %1133 = vmatpush.msrb.mxu2 %v4616_v60  ;;  %1153 = vmatpush.msrb.mxu3 %v4617_v59 }
 0x10e   :  { %1094 = vmatpush.msrb.mxu0 %v4610_v58  ;;  %1114 = vmatpush.msrb.mxu1 %v4611_v62 }
 0x10f   :  { %1134 = vmatpush.msrb.mxu2 %v4612_v55  ;;  %1154 = vmatpush.msrb.mxu3 %v4613_v7 }
 0x110   :  { %1115 = vmatpush.msrb.mxu1 %v4607_v0 }
 0x111   :  { %1135 = vmatpush.msrb.mxu2 %v4608_v1  ;;  %1155 = vmatpush.msrb.mxu3 %v4609_v3 }
 0x112   :  { %1116 = vmatpush.msrb.mxu1 %v4603_v9 }
 0x113   :  { %1136 = vmatpush.msrb.mxu2 %v4604_v10  ;;  %1156 = vmatpush.msrb.mxu3 %v4605_v13 }
 0x114   :  { %1117 = vmatpush.msrb.mxu1 %v4599_v15 }
 0x115   :  { %1137 = vmatpush.msrb.mxu2 %v4600_v20  ;;  %1157 = vmatpush.msrb.mxu3 %v4601_v21 }
 0x117   :  { %1138 = vmatpush.msrb.mxu2 %v4596_v28  ;;  %1158 = vmatpush.msrb.mxu3 %v4597_v29 }
 0x119   :  { %1159 = vmatpush.msrb.mxu3 %v4593_v35 }
 0x153   :  { %v498_v30 = vpop.f32.mrf.mxu0  ;;  %v518_v31 = vpop.f32.mrf.mxu1 }
 0x154   :  { %v499_v33 = vadd.f32 %v498_v30, %v418_v6  ;;  %v519_v34 = vadd.f32 %v518_v31, %v438_v8  ;;  %v4606_v6 = vld [vmem:[%s10665_s1 + $0x280] sm:$0xff] }
 0x155   :  { %1095 = vmatpush.msrb.mxu0 %v4606_v6  ;;  %v4602_v8 = vld [vmem:[%s10665_s1 + $0x260] sm:$0xff] }
 0x156   :  { %v572_v39 = vadd.f32 %v564_v25, %v499_v33  ;;  %v573_v40 = vadd.f32 %v565_v26, %v519_v34  ;;  %v4595_v25 = vld [vmem:[%s10665_s1 + $0x228] sm:$0xff]  ;;  %v4592_v34 = vld [vmem:[%s10665_s1 + $0x210] sm:$0xff] }
 0x157   :  { %1096 = vmatpush.msrb.mxu0 %v4602_v8  ;;  %v4584_v33 = vld [vmem:[%s10664_s0 + $0x8] sm:$0xff]  ;;  %1118 = vmatpush.msrb.mxu1 %v4595_v25 }
 0x158   :  { %v4579_v45 = vmul.f32 -1.442695, %v572_v39  ;;  %v4580_v46 = vmul.f32 -1.442695, %v573_v40  ;;  %1139 = vmatpush.msrb.mxu2 %v4592_v34 }
 0x159   :  { %1097 = vmatpush.msrb.mxu0 %v4598_v14  ;;  %1119 = vmatpush.msrb.mxu1 %v4591_v17 }
 0x15a   :  { %5445 = vpow2.f32 %v4579_v45  ;;  %v538_v56 = vpop.f32.mrf.mxu2  ;;  %v558_v50 = vpop.f32.mrf.mxu3 }
 0x15b   :  { %5447 = vpow2.f32 %v4580_v46  ;;  %v559_v51 = vadd.f32 %v558_v50, %v478_v24  ;;  %v747_v5 = vpop.f32.mrf.mxu1  ;;  %v4594_v24 = vld [vmem:[%s10665_s1 + $0x220] sm:$0xff]  ;;  %v539_v26 = vadd.f32 %v538_v56, %v6966_v23  ;;  %v727_v32 = vpop.f32.mrf.mxu0 }
 0x15c   :  { %v794_v22 = vrot.slane %v747_v5, 6  ;;  %v4590_v23 = vld [vmem:[%s10665_s1 + $0x200] sm:$0xff]  ;;  %1098 = vmatpush.msrb.mxu0 %v4594_v24 }
 0x15d   :  { %v575_v61 = vadd.f32 %v567_v49, %v559_v51  ;;  %v574_v39 = vadd.f32 %v566_v27, %v539_v26 }
 0x15e   :  { %v797_v37 = vsel %vm189_vm0, %v727_v32, %v794_v22  ;;  %1099 = vmatpush.msrb.mxu0 %v4590_v23 }
 0x15f   :  { %v4581_v2 = vmul.f32 -1.442695, %v575_v61 }
 0x160   :  { %v5446_v4 = vpop.eup %5445 }
 0x161   :  { %v5448_v11 = vpop.eup %5447  ;;  %v7064_v12 = vadd.f32 1.0, %v5446_v4  ;;  %5449 = vpow2.f32 %v4581_v2  ;;  %v4444_v2 = vld [vmem:[%s10670_s6 + $0x2] sm:$0x3] }
 0x162   :  { %v7075_v16 = vadd.f32 1.0, %v5448_v11  ;;  %v767_v18 = vpop.f32.mrf.mxu2  ;;  %v787_v19 = vpop.f32.mrf.mxu3 }
 0x163   :  { %5451 = vrcp.f32 %v7064_v12  ;;  %v795_v30 = vrot.slane %v767_v18, 4  ;;  %v796_v31 = vrot.slane %v787_v19, 2  ;;  %v589_v52 = vand.u32 2147483647, %v7064_v12 }
 0x164   :  { %5453 = vrcp.f32 %v7075_v16  ;;  %v591_v50 = vand.u32 2147483648, %v7064_v12  ;;  %v610_v54 = vand.u32 2147483648, %v7075_v16  ;;  %v608_v58 = vand.u32 2147483647, %v7075_v16 }
 0x165   :  { %v798_v38 = vsel %vm191_vm1, %v795_v30, %v796_v31  ;;  %vm585_vm4 = vweird.f32 %v7064_v12  ;;  %vm604_vm5 = vweird.f32 %v7075_v16  ;;  %vm590_vm8 = vcmp.eq.f32.partialorder %v589_v52, 8.507059e+37 }
 0x166   :  { %v799_v41 = vsel %vm193_vm2, %v797_v37, %v798_v38  ;;  %v592_v61 = vor.u32 1.1754944e-38, %v591_v50  ;;  %v611_v1 = vor.u32 1.1754944e-38, %v610_v54  ;;  %vm609_vm9 = vcmp.eq.f32.partialorder %v608_v58, 8.507059e+37  ;;  %v1306_v50 = vld [vmem:[%s10666_s2 + $0x1c8] sm:$0xff] }
 0x167   :  { %v5450_v36 = vpop.eup %5449  ;;  %v7119_v43 = vadd.f32 %v4584_v33, %v799_v41 }
 0x168   :  { %v7116_v40 = vadd.f32 1.0, %v5450_v36 }
 0x169   :  { %v5452_v42 = vpop.eup %5451  ;;  %v4585_v47 = vmul.f32 -1.442695, %v7119_v43  ;;  %v822_v48 = vrot.slane %v7119_v43, 2  ;;  %v846_v53 = vrot.slane %v7119_v43, 6  ;;  %v843_v30 = vrot.slane %v7119_v43, 4  ;;  %v1310_v43 = vld [vmem:[%s10666_s2 + $0x1e8] sm:$0xff] }
 0x16a   :  { %v5454_v44 = vpop.eup %5453  ;;  %v581_v45 = vmul.f32 %v5452_v42, %v7064_v12  ;;  %5455 = vrcp.f32 %v7116_v40  ;;  %vm586_vm15 = vweird.f32 %v5452_v42  ;;  %v630_v22 = vand.u32 2147483648, %v7116_v40 }
 0x16b   :  { %v600_v46 = vmul.f32 %v5454_v44, %v7075_v16  ;;  %5457 = vtanh.f32 %v574_v39  ;;  %v4586_v63 = vmul.f32 -1.442695, %v822_v48  ;;  %v4587_v51 = vmul.f32 -1.442695, %v846_v53  ;;  %vm587_vm6 = vmor %vm585_vm4, %vm586_vm15  ;;  %v1312_v48 = vld [vmem:[%s10666_s2 + $0x1f8] sm:$0xff] }
 0x16c   :  { %v582_v49 = vsub.f32 1.0, %v581_v45  ;;  %5459 = vpow2.f32 %v4585_v47  ;;  %vm605_vm3 = vweird.f32 %v5454_v44  ;;  %vm624_vm11 = vweird.f32 %v7116_v40  ;;  %v1311_v47 = vld [vmem:[%s10666_s2 + $0x1f0] sm:$0xff] }
 0x16d   :  { %v601_v56 = vsub.f32 1.0, %v600_v46  ;;  %5461 = vpow2.f32 %v4586_v63  ;;  %vm606_vm7 = vmor %vm604_vm5, %vm605_vm3  ;;  %v628_v24 = vand.u32 2147483647, %v7116_v40  ;;  %v631_v28 = vor.u32 1.1754944e-38, %v630_v22 }
 0x16e   :  { %v583_v60 = vmul.f32 %v5452_v42, %v582_v49  ;;  %5463 = vpow2.f32 %v4587_v51  ;;  %v1308_v51 = vld [vmem:[%s10666_s2 + $0x1d8] sm:$0xff] }
 0x16f   :  { %v602_v59 = vmul.f32 %v5454_v44, %v601_v56  ;;  %vm629_vm13 = vcmp.eq.f32.partialorder %v628_v24, 8.507059e+37  ;;  %v1305_v56 = vld [vmem:[%s10666_s2 + $0x1c0] sm:$0xff]  ;;  %v1291_v24 = vld [vmem:[%s10666_s2 + $0x150] sm:$0xff]  ;;  %v1272_v49 = vld [vmem:[%s10666_s2 + $0xb8] sm:$0xff] }
 0x170   :  { %v5456_v62 = vpop.eup %5455  ;;  %v584_v55 = vadd.f32 %v5452_v42, %v583_v60  ;;  %v1307_v60 = vld [vmem:[%s10666_s2 + $0x1d0] sm:$0xff] }
 0x171   :  { %v603_v7 = vadd.f32 %v5454_v44, %v602_v59  ;;  %v620_v6 = vmul.f32 %v5456_v62, %v7116_v40  ;;  %v5458_v0 = vpop.eup %5457  ;;  %vm625_vm10 = vweird.f32 %v5456_v62 }
 0x172   :  { %v588_v3 = vsel %vm587_vm6, %v5452_v42, %v584_v55  ;;  %v5460_v4 = vpop.eup %5459  ;;  %vm626_vm12 = vmor %vm624_vm11, %vm625_vm10  ;;  %v1309_v42 = vld [vmem:[%s10666_s2 + $0x1e0] sm:$0xff] }
 0x173   :  { %v593_v5 = vsel %vm590_vm8, %v592_v61, %v588_v3  ;;  %v607_v8 = vsel %vm606_vm7, %v5454_v44, %v603_v7  ;;  %v621_v9 = vsub.f32 1.0, %v620_v6  ;;  %v805_v12 = vadd.f32 1.0, %v5460_v4  ;;  %v5462_v13 = vpop.eup %5461  ;;  %v1301_v55 = vld [vmem:[%s10666_s2 + $0x1a0] sm:$0xff]  ;;  %v1302_v61 = vld [vmem:[%s10666_s2 + $0x1a8] sm:$0xff] }
 0x174   :  { %v612_v10 = vsel %vm609_vm9, %v611_v1, %v607_v8  ;;  %v635_v11 = vmul.f32 %v5458_v0, %v593_v5  ;;  %v5464_v16 = vpop.eup %5463  ;;  %v7137_v18 = vadd.f32 1.0, %v5462_v13  ;;  %v1303_v0 = vld [vmem:[%s10666_s2 + $0x1b0] sm:$0xff]  ;;  %v1297_v3 = vld [vmem:[%s10666_s2 + $0x180] sm:$0xff]  ;;  %v1298_v4 = vld [vmem:[%s10666_s2 + $0x188] sm:$0xff] }
 0x175   :  { %v634_v14 = vmul.f32 %v4444_v2, %v612_v10  ;;  %v622_v15 = vmul.f32 %v5456_v62, %v621_v9  ;;  %5465 = vrcp.f32 %v805_v12  ;;  %v7141_v20 = vadd.f32 1.0, %v5464_v16  ;;  %v1299_v9 = vld [vmem:[%s10666_s2 + $0x190] sm:$0xff]  ;;  %v1300_v10 = vld [vmem:[%s10666_s2 + $0x198] sm:$0xff] }
 0x176   :  { %5467 = vrcp.f32 %v7137_v18  ;;  %v815_v35 = vand.u32 2147483647, %v805_v12  ;;  %v817_v36 = vand.u32 2147483648, %v805_v12  ;;  %vm811_vm15 = vweird.f32 %v805_v12 }
 0x177   :  { %v7139_v19 = vadd.f32 %v635_v11, %v634_v14  ;;  %v623_v21 = vadd.f32 %v5456_v62, %v622_v15  ;;  %v839_v41 = vand.u32 2147483648, %v7137_v18  ;;  %v837_v46 = vand.u32 2147483647, %v7137_v18  ;;  %v1293_v11 = vld [vmem:[%s10666_s2 + $0x160] sm:$0xff]  ;;  %v1295_v14 = vld [vmem:[%s10666_s2 + $0x170] sm:$0xff]  ;;  %v1296_v15 = vld [vmem:[%s10666_s2 + $0x178] sm:$0xff] }
 0x178   :  { %v818_v52 = vor.u32 1.1754944e-38, %v817_v36  ;;  %vm816_vm5 = vcmp.eq.f32.partialorder %v815_v35, 8.507059e+37  ;;  %vm833_vm6 = vweird.f32 %v7137_v18  ;;  %v863_v22 = vand.u32 2147483648, %v7141_v20 }
 0x179   :  { %5469 = vtanh.f32 %v7139_v19  ;;  %v627_v26 = vsel %vm626_vm12, %v5456_v62, %v623_v21  ;;  %v840_v58 = vor.u32 1.1754944e-38, %v839_v41  ;;  %v4449_v62 = vclamps-f32 %v6783_v57, 50.0  ;;  %v1304_v57 = vld [vmem:[%s10666_s2 + $0x1b8] sm:$0xff]  ;;  %v1290_v21 = vld [vmem:[%s10666_s2 + $0x148] sm:$0xff] }
 0x17a   :  { %5471 = vrcp.f32 %v7141_v20  ;;  %v632_v32 = vsel %vm629_vm13, %v631_v28, %v627_v26  ;;  %vm838_vm8 = vcmp.eq.f32.partialorder %v837_v46, 8.507059e+37  ;;  %vm857_vm10 = vweird.f32 %v7141_v20  ;;  %v1286_v28 = vld [vmem:[%s10666_s2 + $0x128] sm:$0xff]  ;;  %v1280_v41 = vld [vmem:[%s10666_s2 + $0xf8] sm:$0xff]  ;;  %v1269_v46 = vld [vmem:[%s10666_s2 + $0xa0] sm:$0xff] }
 0x17b   :  { %v5466_v25 = vpop.eup %5465  ;;  %5473 = vtanh.f32 %v843_v30  ;;  %v861_v26 = vand.u32 2147483647, %v7141_v20  ;;  %v1288_v30 = vld [vmem:[%s10666_s2 + $0x138] sm:$0xff] }
 0x17c   :  { %v807_v27 = vmul.f32 %v5466_v25, %v805_v12  ;;  %v5468_v29 = vpop.eup %5467  ;;  %vm812_vm14 = vweird.f32 %v5466_v25  ;;  %v1294_v12 = vld [vmem:[%s10666_s2 + $0x168] sm:$0xff] }
 0x17d   :  { %v829_v17 = vmul.f32 %v5468_v29, %v7137_v18  ;;  %vm834_vm3 = vweird.f32 %v5468_v29  ;;  %vm7170_vm4 = vmor %vm811_vm15, %vm812_vm14  ;;  %v1289_v18 = vld [vmem:[%s10666_s2 + $0x140] sm:$0xff]  ;;  %vm862_vm12 = vcmp.eq.f32.partialorder %v861_v26, 8.507059e+37  ;;  %v4844_v26 = vld [vmem:[%s10666_s2 + $0x390] sm:$0xff] }
 0x17e   :  { %v808_v23 = vsub.f32 1.0, %v807_v27  ;;  %vm835_vm7 = vmor %vm833_vm6, %vm834_vm3  ;;  %v1285_v27 = vld [vmem:[%s10666_s2 + $0x120] sm:$0xff] }
 0x17f   :  { %v5470_v31 = vpop.eup %5469  ;;  %v830_v37 = vsub.f32 1.0, %v829_v17  ;;  %v1282_v17 = vld [vmem:[%s10666_s2 + $0x108] sm:$0xff] }
 0x180   :  { %v7151_v33 = vpop.eup %5471  ;;  %v638_v34 = vmul.f32 %v5470_v31, %v632_v32  ;;  %v809_v38 = vmul.f32 %v5466_v25, %v808_v23  ;;  %v1281_v23 = vld [vmem:[%s10666_s2 + $0x100] sm:$0xff]  ;;  %v864_v32 = vor.u32 1.1754944e-38, %v863_v22  ;;  %v4849_v22 = vld [vmem:[%s10666_s2 + $0x3b8] sm:$0xff] }
 0x181   :  { %v853_v39 = vmul.f32 %v7151_v33, %v7141_v20  ;;  %v831_v45 = vmul.f32 %v5468_v29, %v830_v37  ;;  %v5474_v6 = vpop.eup %5473  ;;  %vm858_vm9 = vweird.f32 %v7151_v33  ;;  %v1287_v20 = vld [vmem:[%s10666_s2 + $0x130] sm:$0xff] }
 0x182   :  { %v4582_v40 = vclamps-f32 %v638_v34, 50.0  ;;  %643 = vst [vmem:[#allocation2] sm:$0x3] %v638_v34  ;;  %v810_v44 = vadd.f32 %v5466_v25, %v809_v38  ;;  %vm7256_vm11 = vmor %vm857_vm10, %vm858_vm9  ;;  %v1283_v34 = vld [vmem:[%s10666_s2 + $0x110] sm:$0xff]  ;;  %v1277_v38 = vld [vmem:[%s10666_s2 + $0xe0] sm:$0xff] }
 0x183   :  { %v854_v53 = vsub.f32 1.0, %v853_v39  ;;  %v832_v54 = vadd.f32 %v5468_v29, %v831_v45  ;;  %v1278_v39 = vld [vmem:[%s10666_s2 + $0xe8] sm:$0xff]  ;;  %v1276_v45 = vld [vmem:[%s10666_s2 + $0xd8] sm:$0xff] }
 0x184   :  { %1020 = vmatmul.f32.vlgmr.msra.gmra.mxu0 %v4582_v40  ;;  %1040 = vmatmul.f32.vlgmr.msra.gmra.mxu1 %v4582_v40  ;;  %v814_v63 = vsel %vm7170_vm4, %v5466_v25, %v810_v44  ;;  %v1292_v25 = vld [vmem:[%s10666_s2 + $0x158] sm:$0xff]  ;;  %v1275_v44 = vld [vmem:[%s10666_s2 + $0xd0] sm:$0xff] }
 0x185   :  { %1060 = vmatmul.f32.vlgmr.msra.gmra.mxu2 %v4582_v40  ;;  %1080 = vmatmul.f32.vlgmr.msra.gmra.mxu3 %v4582_v40  ;;  %v819_v59 = vsel %vm816_vm5, %v818_v52, %v814_v63  ;;  %v836_v7 = vsel %vm835_vm7, %v5468_v29, %v832_v54  ;;  %v855_v2 = vmul.f32 %v7151_v33, %v854_v53  ;;  %v1279_v40 = vld [vmem:[%s10666_s2 + $0xf0] sm:$0xff]  ;;  %v1265_v52 = vld [vmem:[%s10666_s2 + $0x80] sm:$0xff]  ;;  %v1266_v53 = vld [vmem:[%s10666_s2 + $0x88] sm:$0xff] }
 0x186   :  { %1313 = vmatpush.msra.mxu0 %v1309_v42  ;;  %1333 = vmatpush.msra.mxu1 %v1310_v43  ;;  %v841_v1 = vsel %vm838_vm8, %v840_v58, %v836_v7  ;;  %v868_v8 = vmul.f32 %v5474_v6, %v819_v59  ;;  %v1273_v42 = vld [vmem:[%s10666_s2 + $0xc0] sm:$0xff]  ;;  %v1274_v43 = vld [vmem:[%s10666_s2 + $0xc8] sm:$0xff]  ;;  %v1255_v6 = vld [vmem:[%s10666_s2 + $0x30] sm:$0xff] }
 0x187   :  { %1353 = vmatpush.msra.mxu2 %v1311_v47  ;;  %1373 = vmatpush.msra.mxu3 %v1312_v48  ;;  %v867_v5 = vmul.f32 %v4449_v62, %v841_v1  ;;  %v856_v16 = vadd.f32 %v7151_v33, %v855_v2  ;;  %v1270_v47 = vld [vmem:[%s10666_s2 + $0xa8] sm:$0xff]  ;;  %v1271_v48 = vld [vmem:[%s10666_s2 + $0xb0] sm:$0xff]  ;;  %v1261_v63 = vld [vmem:[%s10666_s2 + $0x60] sm:$0xff] }
 0x188   :  { %1314 = vmatpush.msra.mxu0 %v1305_v56  ;;  %1334 = vmatpush.msra.mxu1 %v1306_v50  ;;  %v1267_v56 = vld [vmem:[%s10666_s2 + $0x90] sm:$0xff]  ;;  %v1268_v50 = vld [vmem:[%s10666_s2 + $0x98] sm:$0xff]  ;;  %v1262_v54 = vld [vmem:[%s10666_s2 + $0x68] sm:$0xff] }
 0x189   :  { %1354 = vmatpush.msra.mxu2 %v1307_v60  ;;  %1374 = vmatpush.msra.mxu3 %v1308_v51  ;;  %v7222_v13 = vadd.f32 %v868_v8, %v867_v5  ;;  %v860_v31 = vsel %vm7256_vm11, %v7151_v33, %v856_v16  ;;  %v1284_v33 = vld [vmem:[%s10666_s2 + $0x118] sm:$0xff]  ;;  %v1263_v60 = vld [vmem:[%s10666_s2 + $0x70] sm:$0xff]  ;;  %v1257_v59 = vld [vmem:[%s10666_s2 + $0x40] sm:$0xff] }
 0x18a   :  { %1315 = vmatpush.msra.mxu0 %v1301_v55  ;;  %1335 = vmatpush.msra.mxu1 %v1302_v61  ;;  %v865_v36 = vsel %vm862_vm12, %v864_v32, %v860_v31  ;;  %v1264_v51 = vld [vmem:[%s10666_s2 + $0x78] sm:$0xff]  ;;  %v1258_v58 = vld [vmem:[%s10666_s2 + $0x48] sm:$0xff]  ;;  %v1259_v62 = vld [vmem:[%s10666_s2 + $0x50] sm:$0xff] }
 0x18b   :  { %1355 = vmatpush.msra.mxu2 %v1303_v0  ;;  %1375 = vmatpush.msra.mxu3 %v1304_v57  ;;  %5475 = vtanh.f32 %v7222_v13  ;;  %v1260_v55 = vld [vmem:[%s10666_s2 + $0x58] sm:$0xff]  ;;  %v1253_v61 = vld [vmem:[%s10666_s2 + $0x20] sm:$0xff]  ;;  %v1254_v7 = vld [vmem:[%s10666_s2 + $0x28] sm:$0xff] }
 0x18c   :  { %1316 = vmatpush.msra.mxu0 %v1297_v3  ;;  %1336 = vmatpush.msra.mxu1 %v1298_v4  ;;  %v1256_v0 = vld [vmem:[%s10666_s2 + $0x38] sm:$0xff]  ;;  %v1249_v57 = vld [vmem:[%s10666_s2] sm:$0xff]  ;;  %v1250_v1 = vld [vmem:[%s10666_s2 + $0x8] sm:$0xff] }
 0x18d   :  { %1356 = vmatpush.msra.mxu2 %v1299_v9  ;;  %1376 = vmatpush.msra.mxu3 %v1300_v10  ;;  %v1251_v2 = vld [vmem:[%s10666_s2 + $0x10] sm:$0xff]  ;;  %v1252_v3 = vld [vmem:[%s10666_s2 + $0x18] sm:$0xff]  ;;  %v4854_v5 = vld [vmem:[%s10666_s2 + $0x3e0] sm:$0xff] }
 0x18e   :  { %1317 = vmatpush.msra.mxu0 %v1293_v11  ;;  %1337 = vmatpush.msra.mxu1 %v1294_v12  ;;  %v4855_v8 = vld [vmem:[%s10666_s2 + $0x3e8] sm:$0xff]  ;;  %v4856_v9 = vld [vmem:[%s10666_s2 + $0x3f0] sm:$0xff]  ;;  %v4857_v10 = vld [vmem:[%s10666_s2 + $0x3f8] sm:$0xff] }
 0x18f   :  { %1357 = vmatpush.msra.mxu2 %v1295_v14  ;;  %1377 = vmatpush.msra.mxu3 %v1296_v15  ;;  %v4850_v11 = vld [vmem:[%s10666_s2 + $0x3c0] sm:$0xff]  ;;  %v4851_v12 = vld [vmem:[%s10666_s2 + $0x3c8] sm:$0xff]  ;;  %v4852_v14 = vld [vmem:[%s10666_s2 + $0x3d0] sm:$0xff] }
 0x190   :  { %1318 = vmatpush.msra.mxu0 %v1289_v18  ;;  %1338 = vmatpush.msra.mxu1 %v1290_v21  ;;  %v4853_v15 = vld [vmem:[%s10666_s2 + $0x3d8] sm:$0xff]  ;;  %v4846_v16 = vld [vmem:[%s10666_s2 + $0x3a0] sm:$0xff]  ;;  %v4847_v18 = vld [vmem:[%s10666_s2 + $0x3a8] sm:$0xff] }
 0x191   :  { %1358 = vmatpush.msra.mxu2 %v1291_v24  ;;  %1378 = vmatpush.msra.mxu3 %v1292_v25  ;;  %v5476_v35 = vpop.eup %5475  ;;  %v4848_v21 = vld [vmem:[%s10666_s2 + $0x3b0] sm:$0xff]  ;;  %v4842_v24 = vld [vmem:[%s10666_s2 + $0x380] sm:$0xff]  ;;  %v4843_v25 = vld [vmem:[%s10666_s2 + $0x388] sm:$0xff] }
 0x192   :  { %1319 = vmatpush.msra.mxu0 %v1285_v27  ;;  %1339 = vmatpush.msra.mxu1 %v1286_v28  ;;  %v7281_v37 = vmul.f32 %v5476_v35, %v865_v36  ;;  %v4845_v27 = vld [vmem:[%s10666_s2 + $0x398] sm:$0xff]  ;;  %v4838_v28 = vld [vmem:[%s10666_s2 + $0x360] sm:$0xff]  ;;  %v4839_v29 = vld [vmem:[%s10666_s2 + $0x368] sm:$0xff] }
 0x193   :  { %1359 = vmatpush.msra.mxu2 %v1287_v20  ;;  %1379 = vmatpush.msra.mxu3 %v1288_v30  ;;  %v4840_v20 = vld [vmem:[%s10666_s2 + $0x370] sm:$0xff]  ;;  %v4841_v30 = vld [vmem:[%s10666_s2 + $0x378] sm:$0xff]  ;;  %v4834_v31 = vld [vmem:[%s10666_s2 + $0x340] sm:$0xff] }
 0x194   :  { %1320 = vmatpush.msra.mxu0 %v1281_v23  ;;  %1340 = vmatpush.msra.mxu1 %v1282_v17  ;;  %v4588_v4 = vclamps-f32 %v7281_v37, 50.0  ;;  %v4835_v23 = vld [vmem:[%s10666_s2 + $0x348] sm:$0xff]  ;;  %v4836_v17 = vld [vmem:[%s10666_s2 + $0x350] sm:$0xff]  ;;  %v4837_v32 = vld [vmem:[%s10666_s2 + $0x358] sm:$0xff] }
 0x195   :  { %1360 = vmatpush.msra.mxu2 %v1283_v34  ;;  %1380 = vmatpush.msra.mxu3 %v1284_v33  ;;  %v4830_v34 = vld [vmem:[%s10666_s2 + $0x320] sm:$0xff]  ;;  %v4831_v33 = vld [vmem:[%s10666_s2 + $0x328] sm:$0xff]  ;;  %v4832_v35 = vld [vmem:[%s10666_s2 + $0x330] sm:$0xff] }
 0x196   :  { %1100 = vmatmul.f32.vlgmr.msrb.gmra.mxu0 %v7281_v37  ;;  %1120 = vmatmul.f32.vlgmr.msrb.gmra.mxu1 %v7281_v37  ;;  %v4833_v36 = vld [vmem:[%s10666_s2 + $0x338] sm:$0xff] }
 0x197   :  { %1140 = vmatmul.f32.vlgmr.msrb.gmra.mxu2 %v7281_v37  ;;  %1160 = vmatmul.f32.vlgmr.msrb.gmra.mxu3 %v7281_v37  ;;  %v4826_v37 = vld [vmem:[%s10666_s2 + $0x300] sm:$0xff] }
 0x198   :  { %1321 = vmatpush.msra.mxu0 %v1277_v38  ;;  %1341 = vmatpush.msra.mxu1 %v1278_v39  ;;  %v4827_v38 = vld [vmem:[%s10666_s2 + $0x308] sm:$0xff]  ;;  %v4828_v39 = vld [vmem:[%s10666_s2 + $0x310] sm:$0xff] }
 0x199   :  { %1361 = vmatpush.msra.mxu2 %v1279_v40  ;;  %1381 = vmatpush.msra.mxu3 %v1280_v41  ;;  %v4829_v40 = vld [vmem:[%s10666_s2 + $0x318] sm:$0xff]  ;;  %v4822_v41 = vld [vmem:[%s10666_s2 + $0x2e0] sm:$0xff] }
 0x19a   :  { %1322 = vmatpush.msra.mxu0 %v1273_v42  ;;  %1342 = vmatpush.msra.mxu1 %v1274_v43  ;;  %v4823_v42 = vld [vmem:[%s10666_s2 + $0x2e8] sm:$0xff]  ;;  %v4824_v43 = vld [vmem:[%s10666_s2 + $0x2f0] sm:$0xff] }
 0x19b   :  { %1362 = vmatpush.msra.mxu2 %v1275_v44  ;;  %1382 = vmatpush.msra.mxu3 %v1276_v45  ;;  %v4825_v44 = vld [vmem:[%s10666_s2 + $0x2f8] sm:$0xff]  ;;  %v4818_v45 = vld [vmem:[%s10666_s2 + $0x2c0] sm:$0xff] }
 0x19c   :  { %1323 = vmatpush.msra.mxu0 %v1269_v46  ;;  %1343 = vmatpush.msra.mxu1 %v1270_v47  ;;  %v4819_v46 = vld [vmem:[%s10666_s2 + $0x2c8] sm:$0xff]  ;;  %v4820_v47 = vld [vmem:[%s10666_s2 + $0x2d0] sm:$0xff] }
 0x19d   :  { %1363 = vmatpush.msra.mxu2 %v1271_v48  ;;  %1383 = vmatpush.msra.mxu3 %v1272_v49  ;;  %v4821_v48 = vld [vmem:[%s10666_s2 + $0x2d8] sm:$0xff]  ;;  %v4814_v49 = vld [vmem:[%s10666_s2 + $0x2a0] sm:$0xff] }
 0x19e   :  { %1324 = vmatpush.msra.mxu0 %v1265_v52  ;;  %1344 = vmatpush.msra.mxu1 %v1266_v53  ;;  %v4815_v52 = vld [vmem:[%s10666_s2 + $0x2a8] sm:$0xff]  ;;  %v4816_v53 = vld [vmem:[%s10666_s2 + $0x2b0] sm:$0xff] }
 0x19f   :  { %1364 = vmatpush.msra.mxu2 %v1267_v56  ;;  %1384 = vmatpush.msra.mxu3 %v1268_v50  ;;  %v4817_v56 = vld [vmem:[%s10666_s2 + $0x2b8] sm:$0xff]  ;;  %v4810_v50 = vld [vmem:[%s10666_s2 + $0x280] sm:$0xff] }
 0x1a0   :  { %1325 = vmatpush.msra.mxu0 %v1261_v63  ;;  %1345 = vmatpush.msra.mxu1 %v1262_v54  ;;  %v4811_v63 = vld [vmem:[%s10666_s2 + $0x288] sm:$0xff]  ;;  %v4812_v54 = vld [vmem:[%s10666_s2 + $0x290] sm:$0xff] }
 0x1a1   :  { %1365 = vmatpush.msra.mxu2 %v1263_v60  ;;  %1385 = vmatpush.msra.mxu3 %v1264_v51  ;;  %v4813_v60 = vld [vmem:[%s10666_s2 + $0x298] sm:$0xff]  ;;  %v4806_v51 = vld [vmem:[%s10666_s2 + $0x260] sm:$0xff] }
 0x1a2   :  { %1326 = vmatpush.msra.mxu0 %v1257_v59  ;;  %1346 = vmatpush.msra.mxu1 %v1258_v58  ;;  %v4807_v59 = vld [vmem:[%s10666_s2 + $0x268] sm:$0xff]  ;;  %v4808_v58 = vld [vmem:[%s10666_s2 + $0x270] sm:$0xff] }
 0x1a3   :  { %1366 = vmatpush.msra.mxu2 %v1259_v62  ;;  %1386 = vmatpush.msra.mxu3 %v1260_v55  ;;  %v4809_v62 = vld [vmem:[%s10666_s2 + $0x278] sm:$0xff]  ;;  %v4802_v55 = vld [vmem:[%s10666_s2 + $0x240] sm:$0xff] }
 0x1a4   :  { %1327 = vmatpush.msra.mxu0 %v1253_v61  ;;  %1347 = vmatpush.msra.mxu1 %v1254_v7  ;;  %v4803_v61 = vld [vmem:[%s10666_s2 + $0x248] sm:$0xff]  ;;  %v4804_v7 = vld [vmem:[%s10666_s2 + $0x250] sm:$0xff] }
 0x1a5   :  { %1367 = vmatpush.msra.mxu2 %v1255_v6  ;;  %1387 = vmatpush.msra.mxu3 %v1256_v0  ;;  %v4805_v6 = vld [vmem:[%s10666_s2 + $0x258] sm:$0xff]  ;;  %v4798_v0 = vld [vmem:[%s10666_s2 + $0x220] sm:$0xff] }
 0x1a6   :  { %1328 = vmatpush.msra.mxu0 %v1249_v57  ;;  %1348 = vmatpush.msra.mxu1 %v1250_v1  ;;  %v4799_v57 = vld [vmem:[%s10666_s2 + $0x228] sm:$0xff]  ;;  %v4800_v1 = vld [vmem:[%s10666_s2 + $0x230] sm:$0xff] }
 0x1a7   :  { %1368 = vmatpush.msra.mxu2 %v1251_v2  ;;  %1388 = vmatpush.msra.mxu3 %v1252_v3  ;;  %v4801_v2 = vld [vmem:[%s10666_s2 + $0x238] sm:$0xff]  ;;  %v4794_v3 = vld [vmem:[%s10666_s2 + $0x200] sm:$0xff] }
 0x1a8   :  { %1329 = vmatmul.f32.vlgmr.msra.gmra.mxu0 %v4588_v4  ;;  %1349 = vmatmul.f32.vlgmr.msra.gmra.mxu1 %v4588_v4 }
 0x1a9   :  { %1369 = vmatmul.f32.vlgmr.msra.gmra.mxu2 %v4588_v4  ;;  %1389 = vmatmul.f32.vlgmr.msra.gmra.mxu3 %v4588_v4  ;;  %v4795_v4 = vld [vmem:[%s10666_s2 + $0x208] sm:$0xff] }
 0x1aa   :  { %1607 = vmatpush.msrb.mxu0 %v4854_v5  ;;  %1627 = vmatpush.msrb.mxu1 %v4855_v8  ;;  %v4796_v5 = vld [vmem:[%s10666_s2 + $0x210] sm:$0xff]  ;;  %v4797_v8 = vld [vmem:[%s10666_s2 + $0x218] sm:$0xff] }
 0x1ab   :  { %1647 = vmatpush.msrb.mxu2 %v4856_v9  ;;  %1667 = vmatpush.msrb.mxu3 %v4857_v10  ;;  %v4790_v9 = vld [vmem:[%s10665_s1 + $0x3e0] sm:$0xff]  ;;  %v4791_v10 = vld [vmem:[%s10665_s1 + $0x3e8] sm:$0xff] }
 0x1ac   :  { %1608 = vmatpush.msrb.mxu0 %v4850_v11  ;;  %1628 = vmatpush.msrb.mxu1 %v4851_v12  ;;  %v4792_v11 = vld [vmem:[%s10665_s1 + $0x3f0] sm:$0xff]  ;;  %v4793_v12 = vld [vmem:[%s10665_s1 + $0x3f8] sm:$0xff] }
 0x1ad   :  { %1648 = vmatpush.msrb.mxu2 %v4852_v14  ;;  %1668 = vmatpush.msrb.mxu3 %v4853_v15  ;;  %v4786_v14 = vld [vmem:[%s10665_s1 + $0x3c0] sm:$0xff]  ;;  %v4787_v15 = vld [vmem:[%s10665_s1 + $0x3c8] sm:$0xff] }
 0x1ae   :  { %1609 = vmatpush.msrb.mxu0 %v4846_v16  ;;  %1629 = vmatpush.msrb.mxu1 %v4847_v18  ;;  %v4788_v16 = vld [vmem:[%s10665_s1 + $0x3d0] sm:$0xff]  ;;  %v4789_v18 = vld [vmem:[%s10665_s1 + $0x3d8] sm:$0xff] }
 0x1af   :  { %1649 = vmatpush.msrb.mxu2 %v4848_v21  ;;  %1669 = vmatpush.msrb.mxu3 %v4849_v22 }
 0x1b0   :  { %1610 = vmatpush.msrb.mxu0 %v4842_v24  ;;  %1630 = vmatpush.msrb.mxu1 %v4843_v25  ;;  %v4782_v24 = vld [vmem:[%s10665_s1 + $0x3a0] sm:$0xff]  ;;  %v4783_v25 = vld [vmem:[%s10665_s1 + $0x3a8] sm:$0xff] }
 0x1b1   :  { %1650 = vmatpush.msrb.mxu2 %v4844_v26  ;;  %1670 = vmatpush.msrb.mxu3 %v4845_v27  ;;  %v4784_v26 = vld [vmem:[%s10665_s1 + $0x3b0] sm:$0xff]  ;;  %v7612_v27 = vld [vmem:[%s10667_s3 + $0x4] sm:$0xf] }
 0x1b2   :  { %1611 = vmatpush.msrb.mxu0 %v4838_v28  ;;  %1631 = vmatpush.msrb.mxu1 %v4839_v29  ;;  %v4785_v28 = vld [vmem:[%s10665_s1 + $0x3b8] sm:$0xff]  ;;  %v4778_v29 = vld [vmem:[%s10665_s1 + $0x380] sm:$0xff] }
 0x1b3   :  { %1651 = vmatpush.msrb.mxu2 %v4840_v20  ;;  %1671 = vmatpush.msrb.mxu3 %v4841_v30  ;;  %v4779_v20 = vld [vmem:[%s10665_s1 + $0x388] sm:$0xff]  ;;  %v4780_v30 = vld [vmem:[%s10665_s1 + $0x390] sm:$0xff] }
 0x1b4   :  { %1612 = vmatpush.msrb.mxu0 %v4834_v31  ;;  %1632 = vmatpush.msrb.mxu1 %v4835_v23  ;;  %v4781_v31 = vld [vmem:[%s10665_s1 + $0x398] sm:$0xff] }
 0x1b5   :  { %1652 = vmatpush.msrb.mxu2 %v4836_v17  ;;  %1672 = vmatpush.msrb.mxu3 %v4837_v32  ;;  %v1166_v17 = vperm.slane %v7612_v27, 0  ;;  %v1167_v32 = vperm.slane %v7612_v27, 1 }
 0x1b6   :  { %1613 = vmatpush.msrb.mxu0 %v4830_v34  ;;  %1633 = vmatpush.msrb.mxu1 %v4831_v33  ;;  %v4774_v34 = vld [vmem:[%s10665_s1 + $0x360] sm:$0xff]  ;;  %v4775_v33 = vld [vmem:[%s10665_s1 + $0x368] sm:$0xff] }
 0x1b7   :  { %1653 = vmatpush.msrb.mxu2 %v4832_v35  ;;  %1673 = vmatpush.msrb.mxu3 %v4833_v36  ;;  %v4776_v35 = vld [vmem:[%s10665_s1 + $0x370] sm:$0xff] }
 0x1b8   :  { %1614 = vmatpush.msrb.mxu0 %v4826_v37  ;;  %1634 = vmatpush.msrb.mxu1 %v4827_v38  ;;  %v4777_v38 = vld [vmem:[%s10665_s1 + $0x378] sm:$0xff] }
 0x1b9   :  { %1654 = vmatpush.msrb.mxu2 %v4828_v39  ;;  %1674 = vmatpush.msrb.mxu3 %v4829_v40 }
 0x1ba   :  { %1615 = vmatpush.msrb.mxu0 %v4822_v41  ;;  %1635 = vmatpush.msrb.mxu1 %v4823_v42  ;;  %v4770_v41 = vld [vmem:[%s10665_s1 + $0x340] sm:$0xff]  ;;  %v4771_v42 = vld [vmem:[%s10665_s1 + $0x348] sm:$0xff] }
 0x1bb   :  { %1655 = vmatpush.msrb.mxu2 %v4824_v43  ;;  %1675 = vmatpush.msrb.mxu3 %v4825_v44  ;;  %v4772_v43 = vld [vmem:[%s10665_s1 + $0x350] sm:$0xff]  ;;  %v4773_v44 = vld [vmem:[%s10665_s1 + $0x358] sm:$0xff] }
 0x1bc   :  { %1616 = vmatpush.msrb.mxu0 %v4818_v45  ;;  %1636 = vmatpush.msrb.mxu1 %v4819_v46 }
 0x1bd   :  { %1656 = vmatpush.msrb.mxu2 %v4820_v47  ;;  %1676 = vmatpush.msrb.mxu3 %v4821_v48  ;;  %v4766_v47 = vld [vmem:[%s10665_s1 + $0x320] sm:$0xff]  ;;  %v4767_v48 = vld [vmem:[%s10665_s1 + $0x328] sm:$0xff] }
 0x1be   :  { %1617 = vmatpush.msrb.mxu0 %v4814_v49  ;;  %1637 = vmatpush.msrb.mxu1 %v4815_v52  ;;  %v4768_v49 = vld [vmem:[%s10665_s1 + $0x330] sm:$0xff]  ;;  %v4769_v52 = vld [vmem:[%s10665_s1 + $0x338] sm:$0xff] }
 0x1bf   :  { %1657 = vmatpush.msrb.mxu2 %v4816_v53  ;;  %1677 = vmatpush.msrb.mxu3 %v4817_v56 }
 0x1c0   :  { %1618 = vmatpush.msrb.mxu0 %v4810_v50  ;;  %1638 = vmatpush.msrb.mxu1 %v4811_v63  ;;  %v4762_v50 = vld [vmem:[%s10665_s1 + $0x300] sm:$0xff]  ;;  %v4763_v63 = vld [vmem:[%s10665_s1 + $0x308] sm:$0xff] }
 0x1c1   :  { %1658 = vmatpush.msrb.mxu2 %v4812_v54  ;;  %1678 = vmatpush.msrb.mxu3 %v4813_v60  ;;  %v1169_v60 = vperm.slane %v7612_v27, 3 }
 0x1c2   :  { %1619 = vmatpush.msrb.mxu0 %v4806_v51  ;;  %1639 = vmatpush.msrb.mxu1 %v4807_v59  ;;  %v4764_v51 = vld [vmem:[%s10665_s1 + $0x310] sm:$0xff]  ;;  %v4765_v59 = vld [vmem:[%s10665_s1 + $0x318] sm:$0xff] }
 0x1c3   :  { %1659 = vmatpush.msrb.mxu2 %v4808_v58  ;;  %1679 = vmatpush.msrb.mxu3 %v4809_v62  ;;  %v4758_v62 = vld [vmem:[%s10665_s1 + $0x2e0] sm:$0xff] }
 0x1c4   :  { %1620 = vmatpush.msrb.mxu0 %v4802_v55  ;;  %1640 = vmatpush.msrb.mxu1 %v4803_v61  ;;  %v4759_v55 = vld [vmem:[%s10665_s1 + $0x2e8] sm:$0xff]  ;;  %v4760_v61 = vld [vmem:[%s10665_s1 + $0x2f0] sm:$0xff] }
 0x1c5   :  { %1660 = vmatpush.msrb.mxu2 %v4804_v7  ;;  %1680 = vmatpush.msrb.mxu3 %v4805_v6  ;;  %v4761_v6 = vld [vmem:[%s10665_s1 + $0x2f8] sm:$0xff] }
 0x1c6   :  { %1621 = vmatpush.msrb.mxu0 %v4798_v0  ;;  %1641 = vmatpush.msrb.mxu1 %v4799_v57  ;;  %v4754_v0 = vld [vmem:[%s10665_s1 + $0x2c0] sm:$0xff]  ;;  %v4755_v57 = vld [vmem:[%s10665_s1 + $0x2c8] sm:$0xff] }
 0x1c7   :  { %1661 = vmatpush.msrb.mxu2 %v4800_v1  ;;  %1681 = vmatpush.msrb.mxu3 %v4801_v2  ;;  %v4756_v1 = vld [vmem:[%s10665_s1 + $0x2d0] sm:$0xff] }
 0x1c8   :  { %1622 = vmatpush.msrb.mxu0 %v4794_v3  ;;  %1642 = vmatpush.msrb.mxu1 %v4795_v4  ;;  %v4757_v3 = vld [vmem:[%s10665_s1 + $0x2d8] sm:$0xff]  ;;  %v4750_v4 = vld [vmem:[%s10665_s1 + $0x2a0] sm:$0xff] }
 0x1c9   :  { %1662 = vmatpush.msrb.mxu2 %v4796_v5  ;;  %1682 = vmatpush.msrb.mxu3 %v4797_v8  ;;  %v4751_v5 = vld [vmem:[%s10665_s1 + $0x2a8] sm:$0xff]  ;;  %v4752_v8 = vld [vmem:[%s10665_s1 + $0x2b0] sm:$0xff] }
 0x1ca   :  { %1687 = vmatpush.msra.mxu0 %v4790_v9  ;;  %1707 = vmatpush.msra.mxu1 %v4791_v10  ;;  %v4753_v10 = vld [vmem:[%s10665_s1 + $0x2b8] sm:$0xff] }
 0x1cb   :  { %1727 = vmatpush.msra.mxu2 %v4792_v11  ;;  %1747 = vmatpush.msra.mxu3 %v4793_v12  ;;  %v4746_v12 = vld [vmem:[%s10665_s1 + $0x280] sm:$0xff] }
 0x1cc   :  { %1688 = vmatpush.msra.mxu0 %v4786_v14  ;;  %1708 = vmatpush.msra.mxu1 %v4787_v15  ;;  %v4747_v14 = vld [vmem:[%s10665_s1 + $0x288] sm:$0xff]  ;;  %v4748_v15 = vld [vmem:[%s10665_s1 + $0x290] sm:$0xff] }
 0x1cd   :  { %1728 = vmatpush.msra.mxu2 %v4788_v16  ;;  %1748 = vmatpush.msra.mxu3 %v4789_v18 }
 0x1ce   :  { %1689 = vmatpush.msra.mxu0 %v4782_v24  ;;  %1709 = vmatpush.msra.mxu1 %v4783_v25  ;;  %v4742_v25 = vld [vmem:[%s10665_s1 + $0x260] sm:$0xff] }
 0x1cf   :  { %1729 = vmatpush.msra.mxu2 %v4784_v26  ;;  %1749 = vmatpush.msra.mxu3 %v4785_v28  ;;  %v4743_v26 = vld [vmem:[%s10665_s1 + $0x268] sm:$0xff]  ;;  %v4744_v28 = vld [vmem:[%s10665_s1 + $0x270] sm:$0xff] }
 0x1d0   :  { %1690 = vmatpush.msra.mxu0 %v4778_v29  ;;  %1710 = vmatpush.msra.mxu1 %v4779_v20  ;;  %v4745_v29 = vld [vmem:[%s10665_s1 + $0x278] sm:$0xff] }
 0x1d1   :  { %1730 = vmatpush.msra.mxu2 %v4780_v30  ;;  %1750 = vmatpush.msra.mxu3 %v4781_v31  ;;  %v1168_v30 = vperm.slane %v7612_v27, 2  ;;  %v4738_v31 = vld [vmem:[%s10665_s1 + $0x240] sm:$0xff]  ;;  %v4741_v27 = vld [vmem:[%s10665_s1 + $0x258] sm:$0xff] }
 0x1d2   :  { %1691 = vmatpush.msra.mxu0 %v4774_v34  ;;  %1711 = vmatpush.msra.mxu1 %v4775_v33  ;;  %v4735_v34 = vld [vmem:[%s10665_s1 + $0x228] sm:$0xff]  ;;  %v4736_v33 = vld [vmem:[%s10665_s1 + $0x230] sm:$0xff] }
 0x1d3   :  { %1731 = vmatpush.msra.mxu2 %v4776_v35  ;;  %1751 = vmatpush.msra.mxu3 %v4777_v38 }
 0x1d4   :  { %1692 = vmatpush.msra.mxu0 %v4770_v41  ;;  %1712 = vmatpush.msra.mxu1 %v4771_v42  ;;  %v4731_v41 = vld [vmem:[%s10665_s1 + $0x208] sm:$0xff]  ;;  %v4732_v42 = vld [vmem:[%s10665_s1 + $0x210] sm:$0xff] }
 0x1d5   :  { %1732 = vmatpush.msra.mxu2 %v4772_v43  ;;  %1752 = vmatpush.msra.mxu3 %v4773_v44  ;;  %v4733_v44 = vld [vmem:[%s10665_s1 + $0x218] sm:$0xff] }
 0x1d6   :  { %1693 = vmatpush.msra.mxu0 %v4766_v47  ;;  %1713 = vmatpush.msra.mxu1 %v4767_v48 }
 0x1d7   :  { %1733 = vmatpush.msra.mxu2 %v4768_v49  ;;  %1753 = vmatpush.msra.mxu3 %v4769_v52  ;;  %v4583_v49 = vclamps-f32 %v7139_v19, 50.0  ;;  %v4724_v19 = vld [vmem:[%s10664_s0 + $0x10] sm:$0xff] }
 0x1d8   :  { %1694 = vmatpush.msra.mxu0 %v4762_v50  ;;  %1714 = vmatpush.msra.mxu1 %v4763_v63 }
 0x1d9   :  { %1734 = vmatpush.msra.mxu2 %v4764_v51  ;;  %1754 = vmatpush.msra.mxu3 %v4765_v59 }
 0x1da   :  { %1695 = vmatpush.msra.mxu0 %v4758_v62  ;;  %1715 = vmatpush.msra.mxu1 %v4759_v55 }
 0x1db   :  { %1735 = vmatpush.msra.mxu2 %v4760_v61  ;;  %1755 = vmatpush.msra.mxu3 %v4761_v6 }
 0x1dc   :  { %1696 = vmatpush.msra.mxu0 %v4754_v0  ;;  %1716 = vmatpush.msra.mxu1 %v4755_v57 }
 0x1dd   :  { %1736 = vmatpush.msra.mxu2 %v4756_v1  ;;  %1756 = vmatpush.msra.mxu3 %v4757_v3 }
 0x1de   :  { %1697 = vmatpush.msra.mxu0 %v4750_v4  ;;  %1717 = vmatpush.msra.mxu1 %v4751_v5 }
 0x1df   :  { %1737 = vmatpush.msra.mxu2 %v4752_v8  ;;  %1757 = vmatpush.msra.mxu3 %v4753_v10 }
 0x1e0   :  { %1698 = vmatpush.msra.mxu0 %v4746_v12  ;;  %1718 = vmatpush.msra.mxu1 %v4747_v14 }
 0x1e1   :  { %1738 = vmatpush.msra.mxu2 %v4748_v15 }
 0x1e2   :  { %1699 = vmatpush.msra.mxu0 %v4742_v25  ;;  %1719 = vmatpush.msra.mxu1 %v4743_v26 }
 0x1e3   :  { %1739 = vmatpush.msra.mxu2 %v4744_v28 }
 0x1e4   :  { %1700 = vmatpush.msra.mxu0 %v4738_v31 }
 0x201   :  { %v1021_v21 = vpop.f32.mrf.mxu0  ;;  %v1041_v22 = vpop.f32.mrf.mxu1 }
 0x208   :  { %v1081_v23 = vpop.f32.mrf.mxu3  ;;  %v1061_v54 = vpop.f32.mrf.mxu2 }
 0x213   :  { %v1101_v36 = vpop.f32.mrf.mxu0  ;;  %v1121_v37 = vpop.f32.mrf.mxu1 }
 0x214   :  { %v1102_v39 = vadd.f32 %v1101_v36, %v1021_v21  ;;  %v1122_v40 = vadd.f32 %v1121_v37, %v1041_v22  ;;  %v4749_v22 = vld [vmem:[%s10665_s1 + $0x298] sm:$0xff] }
 0x215   :  { %1758 = vmatpush.msra.mxu3 %v4749_v22  ;;  %v4737_v36 = vld [vmem:[%s10665_s1 + $0x238] sm:$0xff] }
 0x216   :  { %v1174_v45 = vadd.f32 %v1166_v17, %v1102_v39  ;;  %v1175_v46 = vadd.f32 %v1167_v32, %v1122_v40  ;;  %v4740_v17 = vld [vmem:[%s10665_s1 + $0x250] sm:$0xff]  ;;  %v4734_v32 = vld [vmem:[%s10665_s1 + $0x220] sm:$0xff] }
 0x217   :  { %1759 = vmatpush.msra.mxu3 %v4745_v29  ;;  %1740 = vmatpush.msra.mxu2 %v4740_v17  ;;  %v4730_v40 = vld [vmem:[%s10665_s1 + $0x200] sm:$0xff] }
 0x218   :  { %v4719_v53 = vmul.f32 -1.442695, %v1174_v45  ;;  %v4720_v56 = vmul.f32 -1.442695, %v1175_v46  ;;  %1701 = vmatpush.msra.mxu0 %v4734_v32 }
 0x219   :  { %1760 = vmatpush.msra.mxu3 %v4741_v27  ;;  %1741 = vmatpush.msra.mxu2 %v4736_v33 }
 0x21a   :  { %5477 = vpow2.f32 %v4719_v53  ;;  %v1161_v58 = vpop.f32.mrf.mxu3  ;;  %v1141_v21 = vpop.f32.mrf.mxu2  ;;  %1702 = vmatpush.msra.mxu0 %v4730_v40 }
 0x21b   :  { %5479 = vpow2.f32 %v4720_v56  ;;  %v1162_v7 = vadd.f32 %v1161_v58, %v1081_v23  ;;  %v1142_v20 = vadd.f32 %v1141_v21, %v1061_v54  ;;  %v4739_v23 = vld [vmem:[%s10665_s1 + $0x248] sm:$0xff]  ;;  %1761 = vmatpush.msra.mxu3 %v4737_v36  ;;  %1742 = vmatpush.msra.mxu2 %v4732_v42 }
 0x21c   :  { %1720 = vmatpush.msra.mxu1 %v4739_v23  ;;  %v1913_v42 = vld [vmem:[%s10666_s2 + $0x1e8] sm:$0xff] }
 0x21d   :  { %v1177_v2 = vadd.f32 %v1169_v60, %v1162_v7  ;;  %v1176_v37 = vadd.f32 %v1168_v30, %v1142_v20  ;;  %1762 = vmatpush.msra.mxu3 %v4733_v44  ;;  %v1914_v44 = vld [vmem:[%s10666_s2 + $0x1f0] sm:$0xff] }
 0x21e   :  { %1721 = vmatpush.msra.mxu1 %v4735_v34 }
 0x21f   :  { %v4721_v9 = vmul.f32 -1.442695, %v1177_v2 }
 0x220   :  { %v5478_v11 = vpop.eup %5477  ;;  %1722 = vmatpush.msra.mxu1 %v4731_v41  ;;  %v1912_v41 = vld [vmem:[%s10666_s2 + $0x1e0] sm:$0xff] }
 0x221   :  { %v5480_v16 = vpop.eup %5479  ;;  %v7725_v18 = vadd.f32 1.0, %v5478_v11  ;;  %5481 = vpow2.f32 %v4721_v9 }
 0x222   :  { %v7730_v24 = vadd.f32 1.0, %v5480_v16 }
 0x223   :  { %5483 = vrcp.f32 %v7725_v18  ;;  %v1191_v53 = vand.u32 2147483647, %v7725_v18  ;;  %v1193_v54 = vand.u32 2147483648, %v7725_v18  ;;  %vm1187_vm3 = vweird.f32 %v7725_v18 }
 0x224   :  { %5485 = vrcp.f32 %v7730_v24  ;;  %v1212_v59 = vand.u32 2147483648, %v7730_v24  ;;  %v1210_v62 = vand.u32 2147483647, %v7730_v24  ;;  %vm1206_vm15 = vweird.f32 %v7730_v24 }
 0x225   :  { %v1350_v39 = vpop.f32.mrf.mxu1  ;;  %v1330_v55 = vpop.f32.mrf.mxu0  ;;  %v1194_v2 = vor.u32 1.1754944e-38, %v1193_v54  ;;  %vm1192_vm6 = vcmp.eq.f32.partialorder %v1191_v53, 8.507059e+37  ;;  %v1905_v54 = vld [vmem:[%s10666_s2 + $0x1a8] sm:$0xff] }
 0x226   :  { %v1397_v48 = vrot.slane %v1350_v39, 6  ;;  %v1213_v9 = vor.u32 1.1754944e-38, %v1212_v59  ;;  %vm1211_vm7 = vcmp.eq.f32.partialorder %v1210_v62, 8.507059e+37  ;;  %v1907_v59 = vld [vmem:[%s10666_s2 + $0x1b8] sm:$0xff]  ;;  %v1900_v62 = vld [vmem:[%s10666_s2 + $0x180] sm:$0xff] }
 0x227   :  { %v5482_v35 = vpop.eup %5481 }
 0x228   :  { %v7771_v38 = vadd.f32 1.0, %v5482_v35  ;;  %v1400_v7 = vsel %vm189_vm0, %v1330_v55, %v1397_v48  ;;  %v1909_v48 = vld [vmem:[%s10666_s2 + $0x1c8] sm:$0xff] }
 0x229   :  { %v5484_v43 = vpop.eup %5483  ;;  %v1901_v55 = vld [vmem:[%s10666_s2 + $0x188] sm:$0xff] }
 0x22a   :  { %v5486_v45 = vpop.eup %5485  ;;  %v1183_v46 = vmul.f32 %v5484_v43, %v7725_v18  ;;  %5487 = vrcp.f32 %v7771_v38  ;;  %vm1188_vm13 = vweird.f32 %v5484_v43  ;;  %v1232_v30 = vand.u32 2147483648, %v7771_v38 }
 0x22b   :  { %v1202_v47 = vmul.f32 %v5486_v45, %v7730_v24  ;;  %5489 = vtanh.f32 %v1176_v37  ;;  %vm1207_vm14 = vweird.f32 %v5486_v45  ;;  %vm1189_vm4 = vmor %vm1187_vm3, %vm1188_vm13  ;;  %vm1226_vm9 = vweird.f32 %v7771_v38 }
 0x22c   :  { %v1184_v52 = vsub.f32 1.0, %v1183_v46  ;;  %v1370_v56 = vpop.f32.mrf.mxu2  ;;  %v1390_v50 = vpop.f32.mrf.mxu3  ;;  %vm1208_vm5 = vmor %vm1206_vm15, %vm1207_vm14  ;;  %v1230_v31 = vand.u32 2147483647, %v7771_v38  ;;  %v1233_v32 = vor.u32 1.1754944e-38, %v1232_v30 }
 0x22d   :  { %v1203_v63 = vsub.f32 1.0, %v1202_v47  ;;  %v1398_v60 = vrot.slane %v1370_v56, 4  ;;  %v1399_v51 = vrot.slane %v1390_v50, 2  ;;  %v1908_v47 = vld [vmem:[%s10666_s2 + $0x1c0] sm:$0xff] }
 0x22e   :  { %v1185_v58 = vmul.f32 %v5484_v43, %v1184_v52  ;;  %vm1231_vm11 = vcmp.eq.f32.partialorder %v1230_v31, 8.507059e+37  ;;  %v1911_v52 = vld [vmem:[%s10666_s2 + $0x1d8] sm:$0xff]  ;;  %v4589_v31 = vclamps-f32 %v7222_v13, 50.0  ;;  %v1884_v13 = vld [vmem:[%s10666_s2 + $0x100] sm:$0xff] }
 0x22f   :  { %v1204_v61 = vmul.f32 %v5486_v45, %v1203_v63  ;;  %v1401_v6 = vsel %vm191_vm1, %v1398_v60, %v1399_v51  ;;  %v1904_v63 = vld [vmem:[%s10666_s2 + $0x1a0] sm:$0xff]  ;;  %v1906_v51 = vld [vmem:[%s10666_s2 + $0x1b0] sm:$0xff] }
 0x230   :  { %v5488_v0 = vpop.eup %5487  ;;  %v1186_v57 = vadd.f32 %v5484_v43, %v1185_v58  ;;  %v1402_v1 = vsel %vm193_vm2, %v1400_v7, %v1401_v6  ;;  %v1902_v6 = vld [vmem:[%s10666_s2 + $0x190] sm:$0xff] }
 0x231   :  { %v1205_v3 = vadd.f32 %v5486_v45, %v1204_v61  ;;  %v1222_v4 = vmul.f32 %v5488_v0, %v7771_v38  ;;  %v7802_v5 = vadd.f32 %v4724_v19, %v1402_v1  ;;  %v5490_v8 = vpop.eup %5489  ;;  %vm1227_vm8 = vweird.f32 %v5488_v0 }
 0x232   :  { %v1190_v10 = vsel %vm1189_vm4, %v5484_v43, %v1186_v57  ;;  %vm1228_vm10 = vmor %vm1226_vm9, %vm1227_vm8 }
 0x233   :  { %v1195_v11 = vsel %vm1192_vm6, %v1194_v2, %v1190_v10  ;;  %v1209_v12 = vsel %vm1208_vm5, %v5486_v45, %v1205_v3  ;;  %v1223_v14 = vsub.f32 1.0, %v1222_v4  ;;  %v4725_v15 = vmul.f32 -1.442695, %v7802_v5  ;;  %v1915_v45 = vld [vmem:[%s10666_s2 + $0x1f8] sm:$0xff]  ;;  %v1896_v2 = vld [vmem:[%s10666_s2 + $0x160] sm:$0xff]  ;;  %v1897_v3 = vld [vmem:[%s10666_s2 + $0x168] sm:$0xff] }
 0x234   :  { %v1214_v16 = vsel %vm1211_vm7, %v1213_v9, %v1209_v12  ;;  %v1237_v18 = vmul.f32 %v5490_v8, %v1195_v11  ;;  %v1425_v21 = vrot.slane %v7802_v5, 2  ;;  %v1449_v24 = vrot.slane %v7802_v5, 6  ;;  %v1898_v8 = vld [vmem:[%s10666_s2 + $0x170] sm:$0xff]  ;;  %v1899_v9 = vld [vmem:[%s10666_s2 + $0x178] sm:$0xff]  ;;  %v1857_v10 = vld [vmem:[%s10666_s2 + $0x28] sm:$0xff] }
 0x235   :  { %v1236_v22 = vmul.f32 %v4583_v49, %v1214_v16  ;;  %5491 = vpow2.f32 %v4725_v15  ;;  %v1224_v25 = vmul.f32 %v5488_v0, %v1223_v14  ;;  %v1910_v49 = vld [vmem:[%s10666_s2 + $0x1d0] sm:$0xff]  ;;  %v1446_v50 = vrot.slane %v7802_v5, 4  ;;  %v1892_v14 = vld [vmem:[%s10666_s2 + $0x140] sm:$0xff]  ;;  %v1893_v15 = vld [vmem:[%s10666_s2 + $0x148] sm:$0xff] }
 0x236   :  { %v4726_v26 = vmul.f32 -1.442695, %v1425_v21  ;;  %v4727_v29 = vmul.f32 -1.442695, %v1449_v24  ;;  %v1895_v24 = vld [vmem:[%s10666_s2 + $0x158] sm:$0xff] }
 0x237   :  { %v7807_v28 = vadd.f32 %v1237_v18, %v1236_v22  ;;  %v1225_v20 = vadd.f32 %v5488_v0, %v1224_v25  ;;  %v1894_v22 = vld [vmem:[%s10666_s2 + $0x150] sm:$0xff] }
 0x238   :  { %5493 = vpow2.f32 %v4726_v26  ;;  %v1888_v26 = vld [vmem:[%s10666_s2 + $0x120] sm:$0xff] }
 0x239   :  { %5495 = vtanh.f32 %v7807_v28  ;;  %v1229_v27 = vsel %vm1228_vm10, %v5488_v0, %v1225_v20  ;;  %v1903_v0 = vld [vmem:[%s10666_s2 + $0x198] sm:$0xff] }
 0x23a   :  { %5497 = vpow2.f32 %v4727_v29  ;;  %v1234_v36 = vsel %vm1231_vm11, %v1233_v32, %v1229_v27  ;;  %v1889_v29 = vld [vmem:[%s10666_s2 + $0x128] sm:$0xff] }
 0x23b   :  { %v5492_v23 = vpop.eup %5491 }
 0x23c   :  { %v7813_v17 = vadd.f32 1.0, %v5492_v23  ;;  %v1890_v23 = vld [vmem:[%s10666_s2 + $0x130] sm:$0xff] }
 0x23e   :  { %v5494_v34 = vpop.eup %5493  ;;  %5499 = vrcp.f32 %v7813_v17  ;;  %v1420_v61 = vand.u32 2147483648, %v7813_v17  ;;  %v1418_v57 = vand.u32 2147483647, %v7813_v17  ;;  %vm1414_vm13 = vweird.f32 %v7813_v17 }
 0x23f   :  { %v5496_v33 = vpop.eup %5495  ;;  %v7816_v35 = vadd.f32 1.0, %v5494_v34  ;;  %v1885_v34 = vld [vmem:[%s10666_s2 + $0x108] sm:$0xff] }
 0x240   :  { %v5498_v37 = vpop.eup %5497  ;;  %v1240_v39 = vmul.f32 %v5496_v33, %v1234_v36  ;;  %v1421_v18 = vor.u32 1.1754944e-38, %v1420_v61  ;;  %vm1419_vm3 = vcmp.eq.f32.partialorder %v1418_v57, 8.507059e+37  ;;  %v1886_v36 = vld [vmem:[%s10666_s2 + $0x110] sm:$0xff]  ;;  %v5666_v61 = vld [vmem:[%s10666_s2 + $0x88] sm:$0xff] }
 0x241   :  { %5501 = vrcp.f32 %v7816_v35  ;;  %v7819_v40 = vadd.f32 1.0, %v5498_v37  ;;  %v1442_v5 = vand.u32 2147483648, %v7816_v35  ;;  %v1440_v12 = vand.u32 2147483647, %v7816_v35  ;;  %v1887_v37 = vld [vmem:[%s10666_s2 + $0x118] sm:$0xff] }
 0x242   :  { %v4722_v38 = vclamps-f32 %v1240_v39, 50.0  ;;  %1246 = vst [vmem:[#allocation2 + $0x2] sm:$0x3] %v1240_v39  ;;  %vm1436_vm4 = vweird.f32 %v7816_v35 }
 0x243   :  { %5503 = vrcp.f32 %v7819_v40  ;;  %v1443_v30 = vor.u32 1.1754944e-38, %v1442_v5  ;;  %vm1441_vm6 = vcmp.eq.f32.partialorder %v1440_v12, 8.507059e+37  ;;  %vm1460_vm8 = vweird.f32 %v7819_v40  ;;  %v1862_v5 = vld [vmem:[%s10666_s2 + $0x50] sm:$0xff]  ;;  %v1859_v12 = vld [vmem:[%s10666_s2 + $0x38] sm:$0xff] }
 0x244   :  { %v7828_v43 = vpop.eup %5499  ;;  %1623 = vmatmul.f32.vlgmr.msrb.gmra.mxu0 %v4722_v38  ;;  %1643 = vmatmul.f32.vlgmr.msrb.gmra.mxu1 %v4722_v38  ;;  %5505 = vtanh.f32 %v1446_v50 }
 0x245   :  { %v1410_v46 = vmul.f32 %v7828_v43, %v7813_v17  ;;  %1663 = vmatmul.f32.vlgmr.msrb.gmra.mxu2 %v4722_v38  ;;  %1683 = vmatmul.f32.vlgmr.msrb.gmra.mxu3 %v4722_v38  ;;  %vm1415_vm12 = vweird.f32 %v7828_v43  ;;  %v1891_v17 = vld [vmem:[%s10666_s2 + $0x138] sm:$0xff] }
 0x246   :  { %1916 = vmatpush.msrb.mxu0 %v1912_v41  ;;  %1936 = vmatpush.msrb.mxu1 %v1913_v42  ;;  %vm7904_vm14 = vmor %vm1414_vm13, %vm1415_vm12 }
 0x247   :  { %v7850_v53 = vpop.eup %5501  ;;  %v1411_v56 = vsub.f32 1.0, %v1410_v46  ;;  %1956 = vmatpush.msrb.mxu2 %v1914_v44  ;;  %1976 = vmatpush.msrb.mxu3 %v1915_v45  ;;  %v5654_v44 = vld [vmem:[%s10666_s2 + $0xe8] sm:$0xff]  ;;  %v1466_v45 = vand.u32 2147483648, %v7819_v40  ;;  %v5655_v46 = vld [vmem:[%s10666_s2 + $0xf0] sm:$0xff] }
 0x248   :  { %v1432_v60 = vmul.f32 %v7850_v53, %v7816_v35  ;;  %1917 = vmatpush.msrb.mxu0 %v1908_v47  ;;  %1937 = vmatpush.msrb.mxu1 %v1909_v48  ;;  %vm1437_vm15 = vweird.f32 %v7850_v53  ;;  %v5656_v47 = vld [vmem:[%s10666_s2 + $0xf8] sm:$0xff]  ;;  %v1464_v48 = vand.u32 2147483647, %v7819_v40 }
 0x249   :  { %v7867_v58 = vpop.eup %5503  ;;  %1957 = vmatpush.msrb.mxu2 %v1910_v49  ;;  %1977 = vmatpush.msrb.mxu3 %v1911_v52  ;;  %v1412_v19 = vmul.f32 %v7828_v43, %v1411_v56  ;;  %vm1438_vm5 = vmor %vm1436_vm4, %vm1437_vm15  ;;  %v5657_v49 = vld [vmem:[%s10666_s2 + $0xc0] sm:$0xff]  ;;  %v5658_v52 = vld [vmem:[%s10666_s2 + $0xc8] sm:$0xff] }
 0x24a   :  { %v1433_v7 = vsub.f32 1.0, %v1432_v60  ;;  %1918 = vmatpush.msrb.mxu0 %v1904_v63  ;;  %1938 = vmatpush.msrb.mxu1 %v1905_v54  ;;  %v1456_v1 = vmul.f32 %v7867_v58, %v7819_v40  ;;  %v5506_v32 = vpop.eup %5505  ;;  %vm1461_vm7 = vweird.f32 %v7867_v58  ;;  %v5659_v40 = vld [vmem:[%s10666_s2 + $0xd0] sm:$0xff]  ;;  %v5660_v56 = vld [vmem:[%s10666_s2 + $0xd8] sm:$0xff]  ;;  %v5661_v63 = vld [vmem:[%s10666_s2 + $0xa0] sm:$0xff]  ;;  %v1467_v60 = vor.u32 1.1754944e-38, %v1466_v45 }
 0x24b   :  { %1958 = vmatpush.msrb.mxu2 %v1906_v51  ;;  %1978 = vmatpush.msrb.mxu3 %v1907_v59  ;;  %v1413_v4 = vadd.f32 %v7828_v43, %v1412_v19  ;;  %vm7985_vm9 = vmor %vm1460_vm8, %vm1461_vm7  ;;  %v5662_v54 = vld [vmem:[%s10666_s2 + $0xa8] sm:$0xff]  ;;  %v5663_v51 = vld [vmem:[%s10666_s2 + $0xb0] sm:$0xff]  ;;  %vm1465_vm10 = vcmp.eq.f32.partialorder %v1464_v48, 8.507059e+37 }
 0x24c   :  { %1919 = vmatpush.msrb.mxu0 %v1900_v62  ;;  %1939 = vmatpush.msrb.mxu1 %v1901_v55  ;;  %v1434_v11 = vmul.f32 %v7850_v53, %v1433_v7  ;;  %v1457_v21 = vsub.f32 1.0, %v1456_v1  ;;  %v5664_v59 = vld [vmem:[%s10666_s2 + $0xb8] sm:$0xff]  ;;  %v1865_v62 = vld [vmem:[%s10666_s2 + $0x68] sm:$0xff]  ;;  %v5665_v19 = vld [vmem:[%s10666_s2 + $0x80] sm:$0xff] }
 0x24d   :  { %1959 = vmatpush.msrb.mxu2 %v1902_v6  ;;  %1979 = vmatpush.msrb.mxu3 %v1903_v0  ;;  %v1417_v16 = vsel %vm7904_vm14, %v7828_v43, %v1413_v4  ;;  %v5653_v43 = vld [vmem:[%s10666_s2 + $0xe0] sm:$0xff]  ;;  %v5667_v6 = vld [vmem:[%s10666_s2 + $0x90] sm:$0xff]  ;;  %v5668_v0 = vld [vmem:[%s10666_s2 + $0x98] sm:$0xff] }
 0x24e   :  { %1920 = vmatpush.msrb.mxu0 %v1896_v2  ;;  %1940 = vmatpush.msrb.mxu1 %v1897_v3  ;;  %v1435_v25 = vadd.f32 %v7850_v53, %v1434_v11  ;;  %v1422_v20 = vsel %vm1419_vm3, %v1421_v18, %v1417_v16  ;;  %v1458_v35 = vmul.f32 %v7867_v58, %v1457_v21  ;;  %v1866_v1 = vld [vmem:[%s10666_s2 + $0x70] sm:$0xff]  ;;  %v1867_v2 = vld [vmem:[%s10666_s2 + $0x78] sm:$0xff]  ;;  %v1860_v3 = vld [vmem:[%s10666_s2 + $0x40] sm:$0xff] }
 0x24f   :  { %1960 = vmatpush.msrb.mxu2 %v1898_v8  ;;  %1980 = vmatpush.msrb.mxu3 %v1899_v9  ;;  %v1471_v38 = vmul.f32 %v5506_v32, %v1422_v20  ;;  %v1861_v4 = vld [vmem:[%s10666_s2 + $0x48] sm:$0xff]  ;;  %v1863_v8 = vld [vmem:[%s10666_s2 + $0x58] sm:$0xff]  ;;  %v1856_v9 = vld [vmem:[%s10666_s2 + $0x20] sm:$0xff] }
 0x250   :  { %1921 = vmatpush.msrb.mxu0 %v1892_v14  ;;  %1941 = vmatpush.msrb.mxu1 %v1893_v15  ;;  %v1439_v27 = vsel %vm1438_vm5, %v7850_v53, %v1435_v25  ;;  %v1459_v42 = vadd.f32 %v7867_v58, %v1458_v35  ;;  %v1858_v11 = vld [vmem:[%s10666_s2 + $0x30] sm:$0xff]  ;;  %v1852_v14 = vld [vmem:[%s10666_s2] sm:$0xff]  ;;  %v1853_v15 = vld [vmem:[%s10666_s2 + $0x8] sm:$0xff] }
 0x251   :  { %1961 = vmatpush.msrb.mxu2 %v1894_v22  ;;  %1981 = vmatpush.msrb.mxu3 %v1895_v24  ;;  %v1444_v33 = vsel %vm1441_vm6, %v1443_v30, %v1439_v27  ;;  %v1854_v16 = vld [vmem:[%s10666_s2 + $0x10] sm:$0xff]  ;;  %v1855_v18 = vld [vmem:[%s10666_s2 + $0x18] sm:$0xff]  ;;  %v4994_v22 = vld [vmem:[%s10666_s2 + $0x3e0] sm:$0xff] }
 0x252   :  { %1922 = vmatpush.msrb.mxu0 %v1888_v26  ;;  %1942 = vmatpush.msrb.mxu1 %v1889_v29  ;;  %v1470_v39 = vmul.f32 %v4589_v31, %v1444_v33  ;;  %v1463_v50 = vsel %vm7985_vm9, %v7867_v58, %v1459_v42  ;;  %v1864_v58 = vld [vmem:[%s10666_s2 + $0x60] sm:$0xff]  ;;  %v4995_v24 = vld [vmem:[%s10666_s2 + $0x3e8] sm:$0xff]  ;;  %v4996_v25 = vld [vmem:[%s10666_s2 + $0x3f0] sm:$0xff] }
 0x253   :  { %1962 = vmatpush.msrb.mxu2 %v1890_v23  ;;  %1982 = vmatpush.msrb.mxu3 %v1891_v17  ;;  %v1468_v7 = vsel %vm1465_vm10, %v1467_v60, %v1463_v50  ;;  %v4997_v26 = vld [vmem:[%s10666_s2 + $0x3f8] sm:$0xff]  ;;  %v4990_v29 = vld [vmem:[%s10666_s2 + $0x3c0] sm:$0xff]  ;;  %v4991_v20 = vld [vmem:[%s10666_s2 + $0x3c8] sm:$0xff] }
 0x254   :  { %1923 = vmatpush.msrb.mxu0 %v1884_v13  ;;  %1943 = vmatpush.msrb.mxu1 %v1885_v34  ;;  %v7957_v41 = vadd.f32 %v1471_v38, %v1470_v39  ;;  %v4992_v30 = vld [vmem:[%s10666_s2 + $0x3d0] sm:$0xff]  ;;  %v4993_v31 = vld [vmem:[%s10666_s2 + $0x3d8] sm:$0xff]  ;;  %v4986_v23 = vld [vmem:[%s10666_s2 + $0x3a0] sm:$0xff] }
 0x255   :  { %1963 = vmatpush.msrb.mxu2 %v1886_v36  ;;  %1983 = vmatpush.msrb.mxu3 %v1887_v37  ;;  %v4987_v17 = vld [vmem:[%s10666_s2 + $0x3a8] sm:$0xff]  ;;  %v4988_v27 = vld [vmem:[%s10666_s2 + $0x3b0] sm:$0xff]  ;;  %v4989_v32 = vld [vmem:[%s10666_s2 + $0x3b8] sm:$0xff] }
 0x256   :  { %1924 = vmatpush.msrb.mxu0 %v5653_v43  ;;  %1944 = vmatpush.msrb.mxu1 %v5654_v44  ;;  %5507 = vtanh.f32 %v7957_v41  ;;  %v4982_v13 = vld [vmem:[%s10666_s2 + $0x380] sm:$0xff]  ;;  %v4983_v34 = vld [vmem:[%s10666_s2 + $0x388] sm:$0xff]  ;;  %v4984_v33 = vld [vmem:[%s10666_s2 + $0x390] sm:$0xff] }
 0x257   :  { %1964 = vmatpush.msrb.mxu2 %v5655_v46  ;;  %1984 = vmatpush.msrb.mxu3 %v5656_v47  ;;  %v4985_v35 = vld [vmem:[%s10666_s2 + $0x398] sm:$0xff]  ;;  %v4978_v36 = vld [vmem:[%s10666_s2 + $0x360] sm:$0xff]  ;;  %v4979_v37 = vld [vmem:[%s10666_s2 + $0x368] sm:$0xff] }
 0x258   :  { %1925 = vmatpush.msrb.mxu0 %v5657_v49  ;;  %1945 = vmatpush.msrb.mxu1 %v5658_v52  ;;  %v4980_v39 = vld [vmem:[%s10666_s2 + $0x370] sm:$0xff]  ;;  %v4981_v38 = vld [vmem:[%s10666_s2 + $0x378] sm:$0xff]  ;;  %v4974_v42 = vld [vmem:[%s10666_s2 + $0x340] sm:$0xff] }
 0x259   :  { %1965 = vmatpush.msrb.mxu2 %v5659_v40  ;;  %1985 = vmatpush.msrb.mxu3 %v5660_v56  ;;  %v4975_v43 = vld [vmem:[%s10666_s2 + $0x348] sm:$0xff]  ;;  %v4976_v44 = vld [vmem:[%s10666_s2 + $0x350] sm:$0xff]  ;;  %v4977_v45 = vld [vmem:[%s10666_s2 + $0x358] sm:$0xff] }
 0x25a   :  { %1926 = vmatpush.msrb.mxu0 %v5661_v63  ;;  %1946 = vmatpush.msrb.mxu1 %v5662_v54  ;;  %v4970_v46 = vld [vmem:[%s10666_s2 + $0x320] sm:$0xff]  ;;  %v4971_v47 = vld [vmem:[%s10666_s2 + $0x328] sm:$0xff]  ;;  %v4972_v48 = vld [vmem:[%s10666_s2 + $0x330] sm:$0xff] }
 0x25b   :  { %1966 = vmatpush.msrb.mxu2 %v5663_v51  ;;  %1986 = vmatpush.msrb.mxu3 %v5664_v59  ;;  %v4973_v49 = vld [vmem:[%s10666_s2 + $0x338] sm:$0xff]  ;;  %v4966_v52 = vld [vmem:[%s10666_s2 + $0x300] sm:$0xff]  ;;  %v4967_v53 = vld [vmem:[%s10666_s2 + $0x308] sm:$0xff] }
 0x25c   :  { %v5508_v55 = vpop.eup %5507  ;;  %1927 = vmatpush.msrb.mxu0 %v5665_v19  ;;  %1947 = vmatpush.msrb.mxu1 %v5666_v61  ;;  %v4968_v40 = vld [vmem:[%s10666_s2 + $0x310] sm:$0xff]  ;;  %v4969_v56 = vld [vmem:[%s10666_s2 + $0x318] sm:$0xff]  ;;  %v4962_v50 = vld [vmem:[%s10666_s2 + $0x2e0] sm:$0xff] }
 0x25d   :  { %1967 = vmatpush.msrb.mxu2 %v5667_v6  ;;  %1987 = vmatpush.msrb.mxu3 %v5668_v0  ;;  %v1474_v57 = vmul.f32 %v5508_v55, %v1468_v7  ;;  %v4963_v63 = vld [vmem:[%s10666_s2 + $0x2e8] sm:$0xff]  ;;  %v4964_v54 = vld [vmem:[%s10666_s2 + $0x2f0] sm:$0xff]  ;;  %v4965_v60 = vld [vmem:[%s10666_s2 + $0x2f8] sm:$0xff] }
 0x25e   :  { %1928 = vmatpush.msrb.mxu0 %v1864_v58  ;;  %1948 = vmatpush.msrb.mxu1 %v1865_v62  ;;  %v4958_v51 = vld [vmem:[%s10666_s2 + $0x2c0] sm:$0xff]  ;;  %v4959_v59 = vld [vmem:[%s10666_s2 + $0x2c8] sm:$0xff]  ;;  %v4960_v58 = vld [vmem:[%s10666_s2 + $0x2d0] sm:$0xff] }
 0x25f   :  { %1703 = vmatmul.f32.vlgmr.msra.gmra.mxu0 %v1474_v57  ;;  %1723 = vmatmul.f32.vlgmr.msra.gmra.mxu1 %v1474_v57  ;;  %v4728_v21 = vclamps-f32 %v1474_v57, 50.0  ;;  %v4961_v62 = vld [vmem:[%s10666_s2 + $0x2d8] sm:$0xff]  ;;  %v4954_v55 = vld [vmem:[%s10666_s2 + $0x2a0] sm:$0xff]  ;;  %v4955_v19 = vld [vmem:[%s10666_s2 + $0x2a8] sm:$0xff] }
 0x260   :  { %1743 = vmatmul.f32.vlgmr.msra.gmra.mxu2 %v1474_v57  ;;  %1763 = vmatmul.f32.vlgmr.msra.gmra.mxu3 %v1474_v57  ;;  %v4956_v61 = vld [vmem:[%s10666_s2 + $0x2b0] sm:$0xff]  ;;  %v4957_v7 = vld [vmem:[%s10666_s2 + $0x2b8] sm:$0xff]  ;;  %v4950_v6 = vld [vmem:[%s10666_s2 + $0x280] sm:$0xff] }
 0x261   :  { %1968 = vmatpush.msrb.mxu2 %v1866_v1  ;;  %1988 = vmatpush.msrb.mxu3 %v1867_v2  ;;  %v4951_v0 = vld [vmem:[%s10666_s2 + $0x288] sm:$0xff]  ;;  %v4952_v57 = vld [vmem:[%s10666_s2 + $0x290] sm:$0xff]  ;;  %v4953_v1 = vld [vmem:[%s10666_s2 + $0x298] sm:$0xff] }
 0x262   :  { %1929 = vmatpush.msrb.mxu0 %v1860_v3  ;;  %1949 = vmatpush.msrb.mxu1 %v1861_v4  ;;  %v4946_v2 = vld [vmem:[%s10666_s2 + $0x260] sm:$0xff]  ;;  %v4947_v3 = vld [vmem:[%s10666_s2 + $0x268] sm:$0xff]  ;;  %v4948_v4 = vld [vmem:[%s10666_s2 + $0x270] sm:$0xff] }
 0x263   :  { %1969 = vmatpush.msrb.mxu2 %v1862_v5  ;;  %1989 = vmatpush.msrb.mxu3 %v1863_v8  ;;  %v4949_v5 = vld [vmem:[%s10666_s2 + $0x278] sm:$0xff]  ;;  %v4942_v8 = vld [vmem:[%s10666_s2 + $0x240] sm:$0xff] }
 0x264   :  { %1930 = vmatpush.msrb.mxu0 %v1856_v9  ;;  %1950 = vmatpush.msrb.mxu1 %v1857_v10  ;;  %v4943_v9 = vld [vmem:[%s10666_s2 + $0x248] sm:$0xff]  ;;  %v4944_v10 = vld [vmem:[%s10666_s2 + $0x250] sm:$0xff] }
 0x265   :  { %1970 = vmatpush.msrb.mxu2 %v1858_v11  ;;  %1990 = vmatpush.msrb.mxu3 %v1859_v12  ;;  %v4945_v11 = vld [vmem:[%s10666_s2 + $0x258] sm:$0xff]  ;;  %v4938_v12 = vld [vmem:[%s10666_s2 + $0x220] sm:$0xff] }
 0x266   :  { %1931 = vmatpush.msrb.mxu0 %v1852_v14  ;;  %1951 = vmatpush.msrb.mxu1 %v1853_v15  ;;  %v4939_v14 = vld [vmem:[%s10666_s2 + $0x228] sm:$0xff]  ;;  %v4940_v15 = vld [vmem:[%s10666_s2 + $0x230] sm:$0xff] }
 0x267   :  { %1971 = vmatpush.msrb.mxu2 %v1854_v16  ;;  %1991 = vmatpush.msrb.mxu3 %v1855_v18  ;;  %v4941_v16 = vld [vmem:[%s10666_s2 + $0x238] sm:$0xff]  ;;  %v4934_v18 = vld [vmem:[%s10666_s2 + $0x200] sm:$0xff] }
 0x268   :  { %1932 = vmatmul.f32.vlgmr.msrb.gmra.mxu0 %v4728_v21  ;;  %1952 = vmatmul.f32.vlgmr.msrb.gmra.mxu1 %v4728_v21 }
 0x269   :  { %1972 = vmatmul.f32.vlgmr.msrb.gmra.mxu2 %v4728_v21  ;;  %1992 = vmatmul.f32.vlgmr.msrb.gmra.mxu3 %v4728_v21  ;;  %v4935_v21 = vld [vmem:[%s10666_s2 + $0x208] sm:$0xff] }
 0x26a   :  { %2210 = vmatpush.msra.mxu0 %v4994_v22  ;;  %2230 = vmatpush.msra.mxu1 %v4995_v24  ;;  %v4936_v22 = vld [vmem:[%s10666_s2 + $0x210] sm:$0xff]  ;;  %v4937_v24 = vld [vmem:[%s10666_s2 + $0x218] sm:$0xff] }
 0x26b   :  { %2250 = vmatpush.msra.mxu2 %v4996_v25  ;;  %2270 = vmatpush.msra.mxu3 %v4997_v26  ;;  %v4930_v25 = vld [vmem:[%s10665_s1 + $0x3e0] sm:$0xff]  ;;  %v4931_v26 = vld [vmem:[%s10665_s1 + $0x3e8] sm:$0xff] }
 0x26c   :  { %2211 = vmatpush.msra.mxu0 %v4990_v29  ;;  %2231 = vmatpush.msra.mxu1 %v4991_v20  ;;  %v4932_v29 = vld [vmem:[%s10665_s1 + $0x3f0] sm:$0xff]  ;;  %v4933_v20 = vld [vmem:[%s10665_s1 + $0x3f8] sm:$0xff] }
 0x26d   :  { %2251 = vmatpush.msra.mxu2 %v4992_v30  ;;  %2271 = vmatpush.msra.mxu3 %v4993_v31  ;;  %v4926_v30 = vld [vmem:[%s10665_s1 + $0x3c0] sm:$0xff]  ;;  %v4927_v31 = vld [vmem:[%s10665_s1 + $0x3c8] sm:$0xff] }
 0x26e   :  { %2212 = vmatpush.msra.mxu0 %v4986_v23  ;;  %2232 = vmatpush.msra.mxu1 %v4987_v17  ;;  %v4928_v23 = vld [vmem:[%s10665_s1 + $0x3d0] sm:$0xff] }
 0x26f   :  { %2252 = vmatpush.msra.mxu2 %v4988_v27  ;;  %2272 = vmatpush.msra.mxu3 %v4989_v32  ;;  %v4929_v32 = vld [vmem:[%s10665_s1 + $0x3d8] sm:$0xff] }
 0x270   :  { %2213 = vmatpush.msra.mxu0 %v4982_v13  ;;  %2233 = vmatpush.msra.mxu1 %v4983_v34  ;;  %v4922_v13 = vld [vmem:[%s10665_s1 + $0x3a0] sm:$0xff]  ;;  %v4923_v34 = vld [vmem:[%s10665_s1 + $0x3a8] sm:$0xff] }
 0x271   :  { %2253 = vmatpush.msra.mxu2 %v4984_v33  ;;  %2273 = vmatpush.msra.mxu3 %v4985_v35  ;;  %v4924_v33 = vld [vmem:[%s10665_s1 + $0x3b0] sm:$0xff]  ;;  %v4925_v35 = vld [vmem:[%s10665_s1 + $0x3b8] sm:$0xff] }
 0x272   :  { %2214 = vmatpush.msra.mxu0 %v4978_v36  ;;  %2234 = vmatpush.msra.mxu1 %v4979_v37  ;;  %v4918_v36 = vld [vmem:[%s10665_s1 + $0x380] sm:$0xff]  ;;  %v4919_v37 = vld [vmem:[%s10665_s1 + $0x388] sm:$0xff] }
 0x273   :  { %2254 = vmatpush.msra.mxu2 %v4980_v39  ;;  %2274 = vmatpush.msra.mxu3 %v4981_v38  ;;  %v4920_v39 = vld [vmem:[%s10665_s1 + $0x390] sm:$0xff]  ;;  %v8310_v38 = vld [vmem:[%s10667_s3 + $0x4] sm:$0xf] }
 0x274   :  { %2215 = vmatpush.msra.mxu0 %v4974_v42  ;;  %2235 = vmatpush.msra.mxu1 %v4975_v43  ;;  %v4921_v42 = vld [vmem:[%s10665_s1 + $0x398] sm:$0xff]  ;;  %v4914_v43 = vld [vmem:[%s10665_s1 + $0x360] sm:$0xff] }
 0x275   :  { %2255 = vmatpush.msra.mxu2 %v4976_v44  ;;  %2275 = vmatpush.msra.mxu3 %v4977_v45  ;;  %v4915_v44 = vld [vmem:[%s10665_s1 + $0x368] sm:$0xff]  ;;  %v4916_v45 = vld [vmem:[%s10665_s1 + $0x370] sm:$0xff] }
 0x276   :  { %2216 = vmatpush.msra.mxu0 %v4970_v46  ;;  %2236 = vmatpush.msra.mxu1 %v4971_v47  ;;  %v4917_v46 = vld [vmem:[%s10665_s1 + $0x378] sm:$0xff] }
 0x277   :  { %2256 = vmatpush.msra.mxu2 %v4972_v48  ;;  %2276 = vmatpush.msra.mxu3 %v4973_v49  ;;  %v1769_v49 = vperm.slane %v8310_v38, 0 }
 0x278   :  { %2217 = vmatpush.msra.mxu0 %v4966_v52  ;;  %2237 = vmatpush.msra.mxu1 %v4967_v53  ;;  %v1770_v52 = vperm.slane %v8310_v38, 1  ;;  %v4910_v53 = vld [vmem:[%s10665_s1 + $0x340] sm:$0xff] }
 0x279   :  { %2257 = vmatpush.msra.mxu2 %v4968_v40  ;;  %2277 = vmatpush.msra.mxu3 %v4969_v56  ;;  %v4911_v40 = vld [vmem:[%s10665_s1 + $0x348] sm:$0xff]  ;;  %v4912_v56 = vld [vmem:[%s10665_s1 + $0x350] sm:$0xff] }
 0x27a   :  { %2218 = vmatpush.msra.mxu0 %v4962_v50  ;;  %2238 = vmatpush.msra.mxu1 %v4963_v63 }
 0x27b   :  { %2258 = vmatpush.msra.mxu2 %v4964_v54  ;;  %2278 = vmatpush.msra.mxu3 %v4965_v60  ;;  %v4913_v54 = vld [vmem:[%s10665_s1 + $0x358] sm:$0xff] }
 0x27c   :  { %2219 = vmatpush.msra.mxu0 %v4958_v51  ;;  %2239 = vmatpush.msra.mxu1 %v4959_v59  ;;  %v4906_v59 = vld [vmem:[%s10665_s1 + $0x320] sm:$0xff] }
 0x27d   :  { %2259 = vmatpush.msra.mxu2 %v4960_v58  ;;  %2279 = vmatpush.msra.mxu3 %v4961_v62  ;;  %v4907_v58 = vld [vmem:[%s10665_s1 + $0x328] sm:$0xff]  ;;  %v4908_v62 = vld [vmem:[%s10665_s1 + $0x330] sm:$0xff] }
 0x27e   :  { %2220 = vmatpush.msra.mxu0 %v4954_v55  ;;  %2240 = vmatpush.msra.mxu1 %v4955_v19  ;;  %v4909_v55 = vld [vmem:[%s10665_s1 + $0x338] sm:$0xff] }
 0x27f   :  { %2260 = vmatpush.msra.mxu2 %v4956_v61  ;;  %2280 = vmatpush.msra.mxu3 %v4957_v7  ;;  %v4902_v7 = vld [vmem:[%s10665_s1 + $0x300] sm:$0xff] }
 0x280   :  { %2221 = vmatpush.msra.mxu0 %v4950_v6  ;;  %2241 = vmatpush.msra.mxu1 %v4951_v0  ;;  %v4903_v6 = vld [vmem:[%s10665_s1 + $0x308] sm:$0xff]  ;;  %v4904_v0 = vld [vmem:[%s10665_s1 + $0x310] sm:$0xff] }
 0x281   :  { %2261 = vmatpush.msra.mxu2 %v4952_v57  ;;  %2281 = vmatpush.msra.mxu3 %v4953_v1  ;;  %v4905_v57 = vld [vmem:[%s10665_s1 + $0x318] sm:$0xff] }
 0x282   :  { %2222 = vmatpush.msra.mxu0 %v4946_v2  ;;  %2242 = vmatpush.msra.mxu1 %v4947_v3  ;;  %v4898_v3 = vld [vmem:[%s10665_s1 + $0x2e0] sm:$0xff] }
 0x283   :  { %2262 = vmatpush.msra.mxu2 %v4948_v4  ;;  %2282 = vmatpush.msra.mxu3 %v4949_v5  ;;  %v4899_v4 = vld [vmem:[%s10665_s1 + $0x2e8] sm:$0xff]  ;;  %v1772_v5 = vperm.slane %v8310_v38, 3 }
 0x284   :  { %2223 = vmatpush.msra.mxu0 %v4942_v8  ;;  %2243 = vmatpush.msra.mxu1 %v4943_v9  ;;  %v4900_v8 = vld [vmem:[%s10665_s1 + $0x2f0] sm:$0xff]  ;;  %v4901_v9 = vld [vmem:[%s10665_s1 + $0x2f8] sm:$0xff] }
 0x285   :  { %2263 = vmatpush.msra.mxu2 %v4944_v10  ;;  %2283 = vmatpush.msra.mxu3 %v4945_v11 }
 0x286   :  { %2224 = vmatpush.msra.mxu0 %v4938_v12  ;;  %2244 = vmatpush.msra.mxu1 %v4939_v14  ;;  %v4894_v12 = vld [vmem:[%s10665_s1 + $0x2c0] sm:$0xff]  ;;  %v4895_v14 = vld [vmem:[%s10665_s1 + $0x2c8] sm:$0xff] }
 0x287   :  { %2264 = vmatpush.msra.mxu2 %v4940_v15  ;;  %2284 = vmatpush.msra.mxu3 %v4941_v16  ;;  %v4896_v15 = vld [vmem:[%s10665_s1 + $0x2d0] sm:$0xff] }
 0x288   :  { %2225 = vmatpush.msra.mxu0 %v4934_v18  ;;  %2245 = vmatpush.msra.mxu1 %v4935_v21  ;;  %v4897_v18 = vld [vmem:[%s10665_s1 + $0x2d8] sm:$0xff]  ;;  %v4890_v21 = vld [vmem:[%s10665_s1 + $0x2a0] sm:$0xff] }
 0x289   :  { %2265 = vmatpush.msra.mxu2 %v4936_v22  ;;  %2285 = vmatpush.msra.mxu3 %v4937_v24  ;;  %v4891_v22 = vld [vmem:[%s10665_s1 + $0x2a8] sm:$0xff]  ;;  %v4892_v24 = vld [vmem:[%s10665_s1 + $0x2b0] sm:$0xff] }
 0x28a   :  { %2290 = vmatpush.msrb.mxu0 %v4930_v25  ;;  %2310 = vmatpush.msrb.mxu1 %v4931_v26  ;;  %v4893_v26 = vld [vmem:[%s10665_s1 + $0x2b8] sm:$0xff] }
 0x28b   :  { %2330 = vmatpush.msrb.mxu2 %v4932_v29  ;;  %2350 = vmatpush.msrb.mxu3 %v4933_v20  ;;  %v4886_v29 = vld [vmem:[%s10665_s1 + $0x280] sm:$0xff]  ;;  %v4887_v20 = vld [vmem:[%s10665_s1 + $0x288] sm:$0xff] }
 0x28c   :  { %2291 = vmatpush.msrb.mxu0 %v4926_v30  ;;  %2311 = vmatpush.msrb.mxu1 %v4927_v31  ;;  %v4888_v30 = vld [vmem:[%s10665_s1 + $0x290] sm:$0xff] }
 0x28d   :  { %2331 = vmatpush.msrb.mxu2 %v4928_v23  ;;  %2351 = vmatpush.msrb.mxu3 %v4929_v32  ;;  %v4889_v23 = vld [vmem:[%s10665_s1 + $0x298] sm:$0xff]  ;;  %v4882_v32 = vld [vmem:[%s10665_s1 + $0x260] sm:$0xff] }
 0x28e   :  { %2292 = vmatpush.msrb.mxu0 %v4922_v13  ;;  %2312 = vmatpush.msrb.mxu1 %v4923_v34  ;;  %v4883_v13 = vld [vmem:[%s10665_s1 + $0x268] sm:$0xff]  ;;  %v4884_v34 = vld [vmem:[%s10665_s1 + $0x270] sm:$0xff] }
 0x28f   :  { %2332 = vmatpush.msrb.mxu2 %v4924_v33  ;;  %2352 = vmatpush.msrb.mxu3 %v4925_v35 }
 0x290   :  { %2293 = vmatpush.msrb.mxu0 %v4918_v36  ;;  %2313 = vmatpush.msrb.mxu1 %v4919_v37  ;;  %v4885_v36 = vld [vmem:[%s10665_s1 + $0x278] sm:$0xff]  ;;  %v4878_v37 = vld [vmem:[%s10665_s1 + $0x240] sm:$0xff] }
 0x291   :  { %2333 = vmatpush.msrb.mxu2 %v4920_v39  ;;  %2353 = vmatpush.msrb.mxu3 %v4921_v42  ;;  %v4879_v39 = vld [vmem:[%s10665_s1 + $0x248] sm:$0xff] }
 0x292   :  { %2294 = vmatpush.msrb.mxu0 %v4914_v43  ;;  %2314 = vmatpush.msrb.mxu1 %v4915_v44  ;;  %v4880_v43 = vld [vmem:[%s10665_s1 + $0x250] sm:$0xff]  ;;  %v4881_v44 = vld [vmem:[%s10665_s1 + $0x258] sm:$0xff] }
 0x293   :  { %2334 = vmatpush.msrb.mxu2 %v4916_v45  ;;  %2354 = vmatpush.msrb.mxu3 %v4917_v46 }
 0x294   :  { %2295 = vmatpush.msrb.mxu0 %v4910_v53  ;;  %2315 = vmatpush.msrb.mxu1 %v4911_v40  ;;  %v1771_v40 = vperm.slane %v8310_v38, 2  ;;  %v4871_v38 = vld [vmem:[%s10665_s1 + $0x208] sm:$0xff] }
 0x295   :  { %2335 = vmatpush.msrb.mxu2 %v4912_v56  ;;  %2355 = vmatpush.msrb.mxu3 %v4913_v54  ;;  %v4876_v56 = vld [vmem:[%s10665_s1 + $0x230] sm:$0xff] }
 0x296   :  { %2296 = vmatpush.msrb.mxu0 %v4906_v59  ;;  %2316 = vmatpush.msrb.mxu1 %v4907_v58  ;;  %v4872_v59 = vld [vmem:[%s10665_s1 + $0x210] sm:$0xff]  ;;  %v4873_v58 = vld [vmem:[%s10665_s1 + $0x218] sm:$0xff] }
 0x297   :  { %2336 = vmatpush.msrb.mxu2 %v4908_v62  ;;  %2356 = vmatpush.msrb.mxu3 %v4909_v55 }
 0x298   :  { %2297 = vmatpush.msrb.mxu0 %v4902_v7  ;;  %2317 = vmatpush.msrb.mxu1 %v4903_v6 }
 0x299   :  { %2337 = vmatpush.msrb.mxu2 %v4904_v0  ;;  %2357 = vmatpush.msrb.mxu3 %v4905_v57 }
 0x29a   :  { %2298 = vmatpush.msrb.mxu0 %v4898_v3  ;;  %2318 = vmatpush.msrb.mxu1 %v4899_v4 }
 0x29b   :  { %2338 = vmatpush.msrb.mxu2 %v4900_v8  ;;  %2358 = vmatpush.msrb.mxu3 %v4901_v9 }
 0x29c   :  { %2299 = vmatpush.msrb.mxu0 %v4894_v12  ;;  %2319 = vmatpush.msrb.mxu1 %v4895_v14 }
 0x29d   :  { %2339 = vmatpush.msrb.mxu2 %v4896_v15  ;;  %2359 = vmatpush.msrb.mxu3 %v4897_v18 }
 0x29e   :  { %2300 = vmatpush.msrb.mxu0 %v4890_v21  ;;  %2320 = vmatpush.msrb.mxu1 %v4891_v22 }
 0x29f   :  { %2340 = vmatpush.msrb.mxu2 %v4892_v24  ;;  %2360 = vmatpush.msrb.mxu3 %v4893_v26 }
 0x2a0   :  { %2301 = vmatpush.msrb.mxu0 %v4886_v29  ;;  %2321 = vmatpush.msrb.mxu1 %v4887_v20 }
 0x2a1   :  { %2341 = vmatpush.msrb.mxu2 %v4888_v30  ;;  %2361 = vmatpush.msrb.mxu3 %v4889_v23 }
 0x2a2   :  { %2302 = vmatpush.msrb.mxu0 %v4882_v32  ;;  %2322 = vmatpush.msrb.mxu1 %v4883_v13 }
 0x2a3   :  { %2342 = vmatpush.msrb.mxu2 %v4884_v34  ;;  %2362 = vmatpush.msrb.mxu3 %v4885_v36 }
 0x2a4   :  { %2303 = vmatpush.msrb.mxu0 %v4878_v37  ;;  %2323 = vmatpush.msrb.mxu1 %v4879_v39 }
 0x2a5   :  { %2343 = vmatpush.msrb.mxu2 %v4880_v43  ;;  %2363 = vmatpush.msrb.mxu3 %v4881_v44 }
 0x2a7   :  { %2344 = vmatpush.msrb.mxu2 %v4876_v56 }
 0x2a9   :  { %2345 = vmatpush.msrb.mxu2 %v4872_v59 }
 0x2c1   :  { %v1624_v17 = vpop.f32.mrf.mxu0  ;;  %v1644_v27 = vpop.f32.mrf.mxu1 }
 0x2c8   :  { %v8327_v47 = vpop.f32.mrf.mxu2  ;;  %v1684_v48 = vpop.f32.mrf.mxu3 }
 0x2dc   :  { %v1704_v50 = vpop.f32.mrf.mxu0  ;;  %v1724_v63 = vpop.f32.mrf.mxu1 }
 0x2dd   :  { %v1705_v60 = vadd.f32 %v1704_v50, %v1624_v17  ;;  %v1725_v51 = vadd.f32 %v1724_v63, %v1644_v27  ;;  %v4877_v50 = vld [vmem:[%s10665_s1 + $0x238] sm:$0xff] }
 0x2de   :  { %2364 = vmatpush.msrb.mxu3 %v4877_v50 }
 0x2df   :  { %v1777_v19 = vadd.f32 %v1769_v49, %v1705_v60  ;;  %v1778_v61 = vadd.f32 %v1770_v52, %v1725_v51  ;;  %v4874_v49 = vld [vmem:[%s10665_s1 + $0x220] sm:$0xff]  ;;  %v4875_v52 = vld [vmem:[%s10665_s1 + $0x228] sm:$0xff]  ;;  %v4864_v51 = vld [vmem:[%s10664_s0 + $0x18] sm:$0xff] }
 0x2e0   :  { %2304 = vmatpush.msrb.mxu0 %v4874_v49  ;;  %2324 = vmatpush.msrb.mxu1 %v4875_v52 }
 0x2e1   :  { %v4859_v1 = vmul.f32 -1.442695, %v1777_v19  ;;  %v4860_v2 = vmul.f32 -1.442695, %v1778_v61  ;;  %2365 = vmatpush.msrb.mxu3 %v4873_v58 }
 0x2e2   :  { %2325 = vmatpush.msrb.mxu1 %v4871_v38 }
 0x2e3   :  { %5509 = vpow2.f32 %v4859_v1  ;;  %v1744_v10 = vpop.f32.mrf.mxu2  ;;  %v1764_v11 = vpop.f32.mrf.mxu3 }
 0x2e4   :  { %5511 = vpow2.f32 %v4860_v2  ;;  %v1765_v16 = vadd.f32 %v1764_v11, %v1684_v48  ;;  %v1745_v53 = vadd.f32 %v1744_v10, %v8327_v47  ;;  %v4870_v47 = vld [vmem:[%s10665_s1 + $0x200] sm:$0xff] }
 0x2e5   :  { %v1953_v27 = vpop.f32.mrf.mxu1  ;;  %v1933_v60 = vpop.f32.mrf.mxu0  ;;  %2305 = vmatpush.msrb.mxu0 %v4870_v47 }
 0x2e6   :  { %v1780_v25 = vadd.f32 %v1772_v5, %v1765_v16  ;;  %v2000_v45 = vrot.slane %v1953_v27, 6  ;;  %v1779_v61 = vadd.f32 %v1771_v40, %v1745_v53 }
 0x2e8   :  { %v4861_v31 = vmul.f32 -1.442695, %v1780_v25  ;;  %v2003_v55 = vsel %vm189_vm0, %v1933_v60, %v2000_v45 }
 0x2e9   :  { %v5510_v17 = vpop.eup %5509 }
 0x2ea   :  { %v5512_v33 = vpop.eup %5511  ;;  %v8425_v35 = vadd.f32 1.0, %v5510_v17  ;;  %5513 = vpow2.f32 %v4861_v31  ;;  %v4723_v31 = vclamps-f32 %v7807_v28, 50.0 }
 0x2eb   :  { %v8436_v42 = vadd.f32 1.0, %v5512_v33 }
 0x2ec   :  { %5515 = vrcp.f32 %v8425_v35  ;;  %v1973_v46 = vpop.f32.mrf.mxu2  ;;  %v1993_v48 = vpop.f32.mrf.mxu3  ;;  %v1794_v9 = vand.u32 2147483647, %v8425_v35  ;;  %v1796_v12 = vand.u32 2147483648, %v8425_v35  ;;  %vm1790_vm13 = vweird.f32 %v8425_v35 }
 0x2ed   :  { %5517 = vrcp.f32 %v8436_v42  ;;  %v2001_v63 = vrot.slane %v1973_v46, 4  ;;  %v2002_v54 = vrot.slane %v1993_v48, 2  ;;  %v1815_v15 = vand.u32 2147483648, %v8436_v42 }
 0x2ee   :  { %v1813_v22 = vand.u32 2147483647, %v8436_v42  ;;  %vm1809_vm14 = vweird.f32 %v8436_v42  ;;  %v1797_v26 = vor.u32 1.1754944e-38, %v1796_v12  ;;  %vm1795_vm4 = vcmp.eq.f32.partialorder %v1794_v9, 8.507059e+37  ;;  %v2512_v12 = vld [vmem:[%s10666_s2 + $0x1c8] sm:$0xff] }
 0x2ef   :  { %v2004_v19 = vsel %vm191_vm1, %v2001_v63, %v2002_v54  ;;  %v1816_v23 = vor.u32 1.1754944e-38, %v1815_v15 }
 0x2f0   :  { %v5514_v62 = vpop.eup %5513  ;;  %v2005_v6 = vsel %vm193_vm2, %v2003_v55, %v2004_v19  ;;  %vm1814_vm5 = vcmp.eq.f32.partialorder %v1813_v22, 8.507059e+37 }
 0x2f1   :  { %v8477_v7 = vadd.f32 1.0, %v5514_v62  ;;  %v8480_v57 = vadd.f32 %v4864_v51, %v2005_v6 }
 0x2f2   :  { %v5516_v0 = vpop.eup %5515 }
 0x2f3   :  { %v5518_v1 = vpop.eup %5517  ;;  %v1786_v2 = vmul.f32 %v5516_v0, %v8425_v35  ;;  %5519 = vrcp.f32 %v8477_v7  ;;  %v4865_v4 = vmul.f32 -1.442695, %v8480_v57  ;;  %v2028_v5 = vrot.slane %v8480_v57, 2 }
 0x2f4   :  { %v1805_v3 = vmul.f32 %v5518_v1, %v8436_v42  ;;  %5521 = vtanh.f32 %v1779_v61  ;;  %v2052_v10 = vrot.slane %v8480_v57, 6  ;;  %vm1791_vm11 = vweird.f32 %v5516_v0 }
 0x2f5   :  { %v1787_v8 = vsub.f32 1.0, %v1786_v2  ;;  %5523 = vpow2.f32 %v4865_v4  ;;  %v4866_v14 = vmul.f32 -1.442695, %v2028_v5  ;;  %vm1810_vm12 = vweird.f32 %v5518_v1  ;;  %vm1792_vm15 = vmor %vm1790_vm13, %vm1791_vm11  ;;  %v2517_v4 = vld [vmem:[%s10666_s2 + $0x1f0] sm:$0xff]  ;;  %v2518_v5 = vld [vmem:[%s10666_s2 + $0x1f8] sm:$0xff] }
 0x2f6   :  { %v1806_v11 = vsub.f32 1.0, %v1805_v3  ;;  %v4867_v18 = vmul.f32 -1.442695, %v2052_v10  ;;  %vm1811_vm3 = vmor %vm1809_vm14, %vm1810_vm12  ;;  %v1835_v48 = vand.u32 2147483648, %v8477_v7  ;;  %vm1829_vm7 = vweird.f32 %v8477_v7 }
 0x2f7   :  { %v1788_v16 = vmul.f32 %v5516_v0, %v1787_v8  ;;  %5525 = vpow2.f32 %v4866_v14  ;;  %v1833_v49 = vand.u32 2147483647, %v8477_v7  ;;  %v2049_v63 = vrot.slane %v8480_v57, 4  ;;  %v2516_v57 = vld [vmem:[%s10666_s2 + $0x1e8] sm:$0xff]  ;;  %v2478_v8 = vld [vmem:[%s10666_s2 + $0xb8] sm:$0xff] }
 0x2f8   :  { %v1807_v21 = vmul.f32 %v5518_v1, %v1806_v11  ;;  %5527 = vpow2.f32 %v4867_v18  ;;  %v1836_v56 = vor.u32 1.1754944e-38, %v1835_v48  ;;  %v2511_v11 = vld [vmem:[%s10666_s2 + $0x1c0] sm:$0xff]  ;;  %v2514_v18 = vld [vmem:[%s10666_s2 + $0x1d8] sm:$0xff] }
 0x2f9   :  { %v5520_v24 = vpop.eup %5519  ;;  %v1789_v25 = vadd.f32 %v5516_v0, %v1788_v16  ;;  %vm1834_vm9 = vcmp.eq.f32.partialorder %v1833_v49, 8.507059e+37  ;;  %v2513_v16 = vld [vmem:[%s10666_s2 + $0x1d0] sm:$0xff] }
 0x2fa   :  { %v1808_v29 = vadd.f32 %v5518_v1, %v1807_v21  ;;  %v1825_v20 = vmul.f32 %v5520_v24, %v8477_v7  ;;  %v5522_v30 = vpop.eup %5521  ;;  %vm1830_vm6 = vweird.f32 %v5520_v24  ;;  %v2497_v49 = vld [vmem:[%s10666_s2 + $0x150] sm:$0xff] }
 0x2fb   :  { %v1793_v17 = vsel %vm1792_vm15, %v5516_v0, %v1789_v25  ;;  %v5524_v27 = vpop.eup %5523  ;;  %vm1831_vm8 = vmor %vm1829_vm7, %vm1830_vm6  ;;  %v2515_v0 = vld [vmem:[%s10666_s2 + $0x1e0] sm:$0xff] }
 0x2fc   :  { %v1798_v32 = vsel %vm1795_vm4, %v1797_v26, %v1793_v17  ;;  %v1812_v13 = vsel %vm1811_vm3, %v5518_v1, %v1808_v29  ;;  %v1826_v34 = vsub.f32 1.0, %v1825_v20  ;;  %v2011_v36 = vadd.f32 1.0, %v5524_v27  ;;  %v2507_v25 = vld [vmem:[%s10666_s2 + $0x1a0] sm:$0xff]  ;;  %v2508_v26 = vld [vmem:[%s10666_s2 + $0x1a8] sm:$0xff] }
 0x2fd   :  { %v1817_v33 = vsel %vm1814_vm5, %v1816_v23, %v1812_v13  ;;  %v1840_v35 = vmul.f32 %v5522_v30, %v1798_v32  ;;  %v5526_v37 = vpop.eup %5525  ;;  %v2509_v30 = vld [vmem:[%s10666_s2 + $0x1b0] sm:$0xff]  ;;  %v2503_v17 = vld [vmem:[%s10666_s2 + $0x180] sm:$0xff]  ;;  %v2504_v27 = vld [vmem:[%s10666_s2 + $0x188] sm:$0xff] }
 0x2fe   :  { %v1839_v39 = vmul.f32 %v4723_v31, %v1817_v33  ;;  %v1827_v42 = vmul.f32 %v5520_v24, %v1826_v34  ;;  %v5528_v43 = vpop.eup %5527  ;;  %5529 = vrcp.f32 %v2011_v36  ;;  %v8496_v44 = vadd.f32 1.0, %v5526_v37  ;;  %v2505_v34 = vld [vmem:[%s10666_s2 + $0x190] sm:$0xff]  ;;  %v2506_v33 = vld [vmem:[%s10666_s2 + $0x198] sm:$0xff] }
 0x2ff   :  { %v8500_v45 = vadd.f32 1.0, %v5528_v43  ;;  %v2021_v58 = vand.u32 2147483647, %v2011_v36  ;;  %v2023_v62 = vand.u32 2147483648, %v2011_v36  ;;  %vm2017_vm11 = vweird.f32 %v2011_v36 }
 0x300   :  { %v8498_v28 = vadd.f32 %v1840_v35, %v1839_v39  ;;  %5531 = vrcp.f32 %v8496_v44  ;;  %v1828_v46 = vadd.f32 %v5520_v24, %v1827_v42  ;;  %v2045_v6 = vand.u32 2147483648, %v8496_v44  ;;  %v2499_v35 = vld [vmem:[%s10666_s2 + $0x160] sm:$0xff]  ;;  %v2501_v39 = vld [vmem:[%s10666_s2 + $0x170] sm:$0xff]  ;;  %v2502_v42 = vld [vmem:[%s10666_s2 + $0x178] sm:$0xff] }
 0x301   :  { %v2043_v3 = vand.u32 2147483647, %v8496_v44  ;;  %v2024_v9 = vor.u32 1.1754944e-38, %v2023_v62  ;;  %vm2022_vm14 = vcmp.eq.f32.partialorder %v2021_v58, 8.507059e+37  ;;  %vm2039_vm15 = vweird.f32 %v8496_v44 }
 0x302   :  { %5533 = vtanh.f32 %v8498_v28  ;;  %v1832_v53 = vsel %vm1831_vm8, %v5520_v24, %v1828_v46  ;;  %v2046_v22 = vor.u32 1.1754944e-38, %v2045_v6  ;;  %v4729_v24 = vclamps-f32 %v7957_v41, 50.0  ;;  %v2510_v41 = vld [vmem:[%s10666_s2 + $0x1b8] sm:$0xff]  ;;  %v2496_v46 = vld [vmem:[%s10666_s2 + $0x148] sm:$0xff] }
 0x303   :  { %5535 = vrcp.f32 %v8500_v45  ;;  %v1837_v60 = vsel %vm1834_vm9, %v1836_v56, %v1832_v53  ;;  %vm2044_vm4 = vcmp.eq.f32.partialorder %v2043_v3, 8.507059e+37  ;;  %v2069_v48 = vand.u32 2147483648, %v8500_v45  ;;  %v2492_v56 = vld [vmem:[%s10666_s2 + $0x128] sm:$0xff]  ;;  %v2486_v6 = vld [vmem:[%s10666_s2 + $0xf8] sm:$0xff]  ;;  %v2475_v3 = vld [vmem:[%s10666_s2 + $0xa0] sm:$0xff] }
 0x304   :  { %v5530_v52 = vpop.eup %5529  ;;  %5537 = vtanh.f32 %v2049_v63  ;;  %vm2063_vm6 = vweird.f32 %v8500_v45  ;;  %v2067_v53 = vand.u32 2147483647, %v8500_v45  ;;  %v2494_v63 = vld [vmem:[%s10666_s2 + $0x138] sm:$0xff] }
 0x305   :  { %v2013_v40 = vmul.f32 %v5530_v52, %v2011_v36  ;;  %vm2018_vm10 = vweird.f32 %v5530_v52  ;;  %v2500_v36 = vld [vmem:[%s10666_s2 + $0x168] sm:$0xff] }
 0x306   :  { %v5532_v50 = vpop.eup %5531  ;;  %vm8529_vm13 = vmor %vm2017_vm11, %vm2018_vm10  ;;  %vm2068_vm8 = vcmp.eq.f32.partialorder %v2067_v53, 8.507059e+37  ;;  %v5124_v53 = vld [vmem:[%s10666_s2 + $0x390] sm:$0xff] }
 0x307   :  { %v2014_v47 = vsub.f32 1.0, %v2013_v40  ;;  %v2035_v38 = vmul.f32 %v5532_v50, %v8496_v44  ;;  %vm2040_vm12 = vweird.f32 %v5532_v50  ;;  %v2495_v44 = vld [vmem:[%s10666_s2 + $0x140] sm:$0xff] }
 0x308   :  { %v5534_v54 = vpop.eup %5533  ;;  %vm2041_vm3 = vmor %vm2039_vm15, %vm2040_vm12  ;;  %v2491_v40 = vld [vmem:[%s10666_s2 + $0x120] sm:$0xff] }
 0x309   :  { %v8510_v51 = vpop.eup %5535  ;;  %v1843_v59 = vmul.f32 %v5534_v54, %v1837_v60  ;;  %v2036_v55 = vsub.f32 1.0, %v2035_v38  ;;  %v2015_v19 = vmul.f32 %v5530_v52, %v2014_v47  ;;  %v2487_v47 = vld [vmem:[%s10666_s2 + $0x100] sm:$0xff]  ;;  %v2488_v38 = vld [vmem:[%s10666_s2 + $0x108] sm:$0xff]  ;;  %v2070_v60 = vor.u32 1.1754944e-38, %v2069_v48  ;;  %v5129_v48 = vld [vmem:[%s10666_s2 + $0x3b8] sm:$0xff] }
 0x30a   :  { %v2059_v61 = vmul.f32 %v8510_v51, %v8500_v45  ;;  %v5538_v20 = vpop.eup %5537  ;;  %vm2064_vm5 = vweird.f32 %v8510_v51  ;;  %v2493_v45 = vld [vmem:[%s10666_s2 + $0x130] sm:$0xff] }
 0x30b   :  { %v4862_v7 = vclamps-f32 %v1843_v59, 50.0  ;;  %1849 = vst [vmem:[#allocation2 + $0x4] sm:$0x3] %v1843_v59  ;;  %v2016_v1 = vadd.f32 %v5530_v52, %v2015_v19  ;;  %v2037_v2 = vmul.f32 %v5532_v50, %v2036_v55  ;;  %vm8615_vm7 = vmor %vm2063_vm6, %vm2064_vm5  ;;  %v2489_v59 = vld [vmem:[%s10666_s2 + $0x110] sm:$0xff]  ;;  %v2483_v19 = vld [vmem:[%s10666_s2 + $0xe0] sm:$0xff] }
 0x30c   :  { %v2060_v10 = vsub.f32 1.0, %v2059_v61  ;;  %v2484_v61 = vld [vmem:[%s10666_s2 + $0xe8] sm:$0xff] }
 0x30d   :  { %2226 = vmatmul.f32.vlgmr.msra.gmra.mxu0 %v4862_v7  ;;  %2246 = vmatmul.f32.vlgmr.msra.gmra.mxu1 %v4862_v7  ;;  %v2020_v14 = vsel %vm8529_vm13, %v5530_v52, %v2016_v1  ;;  %v2038_v15 = vadd.f32 %v5532_v50, %v2037_v2  ;;  %v2498_v52 = vld [vmem:[%s10666_s2 + $0x158] sm:$0xff]  ;;  %v2481_v1 = vld [vmem:[%s10666_s2 + $0xd0] sm:$0xff] }
 0x30e   :  { %2266 = vmatmul.f32.vlgmr.msra.gmra.mxu2 %v4862_v7  ;;  %2286 = vmatmul.f32.vlgmr.msra.gmra.mxu3 %v4862_v7  ;;  %v2025_v21 = vsel %vm2022_vm14, %v2024_v9, %v2020_v14  ;;  %v2061_v23 = vmul.f32 %v8510_v51, %v2060_v10  ;;  %v2485_v7 = vld [vmem:[%s10666_s2 + $0xf0] sm:$0xff]  ;;  %v2482_v2 = vld [vmem:[%s10666_s2 + $0xd8] sm:$0xff]  ;;  %v2471_v9 = vld [vmem:[%s10666_s2 + $0x80] sm:$0xff] }
 0x30f   :  { %2519 = vmatpush.msra.mxu0 %v2515_v0  ;;  %2539 = vmatpush.msra.mxu1 %v2516_v57  ;;  %v2042_v29 = vsel %vm2041_vm3, %v5532_v50, %v2038_v15  ;;  %v2074_v13 = vmul.f32 %v5538_v20, %v2025_v21  ;;  %v2479_v0 = vld [vmem:[%s10666_s2 + $0xc0] sm:$0xff]  ;;  %v2480_v57 = vld [vmem:[%s10666_s2 + $0xc8] sm:$0xff]  ;;  %v2461_v20 = vld [vmem:[%s10666_s2 + $0x30] sm:$0xff] }
 0x310   :  { %2559 = vmatpush.msra.mxu2 %v2517_v4  ;;  %2579 = vmatpush.msra.mxu3 %v2518_v5  ;;  %v2047_v31 = vsel %vm2044_vm4, %v2046_v22, %v2042_v29  ;;  %v2062_v43 = vadd.f32 %v8510_v51, %v2061_v23  ;;  %v2476_v4 = vld [vmem:[%s10666_s2 + $0xa8] sm:$0xff]  ;;  %v2477_v5 = vld [vmem:[%s10666_s2 + $0xb0] sm:$0xff]  ;;  %v2467_v14 = vld [vmem:[%s10666_s2 + $0x60] sm:$0xff] }
 0x311   :  { %2520 = vmatpush.msra.mxu0 %v2511_v11  ;;  %2540 = vmatpush.msra.mxu1 %v2512_v12  ;;  %v2073_v32 = vmul.f32 %v4729_v24, %v2047_v31  ;;  %v2472_v10 = vld [vmem:[%s10666_s2 + $0x88] sm:$0xff]  ;;  %v2473_v11 = vld [vmem:[%s10666_s2 + $0x90] sm:$0xff]  ;;  %v2474_v12 = vld [vmem:[%s10666_s2 + $0x98] sm:$0xff] }
 0x312   :  { %2560 = vmatpush.msra.mxu2 %v2513_v16  ;;  %2580 = vmatpush.msra.mxu3 %v2514_v18  ;;  %v2066_v54 = vsel %vm8615_vm7, %v8510_v51, %v2062_v43  ;;  %v2490_v51 = vld [vmem:[%s10666_s2 + $0x118] sm:$0xff]  ;;  %v2468_v15 = vld [vmem:[%s10666_s2 + $0x68] sm:$0xff]  ;;  %v2469_v16 = vld [vmem:[%s10666_s2 + $0x70] sm:$0xff] }
 0x313   :  { %2521 = vmatpush.msra.mxu0 %v2507_v25  ;;  %2541 = vmatpush.msra.mxu1 %v2508_v26  ;;  %v8581_v37 = vadd.f32 %v2074_v13, %v2073_v32  ;;  %v2071_v62 = vsel %vm2068_vm8, %v2070_v60, %v2066_v54  ;;  %v2470_v18 = vld [vmem:[%s10666_s2 + $0x78] sm:$0xff]  ;;  %v2463_v21 = vld [vmem:[%s10666_s2 + $0x40] sm:$0xff]  ;;  %v2464_v22 = vld [vmem:[%s10666_s2 + $0x48] sm:$0xff] }
 0x314   :  { %2561 = vmatpush.msra.mxu2 %v2509_v30  ;;  %2581 = vmatpush.msra.mxu3 %v2510_v41  ;;  %v2465_v24 = vld [vmem:[%s10666_s2 + $0x50] sm:$0xff]  ;;  %v2466_v25 = vld [vmem:[%s10666_s2 + $0x58] sm:$0xff]  ;;  %v2459_v26 = vld [vmem:[%s10666_s2 + $0x20] sm:$0xff] }
 0x315   :  { %2522 = vmatpush.msra.mxu0 %v2503_v17  ;;  %2542 = vmatpush.msra.mxu1 %v2504_v27  ;;  %5539 = vtanh.f32 %v8581_v37  ;;  %v2460_v29 = vld [vmem:[%s10666_s2 + $0x28] sm:$0xff]  ;;  %v2462_v30 = vld [vmem:[%s10666_s2 + $0x38] sm:$0xff]  ;;  %v2455_v41 = vld [vmem:[%s10666_s2] sm:$0xff] }
 0x316   :  { %2562 = vmatpush.msra.mxu2 %v2505_v34  ;;  %2582 = vmatpush.msra.mxu3 %v2506_v33  ;;  %v2456_v31 = vld [vmem:[%s10666_s2 + $0x8] sm:$0xff]  ;;  %v2457_v23 = vld [vmem:[%s10666_s2 + $0x10] sm:$0xff]  ;;  %v2458_v17 = vld [vmem:[%s10666_s2 + $0x18] sm:$0xff] }
 0x317   :  { %2523 = vmatpush.msra.mxu0 %v2499_v35  ;;  %2543 = vmatpush.msra.mxu1 %v2500_v36  ;;  %v5134_v32 = vld [vmem:[%s10666_s2 + $0x3e0] sm:$0xff]  ;;  %v5135_v13 = vld [vmem:[%s10666_s2 + $0x3e8] sm:$0xff]  ;;  %v5136_v34 = vld [vmem:[%s10666_s2 + $0x3f0] sm:$0xff] }
 0x318   :  { %2563 = vmatpush.msra.mxu2 %v2501_v39  ;;  %2583 = vmatpush.msra.mxu3 %v2502_v42  ;;  %v5137_v33 = vld [vmem:[%s10666_s2 + $0x3f8] sm:$0xff]  ;;  %v5130_v35 = vld [vmem:[%s10666_s2 + $0x3c0] sm:$0xff]  ;;  %v5131_v36 = vld [vmem:[%s10666_s2 + $0x3c8] sm:$0xff] }
 0x319   :  { %2524 = vmatpush.msra.mxu0 %v2495_v44  ;;  %2544 = vmatpush.msra.mxu1 %v2496_v46  ;;  %v5132_v39 = vld [vmem:[%s10666_s2 + $0x3d0] sm:$0xff]  ;;  %v5133_v42 = vld [vmem:[%s10666_s2 + $0x3d8] sm:$0xff]  ;;  %v5126_v43 = vld [vmem:[%s10666_s2 + $0x3a0] sm:$0xff] }
 0x31a   :  { %2564 = vmatpush.msra.mxu2 %v2497_v49  ;;  %2584 = vmatpush.msra.mxu3 %v2498_v52  ;;  %v5127_v44 = vld [vmem:[%s10666_s2 + $0x3a8] sm:$0xff]  ;;  %v5128_v46 = vld [vmem:[%s10666_s2 + $0x3b0] sm:$0xff]  ;;  %v5122_v49 = vld [vmem:[%s10666_s2 + $0x380] sm:$0xff] }
 0x31b   :  { %2525 = vmatpush.msra.mxu0 %v2491_v40  ;;  %2545 = vmatpush.msra.mxu1 %v2492_v56  ;;  %v5540_v58 = vpop.eup %5539  ;;  %v5123_v52 = vld [vmem:[%s10666_s2 + $0x388] sm:$0xff]  ;;  %v5125_v40 = vld [vmem:[%s10666_s2 + $0x398] sm:$0xff]  ;;  %v5118_v56 = vld [vmem:[%s10666_s2 + $0x360] sm:$0xff] }
 0x31c   :  { %2565 = vmatpush.msra.mxu2 %v2493_v45  ;;  %2585 = vmatpush.msra.mxu3 %v2494_v63  ;;  %v8640_v55 = vmul.f32 %v5540_v58, %v2071_v62  ;;  %v5119_v50 = vld [vmem:[%s10666_s2 + $0x368] sm:$0xff]  ;;  %v5120_v45 = vld [vmem:[%s10666_s2 + $0x370] sm:$0xff]  ;;  %v5121_v63 = vld [vmem:[%s10666_s2 + $0x378] sm:$0xff] }
 0x31d   :  { %2526 = vmatpush.msra.mxu0 %v2487_v47  ;;  %2546 = vmatpush.msra.mxu1 %v2488_v38  ;;  %v5114_v54 = vld [vmem:[%s10666_s2 + $0x340] sm:$0xff]  ;;  %v5115_v47 = vld [vmem:[%s10666_s2 + $0x348] sm:$0xff]  ;;  %v5116_v38 = vld [vmem:[%s10666_s2 + $0x350] sm:$0xff] }
 0x31e   :  { %2566 = vmatpush.msra.mxu2 %v2489_v59  ;;  %2586 = vmatpush.msra.mxu3 %v2490_v51  ;;  %v4868_v27 = vclamps-f32 %v8640_v55, 50.0  ;;  %v5117_v60 = vld [vmem:[%s10666_s2 + $0x358] sm:$0xff]  ;;  %v5110_v59 = vld [vmem:[%s10666_s2 + $0x320] sm:$0xff]  ;;  %v5111_v51 = vld [vmem:[%s10666_s2 + $0x328] sm:$0xff] }
 0x31f   :  { %2306 = vmatmul.f32.vlgmr.msrb.gmra.mxu0 %v8640_v55  ;;  %2326 = vmatmul.f32.vlgmr.msrb.gmra.mxu1 %v8640_v55  ;;  %v5112_v58 = vld [vmem:[%s10666_s2 + $0x330] sm:$0xff]  ;;  %v5113_v62 = vld [vmem:[%s10666_s2 + $0x338] sm:$0xff] }
 0x320   :  { %2346 = vmatmul.f32.vlgmr.msrb.gmra.mxu2 %v8640_v55  ;;  %2366 = vmatmul.f32.vlgmr.msrb.gmra.mxu3 %v8640_v55  ;;  %v5106_v55 = vld [vmem:[%s10666_s2 + $0x300] sm:$0xff] }
 0x321   :  { %2527 = vmatpush.msra.mxu0 %v2483_v19  ;;  %2547 = vmatpush.msra.mxu1 %v2484_v61  ;;  %v5107_v19 = vld [vmem:[%s10666_s2 + $0x308] sm:$0xff]  ;;  %v5108_v61 = vld [vmem:[%s10666_s2 + $0x310] sm:$0xff] }
 0x322   :  { %2567 = vmatpush.msra.mxu2 %v2485_v7  ;;  %2587 = vmatpush.msra.mxu3 %v2486_v6  ;;  %v5109_v7 = vld [vmem:[%s10666_s2 + $0x318] sm:$0xff]  ;;  %v5102_v6 = vld [vmem:[%s10666_s2 + $0x2e0] sm:$0xff] }
 0x323   :  { %2528 = vmatpush.msra.mxu0 %v2479_v0  ;;  %2548 = vmatpush.msra.mxu1 %v2480_v57  ;;  %v5103_v0 = vld [vmem:[%s10666_s2 + $0x2e8] sm:$0xff]  ;;  %v5104_v57 = vld [vmem:[%s10666_s2 + $0x2f0] sm:$0xff] }
 0x324   :  { %2568 = vmatpush.msra.mxu2 %v2481_v1  ;;  %2588 = vmatpush.msra.mxu3 %v2482_v2  ;;  %v5105_v1 = vld [vmem:[%s10666_s2 + $0x2f8] sm:$0xff]  ;;  %v5098_v2 = vld [vmem:[%s10666_s2 + $0x2c0] sm:$0xff] }
 0x325   :  { %2529 = vmatpush.msra.mxu0 %v2475_v3  ;;  %2549 = vmatpush.msra.mxu1 %v2476_v4  ;;  %v5099_v3 = vld [vmem:[%s10666_s2 + $0x2c8] sm:$0xff]  ;;  %v5100_v4 = vld [vmem:[%s10666_s2 + $0x2d0] sm:$0xff] }
 0x326   :  { %2569 = vmatpush.msra.mxu2 %v2477_v5  ;;  %2589 = vmatpush.msra.mxu3 %v2478_v8  ;;  %v5101_v5 = vld [vmem:[%s10666_s2 + $0x2d8] sm:$0xff]  ;;  %v5094_v8 = vld [vmem:[%s10666_s2 + $0x2a0] sm:$0xff] }
 0x327   :  { %2530 = vmatpush.msra.mxu0 %v2471_v9  ;;  %2550 = vmatpush.msra.mxu1 %v2472_v10  ;;  %v5095_v9 = vld [vmem:[%s10666_s2 + $0x2a8] sm:$0xff]  ;;  %v5096_v10 = vld [vmem:[%s10666_s2 + $0x2b0] sm:$0xff] }
 0x328   :  { %2570 = vmatpush.msra.mxu2 %v2473_v11  ;;  %2590 = vmatpush.msra.mxu3 %v2474_v12  ;;  %v5097_v11 = vld [vmem:[%s10666_s2 + $0x2b8] sm:$0xff]  ;;  %v5090_v12 = vld [vmem:[%s10666_s2 + $0x280] sm:$0xff] }
 0x329   :  { %2531 = vmatpush.msra.mxu0 %v2467_v14  ;;  %2551 = vmatpush.msra.mxu1 %v2468_v15  ;;  %v5091_v14 = vld [vmem:[%s10666_s2 + $0x288] sm:$0xff]  ;;  %v5092_v15 = vld [vmem:[%s10666_s2 + $0x290] sm:$0xff] }
 0x32a   :  { %2571 = vmatpush.msra.mxu2 %v2469_v16  ;;  %2591 = vmatpush.msra.mxu3 %v2470_v18  ;;  %v5093_v16 = vld [vmem:[%s10666_s2 + $0x298] sm:$0xff]  ;;  %v5086_v18 = vld [vmem:[%s10666_s2 + $0x260] sm:$0xff] }
 0x32b   :  { %2532 = vmatpush.msra.mxu0 %v2463_v21  ;;  %2552 = vmatpush.msra.mxu1 %v2464_v22  ;;  %v5087_v21 = vld [vmem:[%s10666_s2 + $0x268] sm:$0xff]  ;;  %v5088_v22 = vld [vmem:[%s10666_s2 + $0x270] sm:$0xff] }
 0x32c   :  { %2572 = vmatpush.msra.mxu2 %v2465_v24  ;;  %2592 = vmatpush.msra.mxu3 %v2466_v25  ;;  %v5089_v24 = vld [vmem:[%s10666_s2 + $0x278] sm:$0xff]  ;;  %v5082_v25 = vld [vmem:[%s10666_s2 + $0x240] sm:$0xff] }
 0x32d   :  { %2533 = vmatpush.msra.mxu0 %v2459_v26  ;;  %2553 = vmatpush.msra.mxu1 %v2460_v29  ;;  %v5083_v26 = vld [vmem:[%s10666_s2 + $0x248] sm:$0xff]  ;;  %v5084_v29 = vld [vmem:[%s10666_s2 + $0x250] sm:$0xff] }
 0x32e   :  { %2573 = vmatpush.msra.mxu2 %v2461_v20  ;;  %2593 = vmatpush.msra.mxu3 %v2462_v30  ;;  %v5085_v20 = vld [vmem:[%s10666_s2 + $0x258] sm:$0xff]  ;;  %v5078_v30 = vld [vmem:[%s10666_s2 + $0x220] sm:$0xff] }
 0x32f   :  { %2534 = vmatpush.msra.mxu0 %v2455_v41  ;;  %2554 = vmatpush.msra.mxu1 %v2456_v31  ;;  %v5079_v41 = vld [vmem:[%s10666_s2 + $0x228] sm:$0xff]  ;;  %v5080_v31 = vld [vmem:[%s10666_s2 + $0x230] sm:$0xff] }
 0x330   :  { %2574 = vmatpush.msra.mxu2 %v2457_v23  ;;  %2594 = vmatpush.msra.mxu3 %v2458_v17  ;;  %v5081_v23 = vld [vmem:[%s10666_s2 + $0x238] sm:$0xff]  ;;  %v5074_v17 = vld [vmem:[%s10666_s2 + $0x200] sm:$0xff] }
 0x331   :  { %2535 = vmatmul.f32.vlgmr.msra.gmra.mxu0 %v4868_v27  ;;  %2555 = vmatmul.f32.vlgmr.msra.gmra.mxu1 %v4868_v27 }
 0x332   :  { %2575 = vmatmul.f32.vlgmr.msra.gmra.mxu2 %v4868_v27  ;;  %2595 = vmatmul.f32.vlgmr.msra.gmra.mxu3 %v4868_v27  ;;  %v5075_v27 = vld [vmem:[%s10666_s2 + $0x208] sm:$0xff] }
 0x333   :  { %2813 = vmatpush.msrb.mxu0 %v5134_v32  ;;  %2833 = vmatpush.msrb.mxu1 %v5135_v13  ;;  %v5076_v32 = vld [vmem:[%s10666_s2 + $0x210] sm:$0xff]  ;;  %v5077_v13 = vld [vmem:[%s10666_s2 + $0x218] sm:$0xff] }
 0x334   :  { %2853 = vmatpush.msrb.mxu2 %v5136_v34  ;;  %2873 = vmatpush.msrb.mxu3 %v5137_v33  ;;  %v5070_v34 = vld [vmem:[%s10665_s1 + $0x3e0] sm:$0xff]  ;;  %v5071_v33 = vld [vmem:[%s10665_s1 + $0x3e8] sm:$0xff] }
 0x335   :  { %2814 = vmatpush.msrb.mxu0 %v5130_v35  ;;  %2834 = vmatpush.msrb.mxu1 %v5131_v36  ;;  %v5072_v35 = vld [vmem:[%s10665_s1 + $0x3f0] sm:$0xff]  ;;  %v5073_v36 = vld [vmem:[%s10665_s1 + $0x3f8] sm:$0xff] }
 0x336   :  { %2854 = vmatpush.msrb.mxu2 %v5132_v39  ;;  %2874 = vmatpush.msrb.mxu3 %v5133_v42  ;;  %v5066_v39 = vld [vmem:[%s10665_s1 + $0x3c0] sm:$0xff]  ;;  %v5067_v42 = vld [vmem:[%s10665_s1 + $0x3c8] sm:$0xff] }
 0x337   :  { %2815 = vmatpush.msrb.mxu0 %v5126_v43  ;;  %2835 = vmatpush.msrb.mxu1 %v5127_v44  ;;  %v5068_v43 = vld [vmem:[%s10665_s1 + $0x3d0] sm:$0xff]  ;;  %v5069_v44 = vld [vmem:[%s10665_s1 + $0x3d8] sm:$0xff] }
 0x338   :  { %2855 = vmatpush.msrb.mxu2 %v5128_v46  ;;  %2875 = vmatpush.msrb.mxu3 %v5129_v48 }
 0x339   :  { %2816 = vmatpush.msrb.mxu0 %v5122_v49  ;;  %2836 = vmatpush.msrb.mxu1 %v5123_v52  ;;  %v5062_v49 = vld [vmem:[%s10665_s1 + $0x3a0] sm:$0xff]  ;;  %v5063_v52 = vld [vmem:[%s10665_s1 + $0x3a8] sm:$0xff] }
 0x33a   :  { %2856 = vmatpush.msrb.mxu2 %v5124_v53  ;;  %2876 = vmatpush.msrb.mxu3 %v5125_v40  ;;  %v5064_v53 = vld [vmem:[%s10665_s1 + $0x3b0] sm:$0xff]  ;;  %v8971_v40 = vld [vmem:[%s10667_s3 + $0x4] sm:$0xf] }
 0x33b   :  { %2817 = vmatpush.msrb.mxu0 %v5118_v56  ;;  %2837 = vmatpush.msrb.mxu1 %v5119_v50  ;;  %v5065_v56 = vld [vmem:[%s10665_s1 + $0x3b8] sm:$0xff]  ;;  %v5058_v50 = vld [vmem:[%s10665_s1 + $0x380] sm:$0xff] }
 0x33c   :  { %2857 = vmatpush.msrb.mxu2 %v5120_v45  ;;  %2877 = vmatpush.msrb.mxu3 %v5121_v63  ;;  %v5059_v45 = vld [vmem:[%s10665_s1 + $0x388] sm:$0xff]  ;;  %v5060_v63 = vld [vmem:[%s10665_s1 + $0x390] sm:$0xff] }
 0x33d   :  { %2818 = vmatpush.msrb.mxu0 %v5114_v54  ;;  %2838 = vmatpush.msrb.mxu1 %v5115_v47  ;;  %v5061_v54 = vld [vmem:[%s10665_s1 + $0x398] sm:$0xff] }
 0x33e   :  { %2858 = vmatpush.msrb.mxu2 %v5116_v38  ;;  %2878 = vmatpush.msrb.mxu3 %v5117_v60  ;;  %v2372_v38 = vperm.slane %v8971_v40, 0  ;;  %v2373_v60 = vperm.slane %v8971_v40, 1 }
 0x33f   :  { %2819 = vmatpush.msrb.mxu0 %v5110_v59  ;;  %2839 = vmatpush.msrb.mxu1 %v5111_v51  ;;  %v5054_v59 = vld [vmem:[%s10665_s1 + $0x360] sm:$0xff]  ;;  %v5055_v51 = vld [vmem:[%s10665_s1 + $0x368] sm:$0xff] }
 0x340   :  { %2859 = vmatpush.msrb.mxu2 %v5112_v58  ;;  %2879 = vmatpush.msrb.mxu3 %v5113_v62  ;;  %v5056_v58 = vld [vmem:[%s10665_s1 + $0x370] sm:$0xff] }
 0x341   :  { %2820 = vmatpush.msrb.mxu0 %v5106_v55  ;;  %2840 = vmatpush.msrb.mxu1 %v5107_v19  ;;  %v5057_v19 = vld [vmem:[%s10665_s1 + $0x378] sm:$0xff] }
 0x342   :  { %2860 = vmatpush.msrb.mxu2 %v5108_v61  ;;  %2880 = vmatpush.msrb.mxu3 %v5109_v7 }
 0x343   :  { %2821 = vmatpush.msrb.mxu0 %v5102_v6  ;;  %2841 = vmatpush.msrb.mxu1 %v5103_v0  ;;  %v5050_v6 = vld [vmem:[%s10665_s1 + $0x340] sm:$0xff]  ;;  %v5051_v0 = vld [vmem:[%s10665_s1 + $0x348] sm:$0xff] }
 0x344   :  { %2861 = vmatpush.msrb.mxu2 %v5104_v57  ;;  %2881 = vmatpush.msrb.mxu3 %v5105_v1  ;;  %v5052_v57 = vld [vmem:[%s10665_s1 + $0x350] sm:$0xff]  ;;  %v5053_v1 = vld [vmem:[%s10665_s1 + $0x358] sm:$0xff] }
 0x345   :  { %2822 = vmatpush.msrb.mxu0 %v5098_v2  ;;  %2842 = vmatpush.msrb.mxu1 %v5099_v3 }
 0x346   :  { %2862 = vmatpush.msrb.mxu2 %v5100_v4  ;;  %2882 = vmatpush.msrb.mxu3 %v5101_v5  ;;  %v5046_v4 = vld [vmem:[%s10665_s1 + $0x320] sm:$0xff]  ;;  %v5047_v5 = vld [vmem:[%s10665_s1 + $0x328] sm:$0xff] }
 0x347   :  { %2823 = vmatpush.msrb.mxu0 %v5094_v8  ;;  %2843 = vmatpush.msrb.mxu1 %v5095_v9  ;;  %v5048_v8 = vld [vmem:[%s10665_s1 + $0x330] sm:$0xff]  ;;  %v5049_v9 = vld [vmem:[%s10665_s1 + $0x338] sm:$0xff] }
 0x348   :  { %2863 = vmatpush.msrb.mxu2 %v5096_v10  ;;  %2883 = vmatpush.msrb.mxu3 %v5097_v11 }
 0x349   :  { %2824 = vmatpush.msrb.mxu0 %v5090_v12  ;;  %2844 = vmatpush.msrb.mxu1 %v5091_v14  ;;  %v5042_v12 = vld [vmem:[%s10665_s1 + $0x300] sm:$0xff]  ;;  %v5043_v14 = vld [vmem:[%s10665_s1 + $0x308] sm:$0xff] }
 0x34a   :  { %2864 = vmatpush.msrb.mxu2 %v5092_v15  ;;  %2884 = vmatpush.msrb.mxu3 %v5093_v16  ;;  %v2375_v16 = vperm.slane %v8971_v40, 3 }
 0x34b   :  { %2825 = vmatpush.msrb.mxu0 %v5086_v18  ;;  %2845 = vmatpush.msrb.mxu1 %v5087_v21  ;;  %v5044_v18 = vld [vmem:[%s10665_s1 + $0x310] sm:$0xff]  ;;  %v5045_v21 = vld [vmem:[%s10665_s1 + $0x318] sm:$0xff] }
 0x34c   :  { %2865 = vmatpush.msrb.mxu2 %v5088_v22  ;;  %2885 = vmatpush.msrb.mxu3 %v5089_v24  ;;  %v5038_v24 = vld [vmem:[%s10665_s1 + $0x2e0] sm:$0xff] }
 0x34d   :  { %2826 = vmatpush.msrb.mxu0 %v5082_v25  ;;  %2846 = vmatpush.msrb.mxu1 %v5083_v26  ;;  %v5039_v25 = vld [vmem:[%s10665_s1 + $0x2e8] sm:$0xff]  ;;  %v5040_v26 = vld [vmem:[%s10665_s1 + $0x2f0] sm:$0xff] }
 0x34e   :  { %2866 = vmatpush.msrb.mxu2 %v5084_v29  ;;  %2886 = vmatpush.msrb.mxu3 %v5085_v20  ;;  %v5041_v20 = vld [vmem:[%s10665_s1 + $0x2f8] sm:$0xff] }
 0x34f   :  { %2827 = vmatpush.msrb.mxu0 %v5078_v30  ;;  %2847 = vmatpush.msrb.mxu1 %v5079_v41  ;;  %v5034_v30 = vld [vmem:[%s10665_s1 + $0x2c0] sm:$0xff]  ;;  %v5035_v41 = vld [vmem:[%s10665_s1 + $0x2c8] sm:$0xff] }
 0x350   :  { %2867 = vmatpush.msrb.mxu2 %v5080_v31  ;;  %2887 = vmatpush.msrb.mxu3 %v5081_v23  ;;  %v5036_v31 = vld [vmem:[%s10665_s1 + $0x2d0] sm:$0xff] }
 0x351   :  { %2828 = vmatpush.msrb.mxu0 %v5074_v17  ;;  %2848 = vmatpush.msrb.mxu1 %v5075_v27  ;;  %v5037_v17 = vld [vmem:[%s10665_s1 + $0x2d8] sm:$0xff]  ;;  %v5030_v27 = vld [vmem:[%s10665_s1 + $0x2a0] sm:$0xff] }
 0x352   :  { %2868 = vmatpush.msrb.mxu2 %v5076_v32  ;;  %2888 = vmatpush.msrb.mxu3 %v5077_v13  ;;  %v5031_v32 = vld [vmem:[%s10665_s1 + $0x2a8] sm:$0xff]  ;;  %v5032_v13 = vld [vmem:[%s10665_s1 + $0x2b0] sm:$0xff] }
 0x353   :  { %2893 = vmatpush.msra.mxu0 %v5070_v34  ;;  %2913 = vmatpush.msra.mxu1 %v5071_v33  ;;  %v5033_v33 = vld [vmem:[%s10665_s1 + $0x2b8] sm:$0xff] }
 0x354   :  { %2933 = vmatpush.msra.mxu2 %v5072_v35  ;;  %2953 = vmatpush.msra.mxu3 %v5073_v36  ;;  %v5026_v36 = vld [vmem:[%s10665_s1 + $0x280] sm:$0xff] }
 0x355   :  { %2894 = vmatpush.msra.mxu0 %v5066_v39  ;;  %2914 = vmatpush.msra.mxu1 %v5067_v42  ;;  %v5027_v39 = vld [vmem:[%s10665_s1 + $0x288] sm:$0xff]  ;;  %v5028_v42 = vld [vmem:[%s10665_s1 + $0x290] sm:$0xff] }
 0x356   :  { %2934 = vmatpush.msra.mxu2 %v5068_v43  ;;  %2954 = vmatpush.msra.mxu3 %v5069_v44 }
 0x357   :  { %2895 = vmatpush.msra.mxu0 %v5062_v49  ;;  %2915 = vmatpush.msra.mxu1 %v5063_v52  ;;  %v5022_v52 = vld [vmem:[%s10665_s1 + $0x260] sm:$0xff] }
 0x358   :  { %2935 = vmatpush.msra.mxu2 %v5064_v53  ;;  %2955 = vmatpush.msra.mxu3 %v5065_v56  ;;  %v5023_v53 = vld [vmem:[%s10665_s1 + $0x268] sm:$0xff]  ;;  %v5024_v56 = vld [vmem:[%s10665_s1 + $0x270] sm:$0xff] }
 0x359   :  { %2896 = vmatpush.msra.mxu0 %v5058_v50  ;;  %2916 = vmatpush.msra.mxu1 %v5059_v45  ;;  %v5025_v50 = vld [vmem:[%s10665_s1 + $0x278] sm:$0xff] }
 0x35a   :  { %2936 = vmatpush.msra.mxu2 %v5060_v63  ;;  %2956 = vmatpush.msra.mxu3 %v5061_v54  ;;  %v2374_v63 = vperm.slane %v8971_v40, 2  ;;  %v5018_v54 = vld [vmem:[%s10665_s1 + $0x240] sm:$0xff]  ;;  %v5021_v40 = vld [vmem:[%s10665_s1 + $0x258] sm:$0xff] }
 0x35b   :  { %2897 = vmatpush.msra.mxu0 %v5054_v59  ;;  %2917 = vmatpush.msra.mxu1 %v5055_v51  ;;  %v5015_v59 = vld [vmem:[%s10665_s1 + $0x228] sm:$0xff]  ;;  %v5016_v51 = vld [vmem:[%s10665_s1 + $0x230] sm:$0xff] }
 0x35c   :  { %2937 = vmatpush.msra.mxu2 %v5056_v58  ;;  %2957 = vmatpush.msra.mxu3 %v5057_v19 }
 0x35d   :  { %2898 = vmatpush.msra.mxu0 %v5050_v6  ;;  %2918 = vmatpush.msra.mxu1 %v5051_v0  ;;  %v5011_v6 = vld [vmem:[%s10665_s1 + $0x208] sm:$0xff]  ;;  %v5012_v0 = vld [vmem:[%s10665_s1 + $0x210] sm:$0xff] }
 0x35e   :  { %2938 = vmatpush.msra.mxu2 %v5052_v57  ;;  %2958 = vmatpush.msra.mxu3 %v5053_v1  ;;  %v5013_v1 = vld [vmem:[%s10665_s1 + $0x218] sm:$0xff] }
 0x35f   :  { %2899 = vmatpush.msra.mxu0 %v5046_v4  ;;  %2919 = vmatpush.msra.mxu1 %v5047_v5 }
 0x360   :  { %2939 = vmatpush.msra.mxu2 %v5048_v8  ;;  %2959 = vmatpush.msra.mxu3 %v5049_v9  ;;  %v4863_v8 = vclamps-f32 %v8498_v28, 50.0  ;;  %v5004_v28 = vld [vmem:[%s10664_s0 + $0x20] sm:$0xff] }
 0x361   :  { %2900 = vmatpush.msra.mxu0 %v5042_v12  ;;  %2920 = vmatpush.msra.mxu1 %v5043_v14 }
 0x362   :  { %2940 = vmatpush.msra.mxu2 %v5044_v18  ;;  %2960 = vmatpush.msra.mxu3 %v5045_v21 }
 0x363   :  { %2901 = vmatpush.msra.mxu0 %v5038_v24  ;;  %2921 = vmatpush.msra.mxu1 %v5039_v25 }
 0x364   :  { %2941 = vmatpush.msra.mxu2 %v5040_v26  ;;  %2961 = vmatpush.msra.mxu3 %v5041_v20 }
 0x365   :  { %2902 = vmatpush.msra.mxu0 %v5034_v30  ;;  %2922 = vmatpush.msra.mxu1 %v5035_v41 }
 0x366   :  { %2942 = vmatpush.msra.mxu2 %v5036_v31  ;;  %2962 = vmatpush.msra.mxu3 %v5037_v17 }
 0x367   :  { %2903 = vmatpush.msra.mxu0 %v5030_v27  ;;  %2923 = vmatpush.msra.mxu1 %v5031_v32 }
 0x368   :  { %2943 = vmatpush.msra.mxu2 %v5032_v13  ;;  %2963 = vmatpush.msra.mxu3 %v5033_v33 }
 0x369   :  { %2904 = vmatpush.msra.mxu0 %v5026_v36  ;;  %2924 = vmatpush.msra.mxu1 %v5027_v39 }
 0x36a   :  { %2944 = vmatpush.msra.mxu2 %v5028_v42 }
 0x36b   :  { %2905 = vmatpush.msra.mxu0 %v5022_v52  ;;  %2925 = vmatpush.msra.mxu1 %v5023_v53 }
 0x36c   :  { %2945 = vmatpush.msra.mxu2 %v5024_v56 }
 0x36d   :  { %2906 = vmatpush.msra.mxu0 %v5018_v54 }
 0x38a   :  { %v2227_v46 = vpop.f32.mrf.mxu0  ;;  %v2247_v48 = vpop.f32.mrf.mxu1 }
 0x391   :  { %v2287_v47 = vpop.f32.mrf.mxu3  ;;  %v2267_v15 = vpop.f32.mrf.mxu2 }
 0x39c   :  { %v2307_v62 = vpop.f32.mrf.mxu0  ;;  %v2327_v55 = vpop.f32.mrf.mxu1 }
 0x39d   :  { %v2308_v61 = vadd.f32 %v2307_v62, %v2227_v46  ;;  %v2328_v7 = vadd.f32 %v2327_v55, %v2247_v48  ;;  %v5029_v48 = vld [vmem:[%s10665_s1 + $0x298] sm:$0xff] }
 0x39e   :  { %2964 = vmatpush.msra.mxu3 %v5029_v48  ;;  %v5017_v62 = vld [vmem:[%s10665_s1 + $0x238] sm:$0xff] }
 0x39f   :  { %v2380_v2 = vadd.f32 %v2372_v38, %v2308_v61  ;;  %v2381_v3 = vadd.f32 %v2373_v60, %v2328_v7  ;;  %v5020_v38 = vld [vmem:[%s10665_s1 + $0x250] sm:$0xff]  ;;  %v5014_v60 = vld [vmem:[%s10665_s1 + $0x220] sm:$0xff] }
 0x3a0   :  { %2965 = vmatpush.msra.mxu3 %v5025_v50  ;;  %2946 = vmatpush.msra.mxu2 %v5020_v38  ;;  %v5010_v7 = vld [vmem:[%s10665_s1 + $0x200] sm:$0xff] }
 0x3a1   :  { %v4999_v10 = vmul.f32 -1.442695, %v2380_v2  ;;  %v5000_v11 = vmul.f32 -1.442695, %v2381_v3  ;;  %2907 = vmatpush.msra.mxu0 %v5014_v60 }
 0x3a2   :  { %2966 = vmatpush.msra.mxu3 %v5021_v40  ;;  %2947 = vmatpush.msra.mxu2 %v5016_v51 }
 0x3a3   :  { %5541 = vpow2.f32 %v4999_v10  ;;  %v2367_v22 = vpop.f32.mrf.mxu3  ;;  %v2347_v46 = vpop.f32.mrf.mxu2  ;;  %2908 = vmatpush.msra.mxu0 %v5010_v7 }
 0x3a4   :  { %5543 = vpow2.f32 %v5000_v11  ;;  %v2368_v29 = vadd.f32 %v2367_v22, %v2287_v47  ;;  %v2348_v45 = vadd.f32 %v2347_v46, %v2267_v15  ;;  %v5019_v47 = vld [vmem:[%s10665_s1 + $0x248] sm:$0xff]  ;;  %2967 = vmatpush.msra.mxu3 %v5017_v62  ;;  %2948 = vmatpush.msra.mxu2 %v5012_v0 }
 0x3a5   :  { %2926 = vmatpush.msra.mxu1 %v5019_v47  ;;  %v3119_v0 = vld [vmem:[%s10666_s2 + $0x1e8] sm:$0xff] }
 0x3a6   :  { %v2383_v23 = vadd.f32 %v2375_v16, %v2368_v29  ;;  %v2382_v55 = vadd.f32 %v2374_v63, %v2348_v45  ;;  %2968 = vmatpush.msra.mxu3 %v5013_v1  ;;  %v3120_v1 = vld [vmem:[%s10666_s2 + $0x1f0] sm:$0xff] }
 0x3a7   :  { %2927 = vmatpush.msra.mxu1 %v5015_v59 }
 0x3a8   :  { %v5001_v34 = vmul.f32 -1.442695, %v2383_v23 }
 0x3a9   :  { %v5542_v35 = vpop.eup %5541  ;;  %2928 = vmatpush.msra.mxu1 %v5011_v6  ;;  %v3118_v6 = vld [vmem:[%s10666_s2 + $0x1e0] sm:$0xff] }
 0x3aa   :  { %v5544_v43 = vpop.eup %5543  ;;  %v9084_v44 = vadd.f32 1.0, %v5542_v35  ;;  %5545 = vpow2.f32 %v5001_v34 }
 0x3ab   :  { %v9089_v49 = vadd.f32 1.0, %v5544_v43 }
 0x3ac   :  { %5547 = vrcp.f32 %v9084_v44  ;;  %v2397_v10 = vand.u32 2147483647, %v9084_v44  ;;  %v2399_v15 = vand.u32 2147483648, %v9084_v44  ;;  %vm2393_vm12 = vweird.f32 %v9084_v44 }
 0x3ad   :  { %5549 = vrcp.f32 %v9089_v49  ;;  %v2418_v21 = vand.u32 2147483648, %v9089_v49  ;;  %v2416_v24 = vand.u32 2147483647, %v9089_v49  ;;  %vm2412_vm11 = vweird.f32 %v9089_v49 }
 0x3ae   :  { %v2556_v61 = vpop.f32.mrf.mxu1  ;;  %v2536_v25 = vpop.f32.mrf.mxu0  ;;  %v2400_v23 = vor.u32 1.1754944e-38, %v2399_v15  ;;  %vm2398_vm15 = vcmp.eq.f32.partialorder %v2397_v10, 8.507059e+37  ;;  %v3111_v15 = vld [vmem:[%s10666_s2 + $0x1a8] sm:$0xff] }
 0x3af   :  { %v2603_v5 = vrot.slane %v2556_v61, 6  ;;  %v2419_v34 = vor.u32 1.1754944e-38, %v2418_v21  ;;  %vm2417_vm3 = vcmp.eq.f32.partialorder %v2416_v24, 8.507059e+37  ;;  %v3113_v21 = vld [vmem:[%s10666_s2 + $0x1b8] sm:$0xff]  ;;  %v3106_v24 = vld [vmem:[%s10666_s2 + $0x180] sm:$0xff] }
 0x3b0   :  { %v5546_v58 = vpop.eup %5545 }
 0x3b1   :  { %v9130_v19 = vadd.f32 1.0, %v5546_v58  ;;  %v2606_v29 = vsel %vm189_vm0, %v2536_v25, %v2603_v5  ;;  %v3115_v5 = vld [vmem:[%s10666_s2 + $0x1c8] sm:$0xff] }
 0x3b2   :  { %v5548_v57 = vpop.eup %5547  ;;  %v3107_v25 = vld [vmem:[%s10666_s2 + $0x188] sm:$0xff] }
 0x3b3   :  { %v5550_v2 = vpop.eup %5549  ;;  %v2389_v3 = vmul.f32 %v5548_v57, %v9084_v44  ;;  %5551 = vrcp.f32 %v9130_v19  ;;  %vm2394_vm9 = vweird.f32 %v5548_v57  ;;  %v2438_v63 = vand.u32 2147483648, %v9130_v19 }
 0x3b4   :  { %v2408_v4 = vmul.f32 %v5550_v2, %v9089_v49  ;;  %5553 = vtanh.f32 %v2382_v55  ;;  %vm2413_vm10 = vweird.f32 %v5550_v2  ;;  %vm2395_vm13 = vmor %vm2393_vm12, %vm2394_vm9  ;;  %vm2432_vm5 = vweird.f32 %v9130_v19 }
 0x3b5   :  { %v2390_v9 = vsub.f32 1.0, %v2389_v3  ;;  %v2576_v11 = vpop.f32.mrf.mxu2  ;;  %v2596_v12 = vpop.f32.mrf.mxu3  ;;  %vm2414_vm14 = vmor %vm2412_vm11, %vm2413_vm10  ;;  %v2436_v54 = vand.u32 2147483647, %v9130_v19  ;;  %v2439_v60 = vor.u32 1.1754944e-38, %v2438_v63 }
 0x3b6   :  { %v2409_v14 = vsub.f32 1.0, %v2408_v4  ;;  %v2604_v16 = vrot.slane %v2576_v11, 4  ;;  %v2605_v18 = vrot.slane %v2596_v12, 2  ;;  %v3114_v4 = vld [vmem:[%s10666_s2 + $0x1c0] sm:$0xff] }
 0x3b7   :  { %v2391_v22 = vmul.f32 %v5548_v57, %v2390_v9  ;;  %vm2437_vm7 = vcmp.eq.f32.partialorder %v2436_v54, 8.507059e+37  ;;  %v3117_v9 = vld [vmem:[%s10666_s2 + $0x1d8] sm:$0xff]  ;;  %v4869_v54 = vclamps-f32 %v8581_v37, 50.0  ;;  %v3090_v37 = vld [vmem:[%s10666_s2 + $0x100] sm:$0xff] }
 0x3b8   :  { %v2410_v26 = vmul.f32 %v5550_v2, %v2409_v14  ;;  %v2607_v20 = vsel %vm191_vm1, %v2604_v16, %v2605_v18  ;;  %v3110_v14 = vld [vmem:[%s10666_s2 + $0x1a0] sm:$0xff]  ;;  %v3112_v18 = vld [vmem:[%s10666_s2 + $0x1b0] sm:$0xff] }
 0x3b9   :  { %v5552_v30 = vpop.eup %5551  ;;  %v2392_v41 = vadd.f32 %v5548_v57, %v2391_v22  ;;  %v2608_v31 = vsel %vm193_vm2, %v2606_v29, %v2607_v20  ;;  %v3108_v20 = vld [vmem:[%s10666_s2 + $0x190] sm:$0xff] }
 0x3ba   :  { %v2411_v17 = vadd.f32 %v5550_v2, %v2410_v26  ;;  %v2428_v27 = vmul.f32 %v5552_v30, %v9130_v19  ;;  %v9161_v32 = vadd.f32 %v5004_v28, %v2608_v31  ;;  %v5554_v13 = vpop.eup %5553  ;;  %vm2433_vm4 = vweird.f32 %v5552_v30 }
 0x3bb   :  { %v2396_v33 = vsel %vm2395_vm13, %v5548_v57, %v2392_v41  ;;  %vm2434_vm6 = vmor %vm2432_vm5, %vm2433_vm4 }
 0x3bc   :  { %v2401_v35 = vsel %vm2398_vm15, %v2400_v23, %v2396_v33  ;;  %v2415_v36 = vsel %vm2414_vm14, %v5550_v2, %v2411_v17  ;;  %v2429_v39 = vsub.f32 1.0, %v2428_v27  ;;  %v5005_v42 = vmul.f32 -1.442695, %v9161_v32  ;;  %v3121_v2 = vld [vmem:[%s10666_s2 + $0x1f8] sm:$0xff]  ;;  %v3102_v23 = vld [vmem:[%s10666_s2 + $0x160] sm:$0xff]  ;;  %v3103_v17 = vld [vmem:[%s10666_s2 + $0x168] sm:$0xff] }
 0x3bd   :  { %v2420_v43 = vsel %vm2417_vm3, %v2419_v34, %v2415_v36  ;;  %v2443_v44 = vmul.f32 %v5554_v13, %v2401_v35  ;;  %v2631_v46 = vrot.slane %v9161_v32, 2  ;;  %v2655_v49 = vrot.slane %v9161_v32, 6  ;;  %v3104_v13 = vld [vmem:[%s10666_s2 + $0x170] sm:$0xff]  ;;  %v3105_v34 = vld [vmem:[%s10666_s2 + $0x178] sm:$0xff]  ;;  %v3063_v33 = vld [vmem:[%s10666_s2 + $0x28] sm:$0xff] }
 0x3be   :  { %v2442_v48 = vmul.f32 %v4863_v8, %v2420_v43  ;;  %5555 = vpow2.f32 %v5005_v42  ;;  %v2430_v52 = vmul.f32 %v5552_v30, %v2429_v39  ;;  %v3116_v8 = vld [vmem:[%s10666_s2 + $0x1d0] sm:$0xff]  ;;  %v2652_v12 = vrot.slane %v9161_v32, 4  ;;  %v3098_v39 = vld [vmem:[%s10666_s2 + $0x140] sm:$0xff]  ;;  %v3099_v42 = vld [vmem:[%s10666_s2 + $0x148] sm:$0xff] }
 0x3bf   :  { %v5006_v53 = vmul.f32 -1.442695, %v2631_v46  ;;  %v5007_v50 = vmul.f32 -1.442695, %v2655_v49  ;;  %v3101_v49 = vld [vmem:[%s10666_s2 + $0x158] sm:$0xff] }
 0x3c0   :  { %v9166_v56 = vadd.f32 %v2443_v44, %v2442_v48  ;;  %v2431_v45 = vadd.f32 %v5552_v30, %v2430_v52  ;;  %v3100_v48 = vld [vmem:[%s10666_s2 + $0x150] sm:$0xff] }
 0x3c1   :  { %5557 = vpow2.f32 %v5006_v53  ;;  %v3094_v53 = vld [vmem:[%s10666_s2 + $0x120] sm:$0xff] }
 0x3c2   :  { %5559 = vtanh.f32 %v9166_v56  ;;  %v2435_v40 = vsel %vm2434_vm6, %v5552_v30, %v2431_v45  ;;  %v3109_v30 = vld [vmem:[%s10666_s2 + $0x198] sm:$0xff] }
 0x3c3   :  { %5561 = vpow2.f32 %v5007_v50  ;;  %v2440_v62 = vsel %vm2437_vm7, %v2439_v60, %v2435_v40  ;;  %v3095_v50 = vld [vmem:[%s10666_s2 + $0x128] sm:$0xff] }
 0x3c4   :  { %v5556_v47 = vpop.eup %5555 }
 0x3c5   :  { %v9172_v38 = vadd.f32 1.0, %v5556_v47  ;;  %v3096_v47 = vld [vmem:[%s10666_s2 + $0x130] sm:$0xff] }
 0x3c7   :  { %v5558_v59 = vpop.eup %5557  ;;  %5563 = vrcp.f32 %v9172_v38  ;;  %v2626_v26 = vand.u32 2147483648, %v9172_v38  ;;  %v2624_v41 = vand.u32 2147483647, %v9172_v38  ;;  %vm2620_vm9 = vweird.f32 %v9172_v38 }
 0x3c8   :  { %v5560_v51 = vpop.eup %5559  ;;  %v9175_v58 = vadd.f32 1.0, %v5558_v59  ;;  %v3091_v59 = vld [vmem:[%s10666_s2 + $0x108] sm:$0xff] }
 0x3c9   :  { %v5562_v55 = vpop.eup %5561  ;;  %v2446_v61 = vmul.f32 %v5560_v51, %v2440_v62  ;;  %v2627_v44 = vor.u32 1.1754944e-38, %v2626_v26  ;;  %vm2625_vm12 = vcmp.eq.f32.partialorder %v2624_v41, 8.507059e+37  ;;  %v3092_v62 = vld [vmem:[%s10666_s2 + $0x110] sm:$0xff]  ;;  %v5682_v26 = vld [vmem:[%s10666_s2 + $0x88] sm:$0xff] }
 0x3ca   :  { %5565 = vrcp.f32 %v9175_v58  ;;  %v9178_v7 = vadd.f32 1.0, %v5562_v55  ;;  %v2648_v32 = vand.u32 2147483648, %v9175_v58  ;;  %v2646_v36 = vand.u32 2147483647, %v9175_v58  ;;  %v3093_v55 = vld [vmem:[%s10666_s2 + $0x118] sm:$0xff] }
 0x3cb   :  { %v5002_v19 = vclamps-f32 %v2446_v61, 50.0  ;;  %2452 = vst [vmem:[#allocation2 + $0x6] sm:$0x3] %v2446_v61  ;;  %vm2642_vm13 = vweird.f32 %v9175_v58 }
 0x3cc   :  { %5567 = vrcp.f32 %v9178_v7  ;;  %v2649_v63 = vor.u32 1.1754944e-38, %v2648_v32  ;;  %vm2647_vm15 = vcmp.eq.f32.partialorder %v2646_v36, 8.507059e+37  ;;  %vm2666_vm4 = vweird.f32 %v9178_v7  ;;  %v3068_v32 = vld [vmem:[%s10666_s2 + $0x50] sm:$0xff]  ;;  %v3065_v36 = vld [vmem:[%s10666_s2 + $0x38] sm:$0xff] }
 0x3cd   :  { %v9187_v57 = vpop.eup %5563  ;;  %2829 = vmatmul.f32.vlgmr.msrb.gmra.mxu0 %v5002_v19  ;;  %2849 = vmatmul.f32.vlgmr.msrb.gmra.mxu1 %v5002_v19  ;;  %5569 = vtanh.f32 %v2652_v12 }
 0x3ce   :  { %v2616_v3 = vmul.f32 %v9187_v57, %v9172_v38  ;;  %2869 = vmatmul.f32.vlgmr.msrb.gmra.mxu2 %v5002_v19  ;;  %2889 = vmatmul.f32.vlgmr.msrb.gmra.mxu3 %v5002_v19  ;;  %vm2621_vm8 = vweird.f32 %v9187_v57  ;;  %v3097_v38 = vld [vmem:[%s10666_s2 + $0x138] sm:$0xff] }
 0x3cf   :  { %3122 = vmatpush.msrb.mxu0 %v3118_v6  ;;  %3142 = vmatpush.msrb.mxu1 %v3119_v0  ;;  %vm9263_vm10 = vmor %vm2620_vm9, %vm2621_vm8 }
 0x3d0   :  { %v9209_v10 = vpop.eup %5565  ;;  %v2617_v11 = vsub.f32 1.0, %v2616_v3  ;;  %3162 = vmatpush.msrb.mxu2 %v3120_v1  ;;  %3182 = vmatpush.msrb.mxu3 %v3121_v2  ;;  %v5670_v1 = vld [vmem:[%s10666_s2 + $0xe8] sm:$0xff]  ;;  %v2672_v2 = vand.u32 2147483648, %v9178_v7  ;;  %v5671_v3 = vld [vmem:[%s10666_s2 + $0xf0] sm:$0xff] }
 0x3d1   :  { %v2638_v16 = vmul.f32 %v9209_v10, %v9175_v58  ;;  %3123 = vmatpush.msrb.mxu0 %v3114_v4  ;;  %3143 = vmatpush.msrb.mxu1 %v3115_v5  ;;  %vm2643_vm11 = vweird.f32 %v9209_v10  ;;  %v5672_v4 = vld [vmem:[%s10666_s2 + $0xf8] sm:$0xff]  ;;  %v2670_v5 = vand.u32 2147483647, %v9178_v7 }
 0x3d2   :  { %v9226_v22 = vpop.eup %5567  ;;  %3163 = vmatpush.msrb.mxu2 %v3116_v8  ;;  %3183 = vmatpush.msrb.mxu3 %v3117_v9  ;;  %v2618_v28 = vmul.f32 %v9187_v57, %v2617_v11  ;;  %vm2644_vm14 = vmor %vm2642_vm13, %vm2643_vm11  ;;  %v5673_v8 = vld [vmem:[%s10666_s2 + $0xc0] sm:$0xff]  ;;  %v5674_v9 = vld [vmem:[%s10666_s2 + $0xc8] sm:$0xff] }
 0x3d3   :  { %v2639_v29 = vsub.f32 1.0, %v2638_v16  ;;  %3124 = vmatpush.msrb.mxu0 %v3110_v14  ;;  %3144 = vmatpush.msrb.mxu1 %v3111_v15  ;;  %v2662_v31 = vmul.f32 %v9226_v22, %v9178_v7  ;;  %v5570_v60 = vpop.eup %5569  ;;  %vm2667_vm3 = vweird.f32 %v9226_v22  ;;  %v5675_v7 = vld [vmem:[%s10666_s2 + $0xd0] sm:$0xff]  ;;  %v5676_v11 = vld [vmem:[%s10666_s2 + $0xd8] sm:$0xff]  ;;  %v5677_v14 = vld [vmem:[%s10666_s2 + $0xa0] sm:$0xff]  ;;  %v2673_v16 = vor.u32 1.1754944e-38, %v2672_v2 }
 0x3d4   :  { %3164 = vmatpush.msrb.mxu2 %v3112_v18  ;;  %3184 = vmatpush.msrb.mxu3 %v3113_v21  ;;  %v2619_v27 = vadd.f32 %v9187_v57, %v2618_v28  ;;  %vm9344_vm5 = vmor %vm2666_vm4, %vm2667_vm3  ;;  %v5678_v15 = vld [vmem:[%s10666_s2 + $0xa8] sm:$0xff]  ;;  %v5679_v18 = vld [vmem:[%s10666_s2 + $0xb0] sm:$0xff]  ;;  %vm2671_vm6 = vcmp.eq.f32.partialorder %v2670_v5, 8.507059e+37 }
 0x3d5   :  { %3125 = vmatpush.msrb.mxu0 %v3106_v24  ;;  %3145 = vmatpush.msrb.mxu1 %v3107_v25  ;;  %v2640_v35 = vmul.f32 %v9209_v10, %v2639_v29  ;;  %v2663_v46 = vsub.f32 1.0, %v2662_v31  ;;  %v5680_v21 = vld [vmem:[%s10666_s2 + $0xb8] sm:$0xff]  ;;  %v3071_v24 = vld [vmem:[%s10666_s2 + $0x68] sm:$0xff]  ;;  %v5681_v28 = vld [vmem:[%s10666_s2 + $0x80] sm:$0xff] }
 0x3d6   :  { %3165 = vmatpush.msrb.mxu2 %v3108_v20  ;;  %3185 = vmatpush.msrb.mxu3 %v3109_v30  ;;  %v2623_v43 = vsel %vm9263_vm10, %v9187_v57, %v2619_v27  ;;  %v5669_v57 = vld [vmem:[%s10666_s2 + $0xe0] sm:$0xff]  ;;  %v5683_v20 = vld [vmem:[%s10666_s2 + $0x90] sm:$0xff]  ;;  %v5684_v30 = vld [vmem:[%s10666_s2 + $0x98] sm:$0xff] }
 0x3d7   :  { %3126 = vmatpush.msrb.mxu0 %v3102_v23  ;;  %3146 = vmatpush.msrb.mxu1 %v3103_v17  ;;  %v2641_v52 = vadd.f32 %v9209_v10, %v2640_v35  ;;  %v2628_v45 = vsel %vm2625_vm12, %v2627_v44, %v2623_v43  ;;  %v2664_v58 = vmul.f32 %v9226_v22, %v2663_v46  ;;  %v3072_v31 = vld [vmem:[%s10666_s2 + $0x70] sm:$0xff]  ;;  %v3073_v23 = vld [vmem:[%s10666_s2 + $0x78] sm:$0xff]  ;;  %v3066_v17 = vld [vmem:[%s10666_s2 + $0x40] sm:$0xff] }
 0x3d8   :  { %3166 = vmatpush.msrb.mxu2 %v3104_v13  ;;  %3186 = vmatpush.msrb.mxu3 %v3105_v34  ;;  %v2677_v19 = vmul.f32 %v5570_v60, %v2628_v45  ;;  %v3067_v27 = vld [vmem:[%s10666_s2 + $0x48] sm:$0xff]  ;;  %v3069_v13 = vld [vmem:[%s10666_s2 + $0x58] sm:$0xff]  ;;  %v3062_v34 = vld [vmem:[%s10666_s2 + $0x20] sm:$0xff] }
 0x3d9   :  { %3127 = vmatpush.msrb.mxu0 %v3098_v39  ;;  %3147 = vmatpush.msrb.mxu1 %v3099_v42  ;;  %v2645_v40 = vsel %vm2644_vm14, %v9209_v10, %v2641_v52  ;;  %v2665_v0 = vadd.f32 %v9226_v22, %v2664_v58  ;;  %v3064_v35 = vld [vmem:[%s10666_s2 + $0x30] sm:$0xff]  ;;  %v3058_v39 = vld [vmem:[%s10666_s2] sm:$0xff]  ;;  %v3059_v42 = vld [vmem:[%s10666_s2 + $0x8] sm:$0xff] }
 0x3da   :  { %3167 = vmatpush.msrb.mxu2 %v3100_v48  ;;  %3187 = vmatpush.msrb.mxu3 %v3101_v49  ;;  %v2650_v51 = vsel %vm2647_vm15, %v2649_v63, %v2645_v40  ;;  %v3060_v43 = vld [vmem:[%s10666_s2 + $0x10] sm:$0xff]  ;;  %v3061_v44 = vld [vmem:[%s10666_s2 + $0x18] sm:$0xff]  ;;  %v5274_v48 = vld [vmem:[%s10666_s2 + $0x3e0] sm:$0xff] }
 0x3db   :  { %3128 = vmatpush.msrb.mxu0 %v3094_v53  ;;  %3148 = vmatpush.msrb.mxu1 %v3095_v50  ;;  %v2676_v61 = vmul.f32 %v4869_v54, %v2650_v51  ;;  %v2669_v12 = vsel %vm9344_vm5, %v9226_v22, %v2665_v0  ;;  %v3070_v22 = vld [vmem:[%s10666_s2 + $0x60] sm:$0xff]  ;;  %v5275_v49 = vld [vmem:[%s10666_s2 + $0x3e8] sm:$0xff]  ;;  %v5276_v52 = vld [vmem:[%s10666_s2 + $0x3f0] sm:$0xff] }
 0x3dc   :  { %3168 = vmatpush.msrb.mxu2 %v3096_v47  ;;  %3188 = vmatpush.msrb.mxu3 %v3097_v38  ;;  %v2674_v29 = vsel %vm2671_vm6, %v2673_v16, %v2669_v12  ;;  %v5277_v53 = vld [vmem:[%s10666_s2 + $0x3f8] sm:$0xff]  ;;  %v5270_v50 = vld [vmem:[%s10666_s2 + $0x3c0] sm:$0xff]  ;;  %v5271_v45 = vld [vmem:[%s10666_s2 + $0x3c8] sm:$0xff] }
 0x3dd   :  { %3129 = vmatpush.msrb.mxu0 %v3090_v37  ;;  %3149 = vmatpush.msrb.mxu1 %v3091_v59  ;;  %v9316_v6 = vadd.f32 %v2677_v19, %v2676_v61  ;;  %v5272_v63 = vld [vmem:[%s10666_s2 + $0x3d0] sm:$0xff]  ;;  %v5273_v54 = vld [vmem:[%s10666_s2 + $0x3d8] sm:$0xff]  ;;  %v5266_v47 = vld [vmem:[%s10666_s2 + $0x3a0] sm:$0xff] }
 0x3de   :  { %3169 = vmatpush.msrb.mxu2 %v3092_v62  ;;  %3189 = vmatpush.msrb.mxu3 %v3093_v55  ;;  %v5267_v38 = vld [vmem:[%s10666_s2 + $0x3a8] sm:$0xff]  ;;  %v5268_v40 = vld [vmem:[%s10666_s2 + $0x3b0] sm:$0xff]  ;;  %v5269_v60 = vld [vmem:[%s10666_s2 + $0x3b8] sm:$0xff] }
 0x3df   :  { %3130 = vmatpush.msrb.mxu0 %v5669_v57  ;;  %3150 = vmatpush.msrb.mxu1 %v5670_v1  ;;  %5571 = vtanh.f32 %v9316_v6  ;;  %v5262_v37 = vld [vmem:[%s10666_s2 + $0x380] sm:$0xff]  ;;  %v5263_v59 = vld [vmem:[%s10666_s2 + $0x388] sm:$0xff]  ;;  %v5264_v51 = vld [vmem:[%s10666_s2 + $0x390] sm:$0xff] }
 0x3e0   :  { %3170 = vmatpush.msrb.mxu2 %v5671_v3  ;;  %3190 = vmatpush.msrb.mxu3 %v5672_v4  ;;  %v5265_v58 = vld [vmem:[%s10666_s2 + $0x398] sm:$0xff]  ;;  %v5258_v62 = vld [vmem:[%s10666_s2 + $0x360] sm:$0xff]  ;;  %v5259_v55 = vld [vmem:[%s10666_s2 + $0x368] sm:$0xff] }
 0x3e1   :  { %3131 = vmatpush.msrb.mxu0 %v5673_v8  ;;  %3151 = vmatpush.msrb.mxu1 %v5674_v9  ;;  %v5260_v61 = vld [vmem:[%s10666_s2 + $0x370] sm:$0xff]  ;;  %v5261_v19 = vld [vmem:[%s10666_s2 + $0x378] sm:$0xff]  ;;  %v5254_v0 = vld [vmem:[%s10666_s2 + $0x340] sm:$0xff] }
 0x3e2   :  { %3171 = vmatpush.msrb.mxu2 %v5675_v7  ;;  %3191 = vmatpush.msrb.mxu3 %v5676_v11  ;;  %v5255_v57 = vld [vmem:[%s10666_s2 + $0x348] sm:$0xff]  ;;  %v5256_v1 = vld [vmem:[%s10666_s2 + $0x350] sm:$0xff]  ;;  %v5257_v2 = vld [vmem:[%s10666_s2 + $0x358] sm:$0xff] }
 0x3e3   :  { %3132 = vmatpush.msrb.mxu0 %v5677_v14  ;;  %3152 = vmatpush.msrb.mxu1 %v5678_v15  ;;  %v5250_v3 = vld [vmem:[%s10666_s2 + $0x320] sm:$0xff]  ;;  %v5251_v4 = vld [vmem:[%s10666_s2 + $0x328] sm:$0xff]  ;;  %v5252_v5 = vld [vmem:[%s10666_s2 + $0x330] sm:$0xff] }
 0x3e4   :  { %3172 = vmatpush.msrb.mxu2 %v5679_v18  ;;  %3192 = vmatpush.msrb.mxu3 %v5680_v21  ;;  %v5253_v8 = vld [vmem:[%s10666_s2 + $0x338] sm:$0xff]  ;;  %v5246_v9 = vld [vmem:[%s10666_s2 + $0x300] sm:$0xff]  ;;  %v5247_v10 = vld [vmem:[%s10666_s2 + $0x308] sm:$0xff] }
 0x3e5   :  { %v5572_v25 = vpop.eup %5571  ;;  %3133 = vmatpush.msrb.mxu0 %v5681_v28  ;;  %3153 = vmatpush.msrb.mxu1 %v5682_v26  ;;  %v5248_v7 = vld [vmem:[%s10666_s2 + $0x310] sm:$0xff]  ;;  %v5249_v11 = vld [vmem:[%s10666_s2 + $0x318] sm:$0xff]  ;;  %v5242_v12 = vld [vmem:[%s10666_s2 + $0x2e0] sm:$0xff] }
 0x3e6   :  { %3173 = vmatpush.msrb.mxu2 %v5683_v20  ;;  %3193 = vmatpush.msrb.mxu3 %v5684_v30  ;;  %v2680_v41 = vmul.f32 %v5572_v25, %v2674_v29  ;;  %v5243_v14 = vld [vmem:[%s10666_s2 + $0x2e8] sm:$0xff]  ;;  %v5244_v15 = vld [vmem:[%s10666_s2 + $0x2f0] sm:$0xff]  ;;  %v5245_v16 = vld [vmem:[%s10666_s2 + $0x2f8] sm:$0xff] }
 0x3e7   :  { %3134 = vmatpush.msrb.mxu0 %v3070_v22  ;;  %3154 = vmatpush.msrb.mxu1 %v3071_v24  ;;  %v5238_v18 = vld [vmem:[%s10666_s2 + $0x2c0] sm:$0xff]  ;;  %v5239_v21 = vld [vmem:[%s10666_s2 + $0x2c8] sm:$0xff]  ;;  %v5240_v22 = vld [vmem:[%s10666_s2 + $0x2d0] sm:$0xff] }
 0x3e8   :  { %2909 = vmatmul.f32.vlgmr.msra.gmra.mxu0 %v2680_v41  ;;  %2929 = vmatmul.f32.vlgmr.msra.gmra.mxu1 %v2680_v41  ;;  %v5008_v46 = vclamps-f32 %v2680_v41, 50.0  ;;  %v5241_v24 = vld [vmem:[%s10666_s2 + $0x2d8] sm:$0xff]  ;;  %v5234_v25 = vld [vmem:[%s10666_s2 + $0x2a0] sm:$0xff]  ;;  %v5235_v28 = vld [vmem:[%s10666_s2 + $0x2a8] sm:$0xff] }
 0x3e9   :  { %2949 = vmatmul.f32.vlgmr.msra.gmra.mxu2 %v2680_v41  ;;  %2969 = vmatmul.f32.vlgmr.msra.gmra.mxu3 %v2680_v41  ;;  %v5236_v26 = vld [vmem:[%s10666_s2 + $0x2b0] sm:$0xff]  ;;  %v5237_v29 = vld [vmem:[%s10666_s2 + $0x2b8] sm:$0xff]  ;;  %v5230_v20 = vld [vmem:[%s10666_s2 + $0x280] sm:$0xff] }
 0x3ea   :  { %3174 = vmatpush.msrb.mxu2 %v3072_v31  ;;  %3194 = vmatpush.msrb.mxu3 %v3073_v23  ;;  %v5231_v30 = vld [vmem:[%s10666_s2 + $0x288] sm:$0xff]  ;;  %v5232_v41 = vld [vmem:[%s10666_s2 + $0x290] sm:$0xff]  ;;  %v5233_v31 = vld [vmem:[%s10666_s2 + $0x298] sm:$0xff] }
 0x3eb   :  { %3135 = vmatpush.msrb.mxu0 %v3066_v17  ;;  %3155 = vmatpush.msrb.mxu1 %v3067_v27  ;;  %v5226_v23 = vld [vmem:[%s10666_s2 + $0x260] sm:$0xff]  ;;  %v5227_v17 = vld [vmem:[%s10666_s2 + $0x268] sm:$0xff]  ;;  %v5228_v27 = vld [vmem:[%s10666_s2 + $0x270] sm:$0xff] }
 0x3ec   :  { %3175 = vmatpush.msrb.mxu2 %v3068_v32  ;;  %3195 = vmatpush.msrb.mxu3 %v3069_v13  ;;  %v5229_v32 = vld [vmem:[%s10666_s2 + $0x278] sm:$0xff]  ;;  %v5222_v13 = vld [vmem:[%s10666_s2 + $0x240] sm:$0xff] }
 0x3ed   :  { %3136 = vmatpush.msrb.mxu0 %v3062_v34  ;;  %3156 = vmatpush.msrb.mxu1 %v3063_v33  ;;  %v5223_v34 = vld [vmem:[%s10666_s2 + $0x248] sm:$0xff]  ;;  %v5224_v33 = vld [vmem:[%s10666_s2 + $0x250] sm:$0xff] }
 0x3ee   :  { %3176 = vmatpush.msrb.mxu2 %v3064_v35  ;;  %3196 = vmatpush.msrb.mxu3 %v3065_v36  ;;  %v5225_v35 = vld [vmem:[%s10666_s2 + $0x258] sm:$0xff]  ;;  %v5218_v36 = vld [vmem:[%s10666_s2 + $0x220] sm:$0xff] }
 0x3ef   :  { %3137 = vmatpush.msrb.mxu0 %v3058_v39  ;;  %3157 = vmatpush.msrb.mxu1 %v3059_v42  ;;  %v5219_v39 = vld [vmem:[%s10666_s2 + $0x228] sm:$0xff]  ;;  %v5220_v42 = vld [vmem:[%s10666_s2 + $0x230] sm:$0xff] }
 0x3f0   :  { %3177 = vmatpush.msrb.mxu2 %v3060_v43  ;;  %3197 = vmatpush.msrb.mxu3 %v3061_v44  ;;  %v5221_v43 = vld [vmem:[%s10666_s2 + $0x238] sm:$0xff]  ;;  %v5214_v44 = vld [vmem:[%s10666_s2 + $0x200] sm:$0xff] }
 0x3f1   :  { %3138 = vmatmul.f32.vlgmr.msrb.gmra.mxu0 %v5008_v46  ;;  %3158 = vmatmul.f32.vlgmr.msrb.gmra.mxu1 %v5008_v46 }
 0x3f2   :  { %3178 = vmatmul.f32.vlgmr.msrb.gmra.mxu2 %v5008_v46  ;;  %3198 = vmatmul.f32.vlgmr.msrb.gmra.mxu3 %v5008_v46  ;;  %v5215_v46 = vld [vmem:[%s10666_s2 + $0x208] sm:$0xff] }
 0x3f3   :  { %3416 = vmatpush.msra.mxu0 %v5274_v48  ;;  %3436 = vmatpush.msra.mxu1 %v5275_v49  ;;  %v5216_v48 = vld [vmem:[%s10666_s2 + $0x210] sm:$0xff]  ;;  %v5217_v49 = vld [vmem:[%s10666_s2 + $0x218] sm:$0xff] }
 0x3f4   :  { %3456 = vmatpush.msra.mxu2 %v5276_v52  ;;  %3476 = vmatpush.msra.mxu3 %v5277_v53  ;;  %v5210_v52 = vld [vmem:[%s10665_s1 + $0x3e0] sm:$0xff]  ;;  %v5211_v53 = vld [vmem:[%s10665_s1 + $0x3e8] sm:$0xff] }
 0x3f5   :  { %3417 = vmatpush.msra.mxu0 %v5270_v50  ;;  %3437 = vmatpush.msra.mxu1 %v5271_v45  ;;  %v5212_v50 = vld [vmem:[%s10665_s1 + $0x3f0] sm:$0xff]  ;;  %v5213_v45 = vld [vmem:[%s10665_s1 + $0x3f8] sm:$0xff] }
 0x3f6   :  { %3457 = vmatpush.msra.mxu2 %v5272_v63  ;;  %3477 = vmatpush.msra.mxu3 %v5273_v54  ;;  %v5206_v63 = vld [vmem:[%s10665_s1 + $0x3c0] sm:$0xff]  ;;  %v5207_v54 = vld [vmem:[%s10665_s1 + $0x3c8] sm:$0xff] }
 0x3f7   :  { %3418 = vmatpush.msra.mxu0 %v5266_v47  ;;  %3438 = vmatpush.msra.mxu1 %v5267_v38  ;;  %v5208_v47 = vld [vmem:[%s10665_s1 + $0x3d0] sm:$0xff] }
 0x3f8   :  { %3458 = vmatpush.msra.mxu2 %v5268_v40  ;;  %3478 = vmatpush.msra.mxu3 %v5269_v60  ;;  %v5209_v60 = vld [vmem:[%s10665_s1 + $0x3d8] sm:$0xff] }
 0x3f9   :  { %3419 = vmatpush.msra.mxu0 %v5262_v37  ;;  %3439 = vmatpush.msra.mxu1 %v5263_v59  ;;  %v5202_v37 = vld [vmem:[%s10665_s1 + $0x3a0] sm:$0xff]  ;;  %v5203_v59 = vld [vmem:[%s10665_s1 + $0x3a8] sm:$0xff] }
 0x3fa   :  { %3459 = vmatpush.msra.mxu2 %v5264_v51  ;;  %3479 = vmatpush.msra.mxu3 %v5265_v58  ;;  %v5204_v51 = vld [vmem:[%s10665_s1 + $0x3b0] sm:$0xff]  ;;  %v5205_v58 = vld [vmem:[%s10665_s1 + $0x3b8] sm:$0xff] }
 0x3fb   :  { %3420 = vmatpush.msra.mxu0 %v5258_v62  ;;  %3440 = vmatpush.msra.mxu1 %v5259_v55  ;;  %v5198_v62 = vld [vmem:[%s10665_s1 + $0x380] sm:$0xff]  ;;  %v5199_v55 = vld [vmem:[%s10665_s1 + $0x388] sm:$0xff] }
 0x3fc   :  { %3460 = vmatpush.msra.mxu2 %v5260_v61  ;;  %3480 = vmatpush.msra.mxu3 %v5261_v19  ;;  %v5200_v61 = vld [vmem:[%s10665_s1 + $0x390] sm:$0xff]  ;;  %v9669_v19 = vld [vmem:[%s10667_s3 + $0x4] sm:$0xf] }
 0x3fd   :  { %3421 = vmatpush.msra.mxu0 %v5254_v0  ;;  %3441 = vmatpush.msra.mxu1 %v5255_v57  ;;  %v5201_v0 = vld [vmem:[%s10665_s1 + $0x398] sm:$0xff]  ;;  %v5194_v57 = vld [vmem:[%s10665_s1 + $0x360] sm:$0xff] }
 0x3fe   :  { %3461 = vmatpush.msra.mxu2 %v5256_v1  ;;  %3481 = vmatpush.msra.mxu3 %v5257_v2  ;;  %v5195_v1 = vld [vmem:[%s10665_s1 + $0x368] sm:$0xff]  ;;  %v5196_v2 = vld [vmem:[%s10665_s1 + $0x370] sm:$0xff] }
 0x3ff   :  { %3422 = vmatpush.msra.mxu0 %v5250_v3  ;;  %3442 = vmatpush.msra.mxu1 %v5251_v4  ;;  %v5197_v3 = vld [vmem:[%s10665_s1 + $0x378] sm:$0xff] }
 0x400   :  { %3462 = vmatpush.msra.mxu2 %v5252_v5  ;;  %3482 = vmatpush.msra.mxu3 %v5253_v8  ;;  %v2975_v8 = vperm.slane %v9669_v19, 0 }
 0x401   :  { %3423 = vmatpush.msra.mxu0 %v5246_v9  ;;  %3443 = vmatpush.msra.mxu1 %v5247_v10  ;;  %v2976_v9 = vperm.slane %v9669_v19, 1  ;;  %v5190_v10 = vld [vmem:[%s10665_s1 + $0x340] sm:$0xff] }
 0x402   :  { %3463 = vmatpush.msra.mxu2 %v5248_v7  ;;  %3483 = vmatpush.msra.mxu3 %v5249_v11  ;;  %v5191_v7 = vld [vmem:[%s10665_s1 + $0x348] sm:$0xff]  ;;  %v5192_v11 = vld [vmem:[%s10665_s1 + $0x350] sm:$0xff] }
 0x403   :  { %3424 = vmatpush.msra.mxu0 %v5242_v12  ;;  %3444 = vmatpush.msra.mxu1 %v5243_v14 }
 0x404   :  { %3464 = vmatpush.msra.mxu2 %v5244_v15  ;;  %3484 = vmatpush.msra.mxu3 %v5245_v16  ;;  %v5193_v15 = vld [vmem:[%s10665_s1 + $0x358] sm:$0xff] }
 0x405   :  { %3425 = vmatpush.msra.mxu0 %v5238_v18  ;;  %3445 = vmatpush.msra.mxu1 %v5239_v21  ;;  %v5186_v21 = vld [vmem:[%s10665_s1 + $0x320] sm:$0xff] }
 0x406   :  { %3465 = vmatpush.msra.mxu2 %v5240_v22  ;;  %3485 = vmatpush.msra.mxu3 %v5241_v24  ;;  %v5187_v22 = vld [vmem:[%s10665_s1 + $0x328] sm:$0xff]  ;;  %v5188_v24 = vld [vmem:[%s10665_s1 + $0x330] sm:$0xff] }
 0x407   :  { %3426 = vmatpush.msra.mxu0 %v5234_v25  ;;  %3446 = vmatpush.msra.mxu1 %v5235_v28  ;;  %v5189_v25 = vld [vmem:[%s10665_s1 + $0x338] sm:$0xff] }
 0x408   :  { %3466 = vmatpush.msra.mxu2 %v5236_v26  ;;  %3486 = vmatpush.msra.mxu3 %v5237_v29  ;;  %v5182_v29 = vld [vmem:[%s10665_s1 + $0x300] sm:$0xff] }
 0x409   :  { %3427 = vmatpush.msra.mxu0 %v5230_v20  ;;  %3447 = vmatpush.msra.mxu1 %v5231_v30  ;;  %v5183_v20 = vld [vmem:[%s10665_s1 + $0x308] sm:$0xff]  ;;  %v5184_v30 = vld [vmem:[%s10665_s1 + $0x310] sm:$0xff] }
 0x40a   :  { %3467 = vmatpush.msra.mxu2 %v5232_v41  ;;  %3487 = vmatpush.msra.mxu3 %v5233_v31  ;;  %v5185_v41 = vld [vmem:[%s10665_s1 + $0x318] sm:$0xff] }
 0x40b   :  { %3428 = vmatpush.msra.mxu0 %v5226_v23  ;;  %3448 = vmatpush.msra.mxu1 %v5227_v17  ;;  %v5178_v17 = vld [vmem:[%s10665_s1 + $0x2e0] sm:$0xff] }
 0x40c   :  { %3468 = vmatpush.msra.mxu2 %v5228_v27  ;;  %3488 = vmatpush.msra.mxu3 %v5229_v32  ;;  %v5179_v27 = vld [vmem:[%s10665_s1 + $0x2e8] sm:$0xff]  ;;  %v2978_v32 = vperm.slane %v9669_v19, 3 }
 0x40d   :  { %3429 = vmatpush.msra.mxu0 %v5222_v13  ;;  %3449 = vmatpush.msra.mxu1 %v5223_v34  ;;  %v5180_v13 = vld [vmem:[%s10665_s1 + $0x2f0] sm:$0xff]  ;;  %v5181_v34 = vld [vmem:[%s10665_s1 + $0x2f8] sm:$0xff] }
 0x40e   :  { %3469 = vmatpush.msra.mxu2 %v5224_v33  ;;  %3489 = vmatpush.msra.mxu3 %v5225_v35 }
 0x40f   :  { %3430 = vmatpush.msra.mxu0 %v5218_v36  ;;  %3450 = vmatpush.msra.mxu1 %v5219_v39  ;;  %v5174_v36 = vld [vmem:[%s10665_s1 + $0x2c0] sm:$0xff]  ;;  %v5175_v39 = vld [vmem:[%s10665_s1 + $0x2c8] sm:$0xff] }
 0x410   :  { %3470 = vmatpush.msra.mxu2 %v5220_v42  ;;  %3490 = vmatpush.msra.mxu3 %v5221_v43  ;;  %v5176_v42 = vld [vmem:[%s10665_s1 + $0x2d0] sm:$0xff] }
 0x411   :  { %3431 = vmatpush.msra.mxu0 %v5214_v44  ;;  %3451 = vmatpush.msra.mxu1 %v5215_v46  ;;  %v5177_v44 = vld [vmem:[%s10665_s1 + $0x2d8] sm:$0xff]  ;;  %v5170_v46 = vld [vmem:[%s10665_s1 + $0x2a0] sm:$0xff] }
 0x412   :  { %3471 = vmatpush.msra.mxu2 %v5216_v48  ;;  %3491 = vmatpush.msra.mxu3 %v5217_v49  ;;  %v5171_v48 = vld [vmem:[%s10665_s1 + $0x2a8] sm:$0xff]  ;;  %v5172_v49 = vld [vmem:[%s10665_s1 + $0x2b0] sm:$0xff] }
 0x413   :  { %3496 = vmatpush.msrb.mxu0 %v5210_v52  ;;  %3516 = vmatpush.msrb.mxu1 %v5211_v53  ;;  %v5173_v53 = vld [vmem:[%s10665_s1 + $0x2b8] sm:$0xff] }
 0x414   :  { %3536 = vmatpush.msrb.mxu2 %v5212_v50  ;;  %3556 = vmatpush.msrb.mxu3 %v5213_v45  ;;  %v5166_v50 = vld [vmem:[%s10665_s1 + $0x280] sm:$0xff]  ;;  %v5167_v45 = vld [vmem:[%s10665_s1 + $0x288] sm:$0xff] }
 0x415   :  { %3497 = vmatpush.msrb.mxu0 %v5206_v63  ;;  %3517 = vmatpush.msrb.mxu1 %v5207_v54  ;;  %v5168_v63 = vld [vmem:[%s10665_s1 + $0x290] sm:$0xff] }
 0x416   :  { %3537 = vmatpush.msrb.mxu2 %v5208_v47  ;;  %3557 = vmatpush.msrb.mxu3 %v5209_v60  ;;  %v5169_v47 = vld [vmem:[%s10665_s1 + $0x298] sm:$0xff]  ;;  %v5162_v60 = vld [vmem:[%s10665_s1 + $0x260] sm:$0xff] }
 0x417   :  { %3498 = vmatpush.msrb.mxu0 %v5202_v37  ;;  %3518 = vmatpush.msrb.mxu1 %v5203_v59  ;;  %v5163_v37 = vld [vmem:[%s10665_s1 + $0x268] sm:$0xff]  ;;  %v5164_v59 = vld [vmem:[%s10665_s1 + $0x270] sm:$0xff] }
 0x418   :  { %3538 = vmatpush.msrb.mxu2 %v5204_v51  ;;  %3558 = vmatpush.msrb.mxu3 %v5205_v58 }
 0x419   :  { %3499 = vmatpush.msrb.mxu0 %v5198_v62  ;;  %3519 = vmatpush.msrb.mxu1 %v5199_v55  ;;  %v5165_v62 = vld [vmem:[%s10665_s1 + $0x278] sm:$0xff]  ;;  %v5158_v55 = vld [vmem:[%s10665_s1 + $0x240] sm:$0xff] }
 0x41a   :  { %3539 = vmatpush.msrb.mxu2 %v5200_v61  ;;  %3559 = vmatpush.msrb.mxu3 %v5201_v0  ;;  %v5159_v61 = vld [vmem:[%s10665_s1 + $0x248] sm:$0xff] }
 0x41b   :  { %3500 = vmatpush.msrb.mxu0 %v5194_v57  ;;  %3520 = vmatpush.msrb.mxu1 %v5195_v1  ;;  %v5160_v57 = vld [vmem:[%s10665_s1 + $0x250] sm:$0xff]  ;;  %v5161_v1 = vld [vmem:[%s10665_s1 + $0x258] sm:$0xff] }
 0x41c   :  { %3540 = vmatpush.msrb.mxu2 %v5196_v2  ;;  %3560 = vmatpush.msrb.mxu3 %v5197_v3 }
 0x41d   :  { %3501 = vmatpush.msrb.mxu0 %v5190_v10  ;;  %3521 = vmatpush.msrb.mxu1 %v5191_v7  ;;  %v2977_v7 = vperm.slane %v9669_v19, 2  ;;  %v5151_v19 = vld [vmem:[%s10665_s1 + $0x208] sm:$0xff] }
 0x41e   :  { %3541 = vmatpush.msrb.mxu2 %v5192_v11  ;;  %3561 = vmatpush.msrb.mxu3 %v5193_v15  ;;  %v5156_v11 = vld [vmem:[%s10665_s1 + $0x230] sm:$0xff] }
 0x41f   :  { %3502 = vmatpush.msrb.mxu0 %v5186_v21  ;;  %3522 = vmatpush.msrb.mxu1 %v5187_v22  ;;  %v5152_v21 = vld [vmem:[%s10665_s1 + $0x210] sm:$0xff]  ;;  %v5153_v22 = vld [vmem:[%s10665_s1 + $0x218] sm:$0xff] }
 0x420   :  { %3542 = vmatpush.msrb.mxu2 %v5188_v24  ;;  %3562 = vmatpush.msrb.mxu3 %v5189_v25 }
 0x421   :  { %3503 = vmatpush.msrb.mxu0 %v5182_v29  ;;  %3523 = vmatpush.msrb.mxu1 %v5183_v20 }
 0x422   :  { %3543 = vmatpush.msrb.mxu2 %v5184_v30  ;;  %3563 = vmatpush.msrb.mxu3 %v5185_v41 }
 0x423   :  { %3504 = vmatpush.msrb.mxu0 %v5178_v17  ;;  %3524 = vmatpush.msrb.mxu1 %v5179_v27 }
 0x424   :  { %3544 = vmatpush.msrb.mxu2 %v5180_v13  ;;  %3564 = vmatpush.msrb.mxu3 %v5181_v34 }
 0x425   :  { %3505 = vmatpush.msrb.mxu0 %v5174_v36  ;;  %3525 = vmatpush.msrb.mxu1 %v5175_v39 }
 0x426   :  { %3545 = vmatpush.msrb.mxu2 %v5176_v42  ;;  %3565 = vmatpush.msrb.mxu3 %v5177_v44 }
 0x427   :  { %3506 = vmatpush.msrb.mxu0 %v5170_v46  ;;  %3526 = vmatpush.msrb.mxu1 %v5171_v48 }
 0x428   :  { %3546 = vmatpush.msrb.mxu2 %v5172_v49  ;;  %3566 = vmatpush.msrb.mxu3 %v5173_v53 }
 0x429   :  { %3507 = vmatpush.msrb.mxu0 %v5166_v50  ;;  %3527 = vmatpush.msrb.mxu1 %v5167_v45 }
 0x42a   :  { %3547 = vmatpush.msrb.mxu2 %v5168_v63  ;;  %3567 = vmatpush.msrb.mxu3 %v5169_v47 }
 0x42b   :  { %3508 = vmatpush.msrb.mxu0 %v5162_v60  ;;  %3528 = vmatpush.msrb.mxu1 %v5163_v37 }
 0x42c   :  { %3548 = vmatpush.msrb.mxu2 %v5164_v59  ;;  %3568 = vmatpush.msrb.mxu3 %v5165_v62 }
 0x42d   :  { %3509 = vmatpush.msrb.mxu0 %v5158_v55  ;;  %3529 = vmatpush.msrb.mxu1 %v5159_v61 }
 0x42e   :  { %3549 = vmatpush.msrb.mxu2 %v5160_v57  ;;  %3569 = vmatpush.msrb.mxu3 %v5161_v1 }
 0x430   :  { %3550 = vmatpush.msrb.mxu2 %v5156_v11 }
 0x432   :  { %3551 = vmatpush.msrb.mxu2 %v5152_v21 }
 0x44a   :  { %v2830_v38 = vpop.f32.mrf.mxu0  ;;  %v2850_v40 = vpop.f32.mrf.mxu1 }
 0x451   :  { %v9686_v4 = vpop.f32.mrf.mxu2  ;;  %v2890_v5 = vpop.f32.mrf.mxu3 }
 0x465   :  { %v2910_v12 = vpop.f32.mrf.mxu0  ;;  %v2930_v14 = vpop.f32.mrf.mxu1 }
 0x466   :  { %v2911_v16 = vadd.f32 %v2910_v12, %v2830_v38  ;;  %v2931_v18 = vadd.f32 %v2930_v14, %v2850_v40  ;;  %v5157_v12 = vld [vmem:[%s10665_s1 + $0x238] sm:$0xff] }
 0x467   :  { %3570 = vmatpush.msrb.mxu3 %v5157_v12 }
 0x468   :  { %v2983_v28 = vadd.f32 %v2975_v8, %v2911_v16  ;;  %v2984_v26 = vadd.f32 %v2976_v9, %v2931_v18  ;;  %v5154_v8 = vld [vmem:[%s10665_s1 + $0x220] sm:$0xff]  ;;  %v5155_v9 = vld [vmem:[%s10665_s1 + $0x228] sm:$0xff] }
 0x469   :  { %v5144_v18 = vld [vmem:[%s10664_s0 + $0x28] sm:$0xff]  ;;  %3510 = vmatpush.msrb.mxu0 %v5154_v8  ;;  %3530 = vmatpush.msrb.mxu1 %v5155_v9 }
 0x46a   :  { %v5139_v31 = vmul.f32 -1.442695, %v2983_v28  ;;  %v5140_v23 = vmul.f32 -1.442695, %v2984_v26  ;;  %3571 = vmatpush.msrb.mxu3 %v5153_v22 }
 0x46b   :  { %3531 = vmatpush.msrb.mxu1 %v5151_v19 }
 0x46c   :  { %5573 = vpow2.f32 %v5139_v31  ;;  %v2950_v33 = vpop.f32.mrf.mxu2  ;;  %v2970_v35 = vpop.f32.mrf.mxu3 }
 0x46d   :  { %5575 = vpow2.f32 %v5140_v23  ;;  %v2971_v43 = vadd.f32 %v2970_v35, %v2890_v5  ;;  %v2951_v10 = vadd.f32 %v2950_v33, %v9686_v4  ;;  %v5150_v4 = vld [vmem:[%s10665_s1 + $0x200] sm:$0xff] }
 0x46e   :  { %v3159_v40 = vpop.f32.mrf.mxu1  ;;  %v3139_v16 = vpop.f32.mrf.mxu0  ;;  %3511 = vmatpush.msrb.mxu0 %v5150_v4 }
 0x46f   :  { %v2986_v52 = vadd.f32 %v2978_v32, %v2971_v43  ;;  %v3206_v2 = vrot.slane %v3159_v40, 6  ;;  %v2985_v26 = vadd.f32 %v2977_v7, %v2951_v10 }
 0x471   :  { %v5141_v54 = vmul.f32 -1.442695, %v2986_v52  ;;  %v3209_v25 = vsel %vm189_vm0, %v3139_v16, %v3206_v2 }
 0x472   :  { %v5574_v38 = vpop.eup %5573 }
 0x473   :  { %v5576_v51 = vpop.eup %5575  ;;  %v9784_v58 = vadd.f32 1.0, %v5574_v38  ;;  %5577 = vpow2.f32 %v5141_v54  ;;  %v5003_v54 = vclamps-f32 %v9166_v56, 50.0 }
 0x474   :  { %v9795_v0 = vadd.f32 1.0, %v5576_v51 }
 0x475   :  { %5579 = vrcp.f32 %v9784_v58  ;;  %v3179_v3 = vpop.f32.mrf.mxu2  ;;  %v3199_v5 = vpop.f32.mrf.mxu3  ;;  %v3000_v34 = vand.u32 2147483647, %v9784_v58  ;;  %v3002_v36 = vand.u32 2147483648, %v9784_v58  ;;  %vm2996_vm9 = vweird.f32 %v9784_v58 }
 0x476   :  { %5581 = vrcp.f32 %v9795_v0  ;;  %v3207_v14 = vrot.slane %v3179_v3, 4  ;;  %v3208_v15 = vrot.slane %v3199_v5, 2  ;;  %v3021_v42 = vand.u32 2147483648, %v9795_v0 }
 0x477   :  { %v3019_v48 = vand.u32 2147483647, %v9795_v0  ;;  %vm3015_vm10 = vweird.f32 %v9795_v0  ;;  %v3003_v53 = vor.u32 1.1754944e-38, %v3002_v36  ;;  %vm3001_vm13 = vcmp.eq.f32.partialorder %v3000_v34, 8.507059e+37  ;;  %v3718_v36 = vld [vmem:[%s10666_s2 + $0x1c8] sm:$0xff] }
 0x478   :  { %v3210_v28 = vsel %vm191_vm1, %v3207_v14, %v3208_v15  ;;  %v3022_v47 = vor.u32 1.1754944e-38, %v3021_v42 }
 0x479   :  { %v5578_v24 = vpop.eup %5577  ;;  %v3211_v20 = vsel %vm193_vm2, %v3209_v25, %v3210_v28  ;;  %vm3020_vm14 = vcmp.eq.f32.partialorder %v3019_v48, 8.507059e+37 }
 0x47a   :  { %v9836_v29 = vadd.f32 1.0, %v5578_v24  ;;  %v9839_v41 = vadd.f32 %v5144_v18, %v3211_v20 }
 0x47b   :  { %v5580_v30 = vpop.eup %5579 }
 0x47c   :  { %v5582_v31 = vpop.eup %5581  ;;  %v2992_v23 = vmul.f32 %v5580_v30, %v9784_v58  ;;  %5583 = vrcp.f32 %v9836_v29  ;;  %v5145_v27 = vmul.f32 -1.442695, %v9839_v41  ;;  %v3234_v32 = vrot.slane %v9839_v41, 2 }
 0x47d   :  { %v3011_v17 = vmul.f32 %v5582_v31, %v9795_v0  ;;  %5585 = vtanh.f32 %v2985_v26  ;;  %v3258_v33 = vrot.slane %v9839_v41, 6  ;;  %vm2997_vm7 = vweird.f32 %v5580_v30 }
 0x47e   :  { %v2993_v13 = vsub.f32 1.0, %v2992_v23  ;;  %5587 = vpow2.f32 %v5145_v27  ;;  %v5146_v39 = vmul.f32 -1.442695, %v3234_v32  ;;  %vm3016_vm8 = vweird.f32 %v5582_v31  ;;  %vm2998_vm11 = vmor %vm2996_vm9, %vm2997_vm7  ;;  %v3723_v27 = vld [vmem:[%s10666_s2 + $0x1f0] sm:$0xff]  ;;  %v3724_v32 = vld [vmem:[%s10666_s2 + $0x1f8] sm:$0xff] }
 0x47f   :  { %v3012_v35 = vsub.f32 1.0, %v3011_v17  ;;  %v5147_v44 = vmul.f32 -1.442695, %v3258_v33  ;;  %vm3017_vm12 = vmor %vm3015_vm10, %vm3016_vm8  ;;  %v3041_v5 = vand.u32 2147483648, %v9836_v29  ;;  %vm3035_vm3 = vweird.f32 %v9836_v29 }
 0x480   :  { %v2994_v43 = vmul.f32 %v5580_v30, %v2993_v13  ;;  %5589 = vpow2.f32 %v5146_v39  ;;  %v3039_v8 = vand.u32 2147483647, %v9836_v29  ;;  %v3255_v14 = vrot.slane %v9839_v41, 4  ;;  %v3722_v41 = vld [vmem:[%s10666_s2 + $0x1e8] sm:$0xff]  ;;  %v3684_v13 = vld [vmem:[%s10666_s2 + $0xb8] sm:$0xff] }
 0x481   :  { %v3013_v46 = vmul.f32 %v5582_v31, %v3012_v35  ;;  %5591 = vpow2.f32 %v5147_v44  ;;  %v3042_v11 = vor.u32 1.1754944e-38, %v3041_v5  ;;  %v3717_v35 = vld [vmem:[%s10666_s2 + $0x1c0] sm:$0xff]  ;;  %v3720_v44 = vld [vmem:[%s10666_s2 + $0x1d8] sm:$0xff] }
 0x482   :  { %v5584_v49 = vpop.eup %5583  ;;  %v2995_v52 = vadd.f32 %v5580_v30, %v2994_v43  ;;  %vm3040_vm5 = vcmp.eq.f32.partialorder %v3039_v8, 8.507059e+37  ;;  %v3719_v43 = vld [vmem:[%s10666_s2 + $0x1d0] sm:$0xff] }
 0x483   :  { %v3014_v50 = vadd.f32 %v5582_v31, %v3013_v46  ;;  %v3031_v45 = vmul.f32 %v5584_v49, %v9836_v29  ;;  %v5586_v63 = vpop.eup %5585  ;;  %vm3036_vm15 = vweird.f32 %v5584_v49  ;;  %v3703_v8 = vld [vmem:[%s10666_s2 + $0x150] sm:$0xff] }
 0x484   :  { %v2999_v38 = vsel %vm2998_vm11, %v5580_v30, %v2995_v52  ;;  %v5588_v40 = vpop.eup %5587  ;;  %vm3037_vm4 = vmor %vm3035_vm3, %vm3036_vm15  ;;  %v3721_v30 = vld [vmem:[%s10666_s2 + $0x1e0] sm:$0xff] }
 0x485   :  { %v3004_v60 = vsel %vm3001_vm13, %v3003_v53, %v2999_v38  ;;  %v3018_v37 = vsel %vm3017_vm12, %v5582_v31, %v3014_v50  ;;  %v3032_v59 = vsub.f32 1.0, %v3031_v45  ;;  %v3217_v62 = vadd.f32 1.0, %v5588_v40  ;;  %v3713_v52 = vld [vmem:[%s10666_s2 + $0x1a0] sm:$0xff]  ;;  %v3714_v53 = vld [vmem:[%s10666_s2 + $0x1a8] sm:$0xff] }
 0x486   :  { %v3023_v51 = vsel %vm3020_vm14, %v3022_v47, %v3018_v37  ;;  %v3046_v58 = vmul.f32 %v5586_v63, %v3004_v60  ;;  %v5590_v55 = vpop.eup %5589  ;;  %v3715_v63 = vld [vmem:[%s10666_s2 + $0x1b0] sm:$0xff]  ;;  %v3709_v38 = vld [vmem:[%s10666_s2 + $0x180] sm:$0xff]  ;;  %v3710_v40 = vld [vmem:[%s10666_s2 + $0x188] sm:$0xff] }
 0x487   :  { %v3045_v61 = vmul.f32 %v5003_v54, %v3023_v51  ;;  %v3033_v0 = vmul.f32 %v5584_v49, %v3032_v59  ;;  %v5592_v57 = vpop.eup %5591  ;;  %5593 = vrcp.f32 %v3217_v62  ;;  %v9855_v1 = vadd.f32 1.0, %v5590_v55  ;;  %v3711_v59 = vld [vmem:[%s10666_s2 + $0x190] sm:$0xff]  ;;  %v3712_v51 = vld [vmem:[%s10666_s2 + $0x198] sm:$0xff] }
 0x488   :  { %v9859_v2 = vadd.f32 1.0, %v5592_v57  ;;  %v3227_v22 = vand.u32 2147483647, %v3217_v62  ;;  %v3229_v24 = vand.u32 2147483648, %v3217_v62  ;;  %vm3223_vm7 = vweird.f32 %v3217_v62 }
 0x489   :  { %v9857_v56 = vadd.f32 %v3046_v58, %v3045_v61  ;;  %5595 = vrcp.f32 %v9855_v1  ;;  %v3034_v3 = vadd.f32 %v5584_v49, %v3033_v0  ;;  %v3251_v20 = vand.u32 2147483648, %v9855_v1  ;;  %v3705_v58 = vld [vmem:[%s10666_s2 + $0x160] sm:$0xff]  ;;  %v3707_v61 = vld [vmem:[%s10666_s2 + $0x170] sm:$0xff]  ;;  %v3708_v0 = vld [vmem:[%s10666_s2 + $0x178] sm:$0xff] }
 0x48a   :  { %v3249_v17 = vand.u32 2147483647, %v9855_v1  ;;  %v3230_v34 = vor.u32 1.1754944e-38, %v3229_v24  ;;  %vm3228_vm10 = vcmp.eq.f32.partialorder %v3227_v22, 8.507059e+37  ;;  %vm3245_vm11 = vweird.f32 %v9855_v1 }
 0x48b   :  { %5597 = vtanh.f32 %v9857_v56  ;;  %v3038_v10 = vsel %vm3037_vm4, %v5584_v49, %v3034_v3  ;;  %v3252_v48 = vor.u32 1.1754944e-38, %v3251_v20  ;;  %v5009_v49 = vclamps-f32 %v9316_v6, 50.0  ;;  %v3716_v6 = vld [vmem:[%s10666_s2 + $0x1b8] sm:$0xff]  ;;  %v3702_v3 = vld [vmem:[%s10666_s2 + $0x148] sm:$0xff] }
 0x48c   :  { %5599 = vrcp.f32 %v9859_v2  ;;  %v3043_v16 = vsel %vm3040_vm5, %v3042_v11, %v3038_v10  ;;  %vm3250_vm13 = vcmp.eq.f32.partialorder %v3249_v17, 8.507059e+37  ;;  %v3275_v5 = vand.u32 2147483648, %v9859_v2  ;;  %v3698_v11 = vld [vmem:[%s10666_s2 + $0x128] sm:$0xff]  ;;  %v3692_v20 = vld [vmem:[%s10666_s2 + $0xf8] sm:$0xff]  ;;  %v3681_v17 = vld [vmem:[%s10666_s2 + $0xa0] sm:$0xff] }
 0x48d   :  { %v5594_v9 = vpop.eup %5593  ;;  %5601 = vtanh.f32 %v3255_v14  ;;  %vm3269_vm15 = vweird.f32 %v9859_v2  ;;  %v3273_v10 = vand.u32 2147483647, %v9859_v2  ;;  %v3700_v14 = vld [vmem:[%s10666_s2 + $0x138] sm:$0xff] }
 0x48e   :  { %v3219_v7 = vmul.f32 %v5594_v9, %v3217_v62  ;;  %vm3224_vm6 = vweird.f32 %v5594_v9  ;;  %v3706_v62 = vld [vmem:[%s10666_s2 + $0x168] sm:$0xff] }
 0x48f   :  { %v5596_v12 = vpop.eup %5595  ;;  %vm9888_vm9 = vmor %vm3223_vm7, %vm3224_vm6  ;;  %vm3274_vm4 = vcmp.eq.f32.partialorder %v3273_v10, 8.507059e+37  ;;  %v5404_v10 = vld [vmem:[%s10666_s2 + $0x390] sm:$0xff] }
 0x490   :  { %v3220_v4 = vsub.f32 1.0, %v3219_v7  ;;  %v3241_v19 = vmul.f32 %v5596_v12, %v9855_v1  ;;  %vm3246_vm8 = vweird.f32 %v5596_v12  ;;  %v3701_v1 = vld [vmem:[%s10666_s2 + $0x140] sm:$0xff] }
 0x491   :  { %v5598_v15 = vpop.eup %5597  ;;  %vm3247_vm12 = vmor %vm3245_vm11, %vm3246_vm8  ;;  %v3697_v7 = vld [vmem:[%s10666_s2 + $0x120] sm:$0xff] }
 0x492   :  { %v9869_v18 = vpop.eup %5599  ;;  %v3049_v21 = vmul.f32 %v5598_v15, %v3043_v16  ;;  %v3242_v25 = vsub.f32 1.0, %v3241_v19  ;;  %v3221_v28 = vmul.f32 %v5594_v9, %v3220_v4  ;;  %v3693_v4 = vld [vmem:[%s10666_s2 + $0x100] sm:$0xff]  ;;  %v3694_v19 = vld [vmem:[%s10666_s2 + $0x108] sm:$0xff]  ;;  %v3276_v16 = vor.u32 1.1754944e-38, %v3275_v5  ;;  %v5409_v5 = vld [vmem:[%s10666_s2 + $0x3b8] sm:$0xff] }
 0x493   :  { %v3265_v26 = vmul.f32 %v9869_v18, %v9859_v2  ;;  %v5602_v45 = vpop.eup %5601  ;;  %vm3270_vm14 = vweird.f32 %v9869_v18  ;;  %v3699_v2 = vld [vmem:[%s10666_s2 + $0x130] sm:$0xff] }
 0x494   :  { %v5142_v29 = vclamps-f32 %v3049_v21, 50.0  ;;  %3055 = vst [vmem:[#allocation2 + $0x8] sm:$0x3] %v3049_v21  ;;  %v3222_v31 = vadd.f32 %v5594_v9, %v3221_v28  ;;  %v3243_v23 = vmul.f32 %v5596_v12, %v3242_v25  ;;  %vm9974_vm3 = vmor %vm3269_vm15, %vm3270_vm14  ;;  %v3695_v21 = vld [vmem:[%s10666_s2 + $0x110] sm:$0xff]  ;;  %v3689_v28 = vld [vmem:[%s10666_s2 + $0xe0] sm:$0xff] }
 0x495   :  { %v3266_v33 = vsub.f32 1.0, %v3265_v26  ;;  %v3690_v26 = vld [vmem:[%s10666_s2 + $0xe8] sm:$0xff] }
 0x496   :  { %3432 = vmatmul.f32.vlgmr.msra.gmra.mxu0 %v5142_v29  ;;  %3452 = vmatmul.f32.vlgmr.msra.gmra.mxu1 %v5142_v29  ;;  %v3226_v39 = vsel %vm9888_vm9, %v5594_v9, %v3222_v31  ;;  %v3244_v42 = vadd.f32 %v5596_v12, %v3243_v23  ;;  %v3704_v9 = vld [vmem:[%s10666_s2 + $0x158] sm:$0xff]  ;;  %v3687_v31 = vld [vmem:[%s10666_s2 + $0xd0] sm:$0xff] }
 0x497   :  { %3472 = vmatmul.f32.vlgmr.msra.gmra.mxu2 %v5142_v29  ;;  %3492 = vmatmul.f32.vlgmr.msra.gmra.mxu3 %v5142_v29  ;;  %v3231_v46 = vsel %vm3228_vm10, %v3230_v34, %v3226_v39  ;;  %v3267_v47 = vmul.f32 %v9869_v18, %v3266_v33  ;;  %v3691_v29 = vld [vmem:[%s10666_s2 + $0xf0] sm:$0xff]  ;;  %v3688_v23 = vld [vmem:[%s10666_s2 + $0xd8] sm:$0xff]  ;;  %v3677_v34 = vld [vmem:[%s10666_s2 + $0x80] sm:$0xff] }
 0x498   :  { %3725 = vmatpush.msra.mxu0 %v3721_v30  ;;  %3745 = vmatpush.msra.mxu1 %v3722_v41  ;;  %v3248_v50 = vsel %vm3247_vm12, %v5596_v12, %v3244_v42  ;;  %v3280_v37 = vmul.f32 %v5602_v45, %v3231_v46  ;;  %v3685_v30 = vld [vmem:[%s10666_s2 + $0xc0] sm:$0xff]  ;;  %v3686_v41 = vld [vmem:[%s10666_s2 + $0xc8] sm:$0xff]  ;;  %v3667_v45 = vld [vmem:[%s10666_s2 + $0x30] sm:$0xff] }
 0x499   :  { %3765 = vmatpush.msra.mxu2 %v3723_v27  ;;  %3785 = vmatpush.msra.mxu3 %v3724_v32  ;;  %v3253_v54 = vsel %vm3250_vm13, %v3252_v48, %v3248_v50  ;;  %v3268_v57 = vadd.f32 %v9869_v18, %v3267_v47  ;;  %v3682_v27 = vld [vmem:[%s10666_s2 + $0xa8] sm:$0xff]  ;;  %v3683_v32 = vld [vmem:[%s10666_s2 + $0xb0] sm:$0xff]  ;;  %v3673_v39 = vld [vmem:[%s10666_s2 + $0x60] sm:$0xff] }
 0x49a   :  { %3726 = vmatpush.msra.mxu0 %v3717_v35  ;;  %3746 = vmatpush.msra.mxu1 %v3718_v36  ;;  %v3279_v60 = vmul.f32 %v5009_v49, %v3253_v54  ;;  %v3678_v33 = vld [vmem:[%s10666_s2 + $0x88] sm:$0xff]  ;;  %v3679_v35 = vld [vmem:[%s10666_s2 + $0x90] sm:$0xff]  ;;  %v3680_v36 = vld [vmem:[%s10666_s2 + $0x98] sm:$0xff] }
 0x49b   :  { %3766 = vmatpush.msra.mxu2 %v3719_v43  ;;  %3786 = vmatpush.msra.mxu3 %v3720_v44  ;;  %v3272_v15 = vsel %vm9974_vm3, %v9869_v18, %v3268_v57  ;;  %v3696_v18 = vld [vmem:[%s10666_s2 + $0x118] sm:$0xff]  ;;  %v3674_v42 = vld [vmem:[%s10666_s2 + $0x68] sm:$0xff]  ;;  %v3675_v43 = vld [vmem:[%s10666_s2 + $0x70] sm:$0xff] }
 0x49c   :  { %3727 = vmatpush.msra.mxu0 %v3713_v52  ;;  %3747 = vmatpush.msra.mxu1 %v3714_v53  ;;  %v9940_v55 = vadd.f32 %v3280_v37, %v3279_v60  ;;  %v3277_v24 = vsel %vm3274_vm4, %v3276_v16, %v3272_v15  ;;  %v3676_v44 = vld [vmem:[%s10666_s2 + $0x78] sm:$0xff]  ;;  %v3669_v46 = vld [vmem:[%s10666_s2 + $0x40] sm:$0xff]  ;;  %v3670_v48 = vld [vmem:[%s10666_s2 + $0x48] sm:$0xff] }
 0x49d   :  { %3767 = vmatpush.msra.mxu2 %v3715_v63  ;;  %3787 = vmatpush.msra.mxu3 %v3716_v6  ;;  %v3671_v49 = vld [vmem:[%s10666_s2 + $0x50] sm:$0xff]  ;;  %v3672_v52 = vld [vmem:[%s10666_s2 + $0x58] sm:$0xff]  ;;  %v3665_v53 = vld [vmem:[%s10666_s2 + $0x20] sm:$0xff] }
 0x49e   :  { %3728 = vmatpush.msra.mxu0 %v3709_v38  ;;  %3748 = vmatpush.msra.mxu1 %v3710_v40  ;;  %5603 = vtanh.f32 %v9940_v55  ;;  %v3666_v50 = vld [vmem:[%s10666_s2 + $0x28] sm:$0xff]  ;;  %v3668_v63 = vld [vmem:[%s10666_s2 + $0x38] sm:$0xff]  ;;  %v3661_v6 = vld [vmem:[%s10666_s2] sm:$0xff] }
 0x49f   :  { %3768 = vmatpush.msra.mxu2 %v3711_v59  ;;  %3788 = vmatpush.msra.mxu3 %v3712_v51  ;;  %v3662_v54 = vld [vmem:[%s10666_s2 + $0x8] sm:$0xff]  ;;  %v3663_v47 = vld [vmem:[%s10666_s2 + $0x10] sm:$0xff]  ;;  %v3664_v38 = vld [vmem:[%s10666_s2 + $0x18] sm:$0xff] }
 0x4a0   :  { %3729 = vmatpush.msra.mxu0 %v3705_v58  ;;  %3749 = vmatpush.msra.mxu1 %v3706_v62  ;;  %v5414_v60 = vld [vmem:[%s10666_s2 + $0x3e0] sm:$0xff]  ;;  %v5415_v37 = vld [vmem:[%s10666_s2 + $0x3e8] sm:$0xff]  ;;  %v5416_v59 = vld [vmem:[%s10666_s2 + $0x3f0] sm:$0xff] }
 0x4a1   :  { %3769 = vmatpush.msra.mxu2 %v3707_v61  ;;  %3789 = vmatpush.msra.mxu3 %v3708_v0  ;;  %v5417_v51 = vld [vmem:[%s10666_s2 + $0x3f8] sm:$0xff]  ;;  %v5410_v58 = vld [vmem:[%s10666_s2 + $0x3c0] sm:$0xff]  ;;  %v5411_v62 = vld [vmem:[%s10666_s2 + $0x3c8] sm:$0xff] }
 0x4a2   :  { %3730 = vmatpush.msra.mxu0 %v3701_v1  ;;  %3750 = vmatpush.msra.mxu1 %v3702_v3  ;;  %v5412_v61 = vld [vmem:[%s10666_s2 + $0x3d0] sm:$0xff]  ;;  %v5413_v0 = vld [vmem:[%s10666_s2 + $0x3d8] sm:$0xff]  ;;  %v5406_v57 = vld [vmem:[%s10666_s2 + $0x3a0] sm:$0xff] }
 0x4a3   :  { %3770 = vmatpush.msra.mxu2 %v3703_v8  ;;  %3790 = vmatpush.msra.mxu3 %v3704_v9  ;;  %v5407_v1 = vld [vmem:[%s10666_s2 + $0x3a8] sm:$0xff]  ;;  %v5408_v3 = vld [vmem:[%s10666_s2 + $0x3b0] sm:$0xff]  ;;  %v5402_v8 = vld [vmem:[%s10666_s2 + $0x380] sm:$0xff] }
 0x4a4   :  { %3731 = vmatpush.msra.mxu0 %v3697_v7  ;;  %3751 = vmatpush.msra.mxu1 %v3698_v11  ;;  %v5604_v22 = vpop.eup %5603  ;;  %v5403_v9 = vld [vmem:[%s10666_s2 + $0x388] sm:$0xff]  ;;  %v5405_v7 = vld [vmem:[%s10666_s2 + $0x398] sm:$0xff]  ;;  %v5398_v11 = vld [vmem:[%s10666_s2 + $0x360] sm:$0xff] }
 0x4a5   :  { %3771 = vmatpush.msra.mxu2 %v3699_v2  ;;  %3791 = vmatpush.msra.mxu3 %v3700_v14  ;;  %v9999_v25 = vmul.f32 %v5604_v22, %v3277_v24  ;;  %v5399_v12 = vld [vmem:[%s10666_s2 + $0x368] sm:$0xff]  ;;  %v5400_v2 = vld [vmem:[%s10666_s2 + $0x370] sm:$0xff]  ;;  %v5401_v14 = vld [vmem:[%s10666_s2 + $0x378] sm:$0xff] }
 0x4a6   :  { %3732 = vmatpush.msra.mxu0 %v3693_v4  ;;  %3752 = vmatpush.msra.mxu1 %v3694_v19  ;;  %v5394_v15 = vld [vmem:[%s10666_s2 + $0x340] sm:$0xff]  ;;  %v5395_v4 = vld [vmem:[%s10666_s2 + $0x348] sm:$0xff]  ;;  %v5396_v19 = vld [vmem:[%s10666_s2 + $0x350] sm:$0xff] }
 0x4a7   :  { %3772 = vmatpush.msra.mxu2 %v3695_v21  ;;  %3792 = vmatpush.msra.mxu3 %v3696_v18  ;;  %v5148_v40 = vclamps-f32 %v9999_v25, 50.0  ;;  %v5397_v16 = vld [vmem:[%s10666_s2 + $0x358] sm:$0xff]  ;;  %v5390_v22 = vld [vmem:[%s10666_s2 + $0x320] sm:$0xff]  ;;  %v5391_v24 = vld [vmem:[%s10666_s2 + $0x328] sm:$0xff] }
 0x4a8   :  { %3512 = vmatmul.f32.vlgmr.msrb.gmra.mxu0 %v9999_v25  ;;  %3532 = vmatmul.f32.vlgmr.msrb.gmra.mxu1 %v9999_v25 }
 0x4a9   :  { %3552 = vmatmul.f32.vlgmr.msrb.gmra.mxu2 %v9999_v25  ;;  %3572 = vmatmul.f32.vlgmr.msrb.gmra.mxu3 %v9999_v25  ;;  %v5392_v25 = vld [vmem:[%s10666_s2 + $0x330] sm:$0xff] }
 0x4aa   :  { %3733 = vmatpush.msra.mxu0 %v3689_v28  ;;  %3753 = vmatpush.msra.mxu1 %v3690_v26  ;;  %v10186_v28 = vld [vmem:[%s10667_s3 + $0x4] sm:$0xf]  ;;  %v5393_v26 = vld [vmem:[%s10666_s2 + $0x338] sm:$0xff] }
 0x4ab   :  { %3773 = vmatpush.msra.mxu2 %v3691_v29  ;;  %3793 = vmatpush.msra.mxu3 %v3692_v20  ;;  %v5386_v29 = vld [vmem:[%s10666_s2 + $0x300] sm:$0xff]  ;;  %v5387_v20 = vld [vmem:[%s10666_s2 + $0x308] sm:$0xff] }
 0x4ac   :  { %3734 = vmatpush.msra.mxu0 %v3685_v30  ;;  %3754 = vmatpush.msra.mxu1 %v3686_v41  ;;  %v5388_v30 = vld [vmem:[%s10666_s2 + $0x310] sm:$0xff]  ;;  %v5389_v41 = vld [vmem:[%s10666_s2 + $0x318] sm:$0xff] }
 0x4ad   :  { %3774 = vmatpush.msra.mxu2 %v3687_v31  ;;  %3794 = vmatpush.msra.mxu3 %v3688_v23  ;;  %v3578_v23 = vperm.slane %v10186_v28, 0 }
 0x4ae   :  { %3735 = vmatpush.msra.mxu0 %v3681_v17  ;;  %3755 = vmatpush.msra.mxu1 %v3682_v27  ;;  %v3579_v17 = vperm.slane %v10186_v28, 1  ;;  %v5382_v27 = vld [vmem:[%s10666_s2 + $0x2e0] sm:$0xff] }
 0x4af   :  { %3775 = vmatpush.msra.mxu2 %v3683_v32  ;;  %3795 = vmatpush.msra.mxu3 %v3684_v13  ;;  %v5383_v32 = vld [vmem:[%s10666_s2 + $0x2e8] sm:$0xff]  ;;  %v5384_v13 = vld [vmem:[%s10666_s2 + $0x2f0] sm:$0xff] }
 0x4b0   :  { %3736 = vmatpush.msra.mxu0 %v3677_v34  ;;  %3756 = vmatpush.msra.mxu1 %v3678_v33 }
 0x4b1   :  { %3776 = vmatpush.msra.mxu2 %v3679_v35  ;;  %3796 = vmatpush.msra.mxu3 %v3680_v36  ;;  %v5385_v35 = vld [vmem:[%s10666_s2 + $0x2f8] sm:$0xff] }
 0x4b2   :  { %3737 = vmatpush.msra.mxu0 %v3673_v39  ;;  %3757 = vmatpush.msra.mxu1 %v3674_v42  ;;  %v5378_v42 = vld [vmem:[%s10666_s2 + $0x2c0] sm:$0xff] }
 0x4b3   :  { %3777 = vmatpush.msra.mxu2 %v3675_v43  ;;  %3797 = vmatpush.msra.mxu3 %v3676_v44  ;;  %v5379_v43 = vld [vmem:[%s10666_s2 + $0x2c8] sm:$0xff]  ;;  %v5380_v44 = vld [vmem:[%s10666_s2 + $0x2d0] sm:$0xff] }
 0x4b4   :  { %3738 = vmatpush.msra.mxu0 %v3669_v46  ;;  %3758 = vmatpush.msra.mxu1 %v3670_v48  ;;  %v5381_v46 = vld [vmem:[%s10666_s2 + $0x2d8] sm:$0xff] }
 0x4b5   :  { %3778 = vmatpush.msra.mxu2 %v3671_v49  ;;  %3798 = vmatpush.msra.mxu3 %v3672_v52  ;;  %v5374_v52 = vld [vmem:[%s10666_s2 + $0x2a0] sm:$0xff] }
 0x4b6   :  { %3739 = vmatpush.msra.mxu0 %v3665_v53  ;;  %3759 = vmatpush.msra.mxu1 %v3666_v50  ;;  %v5375_v53 = vld [vmem:[%s10666_s2 + $0x2a8] sm:$0xff]  ;;  %v5376_v50 = vld [vmem:[%s10666_s2 + $0x2b0] sm:$0xff] }
 0x4b7   :  { %3779 = vmatpush.msra.mxu2 %v3667_v45  ;;  %3799 = vmatpush.msra.mxu3 %v3668_v63  ;;  %v5377_v45 = vld [vmem:[%s10666_s2 + $0x2b8] sm:$0xff] }
 0x4b8   :  { %3740 = vmatpush.msra.mxu0 %v3661_v6  ;;  %3760 = vmatpush.msra.mxu1 %v3662_v54  ;;  %v5370_v54 = vld [vmem:[%s10666_s2 + $0x280] sm:$0xff] }
 0x4b9   :  { %3780 = vmatpush.msra.mxu2 %v3663_v47  ;;  %3800 = vmatpush.msra.mxu3 %v3664_v38  ;;  %v5371_v47 = vld [vmem:[%s10666_s2 + $0x288] sm:$0xff] }
 0x4ba   :  { %3741 = vmatmul.f32.vlgmr.msra.gmra.mxu0 %v5148_v40  ;;  %3761 = vmatmul.f32.vlgmr.msra.gmra.mxu1 %v5148_v40 }
 0x4bb   :  { %3781 = vmatmul.f32.vlgmr.msra.gmra.mxu2 %v5148_v40  ;;  %3801 = vmatmul.f32.vlgmr.msra.gmra.mxu3 %v5148_v40  ;;  %v3581_v40 = vperm.slane %v10186_v28, 3 }
 0x4bc   :  { %4019 = vmatpush.msrb.mxu0 %v5414_v60  ;;  %4039 = vmatpush.msrb.mxu1 %v5415_v37  ;;  %v5372_v60 = vld [vmem:[%s10666_s2 + $0x290] sm:$0xff]  ;;  %v5373_v37 = vld [vmem:[%s10666_s2 + $0x298] sm:$0xff] }
 0x4bd   :  { %4059 = vmatpush.msrb.mxu2 %v5416_v59  ;;  %4079 = vmatpush.msrb.mxu3 %v5417_v51  ;;  %v5366_v51 = vld [vmem:[%s10666_s2 + $0x260] sm:$0xff] }
 0x4be   :  { %4020 = vmatpush.msrb.mxu0 %v5410_v58  ;;  %4040 = vmatpush.msrb.mxu1 %v5411_v62  ;;  %v5367_v58 = vld [vmem:[%s10666_s2 + $0x268] sm:$0xff]  ;;  %v5368_v62 = vld [vmem:[%s10666_s2 + $0x270] sm:$0xff] }
 0x4bf   :  { %4060 = vmatpush.msrb.mxu2 %v5412_v61  ;;  %4080 = vmatpush.msrb.mxu3 %v5413_v0  ;;  %v5369_v0 = vld [vmem:[%s10666_s2 + $0x278] sm:$0xff] }
 0x4c0   :  { %4021 = vmatpush.msrb.mxu0 %v5406_v57  ;;  %4041 = vmatpush.msrb.mxu1 %v5407_v1  ;;  %v5362_v57 = vld [vmem:[%s10666_s2 + $0x240] sm:$0xff]  ;;  %v5363_v1 = vld [vmem:[%s10666_s2 + $0x248] sm:$0xff] }
 0x4c1   :  { %4061 = vmatpush.msrb.mxu2 %v5408_v3  ;;  %4081 = vmatpush.msrb.mxu3 %v5409_v5  ;;  %v5364_v3 = vld [vmem:[%s10666_s2 + $0x250] sm:$0xff] }
 0x4c2   :  { %4022 = vmatpush.msrb.mxu0 %v5402_v8  ;;  %4042 = vmatpush.msrb.mxu1 %v5403_v9  ;;  %v5365_v8 = vld [vmem:[%s10666_s2 + $0x258] sm:$0xff]  ;;  %v5358_v9 = vld [vmem:[%s10666_s2 + $0x220] sm:$0xff] }
 0x4c3   :  { %4062 = vmatpush.msrb.mxu2 %v5404_v10  ;;  %4082 = vmatpush.msrb.mxu3 %v5405_v7  ;;  %v5359_v10 = vld [vmem:[%s10666_s2 + $0x228] sm:$0xff]  ;;  %v5360_v7 = vld [vmem:[%s10666_s2 + $0x230] sm:$0xff] }
 0x4c4   :  { %4023 = vmatpush.msrb.mxu0 %v5398_v11  ;;  %4043 = vmatpush.msrb.mxu1 %v5399_v12  ;;  %v5361_v12 = vld [vmem:[%s10666_s2 + $0x238] sm:$0xff] }
 0x4c5   :  { %4063 = vmatpush.msrb.mxu2 %v5400_v2  ;;  %4083 = vmatpush.msrb.mxu3 %v5401_v14  ;;  %v5354_v14 = vld [vmem:[%s10666_s2 + $0x200] sm:$0xff] }
 0x4c6   :  { %4024 = vmatpush.msrb.mxu0 %v5394_v15  ;;  %4044 = vmatpush.msrb.mxu1 %v5395_v4  ;;  %v5355_v15 = vld [vmem:[%s10666_s2 + $0x208] sm:$0xff]  ;;  %v5356_v4 = vld [vmem:[%s10666_s2 + $0x210] sm:$0xff] }
 0x4c7   :  { %4064 = vmatpush.msrb.mxu2 %v5396_v19  ;;  %4084 = vmatpush.msrb.mxu3 %v5397_v16 }
 0x4c8   :  { %4025 = vmatpush.msrb.mxu0 %v5390_v22  ;;  %4045 = vmatpush.msrb.mxu1 %v5391_v24  ;;  %v5350_v22 = vld [vmem:[%s10665_s1 + $0x3e0] sm:$0xff]  ;;  %v5351_v24 = vld [vmem:[%s10665_s1 + $0x3e8] sm:$0xff] }
 0x4c9   :  { %4065 = vmatpush.msrb.mxu2 %v5392_v25  ;;  %4085 = vmatpush.msrb.mxu3 %v5393_v26  ;;  %v5352_v26 = vld [vmem:[%s10665_s1 + $0x3f0] sm:$0xff] }
 0x4ca   :  { %4026 = vmatpush.msrb.mxu0 %v5386_v29  ;;  %4046 = vmatpush.msrb.mxu1 %v5387_v20  ;;  %v5353_v29 = vld [vmem:[%s10665_s1 + $0x3f8] sm:$0xff]  ;;  %v5346_v20 = vld [vmem:[%s10665_s1 + $0x3c0] sm:$0xff] }
 0x4cb   :  { %4066 = vmatpush.msrb.mxu2 %v5388_v30  ;;  %4086 = vmatpush.msrb.mxu3 %v5389_v41  ;;  %v5347_v30 = vld [vmem:[%s10665_s1 + $0x3c8] sm:$0xff]  ;;  %v5348_v41 = vld [vmem:[%s10665_s1 + $0x3d0] sm:$0xff] }
 0x4cc   :  { %4027 = vmatpush.msrb.mxu0 %v5382_v27  ;;  %4047 = vmatpush.msrb.mxu1 %v5383_v32  ;;  %v5342_v27 = vld [vmem:[%s10665_s1 + $0x3a0] sm:$0xff]  ;;  %v5343_v32 = vld [vmem:[%s10665_s1 + $0x3a8] sm:$0xff] }
 0x4cd   :  { %4067 = vmatpush.msrb.mxu2 %v5384_v13  ;;  %4087 = vmatpush.msrb.mxu3 %v5385_v35  ;;  %v5345_v13 = vld [vmem:[%s10665_s1 + $0x3b8] sm:$0xff]  ;;  %v5339_v35 = vld [vmem:[%s10665_s1 + $0x388] sm:$0xff] }
 0x4ce   :  { %4028 = vmatpush.msrb.mxu0 %v5378_v42  ;;  %4048 = vmatpush.msrb.mxu1 %v5379_v43 }
 0x4cf   :  { %4068 = vmatpush.msrb.mxu2 %v5380_v44  ;;  %4088 = vmatpush.msrb.mxu3 %v5381_v46  ;;  %v5341_v44 = vld [vmem:[%s10665_s1 + $0x398] sm:$0xff] }
 0x4d0   :  { %4029 = vmatpush.msrb.mxu0 %v5374_v52  ;;  %4049 = vmatpush.msrb.mxu1 %v5375_v53  ;;  %v5336_v52 = vld [vmem:[%s10665_s1 + $0x370] sm:$0xff] }
 0x4d1   :  { %4069 = vmatpush.msrb.mxu2 %v5376_v50  ;;  %4089 = vmatpush.msrb.mxu3 %v5377_v45  ;;  %v5337_v45 = vld [vmem:[%s10665_s1 + $0x378] sm:$0xff] }
 0x4d2   :  { %4030 = vmatpush.msrb.mxu0 %v5370_v54  ;;  %4050 = vmatpush.msrb.mxu1 %v5371_v47 }
 0x4d3   :  { %4070 = vmatpush.msrb.mxu2 %v5372_v60  ;;  %4090 = vmatpush.msrb.mxu3 %v5373_v37  ;;  %v5143_v60 = vclamps-f32 %v9857_v56, 50.0  ;;  %v5306_v56 = vld [vmem:[%s10665_s1 + $0x280] sm:$0xff] }
 0x4d4   :  { %4031 = vmatpush.msrb.mxu0 %v5366_v51  ;;  %4051 = vmatpush.msrb.mxu1 %v5367_v58 }
 0x4d5   :  { %4071 = vmatpush.msrb.mxu2 %v5368_v62  ;;  %4091 = vmatpush.msrb.mxu3 %v5369_v0  ;;  %v5326_v62 = vld [vmem:[%s10665_s1 + $0x320] sm:$0xff] }
 0x4d6   :  { %4032 = vmatpush.msrb.mxu0 %v5362_v57  ;;  %4052 = vmatpush.msrb.mxu1 %v5363_v1 }
 0x4d7   :  { %4072 = vmatpush.msrb.mxu2 %v5364_v3  ;;  %4092 = vmatpush.msrb.mxu3 %v5365_v8  ;;  %v5329_v8 = vld [vmem:[%s10665_s1 + $0x338] sm:$0xff] }
 0x4d8   :  { %4033 = vmatpush.msrb.mxu0 %v5358_v9  ;;  %4053 = vmatpush.msrb.mxu1 %v5359_v10 }
 0x4d9   :  { %4073 = vmatpush.msrb.mxu2 %v5360_v7  ;;  %4093 = vmatpush.msrb.mxu3 %v5361_v12  ;;  %v5284_v12 = vld [vmem:[%s10664_s0 + $0x30] sm:$0xff] }
 0x4da   :  { %4034 = vmatpush.msrb.mxu0 %v5354_v14  ;;  %4054 = vmatpush.msrb.mxu1 %v5355_v15  ;;  %v5323_v14 = vld [vmem:[%s10665_s1 + $0x308] sm:$0xff] }
 0x4db   :  { %4074 = vmatpush.msrb.mxu2 %v5356_v4 }
 0x4dc   :  { %4099 = vmatpush.msra.mxu0 %v5350_v22  ;;  %4119 = vmatpush.msra.mxu1 %v5351_v24 }
 0x4dd   :  { %4139 = vmatpush.msra.mxu2 %v5352_v26 }
 0x4de   :  { %4100 = vmatpush.msra.mxu0 %v5346_v20  ;;  %4120 = vmatpush.msra.mxu1 %v5347_v30  ;;  %v5319_v20 = vld [vmem:[%s10665_s1 + $0x2e8] sm:$0xff]  ;;  %v5293_v30 = vld [vmem:[%s10665_s1 + $0x218] sm:$0xff] }
 0x4df   :  { %4140 = vmatpush.msra.mxu2 %v5348_v41 }
 0x4e0   :  { %4101 = vmatpush.msra.mxu0 %v5342_v27  ;;  %4121 = vmatpush.msra.mxu1 %v5343_v32  ;;  %v5321_v27 = vld [vmem:[%s10665_s1 + $0x2f8] sm:$0xff] }
 0x4e2   :  { %4122 = vmatpush.msra.mxu1 %v5339_v35 }
 0x513   :  { %v3433_v21 = vpop.f32.mrf.mxu0  ;;  %v3453_v18 = vpop.f32.mrf.mxu1 }
 0x51a   :  { %v3493_v31 = vpop.f32.mrf.mxu3  ;;  %v10247_v38 = vpop.f32.mrf.mxu2 }
 0x525   :  { %v3513_v34 = vpop.f32.mrf.mxu0  ;;  %v3533_v33 = vpop.f32.mrf.mxu1 }
 0x526   :  { %v3514_v36 = vadd.f32 %v3513_v34, %v3433_v21  ;;  %v3534_v39 = vadd.f32 %v3533_v33, %v3453_v18  ;;  %v5357_v18 = vld [vmem:[%s10666_s2 + $0x218] sm:$0xff]  ;;  %v5338_v33 = vld [vmem:[%s10665_s1 + $0x380] sm:$0xff] }
 0x527   :  { %4094 = vmatpush.msrb.mxu3 %v5357_v18  ;;  %4102 = vmatpush.msra.mxu0 %v5338_v33  ;;  %v5325_v18 = vld [vmem:[%s10665_s1 + $0x318] sm:$0xff]  ;;  %v5314_v33 = vld [vmem:[%s10665_s1 + $0x2c0] sm:$0xff] }
 0x528   :  { %v3586_v48 = vadd.f32 %v3578_v23, %v3514_v36  ;;  %v3587_v49 = vadd.f32 %v3579_v17, %v3534_v39  ;;  %v3580_v23 = vperm.slane %v10186_v28, 2  ;;  %v5349_v17 = vld [vmem:[%s10665_s1 + $0x3d8] sm:$0xff]  ;;  %v5344_v28 = vld [vmem:[%s10665_s1 + $0x3b0] sm:$0xff] }
 0x529   :  { %4159 = vmatpush.msra.mxu3 %v5353_v29  ;;  %v5340_v36 = vld [vmem:[%s10665_s1 + $0x390] sm:$0xff]  ;;  %4141 = vmatpush.msra.mxu2 %v5344_v28  ;;  %v5318_v29 = vld [vmem:[%s10665_s1 + $0x2e0] sm:$0xff] }
 0x52a   :  { %v5279_v63 = vmul.f32 -1.442695, %v3586_v48  ;;  %v5280_v6 = vmul.f32 -1.442695, %v3587_v49  ;;  %v5334_v48 = vld [vmem:[%s10665_s1 + $0x360] sm:$0xff]  ;;  %v5335_v49 = vld [vmem:[%s10665_s1 + $0x368] sm:$0xff] }
 0x52b   :  { %4160 = vmatpush.msra.mxu3 %v5349_v17  ;;  %4142 = vmatpush.msra.mxu2 %v5340_v36  ;;  %v5320_v17 = vld [vmem:[%s10665_s1 + $0x2f0] sm:$0xff] }
 0x52c   :  { %5605 = vpow2.f32 %v5279_v63  ;;  %v3573_v59 = vpop.f32.mrf.mxu3  ;;  %v3553_v21 = vpop.f32.mrf.mxu2  ;;  %v5330_v63 = vld [vmem:[%s10665_s1 + $0x340] sm:$0xff]  ;;  %4103 = vmatpush.msra.mxu0 %v5334_v48  ;;  %4123 = vmatpush.msra.mxu1 %v5335_v49 }
 0x52d   :  { %5607 = vpow2.f32 %v5280_v6  ;;  %v3574_v61 = vadd.f32 %v3573_v59, %v3493_v31  ;;  %v3554_v31 = vadd.f32 %v3553_v21, %v10247_v38  ;;  %4161 = vmatpush.msra.mxu3 %v5345_v13  ;;  %v5331_v6 = vld [vmem:[%s10665_s1 + $0x348] sm:$0xff]  ;;  %v5332_v38 = vld [vmem:[%s10665_s1 + $0x350] sm:$0xff]  ;;  %4143 = vmatpush.msra.mxu2 %v5336_v52 }
 0x52e   :  { %4104 = vmatpush.msra.mxu0 %v5330_v63  ;;  %4124 = vmatpush.msra.mxu1 %v5331_v6  ;;  %v5324_v21 = vld [vmem:[%s10665_s1 + $0x310] sm:$0xff] }
 0x52f   :  { %v3589_v5 = vadd.f32 %v3581_v40, %v3574_v61  ;;  %v3588_v39 = vadd.f32 %v3580_v23, %v3554_v31  ;;  %4162 = vmatpush.msra.mxu3 %v5341_v44  ;;  %v5333_v40 = vld [vmem:[%s10665_s1 + $0x358] sm:$0xff]  ;;  %v5327_v61 = vld [vmem:[%s10665_s1 + $0x328] sm:$0xff]  ;;  %4144 = vmatpush.msra.mxu2 %v5332_v38  ;;  %v5316_v44 = vld [vmem:[%s10665_s1 + $0x2d0] sm:$0xff] }
 0x530   :  { %4105 = vmatpush.msra.mxu0 %v5326_v62  ;;  %4125 = vmatpush.msra.mxu1 %v5327_v61  ;;  %v5302_v62 = vld [vmem:[%s10665_s1 + $0x260] sm:$0xff]  ;;  %v5303_v61 = vld [vmem:[%s10665_s1 + $0x268] sm:$0xff] }
 0x531   :  { %v5281_v11 = vmul.f32 -1.442695, %v3589_v5  ;;  %4163 = vmatpush.msra.mxu3 %v5337_v45  ;;  %v5328_v5 = vld [vmem:[%s10665_s1 + $0x330] sm:$0xff] }
 0x532   :  { %v5606_v2 = vpop.eup %5605  ;;  %4145 = vmatpush.msra.mxu2 %v5328_v5  ;;  %4126 = vmatpush.msra.mxu1 %v5323_v14  ;;  %v5298_v5 = vld [vmem:[%s10665_s1 + $0x240] sm:$0xff]  ;;  %v5295_v14 = vld [vmem:[%s10665_s1 + $0x228] sm:$0xff] }
 0x533   :  { %v5608_v19 = vpop.eup %5607  ;;  %v10301_v16 = vadd.f32 1.0, %v5606_v2  ;;  %5609 = vpow2.f32 %v5281_v11  ;;  %4164 = vmatpush.msra.mxu3 %v5333_v40  ;;  %v5322_v2 = vld [vmem:[%s10665_s1 + $0x300] sm:$0xff]  ;;  %v5307_v40 = vld [vmem:[%s10665_s1 + $0x288] sm:$0xff] }
 0x534   :  { %v10312_v25 = vadd.f32 1.0, %v5608_v19  ;;  %4106 = vmatpush.msra.mxu0 %v5322_v2  ;;  %4146 = vmatpush.msra.mxu2 %v5324_v21  ;;  %v5294_v2 = vld [vmem:[%s10665_s1 + $0x220] sm:$0xff] }
 0x535   :  { %5611 = vrcp.f32 %v10301_v16  ;;  %v3603_v59 = vand.u32 2147483647, %v10301_v16  ;;  %v3605_v57 = vand.u32 2147483648, %v10301_v16  ;;  %4165 = vmatpush.msra.mxu3 %v5329_v8  ;;  %4127 = vmatpush.msra.mxu1 %v5319_v20  ;;  %v5299_v8 = vld [vmem:[%s10665_s1 + $0x248] sm:$0xff]  ;;  %v5292_v20 = vld [vmem:[%s10665_s1 + $0x210] sm:$0xff] }
 0x536   :  { %5613 = vrcp.f32 %v10312_v25  ;;  %v3624_v9 = vand.u32 2147483648, %v10312_v25  ;;  %v3622_v7 = vand.u32 2147483647, %v10312_v25  ;;  %vm3618_vm7 = vweird.f32 %v10312_v25  ;;  %4107 = vmatpush.msra.mxu0 %v5318_v29  ;;  %4147 = vmatpush.msra.mxu2 %v5320_v17 }
 0x537   :  { %v3762_v43 = vpop.f32.mrf.mxu1  ;;  %v3742_v11 = vpop.f32.mrf.mxu0  ;;  %v3606_v41 = vor.u32 1.1754944e-38, %v3605_v57  ;;  %vm3604_vm8 = vcmp.eq.f32.partialorder %v3603_v59, 8.507059e+37  ;;  %4166 = vmatpush.msra.mxu3 %v5325_v18  ;;  %v5308_v59 = vld [vmem:[%s10665_s1 + $0x290] sm:$0xff]  ;;  %v5290_v18 = vld [vmem:[%s10665_s1 + $0x200] sm:$0xff] }
 0x538   :  { %v3809_v47 = vrot.slane %v3762_v43, 6  ;;  %v3625_v13 = vor.u32 1.1754944e-38, %v3624_v9  ;;  %vm3623_vm9 = vcmp.eq.f32.partialorder %v3622_v7, 8.507059e+37  ;;  %4108 = vmatpush.msra.mxu0 %v5314_v33  ;;  %4148 = vmatpush.msra.mxu2 %v5316_v44  ;;  %v5304_v57 = vld [vmem:[%s10665_s1 + $0x270] sm:$0xff]  ;;  %v5301_v7 = vld [vmem:[%s10665_s1 + $0x258] sm:$0xff] }
 0x539   :  { %v5610_v34 = vpop.eup %5609  ;;  %4167 = vmatpush.msra.mxu3 %v5321_v27 }
 0x53a   :  { %v10357_v42 = vadd.f32 1.0, %v5610_v34  ;;  %v3812_v4 = vsel %vm189_vm0, %v3742_v11, %v3809_v47  ;;  %vm3599_vm0 = vweird.f32 %v10301_v16  ;;  %v5313_v47 = vld [vmem:[%s10665_s1 + $0x2b8] sm:$0xff] }
 0x53b   :  { %v10362_v46 = vpop.eup %5611 }
 0x53c   :  { %v10373_v53 = vpop.eup %5613  ;;  %v3595_v50 = vmul.f32 %v10362_v46, %v10301_v16  ;;  %5615 = vrcp.f32 %v10357_v42  ;;  %vm3600_vm5 = vweird.f32 %v10362_v46  ;;  %vm3638_vm11 = vweird.f32 %v10357_v42 }
 0x53d   :  { %v3614_v54 = vmul.f32 %v10373_v53, %v10312_v25  ;;  %5617 = vtanh.f32 %v3588_v39  ;;  %vm3619_vm6 = vweird.f32 %v10373_v53  ;;  %v5315_v25 = vld [vmem:[%s10665_s1 + $0x2c8] sm:$0xff] }
 0x53e   :  { %v3596_v37 = vsub.f32 1.0, %v3595_v50  ;;  %v3782_v51 = vpop.f32.mrf.mxu2  ;;  %v3802_v58 = vpop.f32.mrf.mxu3  ;;  %v5311_v50 = vld [vmem:[%s10665_s1 + $0x2a8] sm:$0xff]  ;;  %4128 = vmatpush.msra.mxu1 %v5315_v25 }
 0x53f   :  { %v3615_v0 = vsub.f32 1.0, %v3614_v54  ;;  %v3810_v1 = vrot.slane %v3782_v51, 4  ;;  %v3811_v3 = vrot.slane %v3802_v58, 2  ;;  %v5312_v54 = vld [vmem:[%s10665_s1 + $0x2b0] sm:$0xff]  ;;  %v5309_v51 = vld [vmem:[%s10665_s1 + $0x298] sm:$0xff] }
 0x540   :  { %v3597_v10 = vmul.f32 %v10362_v46, %v3596_v37  ;;  %4129 = vmatpush.msra.mxu1 %v5311_v50  ;;  %4149 = vmatpush.msra.mxu2 %v5312_v54  ;;  %v5149_v54 = vclamps-f32 %v9940_v55, 50.0 }
 0x541   :  { %v3616_v15 = vmul.f32 %v10373_v53, %v3615_v0  ;;  %v3813_v19 = vsel %vm191_vm1, %v3810_v1, %v3811_v3  ;;  %vm10447_vm1 = vmor %vm3599_vm0, %vm3600_vm5  ;;  %v3644_v0 = vand.u32 2147483648, %v10357_v42  ;;  %v5305_v1 = vld [vmem:[%s10665_s1 + $0x278] sm:$0xff]  ;;  %v3642_v3 = vand.u32 2147483647, %v10357_v42 }
 0x542   :  { %v10433_v22 = vpop.eup %5615  ;;  %v3598_v24 = vadd.f32 %v10362_v46, %v3597_v10  ;;  %v3814_v26 = vsel %vm193_vm2, %v3812_v4, %v3813_v19  ;;  %vm10466_vm2 = vmor %vm3618_vm7, %vm3619_vm6  ;;  %4130 = vmatpush.msra.mxu1 %v5307_v40  ;;  %4150 = vmatpush.msra.mxu2 %v5308_v59  ;;  %v5296_v4 = vld [vmem:[%s10665_s1 + $0x230] sm:$0xff]  ;;  %v5297_v19 = vld [vmem:[%s10665_s1 + $0x238] sm:$0xff] }
 0x543   :  { %v3617_v16 = vadd.f32 %v10373_v53, %v3616_v15  ;;  %v3634_v31 = vmul.f32 %v10433_v22, %v10357_v42  ;;  %v10454_v23 = vadd.f32 %v5284_v12, %v3814_v26  ;;  %v5618_v32 = vpop.eup %5617  ;;  %vm3639_vm10 = vweird.f32 %v10433_v22  ;;  %v5300_v42 = vld [vmem:[%s10665_s1 + $0x250] sm:$0xff] }
 0x544   :  { %v3602_v34 = vsel %vm10447_vm1, %v10362_v46, %v3598_v24  ;;  %v5317_v46 = vld [vmem:[%s10665_s1 + $0x2d8] sm:$0xff]  ;;  %vm10546_vm12 = vmor %vm3638_vm11, %vm3639_vm10  ;;  %4131 = vmatpush.msra.mxu1 %v5303_v61  ;;  %4151 = vmatpush.msra.mxu2 %v5304_v57  ;;  %v3645_v15 = vor.u32 1.1754944e-38, %v3644_v0  ;;  %vm3643_vm13 = vcmp.eq.f32.partialorder %v3642_v3, 8.507059e+37 }
 0x545   :  { %v3607_v35 = vsel %vm3604_vm8, %v3606_v41, %v3602_v34  ;;  %v3621_v36 = vsel %vm10466_vm2, %v10373_v53, %v3617_v16  ;;  %v3635_v39 = vsub.f32 1.0, %v3634_v31  ;;  %v5285_v43 = vmul.f32 -1.442695, %v10454_v23  ;;  %v5310_v53 = vld [vmem:[%s10665_s1 + $0x2a0] sm:$0xff]  ;;  %4168 = vmatpush.msra.mxu3 %v5317_v46 }
 0x546   :  { %v3626_v48 = vsel %vm3623_vm9, %v3625_v13, %v3621_v36  ;;  %v3649_v49 = vmul.f32 %v5618_v32, %v3607_v35  ;;  %v3837_v52 = vrot.slane %v10454_v23, 2  ;;  %v3861_v63 = vrot.slane %v10454_v23, 6  ;;  %4109 = vmatpush.msra.mxu0 %v5310_v53  ;;  %4132 = vmatpush.msra.mxu1 %v5299_v8 }
 0x547   :  { %v3648_v45 = vmul.f32 %v5143_v60, %v3626_v48  ;;  %5619 = vpow2.f32 %v5285_v43  ;;  %v3636_v6 = vmul.f32 %v10433_v22, %v3635_v39  ;;  %4169 = vmatpush.msra.mxu3 %v5313_v47  ;;  %4152 = vmatpush.msra.mxu2 %v5300_v42  ;;  %v3858_v34 = vrot.slane %v10454_v23, 4  ;;  %v10595_v42 = vld [vmem:[%s10667_s3 + $0x4] sm:$0xf] }
 0x548   :  { %v5286_v38 = vmul.f32 -1.442695, %v3837_v52  ;;  %v5287_v37 = vmul.f32 -1.442695, %v3861_v63  ;;  %4110 = vmatpush.msra.mxu0 %v5306_v56  ;;  %4133 = vmatpush.msra.mxu1 %v5295_v14  ;;  %v4182_v14 = vperm.slane %v10595_v42, 1 }
 0x549   :  { %v10512_v60 = vadd.f32 %v3649_v49, %v3648_v45  ;;  %v3637_v58 = vadd.f32 %v10433_v22, %v3636_v6  ;;  %4170 = vmatpush.msra.mxu3 %v5309_v51  ;;  %4153 = vmatpush.msra.mxu2 %v5296_v4 }
 0x54a   :  { %5621 = vpow2.f32 %v5286_v38  ;;  %4111 = vmatpush.msra.mxu0 %v5302_v62 }
 0x54b   :  { %5623 = vtanh.f32 %v10512_v60  ;;  %v3641_v12 = vsel %vm10546_vm12, %v10433_v22, %v3637_v58  ;;  %4171 = vmatpush.msra.mxu3 %v5305_v1  ;;  %v5291_v22 = vld [vmem:[%s10665_s1 + $0x208] sm:$0xff]  ;;  %4154 = vmatpush.msra.mxu2 %v5292_v20 }
 0x54c   :  { %5625 = vpow2.f32 %v5287_v37  ;;  %4112 = vmatpush.msra.mxu0 %v5298_v5  ;;  %v3646_v29 = vsel %vm3643_vm13, %v3645_v15, %v3641_v12  ;;  %4134 = vmatpush.msra.mxu1 %v5291_v22  ;;  %v4287_v22 = vld [vmem:[%s10668_s4 + $0x60] sm:$0xff] }
 0x54d   :  { %v5620_v9 = vpop.eup %5619  ;;  %4172 = vmatpush.msra.mxu3 %v5301_v7  ;;  %v4290_v7 = vld [vmem:[%s10668_s4 + $0x78] sm:$0xff] }
 0x54e   :  { %v10556_v11 = vadd.f32 1.0, %v5620_v9  ;;  %4113 = vmatpush.msra.mxu0 %v5294_v2  ;;  %v4181_v2 = vperm.slane %v10595_v42, 0 }
 0x54f   :  { %4173 = vmatpush.msra.mxu3 %v5297_v19  ;;  %v4288_v19 = vld [vmem:[%s10668_s4 + $0x68] sm:$0xff] }
 0x550   :  { %v5622_v21 = vpop.eup %5621  ;;  %5627 = vrcp.f32 %v10556_v11  ;;  %4114 = vmatpush.msra.mxu0 %v5290_v18  ;;  %v3832_v36 = vand.u32 2147483648, %v10556_v11  ;;  %v3830_v43 = vand.u32 2147483647, %v10556_v11  ;;  %vm3826_vm15 = vweird.f32 %v10556_v11 }
 0x551   :  { %v5624_v24 = vpop.eup %5623  ;;  %v3842_v26 = vadd.f32 1.0, %v5622_v21  ;;  %4174 = vmatpush.msra.mxu3 %v5293_v30 }
 0x552   :  { %v5626_v41 = vpop.eup %5625  ;;  %v3652_v16 = vmul.f32 %v5624_v24, %v3646_v29  ;;  %v3833_v53 = vor.u32 1.1754944e-38, %v3832_v36  ;;  %vm3831_vm5 = vcmp.eq.f32.partialorder %v3830_v43, 8.507059e+37  ;;  %v4286_v29 = vld [vmem:[%s10668_s4 + $0x58] sm:$0xff] }
 0x553   :  { %5629 = vrcp.f32 %v3842_v26  ;;  %v3866_v31 = vadd.f32 1.0, %v5626_v41  ;;  %v3854_v48 = vand.u32 2147483648, %v3842_v26  ;;  %v3852_v52 = vand.u32 2147483647, %v3842_v26 }
 0x554   :  { %v5282_v17 = vclamps-f32 %v3652_v16, 50.0  ;;  %3658 = vst [vmem:[#allocation2 + $0xa] sm:$0x3] %v3652_v16  ;;  %vm3848_vm6 = vweird.f32 %v3842_v26  ;;  %v4184_v41 = vperm.slane %v10595_v42, 3  ;;  %v4285_v16 = vld [vmem:[%s10668_s4 + $0x50] sm:$0xff] }
 0x555   :  { %5631 = vrcp.f32 %v3866_v31  ;;  %v3855_v6 = vor.u32 1.1754944e-38, %v3854_v48  ;;  %vm3853_vm0 = vcmp.eq.f32.partialorder %v3852_v52, 8.507059e+37  ;;  %v3878_v62 = vand.u32 2147483648, %v3866_v31  ;;  %v4279_v48 = vld [vmem:[%s10668_s4 + $0x20] sm:$0xff] }
 0x556   :  { %v5628_v27 = vpop.eup %5627  ;;  %4035 = vmatmul.f32.vlgmr.msrb.gmra.mxu0 %v5282_v17  ;;  %4055 = vmatmul.f32.vlgmr.msrb.gmra.mxu1 %v5282_v17  ;;  %5633 = vtanh.f32 %v3858_v34  ;;  %vm3872_vm2 = vweird.f32 %v3866_v31  ;;  %v3876_v0 = vand.u32 2147483647, %v3866_v31  ;;  %v4183_v52 = vperm.slane %v10595_v42, 2 }
 0x557   :  { %v3822_v32 = vmul.f32 %v5628_v27, %v10556_v11  ;;  %4075 = vmatmul.f32.vlgmr.msrb.gmra.mxu2 %v5282_v17  ;;  %4095 = vmatmul.f32.vlgmr.msrb.gmra.mxu3 %v5282_v17  ;;  %vm3827_vm14 = vweird.f32 %v5628_v27  ;;  %v3879_v1 = vor.u32 1.1754944e-38, %v3878_v62  ;;  %v4289_v11 = vld [vmem:[%s10668_s4 + $0x70] sm:$0xff] }
 0x558   :  { %vm3828_vm3 = vmor %vm3826_vm15, %vm3827_vm14  ;;  %vm3877_vm9 = vcmp.eq.f32.partialorder %v3876_v0, 8.507059e+37  ;;  %4317 = vmatpush.msrb.mxu0 %v4290_v7  ;;  %4381 = vmatpush.msrb.mxu1 %v4290_v7 }
 0x559   :  { %v5630_v28 = vpop.eup %5629  ;;  %v3823_v13 = vsub.f32 1.0, %v3822_v32  ;;  %v4284_v32 = vld [vmem:[%s10668_s4 + $0x48] sm:$0xff] }
 0x55a   :  { %v3844_v33 = vmul.f32 %v5630_v28, %v3842_v26  ;;  %vm3849_vm4 = vweird.f32 %v5630_v28  ;;  %4318 = vmatpush.msrb.mxu0 %v4289_v11  ;;  %4382 = vmatpush.msrb.mxu1 %v4289_v11 }
 0x55b   :  { %v5632_v25 = vpop.eup %5631  ;;  %v3824_v35 = vmul.f32 %v5628_v27, %v3823_v13  ;;  %vm3850_vm7 = vmor %vm3848_vm6, %vm3849_vm4  ;;  %v4283_v13 = vld [vmem:[%s10668_s4 + $0x40] sm:$0xff] }
 0x55c   :  { %v3845_v39 = vsub.f32 1.0, %v3844_v33  ;;  %v3868_v44 = vmul.f32 %v5632_v25, %v3866_v31  ;;  %v5634_v38 = vpop.eup %5633  ;;  %vm3873_vm1 = vweird.f32 %v5632_v25  ;;  %4319 = vmatpush.msrb.mxu0 %v4288_v19  ;;  %4383 = vmatpush.msrb.mxu1 %v4288_v19  ;;  %v4282_v33 = vld [vmem:[%s10668_s4 + $0x38] sm:$0xff] }
 0x55d   :  { %v3825_v46 = vadd.f32 %v5628_v27, %v3824_v35  ;;  %vm3874_vm8 = vmor %vm3872_vm2, %vm3873_vm1  ;;  %vm4299_vm1 = vcmask 1041409   ;;  %vm4302_vm2 = vcmask 1042434  }
 0x55e   :  { %v3846_v49 = vmul.f32 %v5630_v28, %v3845_v39  ;;  %v3869_v50 = vsub.f32 1.0, %v3868_v44  ;;  %4320 = vmatpush.msrb.mxu0 %v4287_v22  ;;  %4384 = vmatpush.msrb.mxu1 %v4287_v22  ;;  %v4281_v39 = vld [vmem:[%s10668_s4 + $0x30] sm:$0xff] }
 0x55f   :  { %v3829_v23 = vsel %vm3828_vm3, %v5628_v27, %v3825_v46  ;;  %v4280_v46 = vld [vmem:[%s10668_s4 + $0x28] sm:$0xff] }
 0x560   :  { %v3847_v45 = vadd.f32 %v5630_v28, %v3846_v49  ;;  %v3834_v63 = vsel %vm3831_vm5, %v3833_v53, %v3829_v23  ;;  %v3870_v40 = vmul.f32 %v5632_v25, %v3869_v50  ;;  %4321 = vmatpush.msrb.mxu0 %v4286_v29  ;;  %4385 = vmatpush.msrb.mxu1 %v4286_v29  ;;  %v4278_v23 = vld [vmem:[%s10668_s4 + $0x18] sm:$0xff]  ;;  %v4277_v50 = vld [vmem:[%s10668_s4 + $0x10] sm:$0xff] }
 0x561   :  { %v3883_v59 = vmul.f32 %v5634_v38, %v3834_v63 }
 0x562   :  { %v3851_v47 = vsel %vm3850_vm7, %v5630_v28, %v3847_v45  ;;  %v3871_v58 = vadd.f32 %v5632_v25, %v3870_v40  ;;  %4322 = vmatpush.msrb.mxu0 %v4285_v16  ;;  %4386 = vmatpush.msrb.mxu1 %v4285_v16  ;;  %v4275_v40 = vld [vmem:[%s10668_s4] sm:$0xff] }
 0x563   :  { %v3856_v56 = vsel %vm3853_vm0, %v3855_v6, %v3851_v47  ;;  %v4339_v16 = vld [vmem:[#allocation2 + $0x3] sm:$0x1] }
 0x564   :  { %v3882_v37 = vmul.f32 %v5149_v54, %v3856_v56  ;;  %v3875_v57 = vsel %vm3874_vm8, %v5632_v25, %v3871_v58  ;;  %4323 = vmatpush.msrb.mxu0 %v4284_v32  ;;  %4387 = vmatpush.msrb.mxu1 %v4284_v32  ;;  %v4276_v54 = vld [vmem:[%s10668_s4 + $0x8] sm:$0xff]  ;;  %v4271_v32 = vld [vmem:[#allocation2 + $0x6] sm:$0x1]  ;;  %vm4305_vm8 = vcmask 1043459   ;;  %s5737_s4 = smov [#allocation3]  }
 0x565   :  { %v3880_v3 = vsel %vm3877_vm9, %v3879_v1, %v3875_v57  ;;  %vm4308_vm9 = vcmask 1044484   ;;  %s4409_s10 = sshll.u32 %s5737_s4, 4  ;;  %s4410_s10 = int_to_ptr.vmem [resolvable:$true] %s4409_s10 }
 0x566   :  { %v3884_v51 = vadd.f32 %v3883_v59, %v3882_v37  ;;  %4324 = vmatpush.msrb.mxu0 %v4283_v13  ;;  %4388 = vmatpush.msrb.mxu1 %v4283_v13  ;;  %v4341_v13 = vld [vmem:[#allocation2 + $0x7] sm:$0x1] }
 0x568   :  { %5635 = vtanh.f32 %v3884_v51  ;;  %v5289_v61 = vclamps-f32 %v3884_v51, 50.0  ;;  %4325 = vmatpush.msrb.mxu0 %v4282_v33  ;;  %4389 = vmatpush.msrb.mxu1 %v4282_v33 }
 0x56a   :  { %4263 = vst [vmem:[#allocation5] sm:$0x3] %v5289_v61  ;;  %4326 = vmatpush.msrb.mxu0 %v4281_v39  ;;  %4390 = vmatpush.msrb.mxu1 %v4281_v39 }
 0x56c   :  { %4327 = vmatpush.msrb.mxu0 %v4280_v46  ;;  %4391 = vmatpush.msrb.mxu1 %v4280_v46  ;;  %v4268_v46 = vld [vmem:[#allocation2] sm:$0x1] }
 0x56e   :  { %v5636_v55 = vpop.eup %5635  ;;  %4328 = vmatpush.msrb.mxu0 %v4279_v48  ;;  %4392 = vmatpush.msrb.mxu1 %v4279_v48  ;;  %v4304_v48 = vrot.slane %v4271_v32, 5 }
 0x56f   :  { %v3886_v5 = vmul.f32 %v5636_v55, %v3880_v3 }
 0x570   :  { %4329 = vmatpush.msrb.mxu0 %v4278_v23  ;;  %4393 = vmatpush.msrb.mxu1 %v4278_v23 }
 0x571   :  { %4115 = vmatmul.f32.vlgmr.msra.gmra.mxu0 %v3886_v5  ;;  %4135 = vmatmul.f32.vlgmr.msra.gmra.mxu1 %v3886_v5  ;;  %v5288_v8 = vclamps-f32 %v3886_v5, 50.0 }
 0x572   :  { %4155 = vmatmul.f32.vlgmr.msra.gmra.mxu2 %v3886_v5  ;;  %4175 = vmatmul.f32.vlgmr.msra.gmra.mxu3 %v3886_v5 }
 0x573   :  { %4262 = vst [vmem:[#allocation3] sm:$0x3] %v5288_v8  ;;  %4330 = vmatpush.msrb.mxu0 %v4277_v50  ;;  %4394 = vmatpush.msrb.mxu1 %v4277_v50 }
 0x575   :  { %4331 = vmatpush.msrb.mxu0 %v4276_v54  ;;  %4395 = vmatpush.msrb.mxu1 %v4276_v54 }
 0x577   :  { %4332 = vmatpush.msrb.mxu0 %v4275_v40  ;;  %4396 = vmatpush.msrb.mxu1 %v4275_v40 }
 0x5d3   :  { %v4036_v9 = vpop.f32.mrf.mxu0  ;;  %v4056_v10 = vpop.f32.mrf.mxu1 }
 0x5da   :  { %v4096_v12 = vpop.f32.mrf.mxu3  ;;  %v4076_v31 = vpop.f32.mrf.mxu2 }
 0x5ee   :  { %v4116_v15 = vpop.f32.mrf.mxu0  ;;  %v4136_v4 = vpop.f32.mrf.mxu1 }
 0x5ef   :  { %v4117_v21 = vadd.f32 %v4116_v15, %v4036_v9  ;;  %v4137_v18 = vadd.f32 %v4136_v4, %v4056_v10  ;;  %v5283_v9 = vclamps-f32 %v10512_v60, 50.0 }
 0x5f1   :  { %v4189_v24 = vadd.f32 %v4181_v2, %v4117_v21  ;;  %v4190_v26 = vadd.f32 %v4182_v14, %v4137_v18 }
 0x5f3   :  { %v5419_v20 = vmul.f32 -1.442695, %v4189_v24  ;;  %v5420_v30 = vmul.f32 -1.442695, %v4190_v26 }
 0x5f5   :  { %5637 = vpow2.f32 %v5419_v20  ;;  %v4176_v17 = vpop.f32.mrf.mxu3  ;;  %v4156_v44 = vpop.f32.mrf.mxu2  ;;  %v4269_v20 = vld [vmem:[#allocation2 + $0x2] sm:$0x1] }
 0x5f6   :  { %5639 = vpow2.f32 %v5420_v30  ;;  %v4177_v27 = vadd.f32 %v4176_v17, %v4096_v12  ;;  %v4157_v49 = vadd.f32 %v4156_v44, %v4076_v31  ;;  %v4270_v17 = vld [vmem:[#allocation2 + $0x4] sm:$0x1]  ;;  %v4343_v44 = vld [vmem:[#allocation2 + $0xb] sm:$0x1] }
 0x5f8   :  { %v4192_v28 = vadd.f32 %v4184_v41, %v4177_v27  ;;  %v4191_v6 = vadd.f32 %v4183_v52, %v4157_v49  ;;  %v4340_v27 = vld [vmem:[#allocation2 + $0x5] sm:$0x1]  ;;  %v4372_v49 = vrot.slane %v4341_v13, 5 }
 0x5f9   :  { %v4370_v39 = vrot.slane %v4340_v27, 6 }
 0x5fa   :  { %v5421_v34 = vmul.f32 -1.442695, %v4192_v28  ;;  %v4298_v28 = vrot.slane %v4269_v20, 7 }
 0x5fb   :  { %v5638_v25 = vpop.eup %5637 }
 0x5fc   :  { %v5640_v35 = vpop.eup %5639  ;;  %v4196_v36 = vadd.f32 1.0, %v5638_v25  ;;  %5641 = vpow2.f32 %v5421_v34  ;;  %v4368_v34 = vrot.slane %v4339_v16, 7  ;;  %v4272_v25 = vld [vmem:[#allocation2 + $0x8] sm:$0x1]  ;;  %v4300_v52 = vsel %vm4299_vm1, %v4298_v28, %v4268_v46 }
 0x5fd   :  { %v4215_v43 = vadd.f32 1.0, %v5640_v35  ;;  %v4301_v35 = vrot.slane %v4270_v17, 6  ;;  %v4307_v23 = vrot.slane %v4272_v25, 4 }
 0x5fe   :  { %5643 = vrcp.f32 %v4196_v36  ;;  %v4208_v51 = vand.u32 2147483648, %v4196_v36  ;;  %v4206_v61 = vand.u32 2147483647, %v4196_v36  ;;  %vm4202_vm12 = vweird.f32 %v4196_v36 }
 0x5ff   :  { %5645 = vrcp.f32 %v4215_v43  ;;  %v4227_v58 = vand.u32 2147483648, %v4215_v43  ;;  %v4225_v57 = vand.u32 2147483647, %v4215_v43  ;;  %vm4221_vm13 = vweird.f32 %v4215_v43 }
 0x600   :  { %v4209_v3 = vor.u32 1.1754944e-38, %v4208_v51  ;;  %vm4207_vm3 = vcmp.eq.f32.partialorder %v4206_v61, 8.507059e+37  ;;  %v4303_v54 = vsel %vm4302_vm2, %v4301_v35, %v4300_v52 }
 0x601   :  { %v4228_v10 = vor.u32 1.1754944e-38, %v4227_v58  ;;  %vm4226_vm4 = vcmp.eq.f32.partialorder %v4225_v57, 8.507059e+37 }
 0x602   :  { %v5642_v53 = vpop.eup %5641 }
 0x603   :  { %v4235_v45 = vadd.f32 1.0, %v5642_v53  ;;  %v4338_v53 = vld [vmem:[#allocation2 + $0x1] sm:$0x1] }
 0x604   :  { %v5644_v63 = vpop.eup %5643 }
 0x605   :  { %v5646_v47 = vpop.eup %5645  ;;  %v4198_v38 = vmul.f32 %v5644_v63, %v4196_v36  ;;  %5647 = vrcp.f32 %v4235_v45  ;;  %vm4203_vm10 = vweird.f32 %v5644_v63  ;;  %v4247_v22 = vand.u32 2147483648, %v4235_v45  ;;  %v4342_v36 = vld [vmem:[#allocation2 + $0x9] sm:$0x1] }
 0x606   :  { %v4217_v56 = vmul.f32 %v5646_v47, %v4215_v43  ;;  %5649 = vtanh.f32 %v4191_v6  ;;  %vm4222_vm11 = vweird.f32 %v5646_v47  ;;  %vm4204_vm14 = vmor %vm4202_vm12, %vm4203_vm10  ;;  %vm4241_vm6 = vweird.f32 %v4235_v45  ;;  %v4273_v43 = vld [vmem:[#allocation2 + $0xa] sm:$0x1] }
 0x607   :  { %v4199_v37 = vsub.f32 1.0, %v4198_v38  ;;  %vm4223_vm15 = vmor %vm4221_vm13, %vm4222_vm11  ;;  %v4245_v60 = vand.u32 2147483647, %v4235_v45  ;;  %v4248_v29 = vor.u32 1.1754944e-38, %v4247_v22  ;;  %v4374_v50 = vrot.slane %v4342_v36, 4 }
 0x608   :  { %v4218_v59 = vsub.f32 1.0, %v4217_v56  ;;  %v4376_v6 = vrot.slane %v4343_v44, 3  ;;  %vm4311_vm10 = vcmask 1045509   ;;  %v4306_v56 = vsel %vm4305_vm8, %v4304_v48, %v4303_v54 }
 0x609   :  { %v4200_v62 = vmul.f32 %v5644_v63, %v4199_v37  ;;  %vm4246_vm0 = vcmp.eq.f32.partialorder %v4245_v60, 8.507059e+37  ;;  %vm4314_vm11 = vcmask 1046534  }
 0x60a   :  { %v4219_v0 = vmul.f32 %v5646_v47, %v4218_v59  ;;  %v4309_v59 = vsel %vm4308_vm9, %v4307_v23, %v4306_v56 }
 0x60b   :  { %v5648_v1 = vpop.eup %5647  ;;  %v4201_v55 = vadd.f32 %v5644_v63, %v4200_v62 }
 0x60c   :  { %v4220_v5 = vadd.f32 %v5646_v47, %v4219_v0  ;;  %v4237_v8 = vmul.f32 %v5648_v1, %v4235_v45  ;;  %v5650_v7 = vpop.eup %5649  ;;  %vm4242_vm5 = vweird.f32 %v5648_v1  ;;  %v4310_v45 = vrot.slane %v4273_v43, 3 }
 0x60d   :  { %v4205_v42 = vsel %vm4204_vm14, %v5644_v63, %v4201_v55  ;;  %vm4243_vm7 = vmor %vm4241_vm6, %vm4242_vm5  ;;  %v4369_v63 = vsel %vm4299_vm1, %v4368_v34, %v4338_v53 }
 0x60e   :  { %v4210_v11 = vsel %vm4207_vm3, %v4209_v3, %v4205_v42  ;;  %v4224_v12 = vsel %vm4223_vm15, %v5646_v47, %v4220_v5  ;;  %v4238_v2 = vsub.f32 1.0, %v4237_v8  ;;  %v4371_v47 = vsel %vm4302_vm2, %v4370_v39, %v4369_v63 }
 0x60f   :  { %v4229_v14 = vsel %vm4226_vm4, %v4228_v10, %v4224_v12  ;;  %v4252_v15 = vmul.f32 %v5650_v7, %v4210_v11  ;;  %v4373_v37 = vsel %vm4305_vm8, %v4372_v49, %v4371_v47  ;;  %v4312_v61 = vsel %vm4311_vm10, %v4310_v45, %v4309_v59 }
 0x610   :  { %v4251_v4 = vmul.f32 %v5283_v9, %v4229_v14  ;;  %v4239_v19 = vmul.f32 %v5648_v1, %v4238_v2  ;;  %v4375_v58 = vsel %vm4308_vm9, %v4374_v50, %v4373_v37 }
 0x611   :  { %v4377_v0 = vsel %vm4311_vm10, %v4376_v6, %v4375_v58 }
 0x612   :  { %v4253_v21 = vadd.f32 %v4252_v15, %v4251_v4  ;;  %v4240_v18 = vadd.f32 %v5648_v1, %v4239_v19 }
 0x614   :  { %5651 = vtanh.f32 %v4253_v21  ;;  %v5423_v24 = vclamps-f32 %v4253_v21, 50.0  ;;  %v4244_v26 = vsel %vm4243_vm7, %v5648_v1, %v4240_v18 }
 0x615   :  { %v4249_v41 = vsel %vm4246_vm0, %v4248_v29, %v4244_v26 }
 0x616   :  { %4267 = vst [vmem:[#allocation5 + $0x2] sm:$0x3] %v5423_v24 }
 0x617   :  { %4430 = dma.vmem_to_hbm [thread:$0]  %s4423_s16, 64, %s4425_s5, [#allocation6], %s5738_s13, %s5738_s13, %s5739_s14  }
 0x61a   :  { %v5652_v30 = vpop.eup %5651 }
 0x61b   :  { %v4255_v31 = vmul.f32 %v5652_v30, %v4249_v41 }
 0x61d   :  { %4261 = vst [vmem:[#allocation2 + $0xc] sm:$0x3] %v4255_v31  ;;  %v5422_v33 = vclamps-f32 %v4255_v31, 50.0 }
 0x61f   :  { %4265 = vst [vmem:[#allocation3 + $0x2] sm:$0x3] %v5422_v33 }
 0x620   :  { %4417 = dma.vmem_to_hbm [thread:$0]  %s4410_s10, 64, %s4412_s12, [#allocation4], %s5738_s13, %s5738_s13, %s5739_s14  }
 0x624   :  { %v4274_v38 = vld [vmem:[#allocation2 + $0xc] sm:$0x1]  ;;  %v4344_v40 = vld [vmem:[#allocation2 + $0xd] sm:$0x1] }
 0x625   :  { %v4313_v51 = vrot.slane %v4274_v38, 2  ;;  %v4378_v62 = vrot.slane %v4344_v40, 2 }
 0x627   :  { %v4315_v57 = vsel %vm4314_vm11, %v4313_v51, %v4312_v61  ;;  %v4379_v1 = vsel %vm4314_vm11, %v4378_v62, %v4377_v0 }
 0x628   :  { %4333 = vmatmul.f32.vlgmr.msrb.gmra.mxu0 %v4315_v57  ;;  %4397 = vmatmul.f32.vlgmr.msrb.gmra.mxu1 %v4379_v1 }
 0x6a5   :  { %v4334_v55 = vpop.f32.mrf.mxu0  ;;  %v4398_v3 = vpop.f32.mrf.mxu1 }
 0x6a6   :  { %4337 = vst [vmem:[%s10671_s7] sm:$0x7f] %v4334_v55 }
 0x6a7   :  { %5424 = vst [vmem:[%s10671_s7 + $0x8] sm:$0x7f] %v4398_v3 }
 0x6a8   :  { %5733 = dma.done.wait [#allocation4], 64  }
 0x6a9   :  { %5734 = vsyncadd [#allocation4], 4294967232 }
 0x6aa   :  { %5735 = dma.done.wait [#allocation6], 64  }
 0x6ab   :  { %5736 = vsyncadd [#allocation6], 4294967232 }
 0x6ac   :  { %4441 = vsyncpa [#allocation4], 1 }
 0x6ad   :  { %4442 = vsyncpa [#allocation6], 1 }

</bundles_post_ra>
